<compile_context>
chip_gen: v5e
topology: v5e:2x2
jax: 0.10.0
libtpu: 0.0.40
codegen_flags: <defaults>
</compile_context>

<pallas_src>
import math

import jax
import jax.numpy as jnp
from jax.experimental import pallas as pl
from jax.experimental.pallas import tpu as pltpu


# ----------------------------------------------------------------------------
# GridEncoder (hash grid) — parameter construction + vectorized forward (XLA).
# ----------------------------------------------------------------------------

_PRIMES = (1, 2654435761, 805459861)  # tiny-cuda-nn fast_hash primes (3D)


def build_grid_encoder(key, *, input_dim, num_levels, level_dim,
                       base_resolution, log2_hashmap_size, desired_resolution,
                       align_corners=False):
    per_level_scale = 2.0 ** (
        math.log2(desired_resolution / base_resolution) / (num_levels - 1))
    S = math.log2(per_level_scale)
    max_params = 2 ** log2_hashmap_size

    offsets = [0]
    level_scale, level_strides = [], []
    level_hashmap_size, level_use_hash = [], []
    for l in range(num_levels):
        # --- table-size bookkeeping (same formula as torch-ngp's ctor) ------
        resolution_ctor = int(math.ceil(base_resolution * per_level_scale ** l))
        side_ctor = resolution_ctor if align_corners else resolution_ctor + 1
        params_in_level = min(max_params, side_ctor ** input_dim)
        params_in_level = int(math.ceil(params_in_level / 8) * 8)
        offsets.append(offsets[-1] + params_in_level)

        # --- forward-pass constants (same formula as torch-ngp's kernel) ----
        scale = 2.0 ** (l * S) * base_resolution - 1.0
        resolution = int(math.ceil(scale)) + 1
        side = resolution if align_corners else resolution + 1
        level_scale.append(scale)
        level_strides.append([(side ** d) & 0xFFFFFFFF for d in range(input_dim)])
        level_hashmap_size.append(params_in_level)
        level_use_hash.append((side ** input_dim) > params_in_level)

    total_params = offsets[-1]
    # torch-ngp init: uniform(-1e-4, 1e-4); stored bf16 to halve gather traffic.
    embeddings = jax.random.uniform(
        key, (total_params, level_dim), jnp.float32, -1e-4, 1e-4
    ).astype(jnp.bfloat16)

    cfg = dict(input_dim=input_dim, num_levels=num_levels, level_dim=level_dim,
               align_corners=align_corners, offsets=offsets,
               level_scale=level_scale, level_strides=level_strides,
               level_hashmap_size=level_hashmap_size,
               level_use_hash=level_use_hash)
    return embeddings, cfg


def grid_encode(x, embeddings, cfg, out_dtype=jnp.bfloat16):
    """x: [N, D] in [-1, 1] -> points-major encoding [N, L*C] (out_dtype).

    All L levels are evaluated at once, so the trilinear-interp lookup is
    2**D (= 8) XLA gathers over the full table instead of 2**D * L, and the
    output needs no transpose/relayout before the Pallas MLP kernel.
    """
    D = cfg["input_dim"]
    L = cfg["num_levels"]
    C = cfg["level_dim"]
    N = x.shape[0]

    scale = jnp.asarray(cfg["level_scale"], jnp.float32)           # [L]
    strides = jnp.asarray(cfg["level_strides"], jnp.uint32)        # [L, D]
    hmsize = jnp.asarray(cfg["level_hashmap_size"], jnp.uint32)    # [L]
    use_hash = jnp.asarray(cfg["level_use_hash"], jnp.bool_)       # [L]
    level_off = jnp.asarray(cfg["offsets"][:-1], jnp.int32)        # [L]
    primes = jnp.asarray(_PRIMES[:D], jnp.uint32)                  # [D]

    x01 = (x + 1.0) * 0.5                                          # bound = 1
    shift = 0.0 if cfg["align_corners"] else 0.5
    pos = x01[:, None, :] * scale[None, :, None] + shift           # [N, L, D]
    pos_floor = jnp.floor(pos)
    frac = pos - pos_floor                                         # [N, L, D]
    pos_grid = pos_floor.astype(jnp.uint32)                        # [N, L, D]

    result = jnp.zeros((N, L, C), jnp.float32)
    for corner in range(2 ** D):
        bits = [(corner >> d) & 1 for d in range(D)]
        w = None
        lin = jnp.zeros((N, L), jnp.uint32)
        hsh = jnp.zeros((N, L), jnp.uint32)
        for d in range(D):
            fd = frac[..., d]
            wd = fd if bits[d] else (1.0 - fd)
            w = wd if w is None else w * wd
            cg = pos_grid[..., d] + jnp.uint32(bits[d])
            lin = lin + cg * strides[None, :, d]
            hsh = hsh ^ (cg * primes[d])
        idx = jnp.where(use_hash[None, :], hsh, lin) % hmsize[None, :]
        flat = idx.astype(jnp.int32) + level_off[None, :]           # [N, L]
        vals = jnp.take(embeddings, flat.reshape(-1), axis=0)       # [N*L, C]
        result = result + w[..., None] * vals.reshape(N, L, C).astype(jnp.float32)
    return result.reshape(N, L * C).astype(out_dtype)               # [N, L*C]


# ----------------------------------------------------------------------------
# MLP backbone — Pallas TPU kernel (all layers fused, tiled over points).
# Activations run features-major in-kernel: points live in lanes.
# ----------------------------------------------------------------------------

def make_mlp_kernel(num_hidden):
    """num_hidden = number of Linear+ReLU layers; the final 1-wide layer is a
    VPU multiply + sublane reduce emitting a lane-dense (1, tile_n) block."""
    def kernel(x_ref, *refs):
        o_ref = refs[-1]
        xb = x_ref[...]                                     # (T, in_dim) bf16
        w0 = refs[0][...]                                   # (hid, in)  bf16
        b0 = refs[1][...]                                   # (hid, 1)   f32
        # Layer 0: contract the shared in_dim (last axis of BOTH operands) on
        # the MXU (A @ B.T form, like flash-attention's q/k dot).  This turns
        # the points-major encoding into the features-major (hid, T)
        # activation with no HBM relayout and no separate in-kernel transpose.
        z = jax.lax.dot_general(w0, xb, (((1,), (1,)), ((), ())),
                                preferred_element_type=jnp.float32) + b0
        h = jnp.maximum(z, 0.0)                             # (hid, T) f32
        for l in range(1, num_hidden):
            w = refs[2 * l][...]                            # (out, in)  bf16
            b = refs[2 * l + 1][...]                        # (out, 1)   f32
            z = jnp.dot(w, h.astype(jnp.bfloat16),
                        preferred_element_type=jnp.float32) + b
            h = jnp.maximum(z, 0.0)
        # Final out_dim=1 layer on the VPU: per-lane multiply + sublane reduce
        # keeps the output lane-dense and leaves the MXU to the 128-wide work.
        w_col = refs[2 * num_hidden][...]                   # (hid, 1) f32
        b_out = refs[2 * num_hidden + 1][...]               # (1, 1)   f32
        out = jnp.sum(h * w_col, axis=0, keepdims=True) + b_out   # (1, T)
        o_ref[...] = out.astype(o_ref.dtype)
    return kernel


def prepare_mlp_params(weights, biases):
    """Torch-layout f32 params -> kernel-ready params (cast/reshape ONCE)."""
    num_hidden = len(weights) - 1
    return dict(
        ws=[w.astype(jnp.bfloat16) for w in weights[:num_hidden]],    # (out,in)
        bs=[b.reshape(-1, 1).astype(jnp.float32) for b in biases[:num_hidden]],
        w_out=weights[-1].reshape(-1, 1).astype(jnp.float32),          # (hid,1)
        b_out=biases[-1].reshape(1, 1).astype(jnp.float32),            # (1,1)
    )


def mlp_pallas(enc, mlp, *, tile_n=2048, vmem_limit_bytes=32 * 1024 * 1024):
    """enc: [N, in_dim] points-major encoding (bf16).  Returns [N, 1] f32.

    tile_n: sweep 2048-4096; keep grid length >= 2x TensorCores on v7x and
    raise vmem_limit_bytes if tile_n grows further (v5e default is 16 MiB)."""
    ws, bs = mlp["ws"], mlp["bs"]
    w_out, b_out = mlp["w_out"], mlp["b_out"]
    num_hidden = len(ws)
    N, in_dim = enc.shape
    hidden = ws[0].shape[0]

    args = [enc]
    in_specs = [pl.BlockSpec((tile_n, in_dim), lambda i: (i, 0))]
    for w, b in zip(ws, bs):
        in_specs.append(pl.BlockSpec(w.shape, lambda i: (0, 0)))   # resident
        in_specs.append(pl.BlockSpec(b.shape, lambda i: (0, 0)))   # resident
        args += [w, b]
    in_specs += [pl.BlockSpec(w_out.shape, lambda i: (0, 0)),
                 pl.BlockSpec(b_out.shape, lambda i: (0, 0))]
    args += [w_out, b_out]

    flops = 2 * N * (in_dim * hidden + (num_hidden - 1) * hidden * hidden + hidden)
    bytes_accessed = (enc.size * enc.dtype.itemsize + N * 4
                      + sum(a.size * a.dtype.itemsize for a in args[1:]))

    # No padding: ragged last tile handled by Pallas masked partial blocks.
    # All in-kernel math is per-point (per-lane/column), so garbage lanes of a
    # partial block never mix with valid ones and are masked on store.
    grid = (pl.cdiv(N, tile_n),)
    out = pl.pallas_call(
        make_mlp_kernel(num_hidden),
        out_shape=jax.ShapeDtypeStruct((1, N), jnp.float32),
        grid=grid,
        in_specs=in_specs,
        out_specs=pl.BlockSpec((1, tile_n), lambda i: (0, i)),     # lane-dense
        compiler_params=pltpu.CompilerParams(
            dimension_semantics=("parallel",),
            vmem_limit_bytes=vmem_limit_bytes),
        cost_estimate=pl.CostEstimate(flops=flops, transcendentals=0,
                                      bytes_accessed=bytes_accessed),
    )(*args)
    return out.reshape(N, 1)


def mlp_ref(enc, weights, biases):
    """Pure-JAX reference mirroring the kernel's precision (bf16 MXU layers
    with f32 accumulation, f32 final layer)."""
    num_hidden = len(weights) - 1
    h = enc.astype(jnp.bfloat16)                                   # [N, in]
    z = jax.lax.dot_general(weights[0].astype(jnp.bfloat16), h,
                            (((1,), (1,)), ((), ())),
                            preferred_element_type=jnp.float32) + biases[0][:, None]
    h = jnp.maximum(z, 0.0)
    for l in range(1, num_hidden):
        z = jnp.dot(weights[l].astype(jnp.bfloat16), h.astype(jnp.bfloat16),
                    preferred_element_type=jnp.float32) + biases[l][:, None]
        h = jnp.maximum(z, 0.0)
    out = jnp.sum(h * weights[-1].reshape(-1, 1), axis=0, keepdims=True)
    out = out + biases[-1].reshape(1, 1)
    return out.reshape(-1, 1)


# ----------------------------------------------------------------------------
# INGPNetwork = GridEncoder -> MLP
# ----------------------------------------------------------------------------

def init_linear(key, in_dim, out_dim):
    kw, kb = jax.random.split(key)
    bound = 1.0 / math.sqrt(in_dim)
    W = jax.random.uniform(kw, (out_dim, in_dim), jnp.float32, -bound, bound)
    b = jax.random.uniform(kb, (out_dim,), jnp.float32, -bound, bound)
    return W, b


def build_ingp_network(key, *, num_layers=5, hidden_dim=128, input_dim=3,
                       num_levels=16, level_dim=2, base_resolution=16,
                       log2_hashmap_size=19, desired_resolution=2048,
                       align_corners=False):
    k_enc, k_mlp = jax.random.split(key)
    embeddings, enc_cfg = build_grid_encoder(
        k_enc, input_dim=input_dim, num_levels=num_levels, level_dim=level_dim,
        base_resolution=base_resolution, log2_hashmap_size=log2_hashmap_size,
        desired_resolution=desired_resolution, align_corners=align_corners)
    in_dim = num_levels * level_dim
    weights, biases = [], []
    keys = jax.random.split(k_mlp, num_layers)
    for l in range(num_layers):
        din = in_dim if l == 0 else hidden_dim
        dout = 1 if l == num_layers - 1 else hidden_dim
        W, b = init_linear(keys[l], din, dout)
        weights.append(W)
        biases.append(b)
    return dict(embeddings=embeddings, enc_cfg=enc_cfg,
                weights=weights, biases=biases,
                mlp=prepare_mlp_params(weights, biases))   # bf16 cast done once


def ingp_forward(params, x, *, tile_n=2048):
    enc = grid_encode(x, params["embeddings"], params["enc_cfg"])
    return mlp_pallas(enc, params["mlp"], tile_n=tile_n)


def ingp_forward_ref(params, x):
    enc = grid_encode(x, params["embeddings"], params["enc_cfg"])
    return mlp_ref(enc, params["weights"], params["biases"])


if __name__ == "__main__":
    key = jax.random.PRNGKey(0)
    k_params, k_x = jax.random.split(key)

    # Small but forward-consistent configuration:
    #   encoder: 8 levels x 2 features -> in_dim = 16; small hash table
    #   backbone: 5 Linear layers, hidden 128, output dim 1
    params = build_ingp_network(
        k_params, num_layers=5, hidden_dim=128, input_dim=3,
        num_levels=8, level_dim=2, base_resolution=4,
        log2_hashmap_size=10, desired_resolution=64, align_corners=False)

    TILE_N = 2048
    N = 8 * TILE_N        # 8 point-tiles -> megacore-friendly grid on v7x
    x = jax.random.uniform(k_x, (N, 3), jnp.float32, -1.0, 1.0)

    enc_cfg = params["enc_cfg"]   # static python config, closed over by jit

    @jax.jit
    def fwd(embeddings, mlp, pts):
        enc = grid_encode(pts, embeddings, enc_cfg)
        return mlp_pallas(enc, mlp, tile_n=TILE_N)

    @jax.jit
    def fwd_ref(embeddings, weights, biases, pts):
        enc = grid_encode(pts, embeddings, enc_cfg)
        return mlp_ref(enc, weights, biases)

    out = jax.block_until_ready(fwd(params["embeddings"], params["mlp"], x))
    ref = jax.block_until_ready(
        fwd_ref(params["embeddings"], params["weights"], params["biases"], x))

    assert out.shape == (N, 1), out.shape
    assert jnp.allclose(out, ref, rtol=1e-2, atol=1e-3), (
        float(jnp.max(jnp.abs(out - ref))))
    print("KERNEL_OK")
</pallas_src>

<mosaic_0001>
module attributes {stable_mosaic.version = 11 : i64} {
  func.func @kernel(%arg0: i32, %arg1: memref<2048x16xbf16, #tpu.memory_space<vmem>>, %arg2: memref<128x16xbf16, #tpu.memory_space<vmem>>, %arg3: memref<128x1xf32, #tpu.memory_space<vmem>>, %arg4: memref<128x128xbf16, #tpu.memory_space<vmem>>, %arg5: memref<128x1xf32, #tpu.memory_space<vmem>>, %arg6: memref<128x128xbf16, #tpu.memory_space<vmem>>, %arg7: memref<128x1xf32, #tpu.memory_space<vmem>>, %arg8: memref<128x128xbf16, #tpu.memory_space<vmem>>, %arg9: memref<128x1xf32, #tpu.memory_space<vmem>>, %arg10: memref<128x1xf32, #tpu.memory_space<vmem>>, %arg11: memref<1x1xf32, #tpu.memory_space<vmem>>, %arg12: memref<1x2048xf32, #tpu.memory_space<vmem>>) attributes {dimension_semantics = [#tpu.dimension_semantics<parallel>], iteration_bounds = array<i64: 8>, scalar_prefetch = 0 : i64, scratch_operands = 0 : i64, tpu.core_type = #tpu.core_type<tc>, window_params = [{transform_indices = @transform_0, window_bounds = array<i64: 2048, 16>}, {pipeline_mode = #tpu.pipeline_mode<synchronous>, transform_indices = @transform_1, window_bounds = array<i64: 128, 16>}, {pipeline_mode = #tpu.pipeline_mode<synchronous>, transform_indices = @transform_2, window_bounds = array<i64: 128, 1>}, {pipeline_mode = #tpu.pipeline_mode<synchronous>, transform_indices = @transform_3, window_bounds = array<i64: 128, 128>}, {pipeline_mode = #tpu.pipeline_mode<synchronous>, transform_indices = @transform_4, window_bounds = array<i64: 128, 1>}, {pipeline_mode = #tpu.pipeline_mode<synchronous>, transform_indices = @transform_5, window_bounds = array<i64: 128, 128>}, {pipeline_mode = #tpu.pipeline_mode<synchronous>, transform_indices = @transform_6, window_bounds = array<i64: 128, 1>}, {pipeline_mode = #tpu.pipeline_mode<synchronous>, transform_indices = @transform_7, window_bounds = array<i64: 128, 128>}, {pipeline_mode = #tpu.pipeline_mode<synchronous>, transform_indices = @transform_8, window_bounds = array<i64: 128, 1>}, {pipeline_mode = #tpu.pipeline_mode<synchronous>, transform_indices = @transform_9, window_bounds = array<i64: 128, 1>}, {pipeline_mode = #tpu.pipeline_mode<synchronous>, transform_indices = @transform_10, window_bounds = array<i64: 1, 1>}, {transform_indices = @transform_11, window_bounds = array<i64: 1, 2048>}]} {
    %c0 = arith.constant 0 : index
    %c0_0 = arith.constant 0 : index
    %0 = vector.load %arg1[%c0, %c0_0] : memref<2048x16xbf16, #tpu.memory_space<vmem>>, vector<2048x16xbf16>
    %c0_1 = arith.constant 0 : index
    %c0_2 = arith.constant 0 : index
    %1 = vector.load %arg2[%c0_1, %c0_2] : memref<128x16xbf16, #tpu.memory_space<vmem>>, vector<128x16xbf16>
    %c0_3 = arith.constant 0 : index
    %c0_4 = arith.constant 0 : index
    %2 = vector.load %arg3[%c0_3, %c0_4] : memref<128x1xf32, #tpu.memory_space<vmem>>, vector<128x1xf32>
    %cst = arith.constant dense<0.000000e+00> : vector<128x2048xf32>
    %3 = tpu.matmul %1, %0, %cst {dimension_numbers = #tpu.dot_dimension_numbers<[1], [1], [0], [0], [0, 0, 1, 0], [], []>} : vector<128x16xbf16>, vector<2048x16xbf16>, vector<128x2048xf32> -> vector<128x2048xf32>
    %4 = vector.broadcast %2 : vector<128x1xf32> to vector<128x2048xf32>
    %5 = arith.addf %3, %4 : vector<128x2048xf32>
    %cst_5 = arith.constant 0.000000e+00 : f32
    %6 = vector.broadcast %cst_5 : f32 to vector<128x2048xf32>
    %7 = arith.maximumf %5, %6 : vector<128x2048xf32>
    %c0_6 = arith.constant 0 : index
    %c0_7 = arith.constant 0 : index
    %8 = vector.load %arg4[%c0_6, %c0_7] : memref<128x128xbf16, #tpu.memory_space<vmem>>, vector<128x128xbf16>
    %c0_8 = arith.constant 0 : index
    %c0_9 = arith.constant 0 : index
    %9 = vector.load %arg5[%c0_8, %c0_9] : memref<128x1xf32, #tpu.memory_space<vmem>>, vector<128x1xf32>
    %10 = arith.truncf %7 : vector<128x2048xf32> to vector<128x2048xbf16>
    %cst_10 = arith.constant dense<0.000000e+00> : vector<128x2048xf32>
    %11 = tpu.matmul %8, %10, %cst_10 {dimension_numbers = #tpu.dot_dimension_numbers<[1], [0], [0], [1], [0, 0, 1, 1], [], []>} : vector<128x128xbf16>, vector<128x2048xbf16>, vector<128x2048xf32> -> vector<128x2048xf32>
    %12 = vector.broadcast %9 : vector<128x1xf32> to vector<128x2048xf32>
    %13 = arith.addf %11, %12 : vector<128x2048xf32>
    %cst_11 = arith.constant 0.000000e+00 : f32
    %14 = vector.broadcast %cst_11 : f32 to vector<128x2048xf32>
    %15 = arith.maximumf %13, %14 : vector<128x2048xf32>
    %c0_12 = arith.constant 0 : index
    %c0_13 = arith.constant 0 : index
    %16 = vector.load %arg6[%c0_12, %c0_13] : memref<128x128xbf16, #tpu.memory_space<vmem>>, vector<128x128xbf16>
    %c0_14 = arith.constant 0 : index
    %c0_15 = arith.constant 0 : index
    %17 = vector.load %arg7[%c0_14, %c0_15] : memref<128x1xf32, #tpu.memory_space<vmem>>, vector<128x1xf32>
    %18 = arith.truncf %15 : vector<128x2048xf32> to vector<128x2048xbf16>
    %cst_16 = arith.constant dense<0.000000e+00> : vector<128x2048xf32>
    %19 = tpu.matmul %16, %18, %cst_16 {dimension_numbers = #tpu.dot_dimension_numbers<[1], [0], [0], [1], [0, 0, 1, 1], [], []>} : vector<128x128xbf16>, vector<128x2048xbf16>, vector<128x2048xf32> -> vector<128x2048xf32>
    %20 = vector.broadcast %17 : vector<128x1xf32> to vector<128x2048xf32>
    %21 = arith.addf %19, %20 : vector<128x2048xf32>
    %cst_17 = arith.constant 0.000000e+00 : f32
    %22 = vector.broadcast %cst_17 : f32 to vector<128x2048xf32>
    %23 = arith.maximumf %21, %22 : vector<128x2048xf32>
    %c0_18 = arith.constant 0 : index
    %c0_19 = arith.constant 0 : index
    %24 = vector.load %arg8[%c0_18, %c0_19] : memref<128x128xbf16, #tpu.memory_space<vmem>>, vector<128x128xbf16>
    %c0_20 = arith.constant 0 : index
    %c0_21 = arith.constant 0 : index
    %25 = vector.load %arg9[%c0_20, %c0_21] : memref<128x1xf32, #tpu.memory_space<vmem>>, vector<128x1xf32>
    %26 = arith.truncf %23 : vector<128x2048xf32> to vector<128x2048xbf16>
    %cst_22 = arith.constant dense<0.000000e+00> : vector<128x2048xf32>
    %27 = tpu.matmul %24, %26, %cst_22 {dimension_numbers = #tpu.dot_dimension_numbers<[1], [0], [0], [1], [0, 0, 1, 1], [], []>} : vector<128x128xbf16>, vector<128x2048xbf16>, vector<128x2048xf32> -> vector<128x2048xf32>
    %28 = vector.broadcast %25 : vector<128x1xf32> to vector<128x2048xf32>
    %29 = arith.addf %27, %28 : vector<128x2048xf32>
    %cst_23 = arith.constant 0.000000e+00 : f32
    %30 = vector.broadcast %cst_23 : f32 to vector<128x2048xf32>
    %31 = arith.maximumf %29, %30 : vector<128x2048xf32>
    %c0_24 = arith.constant 0 : index
    %c0_25 = arith.constant 0 : index
    %32 = vector.load %arg10[%c0_24, %c0_25] : memref<128x1xf32, #tpu.memory_space<vmem>>, vector<128x1xf32>
    %c0_26 = arith.constant 0 : index
    %c0_27 = arith.constant 0 : index
    %33 = vector.load %arg11[%c0_26, %c0_27] : memref<1x1xf32, #tpu.memory_space<vmem>>, vector<1x1xf32>
    %34 = vector.broadcast %32 : vector<128x1xf32> to vector<128x2048xf32>
    %35 = arith.mulf %31, %34 : vector<128x2048xf32>
    %cst_28 = arith.constant dense<0.000000e+00> : vector<2048xf32>
    %36 = vector.multi_reduction <add>, %35, %cst_28 [0] : vector<128x2048xf32> to vector<2048xf32>
    %37 = vector.shape_cast %36 : vector<2048xf32> to vector<1x2048xf32>
    %38 = vector.broadcast %33 : vector<1x1xf32> to vector<1x2048xf32>
    %39 = arith.addf %37, %38 : vector<1x2048xf32>
    %c0_29 = arith.constant 0 : index
    %c0_30 = arith.constant 0 : index
    %40 = vector.load %arg12[%c0_29, %c0_30] : memref<1x2048xf32, #tpu.memory_space<vmem>>, vector<1x2048xf32>
    tpu.vector_store %arg12[%c0_29, %c0_30], %39 {strides = array<i32>} : memref<1x2048xf32, #tpu.memory_space<vmem>>, vector<1x2048xf32>,
    return
  }
  func.func @transform_0(%arg0: i32) -> (i32, i32) {
    %c0_i32 = arith.constant 0 : i32
    %c0_i32_0 = arith.constant 0 : i32
    return %arg0, %c0_i32 : i32, i32
  }
  func.func @transform_1(%arg0: i32) -> (i32, i32) {
    %c0_i32 = arith.constant 0 : i32
    %c0_i32_0 = arith.constant 0 : i32
    %c0_i32_1 = arith.constant 0 : i32
    return %c0_i32, %c0_i32_0 : i32, i32
  }
  func.func @transform_2(%arg0: i32) -> (i32, i32) {
    %c0_i32 = arith.constant 0 : i32
    %c0_i32_0 = arith.constant 0 : i32
    %c0_i32_1 = arith.constant 0 : i32
    return %c0_i32, %c0_i32_0 : i32, i32
  }
  func.func @transform_3(%arg0: i32) -> (i32, i32) {
    %c0_i32 = arith.constant 0 : i32
    %c0_i32_0 = arith.constant 0 : i32
    %c0_i32_1 = arith.constant 0 : i32
    return %c0_i32, %c0_i32_0 : i32, i32
  }
  func.func @transform_4(%arg0: i32) -> (i32, i32) {
    %c0_i32 = arith.constant 0 : i32
    %c0_i32_0 = arith.constant 0 : i32
    %c0_i32_1 = arith.constant 0 : i32
    return %c0_i32, %c0_i32_0 : i32, i32
  }
  func.func @transform_5(%arg0: i32) -> (i32, i32) {
    %c0_i32 = arith.constant 0 : i32
    %c0_i32_0 = arith.constant 0 : i32
    %c0_i32_1 = arith.constant 0 : i32
    return %c0_i32, %c0_i32_0 : i32, i32
  }
  func.func @transform_6(%arg0: i32) -> (i32, i32) {
    %c0_i32 = arith.constant 0 : i32
    %c0_i32_0 = arith.constant 0 : i32
    %c0_i32_1 = arith.constant 0 : i32
    return %c0_i32, %c0_i32_0 : i32, i32
  }
  func.func @transform_7(%arg0: i32) -> (i32, i32) {
    %c0_i32 = arith.constant 0 : i32
    %c0_i32_0 = arith.constant 0 : i32
    %c0_i32_1 = arith.constant 0 : i32
    return %c0_i32, %c0_i32_0 : i32, i32
  }
  func.func @transform_8(%arg0: i32) -> (i32, i32) {
    %c0_i32 = arith.constant 0 : i32
    %c0_i32_0 = arith.constant 0 : i32
    %c0_i32_1 = arith.constant 0 : i32
    return %c0_i32, %c0_i32_0 : i32, i32
  }
  func.func @transform_9(%arg0: i32) -> (i32, i32) {
    %c0_i32 = arith.constant 0 : i32
    %c0_i32_0 = arith.constant 0 : i32
    %c0_i32_1 = arith.constant 0 : i32
    return %c0_i32, %c0_i32_0 : i32, i32
  }
  func.func @transform_10(%arg0: i32) -> (i32, i32) {
    %c0_i32 = arith.constant 0 : i32
    %c0_i32_0 = arith.constant 0 : i32
    %c0_i32_1 = arith.constant 0 : i32
    return %c0_i32, %c0_i32_0 : i32, i32
  }
  func.func @transform_11(%arg0: i32) -> (i32, i32) {
    %c0_i32 = arith.constant 0 : i32
    %c0_i32_0 = arith.constant 0 : i32
    return %c0_i32, %arg0 : i32, i32
  }
}

</mosaic_0001>

<bundles_post_ra>
// kernel: mul.16
= control target key start
LH: loop header
LB: loop body
LE: loop exit
PB: predicated region body
PF: predicated region fallthrough
CT: control target
= control target key end

     0   :  { %s6295_s0 = inlined_call_operand.vmem [shape: f32[16384,16], index: 0, kind: input, shape index: {}]   ;;  %s6296_s1 = inlined_call_operand.vmem [shape: f32[16384,16], index: 1, kind: input, shape index: {}]   ;;  %s6297_s2 = inlined_call_operand.vmem [shape: f32[16384,16], index: 2, kind: output, shape index: {}]  }
   0x1   :  { %v3_v0 = vld [vmem:[%s6295_s0] sm:$0xff]  ;;  %v2563_v5 = vld [vmem:[%s6295_s0 + $0x8] sm:$0xff]  ;;  %v2569_v11 = vld [vmem:[%s6295_s0 + $0x10] sm:$0xff] }
   0x2   :  { %v4_v1 = vld [vmem:[%s6296_s1] sm:$0xff]  ;;  %v2564_v6 = vld [vmem:[%s6296_s1 + $0x8] sm:$0xff]  ;;  %v2570_v13 = vld [vmem:[%s6296_s1 + $0x10] sm:$0xff] }
   0x3   :  { %v2560_v2 = vld [vmem:[%s6295_s0 + $0x400] sm:$0xff]  ;;  %v7_v3 = vmul.f32 %v4_v1, %v3_v0  ;;  %v26_v8 = vmul.f32 %v2564_v6, %v2563_v5  ;;  %v2566_v9 = vld [vmem:[%s6295_s0 + $0x408] sm:$0xff]  ;;  %v2572_v14 = vld [vmem:[%s6295_s0 + $0x410] sm:$0xff]  ;;  %v46_v16 = vmul.f32 %v2570_v13, %v2569_v11 }
   0x4   :  { %v2561_v4 = vld [vmem:[%s6296_s1 + $0x400] sm:$0xff]  ;;  %v2567_v10 = vld [vmem:[%s6296_s1 + $0x408] sm:$0xff]  ;;  %v2573_v15 = vld [vmem:[%s6296_s1 + $0x410] sm:$0xff] }
   0x5   :  { %v16_v7 = vmul.f32 %v2561_v4, %v2560_v2  ;;  %9 = vst [vmem:[%s6297_s2] sm:$0xff] %v7_v3  ;;  %v36_v12 = vmul.f32 %v2567_v10, %v2566_v9  ;;  %v56_v17 = vmul.f32 %v2573_v15, %v2572_v14  ;;  %v2575_v18 = vld [vmem:[%s6295_s0 + $0x18] sm:$0xff]  ;;  %v2581_v23 = vld [vmem:[%s6295_s0 + $0x20] sm:$0xff]  ;;  %v2587_v29 = vld [vmem:[%s6295_s0 + $0x28] sm:$0xff] }
   0x6   :  { %v2576_v19 = vld [vmem:[%s6296_s1 + $0x18] sm:$0xff]  ;;  %2565 = vst [vmem:[%s6297_s2 + $0x8] sm:$0xff] %v26_v8  ;;  %v2582_v24 = vld [vmem:[%s6296_s1 + $0x20] sm:$0xff]  ;;  %v2588_v31 = vld [vmem:[%s6296_s1 + $0x28] sm:$0xff] }
   0x7   :  { %2562 = vst [vmem:[%s6297_s2 + $0x400] sm:$0xff] %v16_v7  ;;  %v2578_v20 = vld [vmem:[%s6295_s0 + $0x418] sm:$0xff]  ;;  %v66_v21 = vmul.f32 %v2576_v19, %v2575_v18  ;;  %v86_v26 = vmul.f32 %v2582_v24, %v2581_v23  ;;  %v2584_v27 = vld [vmem:[%s6295_s0 + $0x420] sm:$0xff]  ;;  %v2590_v32 = vld [vmem:[%s6295_s0 + $0x428] sm:$0xff]  ;;  %v106_v34 = vmul.f32 %v2588_v31, %v2587_v29 }
   0x8   :  { %v2579_v22 = vld [vmem:[%s6296_s1 + $0x418] sm:$0xff]  ;;  %2568 = vst [vmem:[%s6297_s2 + $0x408] sm:$0xff] %v36_v12  ;;  %v2585_v28 = vld [vmem:[%s6296_s1 + $0x420] sm:$0xff]  ;;  %v2591_v33 = vld [vmem:[%s6296_s1 + $0x428] sm:$0xff] }
   0x9   :  { %v76_v25 = vmul.f32 %v2579_v22, %v2578_v20  ;;  %2571 = vst [vmem:[%s6297_s2 + $0x10] sm:$0xff] %v46_v16  ;;  %v96_v30 = vmul.f32 %v2585_v28, %v2584_v27  ;;  %v116_v35 = vmul.f32 %v2591_v33, %v2590_v32  ;;  %v2593_v36 = vld [vmem:[%s6295_s0 + $0x30] sm:$0xff]  ;;  %v2599_v41 = vld [vmem:[%s6295_s0 + $0x38] sm:$0xff]  ;;  %v2605_v47 = vld [vmem:[%s6295_s0 + $0x40] sm:$0xff] }
   0xa   :  { %2574 = vst [vmem:[%s6297_s2 + $0x410] sm:$0xff] %v56_v17  ;;  %v2594_v37 = vld [vmem:[%s6296_s1 + $0x30] sm:$0xff]  ;;  %v2600_v42 = vld [vmem:[%s6296_s1 + $0x38] sm:$0xff]  ;;  %v2606_v49 = vld [vmem:[%s6296_s1 + $0x40] sm:$0xff] }
   0xb   :  { %v2596_v38 = vld [vmem:[%s6295_s0 + $0x430] sm:$0xff]  ;;  %2577 = vst [vmem:[%s6297_s2 + $0x18] sm:$0xff] %v66_v21  ;;  %v126_v39 = vmul.f32 %v2594_v37, %v2593_v36  ;;  %v146_v44 = vmul.f32 %v2600_v42, %v2599_v41  ;;  %v2602_v45 = vld [vmem:[%s6295_s0 + $0x438] sm:$0xff]  ;;  %v2608_v50 = vld [vmem:[%s6295_s0 + $0x440] sm:$0xff]  ;;  %v166_v52 = vmul.f32 %v2606_v49, %v2605_v47 }
   0xc   :  { %v2597_v40 = vld [vmem:[%s6296_s1 + $0x430] sm:$0xff]  ;;  %2580 = vst [vmem:[%s6297_s2 + $0x418] sm:$0xff] %v76_v25  ;;  %v2603_v46 = vld [vmem:[%s6296_s1 + $0x438] sm:$0xff]  ;;  %v2609_v51 = vld [vmem:[%s6296_s1 + $0x440] sm:$0xff] }
   0xd   :  { %v136_v43 = vmul.f32 %v2597_v40, %v2596_v38  ;;  %2583 = vst [vmem:[%s6297_s2 + $0x20] sm:$0xff] %v86_v26  ;;  %v156_v48 = vmul.f32 %v2603_v46, %v2602_v45  ;;  %v176_v53 = vmul.f32 %v2609_v51, %v2608_v50  ;;  %v2611_v54 = vld [vmem:[%s6295_s0 + $0x48] sm:$0xff]  ;;  %v2617_v59 = vld [vmem:[%s6295_s0 + $0x50] sm:$0xff]  ;;  %v2623_v1 = vld [vmem:[%s6295_s0 + $0x58] sm:$0xff] }
   0xe   :  { %2586 = vst [vmem:[%s6297_s2 + $0x420] sm:$0xff] %v96_v30  ;;  %v2612_v55 = vld [vmem:[%s6296_s1 + $0x48] sm:$0xff]  ;;  %v2618_v60 = vld [vmem:[%s6296_s1 + $0x50] sm:$0xff]  ;;  %v2624_v3 = vld [vmem:[%s6296_s1 + $0x58] sm:$0xff] }
   0xf   :  { %v2614_v56 = vld [vmem:[%s6295_s0 + $0x448] sm:$0xff]  ;;  %2589 = vst [vmem:[%s6297_s2 + $0x28] sm:$0xff] %v106_v34  ;;  %v186_v57 = vmul.f32 %v2612_v55, %v2611_v54  ;;  %v206_v62 = vmul.f32 %v2618_v60, %v2617_v59  ;;  %v2620_v63 = vld [vmem:[%s6295_s0 + $0x450] sm:$0xff]  ;;  %v2626_v4 = vld [vmem:[%s6295_s0 + $0x458] sm:$0xff]  ;;  %v226_v6 = vmul.f32 %v2624_v3, %v2623_v1 }
  0x10   :  { %v2615_v58 = vld [vmem:[%s6296_s1 + $0x448] sm:$0xff]  ;;  %2592 = vst [vmem:[%s6297_s2 + $0x428] sm:$0xff] %v116_v35  ;;  %v2621_v0 = vld [vmem:[%s6296_s1 + $0x450] sm:$0xff]  ;;  %v2627_v5 = vld [vmem:[%s6296_s1 + $0x458] sm:$0xff] }
  0x11   :  { %v196_v61 = vmul.f32 %v2615_v58, %v2614_v56  ;;  %2595 = vst [vmem:[%s6297_s2 + $0x30] sm:$0xff] %v126_v39  ;;  %v216_v2 = vmul.f32 %v2621_v0, %v2620_v63  ;;  %v236_v7 = vmul.f32 %v2627_v5, %v2626_v4  ;;  %v2629_v8 = vld [vmem:[%s6295_s0 + $0x60] sm:$0xff]  ;;  %v2635_v13 = vld [vmem:[%s6295_s0 + $0x68] sm:$0xff]  ;;  %v2641_v19 = vld [vmem:[%s6295_s0 + $0x70] sm:$0xff] }
  0x12   :  { %2598 = vst [vmem:[%s6297_s2 + $0x430] sm:$0xff] %v136_v43  ;;  %v2630_v9 = vld [vmem:[%s6296_s1 + $0x60] sm:$0xff]  ;;  %v2636_v14 = vld [vmem:[%s6296_s1 + $0x68] sm:$0xff]  ;;  %v2642_v21 = vld [vmem:[%s6296_s1 + $0x70] sm:$0xff] }
  0x13   :  { %v2632_v10 = vld [vmem:[%s6295_s0 + $0x460] sm:$0xff]  ;;  %2601 = vst [vmem:[%s6297_s2 + $0x38] sm:$0xff] %v146_v44  ;;  %v246_v11 = vmul.f32 %v2630_v9, %v2629_v8  ;;  %v266_v16 = vmul.f32 %v2636_v14, %v2635_v13  ;;  %v2638_v17 = vld [vmem:[%s6295_s0 + $0x468] sm:$0xff]  ;;  %v2644_v22 = vld [vmem:[%s6295_s0 + $0x470] sm:$0xff]  ;;  %v286_v24 = vmul.f32 %v2642_v21, %v2641_v19 }
  0x14   :  { %v2633_v12 = vld [vmem:[%s6296_s1 + $0x460] sm:$0xff]  ;;  %2604 = vst [vmem:[%s6297_s2 + $0x438] sm:$0xff] %v156_v48  ;;  %v2639_v18 = vld [vmem:[%s6296_s1 + $0x468] sm:$0xff]  ;;  %v2645_v23 = vld [vmem:[%s6296_s1 + $0x470] sm:$0xff] }
  0x15   :  { %v256_v15 = vmul.f32 %v2633_v12, %v2632_v10  ;;  %2607 = vst [vmem:[%s6297_s2 + $0x40] sm:$0xff] %v166_v52  ;;  %v276_v20 = vmul.f32 %v2639_v18, %v2638_v17  ;;  %v3574_v25 = vmul.f32 %v2645_v23, %v2644_v22  ;;  %v2647_v26 = vld [vmem:[%s6295_s0 + $0x78] sm:$0xff]  ;;  %v2653_v31 = vld [vmem:[%s6295_s0 + $0x80] sm:$0xff]  ;;  %v2659_v37 = vld [vmem:[%s6295_s0 + $0x88] sm:$0xff] }
  0x16   :  { %2610 = vst [vmem:[%s6297_s2 + $0x440] sm:$0xff] %v176_v53  ;;  %v2648_v27 = vld [vmem:[%s6296_s1 + $0x78] sm:$0xff]  ;;  %v2654_v32 = vld [vmem:[%s6296_s1 + $0x80] sm:$0xff]  ;;  %v2660_v39 = vld [vmem:[%s6296_s1 + $0x88] sm:$0xff] }
  0x17   :  { %v2650_v28 = vld [vmem:[%s6295_s0 + $0x478] sm:$0xff]  ;;  %2613 = vst [vmem:[%s6297_s2 + $0x48] sm:$0xff] %v186_v57  ;;  %v3588_v29 = vmul.f32 %v2648_v27, %v2647_v26  ;;  %v3604_v34 = vmul.f32 %v2654_v32, %v2653_v31  ;;  %v2656_v35 = vld [vmem:[%s6295_s0 + $0x480] sm:$0xff]  ;;  %v2662_v40 = vld [vmem:[%s6295_s0 + $0x488] sm:$0xff]  ;;  %v3632_v42 = vmul.f32 %v2660_v39, %v2659_v37 }
  0x18   :  { %v2651_v30 = vld [vmem:[%s6296_s1 + $0x478] sm:$0xff]  ;;  %2616 = vst [vmem:[%s6297_s2 + $0x448] sm:$0xff] %v196_v61  ;;  %v2657_v36 = vld [vmem:[%s6296_s1 + $0x480] sm:$0xff]  ;;  %v2663_v41 = vld [vmem:[%s6296_s1 + $0x488] sm:$0xff] }
  0x19   :  { %v3602_v33 = vmul.f32 %v2651_v30, %v2650_v28  ;;  %2619 = vst [vmem:[%s6297_s2 + $0x50] sm:$0xff] %v206_v62  ;;  %v3618_v38 = vmul.f32 %v2657_v36, %v2656_v35  ;;  %v3634_v43 = vmul.f32 %v2663_v41, %v2662_v40  ;;  %v2665_v44 = vld [vmem:[%s6295_s0 + $0x90] sm:$0xff]  ;;  %v2671_v49 = vld [vmem:[%s6295_s0 + $0x98] sm:$0xff]  ;;  %v2677_v55 = vld [vmem:[%s6295_s0 + $0xa0] sm:$0xff] }
  0x1a   :  { %2622 = vst [vmem:[%s6297_s2 + $0x450] sm:$0xff] %v216_v2  ;;  %v2666_v45 = vld [vmem:[%s6296_s1 + $0x90] sm:$0xff]  ;;  %v2672_v50 = vld [vmem:[%s6296_s1 + $0x98] sm:$0xff]  ;;  %v2678_v57 = vld [vmem:[%s6296_s1 + $0xa0] sm:$0xff] }
  0x1b   :  { %v2668_v46 = vld [vmem:[%s6295_s0 + $0x490] sm:$0xff]  ;;  %2625 = vst [vmem:[%s6297_s2 + $0x58] sm:$0xff] %v226_v6  ;;  %v3648_v47 = vmul.f32 %v2666_v45, %v2665_v44  ;;  %v3664_v52 = vmul.f32 %v2672_v50, %v2671_v49  ;;  %v2674_v53 = vld [vmem:[%s6295_s0 + $0x498] sm:$0xff]  ;;  %v2680_v58 = vld [vmem:[%s6295_s0 + $0x4a0] sm:$0xff]  ;;  %v3692_v60 = vmul.f32 %v2678_v57, %v2677_v55 }
  0x1c   :  { %v2669_v48 = vld [vmem:[%s6296_s1 + $0x490] sm:$0xff]  ;;  %2628 = vst [vmem:[%s6297_s2 + $0x458] sm:$0xff] %v236_v7  ;;  %v2675_v54 = vld [vmem:[%s6296_s1 + $0x498] sm:$0xff]  ;;  %v2681_v59 = vld [vmem:[%s6296_s1 + $0x4a0] sm:$0xff] }
  0x1d   :  { %v3662_v51 = vmul.f32 %v2669_v48, %v2668_v46  ;;  %2631 = vst [vmem:[%s6297_s2 + $0x60] sm:$0xff] %v246_v11  ;;  %v3678_v56 = vmul.f32 %v2675_v54, %v2674_v53  ;;  %v3694_v61 = vmul.f32 %v2681_v59, %v2680_v58  ;;  %v2683_v62 = vld [vmem:[%s6295_s0 + $0xa8] sm:$0xff]  ;;  %v2689_v3 = vld [vmem:[%s6295_s0 + $0xb0] sm:$0xff]  ;;  %v2695_v9 = vld [vmem:[%s6295_s0 + $0xb8] sm:$0xff] }
  0x1e   :  { %2634 = vst [vmem:[%s6297_s2 + $0x460] sm:$0xff] %v256_v15  ;;  %v2684_v63 = vld [vmem:[%s6296_s1 + $0xa8] sm:$0xff]  ;;  %v2690_v4 = vld [vmem:[%s6296_s1 + $0xb0] sm:$0xff]  ;;  %v2696_v11 = vld [vmem:[%s6296_s1 + $0xb8] sm:$0xff] }
  0x1f   :  { %v2686_v0 = vld [vmem:[%s6295_s0 + $0x4a8] sm:$0xff]  ;;  %2637 = vst [vmem:[%s6297_s2 + $0x68] sm:$0xff] %v266_v16  ;;  %v3708_v1 = vmul.f32 %v2684_v63, %v2683_v62  ;;  %v3724_v6 = vmul.f32 %v2690_v4, %v2689_v3  ;;  %v2692_v7 = vld [vmem:[%s6295_s0 + $0x4b0] sm:$0xff]  ;;  %v2698_v12 = vld [vmem:[%s6295_s0 + $0x4b8] sm:$0xff]  ;;  %v3753_v14 = vmul.f32 %v2696_v11, %v2695_v9 }
  0x20   :  { %v2687_v2 = vld [vmem:[%s6296_s1 + $0x4a8] sm:$0xff]  ;;  %2640 = vst [vmem:[%s6297_s2 + $0x468] sm:$0xff] %v276_v20  ;;  %v2693_v8 = vld [vmem:[%s6296_s1 + $0x4b0] sm:$0xff]  ;;  %v2699_v13 = vld [vmem:[%s6296_s1 + $0x4b8] sm:$0xff] }
  0x21   :  { %v3722_v5 = vmul.f32 %v2687_v2, %v2686_v0  ;;  %2643 = vst [vmem:[%s6297_s2 + $0x70] sm:$0xff] %v286_v24  ;;  %v3738_v10 = vmul.f32 %v2693_v8, %v2692_v7  ;;  %v3755_v15 = vmul.f32 %v2699_v13, %v2698_v12  ;;  %v2701_v16 = vld [vmem:[%s6295_s0 + $0xc0] sm:$0xff]  ;;  %v2707_v21 = vld [vmem:[%s6295_s0 + $0xc8] sm:$0xff]  ;;  %v2713_v27 = vld [vmem:[%s6295_s0 + $0xd0] sm:$0xff] }
  0x22   :  { %2646 = vst [vmem:[%s6297_s2 + $0x470] sm:$0xff] %v3574_v25  ;;  %v2702_v17 = vld [vmem:[%s6296_s1 + $0xc0] sm:$0xff]  ;;  %v2708_v22 = vld [vmem:[%s6296_s1 + $0xc8] sm:$0xff]  ;;  %v2716_v30 = vld [vmem:[%s6295_s0 + $0x4d0] sm:$0xff] }
  0x23   :  { %v2704_v18 = vld [vmem:[%s6295_s0 + $0x4c0] sm:$0xff]  ;;  %2649 = vst [vmem:[%s6297_s2 + $0x78] sm:$0xff] %v3588_v29  ;;  %v3770_v19 = vmul.f32 %v2702_v17, %v2701_v16  ;;  %v3787_v24 = vmul.f32 %v2708_v22, %v2707_v21  ;;  %v2710_v25 = vld [vmem:[%s6295_s0 + $0x4c8] sm:$0xff]  ;;  %v2714_v29 = vld [vmem:[%s6296_s1 + $0xd0] sm:$0xff] }
  0x24   :  { %v2705_v20 = vld [vmem:[%s6296_s1 + $0x4c0] sm:$0xff]  ;;  %2652 = vst [vmem:[%s6297_s2 + $0x478] sm:$0xff] %v3602_v33  ;;  %v2711_v26 = vld [vmem:[%s6296_s1 + $0x4c8] sm:$0xff]  ;;  %v2717_v31 = vld [vmem:[%s6296_s1 + $0x4d0] sm:$0xff]  ;;  %v3817_v32 = vmul.f32 %v2714_v29, %v2713_v27 }
  0x25   :  { %v3785_v23 = vmul.f32 %v2705_v20, %v2704_v18  ;;  %2655 = vst [vmem:[%s6297_s2 + $0x80] sm:$0xff] %v3604_v34  ;;  %v3802_v28 = vmul.f32 %v2711_v26, %v2710_v25  ;;  %v3819_v33 = vmul.f32 %v2717_v31, %v2716_v30  ;;  %v2719_v34 = vld [vmem:[%s6295_s0 + $0xd8] sm:$0xff]  ;;  %v2725_v39 = vld [vmem:[%s6295_s0 + $0xe0] sm:$0xff]  ;;  %v2731_v45 = vld [vmem:[%s6295_s0 + $0xe8] sm:$0xff] }
  0x26   :  { %2658 = vst [vmem:[%s6297_s2 + $0x480] sm:$0xff] %v3618_v38  ;;  %v2720_v35 = vld [vmem:[%s6296_s1 + $0xd8] sm:$0xff]  ;;  %v2726_v40 = vld [vmem:[%s6296_s1 + $0xe0] sm:$0xff]  ;;  %v2734_v48 = vld [vmem:[%s6295_s0 + $0x4e8] sm:$0xff] }
  0x27   :  { %v2722_v36 = vld [vmem:[%s6295_s0 + $0x4d8] sm:$0xff]  ;;  %2661 = vst [vmem:[%s6297_s2 + $0x88] sm:$0xff] %v3632_v42  ;;  %v3834_v37 = vmul.f32 %v2720_v35, %v2719_v34  ;;  %v3851_v42 = vmul.f32 %v2726_v40, %v2725_v39  ;;  %v2729_v44 = vld [vmem:[%s6296_s1 + $0x4e0] sm:$0xff]  ;;  %v2735_v49 = vld [vmem:[%s6296_s1 + $0x4e8] sm:$0xff] }
  0x28   :  { %v2723_v38 = vld [vmem:[%s6296_s1 + $0x4d8] sm:$0xff]  ;;  %2664 = vst [vmem:[%s6297_s2 + $0x488] sm:$0xff] %v3634_v43  ;;  %v2728_v43 = vld [vmem:[%s6295_s0 + $0x4e0] sm:$0xff]  ;;  %v2737_v53 = vld [vmem:[%s6295_s0 + $0xf0] sm:$0xff] }
  0x29   :  { %v3849_v41 = vmul.f32 %v2723_v38, %v2722_v36  ;;  %2667 = vst [vmem:[%s6297_s2 + $0x90] sm:$0xff] %v3648_v47  ;;  %v3866_v46 = vmul.f32 %v2729_v44, %v2728_v43  ;;  %v2732_v47 = vld [vmem:[%s6296_s1 + $0xe8] sm:$0xff]  ;;  %v2738_v54 = vld [vmem:[%s6296_s1 + $0xf0] sm:$0xff]  ;;  %v2743_v58 = vld [vmem:[%s6295_s0 + $0xf8] sm:$0xff] }
  0x2a   :  { %2670 = vst [vmem:[%s6297_s2 + $0x490] sm:$0xff] %v3662_v51  ;;  %v3881_v50 = vmul.f32 %v2732_v47, %v2731_v45  ;;  %v3883_v51 = vmul.f32 %v2735_v49, %v2734_v48  ;;  %v2740_v55 = vld [vmem:[%s6295_s0 + $0x4f0] sm:$0xff]  ;;  %v2744_v59 = vld [vmem:[%s6296_s1 + $0xf8] sm:$0xff]  ;;  %v2749_v2 = vld [vmem:[%s6295_s0 + $0x100] sm:$0xff] }
  0x2b   :  { %2673 = vst [vmem:[%s6297_s2 + $0x98] sm:$0xff] %v3664_v52  ;;  %v3898_v52 = vmul.f32 %v2738_v54, %v2737_v53  ;;  %v2741_v57 = vld [vmem:[%s6296_s1 + $0x4f0] sm:$0xff]  ;;  %v3915_v62 = vmul.f32 %v2744_v59, %v2743_v58  ;;  %v2746_v63 = vld [vmem:[%s6295_s0 + $0x4f8] sm:$0xff]  ;;  %v2750_v3 = vld [vmem:[%s6296_s1 + $0x100] sm:$0xff] }
  0x2c   :  { %2676 = vst [vmem:[%s6297_s2 + $0x498] sm:$0xff] %v3678_v56  ;;  %v3913_v56 = vmul.f32 %v2741_v57, %v2740_v55  ;;  %v2747_v0 = vld [vmem:[%s6296_s1 + $0x4f8] sm:$0xff]  ;;  %v2752_v4 = vld [vmem:[%s6295_s0 + $0x500] sm:$0xff]  ;;  %v2755_v9 = vld [vmem:[%s6295_s0 + $0x108] sm:$0xff] }
  0x2d   :  { %2679 = vst [vmem:[%s6297_s2 + $0xa0] sm:$0xff] %v3692_v60  ;;  %v3930_v60 = vmul.f32 %v2747_v0, %v2746_v63  ;;  %v2753_v7 = vld [vmem:[%s6296_s1 + $0x500] sm:$0xff]  ;;  %v2756_v11 = vld [vmem:[%s6296_s1 + $0x108] sm:$0xff]  ;;  %v2761_v16 = vld [vmem:[%s6295_s0 + $0x110] sm:$0xff] }
  0x2e   :  { %2682 = vst [vmem:[%s6297_s2 + $0x4a0] sm:$0xff] %v3694_v61  ;;  %v3945_v61 = vmul.f32 %v2750_v3, %v2749_v2  ;;  %v3947_v8 = vmul.f32 %v2753_v7, %v2752_v4  ;;  %v2758_v12 = vld [vmem:[%s6295_s0 + $0x508] sm:$0xff]  ;;  %v2762_v17 = vld [vmem:[%s6296_s1 + $0x110] sm:$0xff]  ;;  %v2767_v22 = vld [vmem:[%s6295_s0 + $0x118] sm:$0xff] }
  0x2f   :  { %2685 = vst [vmem:[%s6297_s2 + $0xa8] sm:$0xff] %v3708_v1  ;;  %v3962_v1 = vmul.f32 %v2756_v11, %v2755_v9  ;;  %v2759_v13 = vld [vmem:[%s6296_s1 + $0x508] sm:$0xff]  ;;  %v3979_v18 = vmul.f32 %v2762_v17, %v2761_v16  ;;  %v2764_v20 = vld [vmem:[%s6295_s0 + $0x510] sm:$0xff]  ;;  %v2768_v25 = vld [vmem:[%s6296_s1 + $0x118] sm:$0xff] }
  0x30   :  { %2688 = vst [vmem:[%s6297_s2 + $0x4a8] sm:$0xff] %v3722_v5  ;;  %v3977_v5 = vmul.f32 %v2759_v13, %v2758_v12  ;;  %v2765_v21 = vld [vmem:[%s6296_s1 + $0x510] sm:$0xff]  ;;  %v2770_v26 = vld [vmem:[%s6295_s0 + $0x518] sm:$0xff]  ;;  %v2773_v30 = vld [vmem:[%s6295_s0 + $0x120] sm:$0xff] }
  0x31   :  { %2691 = vst [vmem:[%s6297_s2 + $0xb0] sm:$0xff] %v3724_v6  ;;  %v3994_v6 = vmul.f32 %v2765_v21, %v2764_v20  ;;  %v2771_v27 = vld [vmem:[%s6296_s1 + $0x518] sm:$0xff]  ;;  %v2774_v31 = vld [vmem:[%s6296_s1 + $0x120] sm:$0xff]  ;;  %v2779_v36 = vld [vmem:[%s6295_s0 + $0x128] sm:$0xff] }
  0x32   :  { %2694 = vst [vmem:[%s6297_s2 + $0x4b0] sm:$0xff] %v3738_v10  ;;  %v4009_v10 = vmul.f32 %v2768_v25, %v2767_v22  ;;  %v4011_v29 = vmul.f32 %v2771_v27, %v2770_v26  ;;  %v2776_v34 = vld [vmem:[%s6295_s0 + $0x520] sm:$0xff]  ;;  %v2780_v38 = vld [vmem:[%s6296_s1 + $0x128] sm:$0xff]  ;;  %v2785_v44 = vld [vmem:[%s6295_s0 + $0x130] sm:$0xff] }
  0x33   :  { %2697 = vst [vmem:[%s6297_s2 + $0xb8] sm:$0xff] %v3753_v14  ;;  %v4026_v14 = vmul.f32 %v2774_v31, %v2773_v30  ;;  %v2777_v35 = vld [vmem:[%s6296_s1 + $0x520] sm:$0xff]  ;;  %v4043_v39 = vmul.f32 %v2780_v38, %v2779_v36  ;;  %v2782_v40 = vld [vmem:[%s6295_s0 + $0x528] sm:$0xff]  ;;  %v2786_v45 = vld [vmem:[%s6296_s1 + $0x130] sm:$0xff] }
  0x34   :  { %2700 = vst [vmem:[%s6297_s2 + $0x4b8] sm:$0xff] %v3755_v15  ;;  %v4041_v15 = vmul.f32 %v2777_v35, %v2776_v34  ;;  %v2783_v43 = vld [vmem:[%s6296_s1 + $0x528] sm:$0xff]  ;;  %v2788_v47 = vld [vmem:[%s6295_s0 + $0x530] sm:$0xff]  ;;  %v2791_v53 = vld [vmem:[%s6295_s0 + $0x138] sm:$0xff] }
  0x35   :  { %2703 = vst [vmem:[%s6297_s2 + $0xc0] sm:$0xff] %v3770_v19  ;;  %v4058_v19 = vmul.f32 %v2783_v43, %v2782_v40  ;;  %v2789_v48 = vld [vmem:[%s6296_s1 + $0x530] sm:$0xff]  ;;  %v2792_v54 = vld [vmem:[%s6296_s1 + $0x138] sm:$0xff]  ;;  %v2797_v58 = vld [vmem:[%s6295_s0 + $0x140] sm:$0xff] }
  0x36   :  { %2706 = vst [vmem:[%s6297_s2 + $0x4c0] sm:$0xff] %v3785_v23  ;;  %v4073_v23 = vmul.f32 %v2786_v45, %v2785_v44  ;;  %v4075_v49 = vmul.f32 %v2789_v48, %v2788_v47  ;;  %v2794_v55 = vld [vmem:[%s6295_s0 + $0x538] sm:$0xff]  ;;  %v2798_v59 = vld [vmem:[%s6296_s1 + $0x140] sm:$0xff]  ;;  %v2803_v3 = vld [vmem:[%s6295_s0 + $0x148] sm:$0xff] }
  0x37   :  { %2709 = vst [vmem:[%s6297_s2 + $0xc8] sm:$0xff] %v3787_v24  ;;  %v4090_v24 = vmul.f32 %v2792_v54, %v2791_v53  ;;  %v2795_v57 = vld [vmem:[%s6296_s1 + $0x538] sm:$0xff]  ;;  %v4107_v63 = vmul.f32 %v2798_v59, %v2797_v58  ;;  %v2800_v0 = vld [vmem:[%s6295_s0 + $0x540] sm:$0xff]  ;;  %v2804_v4 = vld [vmem:[%s6296_s1 + $0x148] sm:$0xff] }
  0x38   :  { %2712 = vst [vmem:[%s6297_s2 + $0x4c8] sm:$0xff] %v3802_v28  ;;  %v4105_v28 = vmul.f32 %v2795_v57, %v2794_v55  ;;  %v2801_v2 = vld [vmem:[%s6296_s1 + $0x540] sm:$0xff]  ;;  %v2806_v7 = vld [vmem:[%s6295_s0 + $0x548] sm:$0xff]  ;;  %v2809_v12 = vld [vmem:[%s6295_s0 + $0x150] sm:$0xff] }
  0x39   :  { %2715 = vst [vmem:[%s6297_s2 + $0xd0] sm:$0xff] %v3817_v32  ;;  %v4122_v32 = vmul.f32 %v2801_v2, %v2800_v0  ;;  %v2807_v9 = vld [vmem:[%s6296_s1 + $0x548] sm:$0xff]  ;;  %v2810_v13 = vld [vmem:[%s6296_s1 + $0x150] sm:$0xff]  ;;  %v2815_v20 = vld [vmem:[%s6295_s0 + $0x158] sm:$0xff] }
  0x3a   :  { %2718 = vst [vmem:[%s6297_s2 + $0x4d0] sm:$0xff] %v3819_v33  ;;  %v4137_v33 = vmul.f32 %v2804_v4, %v2803_v3  ;;  %v4139_v11 = vmul.f32 %v2807_v9, %v2806_v7  ;;  %v2812_v16 = vld [vmem:[%s6295_s0 + $0x550] sm:$0xff]  ;;  %v2816_v21 = vld [vmem:[%s6296_s1 + $0x158] sm:$0xff]  ;;  %v2821_v27 = vld [vmem:[%s6295_s0 + $0x160] sm:$0xff] }
  0x3b   :  { %2721 = vst [vmem:[%s6297_s2 + $0xd8] sm:$0xff] %v3834_v37  ;;  %v4154_v37 = vmul.f32 %v2810_v13, %v2809_v12  ;;  %v2813_v17 = vld [vmem:[%s6296_s1 + $0x550] sm:$0xff]  ;;  %v4171_v22 = vmul.f32 %v2816_v21, %v2815_v20  ;;  %v2818_v25 = vld [vmem:[%s6295_s0 + $0x558] sm:$0xff]  ;;  %v2822_v30 = vld [vmem:[%s6296_s1 + $0x160] sm:$0xff] }
  0x3c   :  { %2724 = vst [vmem:[%s6297_s2 + $0x4d8] sm:$0xff] %v3849_v41  ;;  %v4169_v41 = vmul.f32 %v2813_v17, %v2812_v16  ;;  %v2819_v26 = vld [vmem:[%s6296_s1 + $0x558] sm:$0xff]  ;;  %v2824_v31 = vld [vmem:[%s6295_s0 + $0x560] sm:$0xff]  ;;  %v2827_v36 = vld [vmem:[%s6295_s0 + $0x168] sm:$0xff] }
  0x3d   :  { %2727 = vst [vmem:[%s6297_s2 + $0xe0] sm:$0xff] %v3851_v42  ;;  %v4186_v42 = vmul.f32 %v2819_v26, %v2818_v25  ;;  %v2825_v34 = vld [vmem:[%s6296_s1 + $0x560] sm:$0xff]  ;;  %v2828_v38 = vld [vmem:[%s6296_s1 + $0x168] sm:$0xff]  ;;  %v2833_v44 = vld [vmem:[%s6295_s0 + $0x170] sm:$0xff] }
  0x3e   :  { %2730 = vst [vmem:[%s6297_s2 + $0x4e0] sm:$0xff] %v3866_v46  ;;  %v4201_v46 = vmul.f32 %v2822_v30, %v2821_v27  ;;  %v4203_v35 = vmul.f32 %v2825_v34, %v2824_v31  ;;  %v2830_v40 = vld [vmem:[%s6295_s0 + $0x568] sm:$0xff]  ;;  %v2834_v45 = vld [vmem:[%s6296_s1 + $0x170] sm:$0xff]  ;;  %v2839_v54 = vld [vmem:[%s6295_s0 + $0x178] sm:$0xff] }
  0x3f   :  { %2733 = vst [vmem:[%s6297_s2 + $0xe8] sm:$0xff] %v3881_v50  ;;  %v4218_v50 = vmul.f32 %v2828_v38, %v2827_v36  ;;  %v2831_v43 = vld [vmem:[%s6296_s1 + $0x568] sm:$0xff]  ;;  %v4235_v47 = vmul.f32 %v2834_v45, %v2833_v44  ;;  %v2836_v48 = vld [vmem:[%s6295_s0 + $0x570] sm:$0xff]  ;;  %v2840_v55 = vld [vmem:[%s6296_s1 + $0x178] sm:$0xff] }
  0x40   :  { %2736 = vst [vmem:[%s6297_s2 + $0x4e8] sm:$0xff] %v3883_v51  ;;  %v4233_v51 = vmul.f32 %v2831_v43, %v2830_v40  ;;  %v2837_v53 = vld [vmem:[%s6296_s1 + $0x570] sm:$0xff]  ;;  %v2842_v57 = vld [vmem:[%s6295_s0 + $0x578] sm:$0xff]  ;;  %v2845_v0 = vld [vmem:[%s6295_s0 + $0x180] sm:$0xff] }
  0x41   :  { %2739 = vst [vmem:[%s6297_s2 + $0xf0] sm:$0xff] %v3898_v52  ;;  %v4250_v52 = vmul.f32 %v2837_v53, %v2836_v48  ;;  %v2843_v58 = vld [vmem:[%s6296_s1 + $0x578] sm:$0xff]  ;;  %v2846_v2 = vld [vmem:[%s6296_s1 + $0x180] sm:$0xff]  ;;  %v2851_v7 = vld [vmem:[%s6295_s0 + $0x188] sm:$0xff] }
  0x42   :  { %2742 = vst [vmem:[%s6297_s2 + $0x4f0] sm:$0xff] %v3913_v56  ;;  %v4265_v56 = vmul.f32 %v2840_v55, %v2839_v54  ;;  %v4267_v59 = vmul.f32 %v2843_v58, %v2842_v57  ;;  %v2848_v3 = vld [vmem:[%s6295_s0 + $0x580] sm:$0xff]  ;;  %v2852_v9 = vld [vmem:[%s6296_s1 + $0x188] sm:$0xff]  ;;  %v2857_v17 = vld [vmem:[%s6295_s0 + $0x190] sm:$0xff] }
  0x43   :  { %2745 = vst [vmem:[%s6297_s2 + $0xf8] sm:$0xff] %v3915_v62  ;;  %v4282_v62 = vmul.f32 %v2846_v2, %v2845_v0  ;;  %v2849_v4 = vld [vmem:[%s6296_s1 + $0x580] sm:$0xff]  ;;  %v4299_v12 = vmul.f32 %v2852_v9, %v2851_v7  ;;  %v2854_v13 = vld [vmem:[%s6295_s0 + $0x588] sm:$0xff]  ;;  %v2858_v20 = vld [vmem:[%s6296_s1 + $0x190] sm:$0xff] }
  0x44   :  { %2748 = vst [vmem:[%s6297_s2 + $0x4f8] sm:$0xff] %v3930_v60  ;;  %v4297_v60 = vmul.f32 %v2849_v4, %v2848_v3  ;;  %v2855_v16 = vld [vmem:[%s6296_s1 + $0x588] sm:$0xff]  ;;  %v2860_v21 = vld [vmem:[%s6295_s0 + $0x590] sm:$0xff]  ;;  %v2863_v26 = vld [vmem:[%s6295_s0 + $0x198] sm:$0xff] }
  0x45   :  { %2751 = vst [vmem:[%s6297_s2 + $0x100] sm:$0xff] %v3945_v61  ;;  %v4311_v61 = vmul.f32 %v2855_v16, %v2854_v13  ;;  %v2861_v25 = vld [vmem:[%s6296_s1 + $0x590] sm:$0xff]  ;;  %v2864_v27 = vld [vmem:[%s6296_s1 + $0x198] sm:$0xff]  ;;  %v2869_v34 = vld [vmem:[%s6295_s0 + $0x1a0] sm:$0xff] }
  0x46   :  { %2754 = vst [vmem:[%s6297_s2 + $0x500] sm:$0xff] %v3947_v8  ;;  %v4323_v8 = vmul.f32 %v2858_v20, %v2857_v17  ;;  %v2866_v30 = vld [vmem:[%s6295_s0 + $0x598] sm:$0xff]  ;;  %v2870_v36 = vld [vmem:[%s6296_s1 + $0x1a0] sm:$0xff]  ;;  %v2875_v43 = vld [vmem:[%s6295_s0 + $0x1a8] sm:$0xff] }
  0x47   :  { %2757 = vst [vmem:[%s6297_s2 + $0x108] sm:$0xff] %v3962_v1  ;;  %v4335_v1 = vmul.f32 %v2861_v25, %v2860_v21  ;;  %v2867_v31 = vld [vmem:[%s6296_s1 + $0x598] sm:$0xff]  ;;  %v2872_v38 = vld [vmem:[%s6295_s0 + $0x5a0] sm:$0xff]  ;;  %v2876_v44 = vld [vmem:[%s6296_s1 + $0x1a8] sm:$0xff] }
  0x48   :  { %2760 = vst [vmem:[%s6297_s2 + $0x508] sm:$0xff] %v3977_v5  ;;  %v4347_v5 = vmul.f32 %v2864_v27, %v2863_v26  ;;  %v2873_v40 = vld [vmem:[%s6296_s1 + $0x5a0] sm:$0xff]  ;;  %v2878_v45 = vld [vmem:[%s6295_s0 + $0x5a8] sm:$0xff]  ;;  %v2881_v53 = vld [vmem:[%s6295_s0 + $0x1b0] sm:$0xff] }
  0x49   :  { %2763 = vst [vmem:[%s6297_s2 + $0x110] sm:$0xff] %v3979_v18  ;;  %v4359_v18 = vmul.f32 %v2867_v31, %v2866_v30  ;;  %v2879_v48 = vld [vmem:[%s6296_s1 + $0x5a8] sm:$0xff]  ;;  %v2882_v54 = vld [vmem:[%s6296_s1 + $0x1b0] sm:$0xff]  ;;  %v2887_v58 = vld [vmem:[%s6295_s0 + $0x1b8] sm:$0xff] }
  0x4a   :  { %2766 = vst [vmem:[%s6297_s2 + $0x510] sm:$0xff] %v3994_v6  ;;  %v4371_v6 = vmul.f32 %v2870_v36, %v2869_v34  ;;  %v2884_v55 = vld [vmem:[%s6295_s0 + $0x5b0] sm:$0xff]  ;;  %v2888_v0 = vld [vmem:[%s6296_s1 + $0x1b8] sm:$0xff]  ;;  %v2893_v4 = vld [vmem:[%s6295_s0 + $0x1c0] sm:$0xff] }
  0x4b   :  { %2769 = vst [vmem:[%s6297_s2 + $0x118] sm:$0xff] %v4009_v10  ;;  %v4383_v10 = vmul.f32 %v2873_v40, %v2872_v38  ;;  %v2885_v57 = vld [vmem:[%s6296_s1 + $0x5b0] sm:$0xff]  ;;  %v2890_v2 = vld [vmem:[%s6295_s0 + $0x5b8] sm:$0xff]  ;;  %v2894_v7 = vld [vmem:[%s6296_s1 + $0x1c0] sm:$0xff] }
  0x4c   :  { %2772 = vst [vmem:[%s6297_s2 + $0x518] sm:$0xff] %v4011_v29  ;;  %v4395_v29 = vmul.f32 %v2876_v44, %v2875_v43  ;;  %v2891_v3 = vld [vmem:[%s6296_s1 + $0x5b8] sm:$0xff]  ;;  %v2896_v9 = vld [vmem:[%s6295_s0 + $0x5c0] sm:$0xff]  ;;  %v2899_v16 = vld [vmem:[%s6295_s0 + $0x1c8] sm:$0xff] }
  0x4d   :  { %2775 = vst [vmem:[%s6297_s2 + $0x120] sm:$0xff] %v4026_v14  ;;  %v4407_v14 = vmul.f32 %v2879_v48, %v2878_v45  ;;  %v2897_v13 = vld [vmem:[%s6296_s1 + $0x5c0] sm:$0xff]  ;;  %v2900_v17 = vld [vmem:[%s6296_s1 + $0x1c8] sm:$0xff]  ;;  %v2905_v25 = vld [vmem:[%s6295_s0 + $0x1d0] sm:$0xff] }
  0x4e   :  { %2778 = vst [vmem:[%s6297_s2 + $0x520] sm:$0xff] %v4041_v15  ;;  %v4419_v15 = vmul.f32 %v2882_v54, %v2881_v53  ;;  %v2902_v20 = vld [vmem:[%s6295_s0 + $0x5c8] sm:$0xff]  ;;  %v2906_v26 = vld [vmem:[%s6296_s1 + $0x1d0] sm:$0xff]  ;;  %v2911_v31 = vld [vmem:[%s6295_s0 + $0x1d8] sm:$0xff] }
  0x4f   :  { %2781 = vst [vmem:[%s6297_s2 + $0x128] sm:$0xff] %v4043_v39  ;;  %v4431_v39 = vmul.f32 %v2885_v57, %v2884_v55  ;;  %v2903_v21 = vld [vmem:[%s6296_s1 + $0x5c8] sm:$0xff]  ;;  %v2908_v27 = vld [vmem:[%s6295_s0 + $0x5d0] sm:$0xff]  ;;  %v2912_v34 = vld [vmem:[%s6296_s1 + $0x1d8] sm:$0xff] }
  0x50   :  { %2784 = vst [vmem:[%s6297_s2 + $0x528] sm:$0xff] %v4058_v19  ;;  %v4443_v19 = vmul.f32 %v2888_v0, %v2887_v58  ;;  %v2909_v30 = vld [vmem:[%s6296_s1 + $0x5d0] sm:$0xff]  ;;  %v2914_v36 = vld [vmem:[%s6295_s0 + $0x5d8] sm:$0xff]  ;;  %v2917_v40 = vld [vmem:[%s6295_s0 + $0x1e0] sm:$0xff] }
  0x51   :  { %2787 = vst [vmem:[%s6297_s2 + $0x130] sm:$0xff] %v4073_v23  ;;  %v4455_v23 = vmul.f32 %v2891_v3, %v2890_v2  ;;  %v2915_v38 = vld [vmem:[%s6296_s1 + $0x5d8] sm:$0xff]  ;;  %v2918_v43 = vld [vmem:[%s6296_s1 + $0x1e0] sm:$0xff]  ;;  %v2923_v48 = vld [vmem:[%s6295_s0 + $0x1e8] sm:$0xff] }
  0x52   :  { %2790 = vst [vmem:[%s6297_s2 + $0x530] sm:$0xff] %v4075_v49  ;;  %v4467_v49 = vmul.f32 %v2894_v7, %v2893_v4  ;;  %v2920_v44 = vld [vmem:[%s6295_s0 + $0x5e0] sm:$0xff]  ;;  %v2924_v53 = vld [vmem:[%s6296_s1 + $0x1e8] sm:$0xff]  ;;  %v2929_v57 = vld [vmem:[%s6295_s0 + $0x1f0] sm:$0xff] }
  0x53   :  { %2793 = vst [vmem:[%s6297_s2 + $0x138] sm:$0xff] %v4090_v24  ;;  %v4479_v24 = vmul.f32 %v2897_v13, %v2896_v9  ;;  %v2921_v45 = vld [vmem:[%s6296_s1 + $0x5e0] sm:$0xff]  ;;  %v2926_v54 = vld [vmem:[%s6295_s0 + $0x5e8] sm:$0xff]  ;;  %v2930_v58 = vld [vmem:[%s6296_s1 + $0x1f0] sm:$0xff] }
  0x54   :  { %2796 = vst [vmem:[%s6297_s2 + $0x538] sm:$0xff] %v4105_v28  ;;  %v4491_v28 = vmul.f32 %v2900_v17, %v2899_v16  ;;  %v2927_v55 = vld [vmem:[%s6296_s1 + $0x5e8] sm:$0xff]  ;;  %v2932_v0 = vld [vmem:[%s6295_s0 + $0x5f0] sm:$0xff]  ;;  %v2935_v3 = vld [vmem:[%s6295_s0 + $0x1f8] sm:$0xff] }
  0x55   :  { %2799 = vst [vmem:[%s6297_s2 + $0x140] sm:$0xff] %v4107_v63  ;;  %v4503_v63 = vmul.f32 %v2903_v21, %v2902_v20  ;;  %v2933_v2 = vld [vmem:[%s6296_s1 + $0x5f0] sm:$0xff]  ;;  %v2936_v4 = vld [vmem:[%s6296_s1 + $0x1f8] sm:$0xff]  ;;  %v2941_v13 = vld [vmem:[%s6295_s0 + $0x200] sm:$0xff] }
  0x56   :  { %2802 = vst [vmem:[%s6297_s2 + $0x540] sm:$0xff] %v4122_v32  ;;  %v4515_v32 = vmul.f32 %v2906_v26, %v2905_v25  ;;  %v2938_v7 = vld [vmem:[%s6295_s0 + $0x5f8] sm:$0xff]  ;;  %v2942_v16 = vld [vmem:[%s6296_s1 + $0x200] sm:$0xff]  ;;  %v2947_v21 = vld [vmem:[%s6295_s0 + $0x208] sm:$0xff] }
  0x57   :  { %2805 = vst [vmem:[%s6297_s2 + $0x148] sm:$0xff] %v4137_v33  ;;  %v4527_v33 = vmul.f32 %v2909_v30, %v2908_v27  ;;  %v2939_v9 = vld [vmem:[%s6296_s1 + $0x5f8] sm:$0xff]  ;;  %v2944_v17 = vld [vmem:[%s6295_s0 + $0x600] sm:$0xff]  ;;  %v2948_v25 = vld [vmem:[%s6296_s1 + $0x208] sm:$0xff] }
  0x58   :  { %2808 = vst [vmem:[%s6297_s2 + $0x548] sm:$0xff] %v4139_v11  ;;  %v4539_v11 = vmul.f32 %v2912_v34, %v2911_v31  ;;  %v2945_v20 = vld [vmem:[%s6296_s1 + $0x600] sm:$0xff]  ;;  %v2950_v26 = vld [vmem:[%s6295_s0 + $0x608] sm:$0xff]  ;;  %v2953_v30 = vld [vmem:[%s6295_s0 + $0x210] sm:$0xff] }
  0x59   :  { %2811 = vst [vmem:[%s6297_s2 + $0x150] sm:$0xff] %v4154_v37  ;;  %v4551_v37 = vmul.f32 %v2915_v38, %v2914_v36  ;;  %v2951_v27 = vld [vmem:[%s6296_s1 + $0x608] sm:$0xff]  ;;  %v2954_v31 = vld [vmem:[%s6296_s1 + $0x210] sm:$0xff]  ;;  %v2959_v38 = vld [vmem:[%s6295_s0 + $0x218] sm:$0xff] }
  0x5a   :  { %2814 = vst [vmem:[%s6297_s2 + $0x550] sm:$0xff] %v4169_v41  ;;  %v4563_v41 = vmul.f32 %v2918_v43, %v2917_v40  ;;  %v2956_v34 = vld [vmem:[%s6295_s0 + $0x610] sm:$0xff]  ;;  %v2960_v40 = vld [vmem:[%s6296_s1 + $0x218] sm:$0xff] }
  0x5b   :  { %2817 = vst [vmem:[%s6297_s2 + $0x158] sm:$0xff] %v4171_v22  ;;  %v4575_v22 = vmul.f32 %v2921_v45, %v2920_v44  ;;  %v2957_v36 = vld [vmem:[%s6296_s1 + $0x610] sm:$0xff]  ;;  %v2962_v43 = vld [vmem:[%s6295_s0 + $0x618] sm:$0xff]  ;;  %v2965_v45 = vld [vmem:[%s6295_s0 + $0x220] sm:$0xff] }
  0x5c   :  { %2820 = vst [vmem:[%s6297_s2 + $0x558] sm:$0xff] %v4186_v42  ;;  %v4587_v42 = vmul.f32 %v2924_v53, %v2923_v48  ;;  %v2963_v44 = vld [vmem:[%s6296_s1 + $0x618] sm:$0xff]  ;;  %v2966_v48 = vld [vmem:[%s6296_s1 + $0x220] sm:$0xff] }
  0x5d   :  { %2823 = vst [vmem:[%s6297_s2 + $0x160] sm:$0xff] %v4201_v46  ;;  %v4599_v46 = vmul.f32 %v2927_v55, %v2926_v54  ;;  %v2968_v53 = vld [vmem:[%s6295_s0 + $0x620] sm:$0xff]  ;;  %v2971_v55 = vld [vmem:[%s6295_s0 + $0x228] sm:$0xff] }
  0x5e   :  { %2826 = vst [vmem:[%s6297_s2 + $0x560] sm:$0xff] %v4203_v35  ;;  %v4611_v35 = vmul.f32 %v2930_v58, %v2929_v57  ;;  %v2969_v54 = vld [vmem:[%s6296_s1 + $0x620] sm:$0xff]  ;;  %v2972_v57 = vld [vmem:[%s6296_s1 + $0x228] sm:$0xff] }
  0x5f   :  { %2829 = vst [vmem:[%s6297_s2 + $0x168] sm:$0xff] %v4218_v50  ;;  %v4623_v50 = vmul.f32 %v2933_v2, %v2932_v0  ;;  %v2974_v58 = vld [vmem:[%s6295_s0 + $0x628] sm:$0xff]  ;;  %v2977_v2 = vld [vmem:[%s6295_s0 + $0x230] sm:$0xff] }
  0x60   :  { %2832 = vst [vmem:[%s6297_s2 + $0x568] sm:$0xff] %v4233_v51  ;;  %v4635_v51 = vmul.f32 %v2936_v4, %v2935_v3  ;;  %v2975_v0 = vld [vmem:[%s6296_s1 + $0x628] sm:$0xff]  ;;  %v2978_v3 = vld [vmem:[%s6296_s1 + $0x230] sm:$0xff] }
  0x61   :  { %2835 = vst [vmem:[%s6297_s2 + $0x170] sm:$0xff] %v4235_v47  ;;  %v4647_v47 = vmul.f32 %v2939_v9, %v2938_v7  ;;  %v2980_v4 = vld [vmem:[%s6295_s0 + $0x630] sm:$0xff]  ;;  %v2983_v9 = vld [vmem:[%s6295_s0 + $0x238] sm:$0xff] }
  0x62   :  { %2838 = vst [vmem:[%s6297_s2 + $0x570] sm:$0xff] %v4250_v52  ;;  %v4659_v52 = vmul.f32 %v2942_v16, %v2941_v13  ;;  %v2981_v7 = vld [vmem:[%s6296_s1 + $0x630] sm:$0xff]  ;;  %v2984_v13 = vld [vmem:[%s6296_s1 + $0x238] sm:$0xff] }
  0x63   :  { %2841 = vst [vmem:[%s6297_s2 + $0x178] sm:$0xff] %v4265_v56  ;;  %v4671_v56 = vmul.f32 %v2945_v20, %v2944_v17  ;;  %v2986_v16 = vld [vmem:[%s6295_s0 + $0x638] sm:$0xff]  ;;  %v2989_v20 = vld [vmem:[%s6295_s0 + $0x240] sm:$0xff] }
  0x64   :  { %2844 = vst [vmem:[%s6297_s2 + $0x578] sm:$0xff] %v4267_v59  ;;  %v4683_v59 = vmul.f32 %v2948_v25, %v2947_v21  ;;  %v2987_v17 = vld [vmem:[%s6296_s1 + $0x638] sm:$0xff]  ;;  %v2990_v21 = vld [vmem:[%s6296_s1 + $0x240] sm:$0xff] }
  0x65   :  { %2847 = vst [vmem:[%s6297_s2 + $0x180] sm:$0xff] %v4282_v62  ;;  %v4695_v62 = vmul.f32 %v2951_v27, %v2950_v26  ;;  %v2992_v25 = vld [vmem:[%s6295_s0 + $0x640] sm:$0xff]  ;;  %v2995_v27 = vld [vmem:[%s6295_s0 + $0x248] sm:$0xff] }
  0x66   :  { %2850 = vst [vmem:[%s6297_s2 + $0x580] sm:$0xff] %v4297_v60  ;;  %v4707_v60 = vmul.f32 %v2954_v31, %v2953_v30  ;;  %v2993_v26 = vld [vmem:[%s6296_s1 + $0x640] sm:$0xff]  ;;  %v2996_v30 = vld [vmem:[%s6296_s1 + $0x248] sm:$0xff] }
  0x67   :  { %2853 = vst [vmem:[%s6297_s2 + $0x188] sm:$0xff] %v4299_v12  ;;  %v4719_v12 = vmul.f32 %v2957_v36, %v2956_v34  ;;  %v2998_v31 = vld [vmem:[%s6295_s0 + $0x648] sm:$0xff]  ;;  %v3001_v36 = vld [vmem:[%s6295_s0 + $0x250] sm:$0xff] }
  0x68   :  { %2856 = vst [vmem:[%s6297_s2 + $0x588] sm:$0xff] %v4311_v61  ;;  %v4731_v61 = vmul.f32 %v2960_v40, %v2959_v38  ;;  %v2999_v34 = vld [vmem:[%s6296_s1 + $0x648] sm:$0xff]  ;;  %v3002_v38 = vld [vmem:[%s6296_s1 + $0x250] sm:$0xff] }
  0x69   :  { %2859 = vst [vmem:[%s6297_s2 + $0x190] sm:$0xff] %v4323_v8  ;;  %v4743_v8 = vmul.f32 %v2963_v44, %v2962_v43  ;;  %v3004_v40 = vld [vmem:[%s6295_s0 + $0x650] sm:$0xff]  ;;  %v3007_v44 = vld [vmem:[%s6295_s0 + $0x258] sm:$0xff] }
  0x6a   :  { %2862 = vst [vmem:[%s6297_s2 + $0x590] sm:$0xff] %v4335_v1  ;;  %v4755_v1 = vmul.f32 %v2966_v48, %v2965_v45  ;;  %v3005_v43 = vld [vmem:[%s6296_s1 + $0x650] sm:$0xff]  ;;  %v3008_v45 = vld [vmem:[%s6296_s1 + $0x258] sm:$0xff] }
  0x6b   :  { %2865 = vst [vmem:[%s6297_s2 + $0x198] sm:$0xff] %v4347_v5  ;;  %v4767_v5 = vmul.f32 %v2969_v54, %v2968_v53  ;;  %v3010_v48 = vld [vmem:[%s6295_s0 + $0x658] sm:$0xff]  ;;  %v3013_v54 = vld [vmem:[%s6295_s0 + $0x260] sm:$0xff] }
  0x6c   :  { %2868 = vst [vmem:[%s6297_s2 + $0x598] sm:$0xff] %v4359_v18  ;;  %v4779_v18 = vmul.f32 %v2972_v57, %v2971_v55  ;;  %v3011_v53 = vld [vmem:[%s6296_s1 + $0x658] sm:$0xff]  ;;  %v3014_v55 = vld [vmem:[%s6296_s1 + $0x260] sm:$0xff] }
  0x6d   :  { %2871 = vst [vmem:[%s6297_s2 + $0x1a0] sm:$0xff] %v4371_v6  ;;  %v4791_v6 = vmul.f32 %v2975_v0, %v2974_v58  ;;  %v3016_v57 = vld [vmem:[%s6295_s0 + $0x660] sm:$0xff]  ;;  %v3019_v0 = vld [vmem:[%s6295_s0 + $0x268] sm:$0xff] }
  0x6e   :  { %2874 = vst [vmem:[%s6297_s2 + $0x5a0] sm:$0xff] %v4383_v10  ;;  %v4803_v10 = vmul.f32 %v2978_v3, %v2977_v2  ;;  %v3017_v58 = vld [vmem:[%s6296_s1 + $0x660] sm:$0xff]  ;;  %v3020_v2 = vld [vmem:[%s6296_s1 + $0x268] sm:$0xff] }
  0x6f   :  { %2877 = vst [vmem:[%s6297_s2 + $0x1a8] sm:$0xff] %v4395_v29  ;;  %v4815_v29 = vmul.f32 %v2981_v7, %v2980_v4  ;;  %v3022_v3 = vld [vmem:[%s6295_s0 + $0x668] sm:$0xff]  ;;  %v3025_v7 = vld [vmem:[%s6295_s0 + $0x270] sm:$0xff] }
  0x70   :  { %2880 = vst [vmem:[%s6297_s2 + $0x5a8] sm:$0xff] %v4407_v14  ;;  %v4827_v14 = vmul.f32 %v2984_v13, %v2983_v9  ;;  %v3023_v4 = vld [vmem:[%s6296_s1 + $0x668] sm:$0xff]  ;;  %v3026_v9 = vld [vmem:[%s6296_s1 + $0x270] sm:$0xff] }
  0x71   :  { %2883 = vst [vmem:[%s6297_s2 + $0x1b0] sm:$0xff] %v4419_v15  ;;  %v4839_v15 = vmul.f32 %v2987_v17, %v2986_v16  ;;  %v3028_v13 = vld [vmem:[%s6295_s0 + $0x670] sm:$0xff]  ;;  %v3031_v17 = vld [vmem:[%s6295_s0 + $0x278] sm:$0xff] }
  0x72   :  { %2886 = vst [vmem:[%s6297_s2 + $0x5b0] sm:$0xff] %v4431_v39  ;;  %v4851_v39 = vmul.f32 %v2990_v21, %v2989_v20  ;;  %v3029_v16 = vld [vmem:[%s6296_s1 + $0x670] sm:$0xff]  ;;  %v3032_v20 = vld [vmem:[%s6296_s1 + $0x278] sm:$0xff] }
  0x73   :  { %2889 = vst [vmem:[%s6297_s2 + $0x1b8] sm:$0xff] %v4443_v19  ;;  %v4863_v19 = vmul.f32 %v2993_v26, %v2992_v25  ;;  %v3034_v21 = vld [vmem:[%s6295_s0 + $0x678] sm:$0xff]  ;;  %v3037_v26 = vld [vmem:[%s6295_s0 + $0x280] sm:$0xff] }
  0x74   :  { %2892 = vst [vmem:[%s6297_s2 + $0x5b8] sm:$0xff] %v4455_v23  ;;  %v4875_v23 = vmul.f32 %v2996_v30, %v2995_v27  ;;  %v3035_v25 = vld [vmem:[%s6296_s1 + $0x678] sm:$0xff]  ;;  %v3038_v27 = vld [vmem:[%s6296_s1 + $0x280] sm:$0xff] }
  0x75   :  { %2895 = vst [vmem:[%s6297_s2 + $0x1c0] sm:$0xff] %v4467_v49  ;;  %v4887_v49 = vmul.f32 %v2999_v34, %v2998_v31  ;;  %v3040_v30 = vld [vmem:[%s6295_s0 + $0x680] sm:$0xff]  ;;  %v3043_v34 = vld [vmem:[%s6295_s0 + $0x288] sm:$0xff] }
  0x76   :  { %2898 = vst [vmem:[%s6297_s2 + $0x5c0] sm:$0xff] %v4479_v24  ;;  %v4899_v24 = vmul.f32 %v3002_v38, %v3001_v36  ;;  %v3041_v31 = vld [vmem:[%s6296_s1 + $0x680] sm:$0xff]  ;;  %v3044_v36 = vld [vmem:[%s6296_s1 + $0x288] sm:$0xff] }
  0x77   :  { %2901 = vst [vmem:[%s6297_s2 + $0x1c8] sm:$0xff] %v4491_v28  ;;  %v4911_v28 = vmul.f32 %v3005_v43, %v3004_v40  ;;  %v3046_v38 = vld [vmem:[%s6295_s0 + $0x688] sm:$0xff]  ;;  %v3049_v43 = vld [vmem:[%s6295_s0 + $0x290] sm:$0xff] }
  0x78   :  { %2904 = vst [vmem:[%s6297_s2 + $0x5c8] sm:$0xff] %v4503_v63  ;;  %v4923_v63 = vmul.f32 %v3008_v45, %v3007_v44  ;;  %v3047_v40 = vld [vmem:[%s6296_s1 + $0x688] sm:$0xff]  ;;  %v3050_v44 = vld [vmem:[%s6296_s1 + $0x290] sm:$0xff] }
  0x79   :  { %2907 = vst [vmem:[%s6297_s2 + $0x1d0] sm:$0xff] %v4515_v32  ;;  %v4935_v32 = vmul.f32 %v3011_v53, %v3010_v48  ;;  %v3052_v45 = vld [vmem:[%s6295_s0 + $0x690] sm:$0xff]  ;;  %v3055_v53 = vld [vmem:[%s6295_s0 + $0x298] sm:$0xff] }
  0x7a   :  { %2910 = vst [vmem:[%s6297_s2 + $0x5d0] sm:$0xff] %v4527_v33  ;;  %v4947_v33 = vmul.f32 %v3014_v55, %v3013_v54  ;;  %v3053_v48 = vld [vmem:[%s6296_s1 + $0x690] sm:$0xff]  ;;  %v3056_v54 = vld [vmem:[%s6296_s1 + $0x298] sm:$0xff] }
  0x7b   :  { %2913 = vst [vmem:[%s6297_s2 + $0x1d8] sm:$0xff] %v4539_v11  ;;  %v4959_v11 = vmul.f32 %v3017_v58, %v3016_v57  ;;  %v3058_v55 = vld [vmem:[%s6295_s0 + $0x698] sm:$0xff]  ;;  %v3061_v58 = vld [vmem:[%s6295_s0 + $0x2a0] sm:$0xff] }
  0x7c   :  { %2916 = vst [vmem:[%s6297_s2 + $0x5d8] sm:$0xff] %v4551_v37  ;;  %v4971_v37 = vmul.f32 %v3020_v2, %v3019_v0  ;;  %v3059_v57 = vld [vmem:[%s6296_s1 + $0x698] sm:$0xff]  ;;  %v3062_v0 = vld [vmem:[%s6296_s1 + $0x2a0] sm:$0xff] }
  0x7d   :  { %2919 = vst [vmem:[%s6297_s2 + $0x1e0] sm:$0xff] %v4563_v41  ;;  %v4983_v41 = vmul.f32 %v3023_v4, %v3022_v3  ;;  %v3064_v2 = vld [vmem:[%s6295_s0 + $0x6a0] sm:$0xff]  ;;  %v3067_v4 = vld [vmem:[%s6295_s0 + $0x2a8] sm:$0xff] }
  0x7e   :  { %2922 = vst [vmem:[%s6297_s2 + $0x5e0] sm:$0xff] %v4575_v22  ;;  %v4995_v22 = vmul.f32 %v3026_v9, %v3025_v7  ;;  %v3065_v3 = vld [vmem:[%s6296_s1 + $0x6a0] sm:$0xff]  ;;  %v3068_v7 = vld [vmem:[%s6296_s1 + $0x2a8] sm:$0xff] }
  0x7f   :  { %2925 = vst [vmem:[%s6297_s2 + $0x1e8] sm:$0xff] %v4587_v42  ;;  %v5007_v42 = vmul.f32 %v3029_v16, %v3028_v13  ;;  %v3070_v9 = vld [vmem:[%s6295_s0 + $0x6a8] sm:$0xff]  ;;  %v3073_v16 = vld [vmem:[%s6295_s0 + $0x2b0] sm:$0xff] }
  0x80   :  { %2928 = vst [vmem:[%s6297_s2 + $0x5e8] sm:$0xff] %v4599_v46  ;;  %v5019_v46 = vmul.f32 %v3032_v20, %v3031_v17  ;;  %v3071_v13 = vld [vmem:[%s6296_s1 + $0x6a8] sm:$0xff]  ;;  %v3074_v17 = vld [vmem:[%s6296_s1 + $0x2b0] sm:$0xff] }
  0x81   :  { %2931 = vst [vmem:[%s6297_s2 + $0x1f0] sm:$0xff] %v4611_v35  ;;  %v5031_v35 = vmul.f32 %v3035_v25, %v3034_v21  ;;  %v3076_v20 = vld [vmem:[%s6295_s0 + $0x6b0] sm:$0xff]  ;;  %v3079_v25 = vld [vmem:[%s6295_s0 + $0x2b8] sm:$0xff] }
  0x82   :  { %2934 = vst [vmem:[%s6297_s2 + $0x5f0] sm:$0xff] %v4623_v50  ;;  %v5043_v50 = vmul.f32 %v3038_v27, %v3037_v26  ;;  %v3077_v21 = vld [vmem:[%s6296_s1 + $0x6b0] sm:$0xff]  ;;  %v3080_v26 = vld [vmem:[%s6296_s1 + $0x2b8] sm:$0xff] }
  0x83   :  { %2937 = vst [vmem:[%s6297_s2 + $0x1f8] sm:$0xff] %v4635_v51  ;;  %v5055_v51 = vmul.f32 %v3041_v31, %v3040_v30  ;;  %v3082_v27 = vld [vmem:[%s6295_s0 + $0x6b8] sm:$0xff]  ;;  %v3085_v31 = vld [vmem:[%s6295_s0 + $0x2c0] sm:$0xff] }
  0x84   :  { %2940 = vst [vmem:[%s6297_s2 + $0x5f8] sm:$0xff] %v4647_v47  ;;  %v5067_v47 = vmul.f32 %v3044_v36, %v3043_v34  ;;  %v3083_v30 = vld [vmem:[%s6296_s1 + $0x6b8] sm:$0xff]  ;;  %v3086_v34 = vld [vmem:[%s6296_s1 + $0x2c0] sm:$0xff] }
  0x85   :  { %2943 = vst [vmem:[%s6297_s2 + $0x200] sm:$0xff] %v4659_v52  ;;  %v5079_v52 = vmul.f32 %v3047_v40, %v3046_v38  ;;  %v3088_v36 = vld [vmem:[%s6295_s0 + $0x6c0] sm:$0xff]  ;;  %v3091_v40 = vld [vmem:[%s6295_s0 + $0x2c8] sm:$0xff] }
  0x86   :  { %2946 = vst [vmem:[%s6297_s2 + $0x600] sm:$0xff] %v4671_v56  ;;  %v5091_v56 = vmul.f32 %v3050_v44, %v3049_v43  ;;  %v3089_v38 = vld [vmem:[%s6296_s1 + $0x6c0] sm:$0xff]  ;;  %v3092_v43 = vld [vmem:[%s6296_s1 + $0x2c8] sm:$0xff] }
  0x87   :  { %2949 = vst [vmem:[%s6297_s2 + $0x208] sm:$0xff] %v4683_v59  ;;  %v5103_v59 = vmul.f32 %v3053_v48, %v3052_v45  ;;  %v3094_v44 = vld [vmem:[%s6295_s0 + $0x6c8] sm:$0xff]  ;;  %v3097_v48 = vld [vmem:[%s6295_s0 + $0x2d0] sm:$0xff] }
  0x88   :  { %2952 = vst [vmem:[%s6297_s2 + $0x608] sm:$0xff] %v4695_v62  ;;  %v5115_v62 = vmul.f32 %v3056_v54, %v3055_v53  ;;  %v3095_v45 = vld [vmem:[%s6296_s1 + $0x6c8] sm:$0xff]  ;;  %v3098_v53 = vld [vmem:[%s6296_s1 + $0x2d0] sm:$0xff] }
  0x89   :  { %2955 = vst [vmem:[%s6297_s2 + $0x210] sm:$0xff] %v4707_v60  ;;  %v5127_v60 = vmul.f32 %v3059_v57, %v3058_v55  ;;  %v3100_v54 = vld [vmem:[%s6295_s0 + $0x6d0] sm:$0xff]  ;;  %v3103_v57 = vld [vmem:[%s6295_s0 + $0x2d8] sm:$0xff] }
  0x8a   :  { %2958 = vst [vmem:[%s6297_s2 + $0x610] sm:$0xff] %v4719_v12  ;;  %v5139_v12 = vmul.f32 %v3062_v0, %v3061_v58  ;;  %v3101_v55 = vld [vmem:[%s6296_s1 + $0x6d0] sm:$0xff]  ;;  %v3104_v58 = vld [vmem:[%s6296_s1 + $0x2d8] sm:$0xff] }
  0x8b   :  { %2961 = vst [vmem:[%s6297_s2 + $0x218] sm:$0xff] %v4731_v61  ;;  %v5151_v61 = vmul.f32 %v3065_v3, %v3064_v2  ;;  %v3106_v0 = vld [vmem:[%s6295_s0 + $0x6d8] sm:$0xff]  ;;  %v3109_v3 = vld [vmem:[%s6295_s0 + $0x2e0] sm:$0xff] }
  0x8c   :  { %2964 = vst [vmem:[%s6297_s2 + $0x618] sm:$0xff] %v4743_v8  ;;  %v5163_v8 = vmul.f32 %v3068_v7, %v3067_v4  ;;  %v3107_v2 = vld [vmem:[%s6296_s1 + $0x6d8] sm:$0xff]  ;;  %v3110_v4 = vld [vmem:[%s6296_s1 + $0x2e0] sm:$0xff] }
  0x8d   :  { %2967 = vst [vmem:[%s6297_s2 + $0x220] sm:$0xff] %v4755_v1  ;;  %v5175_v1 = vmul.f32 %v3071_v13, %v3070_v9  ;;  %v3112_v7 = vld [vmem:[%s6295_s0 + $0x6e0] sm:$0xff]  ;;  %v3115_v13 = vld [vmem:[%s6295_s0 + $0x2e8] sm:$0xff] }
  0x8e   :  { %2970 = vst [vmem:[%s6297_s2 + $0x620] sm:$0xff] %v4767_v5  ;;  %v5187_v5 = vmul.f32 %v3074_v17, %v3073_v16  ;;  %v3113_v9 = vld [vmem:[%s6296_s1 + $0x6e0] sm:$0xff]  ;;  %v3116_v16 = vld [vmem:[%s6296_s1 + $0x2e8] sm:$0xff] }
  0x8f   :  { %2973 = vst [vmem:[%s6297_s2 + $0x228] sm:$0xff] %v4779_v18  ;;  %v5199_v18 = vmul.f32 %v3077_v21, %v3076_v20  ;;  %v3118_v17 = vld [vmem:[%s6295_s0 + $0x6e8] sm:$0xff]  ;;  %v3121_v21 = vld [vmem:[%s6295_s0 + $0x2f0] sm:$0xff] }
  0x90   :  { %2976 = vst [vmem:[%s6297_s2 + $0x628] sm:$0xff] %v4791_v6  ;;  %v5211_v6 = vmul.f32 %v3080_v26, %v3079_v25  ;;  %v3119_v20 = vld [vmem:[%s6296_s1 + $0x6e8] sm:$0xff]  ;;  %v3122_v25 = vld [vmem:[%s6296_s1 + $0x2f0] sm:$0xff] }
  0x91   :  { %2979 = vst [vmem:[%s6297_s2 + $0x230] sm:$0xff] %v4803_v10  ;;  %v5223_v10 = vmul.f32 %v3083_v30, %v3082_v27  ;;  %v3124_v26 = vld [vmem:[%s6295_s0 + $0x6f0] sm:$0xff]  ;;  %v3127_v30 = vld [vmem:[%s6295_s0 + $0x2f8] sm:$0xff] }
  0x92   :  { %2982 = vst [vmem:[%s6297_s2 + $0x630] sm:$0xff] %v4815_v29  ;;  %v5235_v29 = vmul.f32 %v3086_v34, %v3085_v31  ;;  %v3125_v27 = vld [vmem:[%s6296_s1 + $0x6f0] sm:$0xff]  ;;  %v3128_v31 = vld [vmem:[%s6296_s1 + $0x2f8] sm:$0xff] }
  0x93   :  { %2985 = vst [vmem:[%s6297_s2 + $0x238] sm:$0xff] %v4827_v14  ;;  %v5247_v14 = vmul.f32 %v3089_v38, %v3088_v36  ;;  %v3130_v34 = vld [vmem:[%s6295_s0 + $0x6f8] sm:$0xff]  ;;  %v3133_v38 = vld [vmem:[%s6295_s0 + $0x300] sm:$0xff] }
  0x94   :  { %2988 = vst [vmem:[%s6297_s2 + $0x638] sm:$0xff] %v4839_v15  ;;  %v5259_v15 = vmul.f32 %v3092_v43, %v3091_v40  ;;  %v3131_v36 = vld [vmem:[%s6296_s1 + $0x6f8] sm:$0xff]  ;;  %v3134_v40 = vld [vmem:[%s6296_s1 + $0x300] sm:$0xff] }
  0x95   :  { %2991 = vst [vmem:[%s6297_s2 + $0x240] sm:$0xff] %v4851_v39  ;;  %v5271_v39 = vmul.f32 %v3095_v45, %v3094_v44  ;;  %v3136_v43 = vld [vmem:[%s6295_s0 + $0x700] sm:$0xff]  ;;  %v3139_v45 = vld [vmem:[%s6295_s0 + $0x308] sm:$0xff] }
  0x96   :  { %2994 = vst [vmem:[%s6297_s2 + $0x640] sm:$0xff] %v4863_v19  ;;  %v5283_v19 = vmul.f32 %v3098_v53, %v3097_v48  ;;  %v3137_v44 = vld [vmem:[%s6296_s1 + $0x700] sm:$0xff]  ;;  %v3140_v48 = vld [vmem:[%s6296_s1 + $0x308] sm:$0xff] }
  0x97   :  { %2997 = vst [vmem:[%s6297_s2 + $0x248] sm:$0xff] %v4875_v23  ;;  %v5295_v23 = vmul.f32 %v3101_v55, %v3100_v54  ;;  %v3142_v53 = vld [vmem:[%s6295_s0 + $0x708] sm:$0xff]  ;;  %v3145_v55 = vld [vmem:[%s6295_s0 + $0x310] sm:$0xff] }
  0x98   :  { %3000 = vst [vmem:[%s6297_s2 + $0x648] sm:$0xff] %v4887_v49  ;;  %v5307_v49 = vmul.f32 %v3104_v58, %v3103_v57  ;;  %v3143_v54 = vld [vmem:[%s6296_s1 + $0x708] sm:$0xff]  ;;  %v3146_v57 = vld [vmem:[%s6296_s1 + $0x310] sm:$0xff] }
  0x99   :  { %3003 = vst [vmem:[%s6297_s2 + $0x250] sm:$0xff] %v4899_v24  ;;  %v5319_v24 = vmul.f32 %v3107_v2, %v3106_v0  ;;  %v3148_v58 = vld [vmem:[%s6295_s0 + $0x710] sm:$0xff]  ;;  %v3151_v2 = vld [vmem:[%s6295_s0 + $0x318] sm:$0xff] }
  0x9a   :  { %3006 = vst [vmem:[%s6297_s2 + $0x650] sm:$0xff] %v4911_v28  ;;  %v5331_v28 = vmul.f32 %v3110_v4, %v3109_v3  ;;  %v3149_v0 = vld [vmem:[%s6296_s1 + $0x710] sm:$0xff]  ;;  %v3152_v3 = vld [vmem:[%s6296_s1 + $0x318] sm:$0xff] }
  0x9b   :  { %3009 = vst [vmem:[%s6297_s2 + $0x258] sm:$0xff] %v4923_v63  ;;  %v5343_v63 = vmul.f32 %v3113_v9, %v3112_v7  ;;  %v3154_v4 = vld [vmem:[%s6295_s0 + $0x718] sm:$0xff]  ;;  %v3157_v9 = vld [vmem:[%s6295_s0 + $0x320] sm:$0xff] }
  0x9c   :  { %3012 = vst [vmem:[%s6297_s2 + $0x658] sm:$0xff] %v4935_v32  ;;  %v5355_v32 = vmul.f32 %v3116_v16, %v3115_v13  ;;  %v3155_v7 = vld [vmem:[%s6296_s1 + $0x718] sm:$0xff]  ;;  %v3158_v13 = vld [vmem:[%s6296_s1 + $0x320] sm:$0xff] }
  0x9d   :  { %3015 = vst [vmem:[%s6297_s2 + $0x260] sm:$0xff] %v4947_v33  ;;  %v5367_v33 = vmul.f32 %v3119_v20, %v3118_v17  ;;  %v3160_v16 = vld [vmem:[%s6295_s0 + $0x720] sm:$0xff]  ;;  %v3163_v20 = vld [vmem:[%s6295_s0 + $0x328] sm:$0xff] }
  0x9e   :  { %3018 = vst [vmem:[%s6297_s2 + $0x660] sm:$0xff] %v4959_v11  ;;  %v5379_v11 = vmul.f32 %v3122_v25, %v3121_v21  ;;  %v3161_v17 = vld [vmem:[%s6296_s1 + $0x720] sm:$0xff]  ;;  %v3164_v21 = vld [vmem:[%s6296_s1 + $0x328] sm:$0xff] }
  0x9f   :  { %3021 = vst [vmem:[%s6297_s2 + $0x268] sm:$0xff] %v4971_v37  ;;  %v5391_v37 = vmul.f32 %v3125_v27, %v3124_v26  ;;  %v3166_v25 = vld [vmem:[%s6295_s0 + $0x728] sm:$0xff]  ;;  %v3169_v27 = vld [vmem:[%s6295_s0 + $0x330] sm:$0xff] }
  0xa0   :  { %3024 = vst [vmem:[%s6297_s2 + $0x668] sm:$0xff] %v4983_v41  ;;  %v5403_v41 = vmul.f32 %v3128_v31, %v3127_v30  ;;  %v3167_v26 = vld [vmem:[%s6296_s1 + $0x728] sm:$0xff]  ;;  %v3170_v30 = vld [vmem:[%s6296_s1 + $0x330] sm:$0xff] }
  0xa1   :  { %3027 = vst [vmem:[%s6297_s2 + $0x270] sm:$0xff] %v4995_v22  ;;  %v5415_v22 = vmul.f32 %v3131_v36, %v3130_v34  ;;  %v3172_v31 = vld [vmem:[%s6295_s0 + $0x730] sm:$0xff]  ;;  %v3175_v36 = vld [vmem:[%s6295_s0 + $0x338] sm:$0xff] }
  0xa2   :  { %3030 = vst [vmem:[%s6297_s2 + $0x670] sm:$0xff] %v5007_v42  ;;  %v5427_v42 = vmul.f32 %v3134_v40, %v3133_v38  ;;  %v3173_v34 = vld [vmem:[%s6296_s1 + $0x730] sm:$0xff]  ;;  %v3176_v38 = vld [vmem:[%s6296_s1 + $0x338] sm:$0xff] }
  0xa3   :  { %3033 = vst [vmem:[%s6297_s2 + $0x278] sm:$0xff] %v5019_v46  ;;  %v5439_v46 = vmul.f32 %v3137_v44, %v3136_v43  ;;  %v3178_v40 = vld [vmem:[%s6295_s0 + $0x738] sm:$0xff]  ;;  %v3181_v44 = vld [vmem:[%s6295_s0 + $0x340] sm:$0xff] }
  0xa4   :  { %3036 = vst [vmem:[%s6297_s2 + $0x678] sm:$0xff] %v5031_v35  ;;  %v5451_v35 = vmul.f32 %v3140_v48, %v3139_v45  ;;  %v3179_v43 = vld [vmem:[%s6296_s1 + $0x738] sm:$0xff]  ;;  %v3182_v45 = vld [vmem:[%s6296_s1 + $0x340] sm:$0xff] }
  0xa5   :  { %3039 = vst [vmem:[%s6297_s2 + $0x280] sm:$0xff] %v5043_v50  ;;  %v5463_v50 = vmul.f32 %v3143_v54, %v3142_v53  ;;  %v3184_v48 = vld [vmem:[%s6295_s0 + $0x740] sm:$0xff]  ;;  %v3187_v54 = vld [vmem:[%s6295_s0 + $0x348] sm:$0xff] }
  0xa6   :  { %3042 = vst [vmem:[%s6297_s2 + $0x680] sm:$0xff] %v5055_v51  ;;  %v5475_v51 = vmul.f32 %v3146_v57, %v3145_v55  ;;  %v3185_v53 = vld [vmem:[%s6296_s1 + $0x740] sm:$0xff]  ;;  %v3188_v55 = vld [vmem:[%s6296_s1 + $0x348] sm:$0xff] }
  0xa7   :  { %3045 = vst [vmem:[%s6297_s2 + $0x288] sm:$0xff] %v5067_v47  ;;  %v5487_v47 = vmul.f32 %v3149_v0, %v3148_v58  ;;  %v3190_v57 = vld [vmem:[%s6295_s0 + $0x748] sm:$0xff]  ;;  %v3193_v0 = vld [vmem:[%s6295_s0 + $0x350] sm:$0xff] }
  0xa8   :  { %3048 = vst [vmem:[%s6297_s2 + $0x688] sm:$0xff] %v5079_v52  ;;  %v5499_v52 = vmul.f32 %v3152_v3, %v3151_v2  ;;  %v3191_v58 = vld [vmem:[%s6296_s1 + $0x748] sm:$0xff]  ;;  %v3194_v2 = vld [vmem:[%s6296_s1 + $0x350] sm:$0xff] }
  0xa9   :  { %3051 = vst [vmem:[%s6297_s2 + $0x290] sm:$0xff] %v5091_v56  ;;  %v5511_v56 = vmul.f32 %v3155_v7, %v3154_v4  ;;  %v3196_v3 = vld [vmem:[%s6295_s0 + $0x750] sm:$0xff]  ;;  %v3199_v7 = vld [vmem:[%s6295_s0 + $0x358] sm:$0xff] }
  0xaa   :  { %3054 = vst [vmem:[%s6297_s2 + $0x690] sm:$0xff] %v5103_v59  ;;  %v5523_v59 = vmul.f32 %v3158_v13, %v3157_v9  ;;  %v3197_v4 = vld [vmem:[%s6296_s1 + $0x750] sm:$0xff]  ;;  %v3200_v9 = vld [vmem:[%s6296_s1 + $0x358] sm:$0xff] }
  0xab   :  { %3057 = vst [vmem:[%s6297_s2 + $0x298] sm:$0xff] %v5115_v62  ;;  %v5535_v62 = vmul.f32 %v3161_v17, %v3160_v16  ;;  %v3202_v13 = vld [vmem:[%s6295_s0 + $0x758] sm:$0xff]  ;;  %v3205_v17 = vld [vmem:[%s6295_s0 + $0x360] sm:$0xff] }
  0xac   :  { %3060 = vst [vmem:[%s6297_s2 + $0x698] sm:$0xff] %v5127_v60  ;;  %v5547_v60 = vmul.f32 %v3164_v21, %v3163_v20  ;;  %v3203_v16 = vld [vmem:[%s6296_s1 + $0x758] sm:$0xff]  ;;  %v3206_v20 = vld [vmem:[%s6296_s1 + $0x360] sm:$0xff] }
  0xad   :  { %3063 = vst [vmem:[%s6297_s2 + $0x2a0] sm:$0xff] %v5139_v12  ;;  %v5559_v12 = vmul.f32 %v3167_v26, %v3166_v25  ;;  %v3208_v21 = vld [vmem:[%s6295_s0 + $0x760] sm:$0xff]  ;;  %v3211_v26 = vld [vmem:[%s6295_s0 + $0x368] sm:$0xff] }
  0xae   :  { %3066 = vst [vmem:[%s6297_s2 + $0x6a0] sm:$0xff] %v5151_v61  ;;  %v5571_v61 = vmul.f32 %v3170_v30, %v3169_v27  ;;  %v3209_v25 = vld [vmem:[%s6296_s1 + $0x760] sm:$0xff]  ;;  %v3212_v27 = vld [vmem:[%s6296_s1 + $0x368] sm:$0xff] }
  0xaf   :  { %3069 = vst [vmem:[%s6297_s2 + $0x2a8] sm:$0xff] %v5163_v8  ;;  %v5583_v8 = vmul.f32 %v3173_v34, %v3172_v31  ;;  %v3214_v30 = vld [vmem:[%s6295_s0 + $0x768] sm:$0xff]  ;;  %v3217_v34 = vld [vmem:[%s6295_s0 + $0x370] sm:$0xff] }
  0xb0   :  { %3072 = vst [vmem:[%s6297_s2 + $0x6a8] sm:$0xff] %v5175_v1  ;;  %v5595_v1 = vmul.f32 %v3176_v38, %v3175_v36  ;;  %v3215_v31 = vld [vmem:[%s6296_s1 + $0x768] sm:$0xff]  ;;  %v3218_v36 = vld [vmem:[%s6296_s1 + $0x370] sm:$0xff] }
  0xb1   :  { %3075 = vst [vmem:[%s6297_s2 + $0x2b0] sm:$0xff] %v5187_v5  ;;  %v5607_v5 = vmul.f32 %v3179_v43, %v3178_v40  ;;  %v3220_v38 = vld [vmem:[%s6295_s0 + $0x770] sm:$0xff]  ;;  %v3223_v43 = vld [vmem:[%s6295_s0 + $0x378] sm:$0xff] }
  0xb2   :  { %3078 = vst [vmem:[%s6297_s2 + $0x6b0] sm:$0xff] %v5199_v18  ;;  %v5619_v18 = vmul.f32 %v3182_v45, %v3181_v44  ;;  %v3221_v40 = vld [vmem:[%s6296_s1 + $0x770] sm:$0xff]  ;;  %v3224_v44 = vld [vmem:[%s6296_s1 + $0x378] sm:$0xff] }
  0xb3   :  { %3081 = vst [vmem:[%s6297_s2 + $0x2b8] sm:$0xff] %v5211_v6  ;;  %v5631_v6 = vmul.f32 %v3185_v53, %v3184_v48  ;;  %v3226_v45 = vld [vmem:[%s6295_s0 + $0x778] sm:$0xff]  ;;  %v3229_v53 = vld [vmem:[%s6295_s0 + $0x380] sm:$0xff] }
  0xb4   :  { %3084 = vst [vmem:[%s6297_s2 + $0x6b8] sm:$0xff] %v5223_v10  ;;  %v5643_v10 = vmul.f32 %v3188_v55, %v3187_v54  ;;  %v3227_v48 = vld [vmem:[%s6296_s1 + $0x778] sm:$0xff]  ;;  %v3230_v54 = vld [vmem:[%s6296_s1 + $0x380] sm:$0xff] }
  0xb5   :  { %3087 = vst [vmem:[%s6297_s2 + $0x2c0] sm:$0xff] %v5235_v29  ;;  %v5655_v29 = vmul.f32 %v3191_v58, %v3190_v57  ;;  %v3232_v55 = vld [vmem:[%s6295_s0 + $0x780] sm:$0xff]  ;;  %v3235_v58 = vld [vmem:[%s6295_s0 + $0x388] sm:$0xff] }
  0xb6   :  { %3090 = vst [vmem:[%s6297_s2 + $0x6c0] sm:$0xff] %v5247_v14  ;;  %v5667_v14 = vmul.f32 %v3194_v2, %v3193_v0  ;;  %v3233_v57 = vld [vmem:[%s6296_s1 + $0x780] sm:$0xff]  ;;  %v3236_v0 = vld [vmem:[%s6296_s1 + $0x388] sm:$0xff] }
  0xb7   :  { %3093 = vst [vmem:[%s6297_s2 + $0x2c8] sm:$0xff] %v5259_v15  ;;  %v5679_v15 = vmul.f32 %v3197_v4, %v3196_v3  ;;  %v3238_v2 = vld [vmem:[%s6295_s0 + $0x788] sm:$0xff]  ;;  %v3241_v4 = vld [vmem:[%s6295_s0 + $0x390] sm:$0xff] }
  0xb8   :  { %3096 = vst [vmem:[%s6297_s2 + $0x6c8] sm:$0xff] %v5271_v39  ;;  %v5691_v39 = vmul.f32 %v3200_v9, %v3199_v7  ;;  %v3239_v3 = vld [vmem:[%s6296_s1 + $0x788] sm:$0xff]  ;;  %v3242_v7 = vld [vmem:[%s6296_s1 + $0x390] sm:$0xff] }
  0xb9   :  { %3099 = vst [vmem:[%s6297_s2 + $0x2d0] sm:$0xff] %v5283_v19  ;;  %v5703_v19 = vmul.f32 %v3203_v16, %v3202_v13  ;;  %v3244_v9 = vld [vmem:[%s6295_s0 + $0x790] sm:$0xff]  ;;  %v3247_v16 = vld [vmem:[%s6295_s0 + $0x398] sm:$0xff] }
  0xba   :  { %3102 = vst [vmem:[%s6297_s2 + $0x6d0] sm:$0xff] %v5295_v23  ;;  %v5715_v23 = vmul.f32 %v3206_v20, %v3205_v17  ;;  %v3245_v13 = vld [vmem:[%s6296_s1 + $0x790] sm:$0xff]  ;;  %v3248_v17 = vld [vmem:[%s6296_s1 + $0x398] sm:$0xff] }
  0xbb   :  { %3105 = vst [vmem:[%s6297_s2 + $0x2d8] sm:$0xff] %v5307_v49  ;;  %v5727_v49 = vmul.f32 %v3209_v25, %v3208_v21  ;;  %v3250_v20 = vld [vmem:[%s6295_s0 + $0x798] sm:$0xff]  ;;  %v3253_v25 = vld [vmem:[%s6295_s0 + $0x3a0] sm:$0xff] }
  0xbc   :  { %3108 = vst [vmem:[%s6297_s2 + $0x6d8] sm:$0xff] %v5319_v24  ;;  %v5739_v24 = vmul.f32 %v3212_v27, %v3211_v26  ;;  %v3251_v21 = vld [vmem:[%s6296_s1 + $0x798] sm:$0xff]  ;;  %v3254_v26 = vld [vmem:[%s6296_s1 + $0x3a0] sm:$0xff] }
  0xbd   :  { %3111 = vst [vmem:[%s6297_s2 + $0x2e0] sm:$0xff] %v5331_v28  ;;  %v5751_v28 = vmul.f32 %v3215_v31, %v3214_v30  ;;  %v3256_v27 = vld [vmem:[%s6295_s0 + $0x7a0] sm:$0xff]  ;;  %v3259_v31 = vld [vmem:[%s6295_s0 + $0x3a8] sm:$0xff] }
  0xbe   :  { %3114 = vst [vmem:[%s6297_s2 + $0x6e0] sm:$0xff] %v5343_v63  ;;  %v5763_v63 = vmul.f32 %v3218_v36, %v3217_v34  ;;  %v3257_v30 = vld [vmem:[%s6296_s1 + $0x7a0] sm:$0xff]  ;;  %v3260_v34 = vld [vmem:[%s6296_s1 + $0x3a8] sm:$0xff] }
  0xbf   :  { %3117 = vst [vmem:[%s6297_s2 + $0x2e8] sm:$0xff] %v5355_v32  ;;  %v5775_v32 = vmul.f32 %v3221_v40, %v3220_v38  ;;  %v3262_v36 = vld [vmem:[%s6295_s0 + $0x7a8] sm:$0xff]  ;;  %v3265_v40 = vld [vmem:[%s6295_s0 + $0x3b0] sm:$0xff] }
  0xc0   :  { %3120 = vst [vmem:[%s6297_s2 + $0x6e8] sm:$0xff] %v5367_v33  ;;  %v5787_v33 = vmul.f32 %v3224_v44, %v3223_v43  ;;  %v3263_v38 = vld [vmem:[%s6296_s1 + $0x7a8] sm:$0xff]  ;;  %v3266_v43 = vld [vmem:[%s6296_s1 + $0x3b0] sm:$0xff] }
  0xc1   :  { %3123 = vst [vmem:[%s6297_s2 + $0x2f0] sm:$0xff] %v5379_v11  ;;  %v5799_v11 = vmul.f32 %v3227_v48, %v3226_v45  ;;  %v3268_v44 = vld [vmem:[%s6295_s0 + $0x7b0] sm:$0xff]  ;;  %v3271_v48 = vld [vmem:[%s6295_s0 + $0x3b8] sm:$0xff] }
  0xc2   :  { %3126 = vst [vmem:[%s6297_s2 + $0x6f0] sm:$0xff] %v5391_v37  ;;  %v5811_v37 = vmul.f32 %v3230_v54, %v3229_v53  ;;  %v3269_v45 = vld [vmem:[%s6296_s1 + $0x7b0] sm:$0xff]  ;;  %v3272_v53 = vld [vmem:[%s6296_s1 + $0x3b8] sm:$0xff] }
  0xc3   :  { %3129 = vst [vmem:[%s6297_s2 + $0x2f8] sm:$0xff] %v5403_v41  ;;  %v5823_v41 = vmul.f32 %v3233_v57, %v3232_v55  ;;  %v3274_v54 = vld [vmem:[%s6295_s0 + $0x7b8] sm:$0xff]  ;;  %v3277_v57 = vld [vmem:[%s6295_s0 + $0x3c0] sm:$0xff] }
  0xc4   :  { %3132 = vst [vmem:[%s6297_s2 + $0x6f8] sm:$0xff] %v5415_v22  ;;  %v5835_v22 = vmul.f32 %v3236_v0, %v3235_v58  ;;  %v3275_v55 = vld [vmem:[%s6296_s1 + $0x7b8] sm:$0xff]  ;;  %v3278_v58 = vld [vmem:[%s6296_s1 + $0x3c0] sm:$0xff] }
  0xc5   :  { %3135 = vst [vmem:[%s6297_s2 + $0x300] sm:$0xff] %v5427_v42  ;;  %v5847_v42 = vmul.f32 %v3239_v3, %v3238_v2  ;;  %v3280_v0 = vld [vmem:[%s6295_s0 + $0x7c0] sm:$0xff]  ;;  %v3283_v3 = vld [vmem:[%s6295_s0 + $0x3c8] sm:$0xff] }
  0xc6   :  { %3138 = vst [vmem:[%s6297_s2 + $0x700] sm:$0xff] %v5439_v46  ;;  %v5859_v46 = vmul.f32 %v3242_v7, %v3241_v4  ;;  %v3281_v2 = vld [vmem:[%s6296_s1 + $0x7c0] sm:$0xff]  ;;  %v3284_v4 = vld [vmem:[%s6296_s1 + $0x3c8] sm:$0xff] }
  0xc7   :  { %3141 = vst [vmem:[%s6297_s2 + $0x308] sm:$0xff] %v5451_v35  ;;  %v5871_v35 = vmul.f32 %v3245_v13, %v3244_v9  ;;  %v3286_v7 = vld [vmem:[%s6295_s0 + $0x7c8] sm:$0xff]  ;;  %v3289_v13 = vld [vmem:[%s6295_s0 + $0x3d0] sm:$0xff] }
  0xc8   :  { %3144 = vst [vmem:[%s6297_s2 + $0x708] sm:$0xff] %v5463_v50  ;;  %v5883_v50 = vmul.f32 %v3248_v17, %v3247_v16  ;;  %v3287_v9 = vld [vmem:[%s6296_s1 + $0x7c8] sm:$0xff]  ;;  %v3290_v16 = vld [vmem:[%s6296_s1 + $0x3d0] sm:$0xff] }
  0xc9   :  { %3147 = vst [vmem:[%s6297_s2 + $0x310] sm:$0xff] %v5475_v51  ;;  %v5895_v51 = vmul.f32 %v3251_v21, %v3250_v20  ;;  %v3292_v17 = vld [vmem:[%s6295_s0 + $0x7d0] sm:$0xff]  ;;  %v3295_v21 = vld [vmem:[%s6295_s0 + $0x3d8] sm:$0xff] }
  0xca   :  { %3150 = vst [vmem:[%s6297_s2 + $0x710] sm:$0xff] %v5487_v47  ;;  %v5907_v47 = vmul.f32 %v3254_v26, %v3253_v25  ;;  %v3293_v20 = vld [vmem:[%s6296_s1 + $0x7d0] sm:$0xff]  ;;  %v3296_v25 = vld [vmem:[%s6296_s1 + $0x3d8] sm:$0xff] }
  0xcb   :  { %3153 = vst [vmem:[%s6297_s2 + $0x318] sm:$0xff] %v5499_v52  ;;  %v5919_v52 = vmul.f32 %v3257_v30, %v3256_v27  ;;  %v3298_v26 = vld [vmem:[%s6295_s0 + $0x7d8] sm:$0xff]  ;;  %v3301_v30 = vld [vmem:[%s6295_s0 + $0x3e0] sm:$0xff] }
  0xcc   :  { %3156 = vst [vmem:[%s6297_s2 + $0x718] sm:$0xff] %v5511_v56  ;;  %v5931_v56 = vmul.f32 %v3260_v34, %v3259_v31  ;;  %v3299_v27 = vld [vmem:[%s6296_s1 + $0x7d8] sm:$0xff]  ;;  %v3302_v31 = vld [vmem:[%s6296_s1 + $0x3e0] sm:$0xff] }
  0xcd   :  { %3159 = vst [vmem:[%s6297_s2 + $0x320] sm:$0xff] %v5523_v59  ;;  %v5943_v59 = vmul.f32 %v3263_v38, %v3262_v36  ;;  %v3304_v34 = vld [vmem:[%s6295_s0 + $0x7e0] sm:$0xff]  ;;  %v3307_v38 = vld [vmem:[%s6295_s0 + $0x3e8] sm:$0xff] }
  0xce   :  { %3162 = vst [vmem:[%s6297_s2 + $0x720] sm:$0xff] %v5535_v62  ;;  %v5955_v62 = vmul.f32 %v3266_v43, %v3265_v40  ;;  %v3305_v36 = vld [vmem:[%s6296_s1 + $0x7e0] sm:$0xff]  ;;  %v3308_v40 = vld [vmem:[%s6296_s1 + $0x3e8] sm:$0xff] }
  0xcf   :  { %3165 = vst [vmem:[%s6297_s2 + $0x328] sm:$0xff] %v5547_v60  ;;  %v5967_v60 = vmul.f32 %v3269_v45, %v3268_v44  ;;  %v3310_v43 = vld [vmem:[%s6295_s0 + $0x7e8] sm:$0xff]  ;;  %v3313_v45 = vld [vmem:[%s6295_s0 + $0x3f0] sm:$0xff] }
  0xd0   :  { %3168 = vst [vmem:[%s6297_s2 + $0x728] sm:$0xff] %v5559_v12  ;;  %v5979_v12 = vmul.f32 %v3272_v53, %v3271_v48  ;;  %v3311_v44 = vld [vmem:[%s6296_s1 + $0x7e8] sm:$0xff]  ;;  %v3314_v48 = vld [vmem:[%s6296_s1 + $0x3f0] sm:$0xff] }
  0xd1   :  { %3171 = vst [vmem:[%s6297_s2 + $0x330] sm:$0xff] %v5571_v61  ;;  %v5991_v61 = vmul.f32 %v3275_v55, %v3274_v54  ;;  %v3316_v53 = vld [vmem:[%s6295_s0 + $0x7f0] sm:$0xff]  ;;  %v3319_v55 = vld [vmem:[%s6295_s0 + $0x3f8] sm:$0xff] }
  0xd2   :  { %3174 = vst [vmem:[%s6297_s2 + $0x730] sm:$0xff] %v5583_v8  ;;  %v6003_v8 = vmul.f32 %v3278_v58, %v3277_v57  ;;  %v3317_v54 = vld [vmem:[%s6296_s1 + $0x7f0] sm:$0xff]  ;;  %v3320_v57 = vld [vmem:[%s6296_s1 + $0x3f8] sm:$0xff] }
  0xd3   :  { %3177 = vst [vmem:[%s6297_s2 + $0x338] sm:$0xff] %v5595_v1  ;;  %v6015_v1 = vmul.f32 %v3281_v2, %v3280_v0  ;;  %v3322_v58 = vld [vmem:[%s6295_s0 + $0x7f8] sm:$0xff] }
  0xd4   :  { %3180 = vst [vmem:[%s6297_s2 + $0x738] sm:$0xff] %v5607_v5  ;;  %v6027_v5 = vmul.f32 %v3284_v4, %v3283_v3  ;;  %v3323_v0 = vld [vmem:[%s6296_s1 + $0x7f8] sm:$0xff] }
  0xd5   :  { %3183 = vst [vmem:[%s6297_s2 + $0x340] sm:$0xff] %v5619_v18  ;;  %v6039_v18 = vmul.f32 %v3287_v9, %v3286_v7 }
  0xd6   :  { %3186 = vst [vmem:[%s6297_s2 + $0x740] sm:$0xff] %v5631_v6  ;;  %v6051_v6 = vmul.f32 %v3290_v16, %v3289_v13 }
  0xd7   :  { %3189 = vst [vmem:[%s6297_s2 + $0x348] sm:$0xff] %v5643_v10  ;;  %v6063_v10 = vmul.f32 %v3293_v20, %v3292_v17 }
  0xd8   :  { %3192 = vst [vmem:[%s6297_s2 + $0x748] sm:$0xff] %v5655_v29  ;;  %v2466_v29 = vmul.f32 %v3296_v25, %v3295_v21 }
  0xd9   :  { %3195 = vst [vmem:[%s6297_s2 + $0x350] sm:$0xff] %v5667_v14  ;;  %v2476_v14 = vmul.f32 %v3299_v27, %v3298_v26 }
  0xda   :  { %3198 = vst [vmem:[%s6297_s2 + $0x750] sm:$0xff] %v5679_v15  ;;  %v2486_v15 = vmul.f32 %v3302_v31, %v3301_v30 }
  0xdb   :  { %3201 = vst [vmem:[%s6297_s2 + $0x358] sm:$0xff] %v5691_v39  ;;  %v2496_v39 = vmul.f32 %v3305_v36, %v3304_v34 }
  0xdc   :  { %3204 = vst [vmem:[%s6297_s2 + $0x758] sm:$0xff] %v5703_v19  ;;  %v2506_v19 = vmul.f32 %v3308_v40, %v3307_v38 }
  0xdd   :  { %3207 = vst [vmem:[%s6297_s2 + $0x360] sm:$0xff] %v5715_v23  ;;  %v2516_v23 = vmul.f32 %v3311_v44, %v3310_v43 }
  0xde   :  { %3210 = vst [vmem:[%s6297_s2 + $0x760] sm:$0xff] %v5727_v49  ;;  %v2526_v49 = vmul.f32 %v3314_v48, %v3313_v45 }
  0xdf   :  { %3213 = vst [vmem:[%s6297_s2 + $0x368] sm:$0xff] %v5739_v24  ;;  %v2536_v24 = vmul.f32 %v3317_v54, %v3316_v53 }
  0xe0   :  { %3216 = vst [vmem:[%s6297_s2 + $0x768] sm:$0xff] %v5751_v28  ;;  %v2546_v28 = vmul.f32 %v3320_v57, %v3319_v55 }
  0xe1   :  { %3219 = vst [vmem:[%s6297_s2 + $0x370] sm:$0xff] %v5763_v63  ;;  %v2556_v63 = vmul.f32 %v3323_v0, %v3322_v58 }
  0xe2   :  { %3222 = vst [vmem:[%s6297_s2 + $0x770] sm:$0xff] %v5775_v32 }
  0xe3   :  { %3225 = vst [vmem:[%s6297_s2 + $0x378] sm:$0xff] %v5787_v33 }
  0xe4   :  { %3228 = vst [vmem:[%s6297_s2 + $0x778] sm:$0xff] %v5799_v11 }
  0xe5   :  { %3231 = vst [vmem:[%s6297_s2 + $0x380] sm:$0xff] %v5811_v37 }
  0xe6   :  { %3234 = vst [vmem:[%s6297_s2 + $0x780] sm:$0xff] %v5823_v41 }
  0xe7   :  { %3237 = vst [vmem:[%s6297_s2 + $0x388] sm:$0xff] %v5835_v22 }
  0xe8   :  { %3240 = vst [vmem:[%s6297_s2 + $0x788] sm:$0xff] %v5847_v42 }
  0xe9   :  { %3243 = vst [vmem:[%s6297_s2 + $0x390] sm:$0xff] %v5859_v46 }
  0xea   :  { %3246 = vst [vmem:[%s6297_s2 + $0x790] sm:$0xff] %v5871_v35 }
  0xeb   :  { %3249 = vst [vmem:[%s6297_s2 + $0x398] sm:$0xff] %v5883_v50 }
  0xec   :  { %3252 = vst [vmem:[%s6297_s2 + $0x798] sm:$0xff] %v5895_v51 }
  0xed   :  { %3255 = vst [vmem:[%s6297_s2 + $0x3a0] sm:$0xff] %v5907_v47 }
  0xee   :  { %3258 = vst [vmem:[%s6297_s2 + $0x7a0] sm:$0xff] %v5919_v52 }
  0xef   :  { %3261 = vst [vmem:[%s6297_s2 + $0x3a8] sm:$0xff] %v5931_v56 }
  0xf0   :  { %3264 = vst [vmem:[%s6297_s2 + $0x7a8] sm:$0xff] %v5943_v59 }
  0xf1   :  { %3267 = vst [vmem:[%s6297_s2 + $0x3b0] sm:$0xff] %v5955_v62 }
  0xf2   :  { %3270 = vst [vmem:[%s6297_s2 + $0x7b0] sm:$0xff] %v5967_v60 }
  0xf3   :  { %3273 = vst [vmem:[%s6297_s2 + $0x3b8] sm:$0xff] %v5979_v12 }
  0xf4   :  { %3276 = vst [vmem:[%s6297_s2 + $0x7b8] sm:$0xff] %v5991_v61 }
  0xf5   :  { %3279 = vst [vmem:[%s6297_s2 + $0x3c0] sm:$0xff] %v6003_v8 }
  0xf6   :  { %3282 = vst [vmem:[%s6297_s2 + $0x7c0] sm:$0xff] %v6015_v1 }
  0xf7   :  { %3285 = vst [vmem:[%s6297_s2 + $0x3c8] sm:$0xff] %v6027_v5 }
  0xf8   :  { %3288 = vst [vmem:[%s6297_s2 + $0x7c8] sm:$0xff] %v6039_v18 }
  0xf9   :  { %3291 = vst [vmem:[%s6297_s2 + $0x3d0] sm:$0xff] %v6051_v6 }
  0xfa   :  { %3294 = vst [vmem:[%s6297_s2 + $0x7d0] sm:$0xff] %v6063_v10 }
  0xfb   :  { %3297 = vst [vmem:[%s6297_s2 + $0x3d8] sm:$0xff] %v2466_v29 }
  0xfc   :  { %3300 = vst [vmem:[%s6297_s2 + $0x7d8] sm:$0xff] %v2476_v14 }
  0xfd   :  { %3303 = vst [vmem:[%s6297_s2 + $0x3e0] sm:$0xff] %v2486_v15 }
  0xfe   :  { %3306 = vst [vmem:[%s6297_s2 + $0x7e0] sm:$0xff] %v2496_v39 }
  0xff   :  { %3309 = vst [vmem:[%s6297_s2 + $0x3e8] sm:$0xff] %v2506_v19 }
 0x100   :  { %3312 = vst [vmem:[%s6297_s2 + $0x7e8] sm:$0xff] %v2516_v23 }
 0x101   :  { %3315 = vst [vmem:[%s6297_s2 + $0x3f0] sm:$0xff] %v2526_v49 }
 0x102   :  { %3318 = vst [vmem:[%s6297_s2 + $0x7f0] sm:$0xff] %v2536_v24 }
 0x103   :  { %3321 = vst [vmem:[%s6297_s2 + $0x3f8] sm:$0xff] %v2546_v28 }
 0x104   :  { %3324 = vst [vmem:[%s6297_s2 + $0x7f8] sm:$0xff] %v2556_v63 }

// kernel: fwd.1
= control target key start
LH: loop header
LB: loop body
LE: loop exit
PB: predicated region body
PF: predicated region fallthrough
CT: control target
= control target key end

     0   :  { %s13293_s0 = inlined_call_operand.vmem [shape: bf16[16384,16], index: 0, kind: input, shape index: {}]   ;;  %s13294_s1 = inlined_call_operand.vmem [shape: bf16[128,16], index: 1, kind: input, shape index: {}]   ;;  %s13295_s2 = inlined_call_operand.vmem [shape: f32[128,1], index: 2, kind: input, shape index: {}]   ;;  %s13296_s3 = inlined_call_operand.vmem [shape: bf16[128,128], index: 3, kind: input, shape index: {}]   ;;  %s13297_s4 = inlined_call_operand.vmem [shape: f32[128,1], index: 4, kind: input, shape index: {}]   ;;  %s13298_s5 = inlined_call_operand.vmem [shape: bf16[128,128], index: 5, kind: input, shape index: {}]   ;;  %s13299_s6 = inlined_call_operand.vmem [shape: f32[128,1], index: 6, kind: input, shape index: {}]   ;;  %s13300_s7 = inlined_call_operand.hbm [shape: bf16[128,128], index: 7, kind: input, shape index: {}]   ;;  %s13301_s8 = inlined_call_operand.vmem [shape: f32[128,1], index: 8, kind: input, shape index: {}]   ;;  %s13302_s9 = inlined_call_operand.vmem [shape: f32[128,1], index: 9, kind: input, shape index: {}]   ;;  %s13303_s10 = inlined_call_operand.<no memory space> [shape: f32[1,1], index: 10, kind: input, shape index: {}]   ;;  %s13304_s11 = inlined_call_operand.hbm [shape: f32[1,16384], index: 11, kind: output, shape index: {}]  }
   0x1   :  { %v16_v0 = vstv %s13303_s10 }
   0x2   :  { %17 = vst [vmem:[#allocation2] sm:$0x1] %v16_v0 }
   0x3   :  { %18 = vsyncpa [#allocation4], 0 }
   0x4   :  { %19 = vsyncpa [#allocation5], 0 }
   0x5   :  { %21 = vsyncpa [#allocation5 + $0x1], 0  ;;  %s8935_s19 = smov 0   ;;  %s8937_s20 = smov 0  }
   0x6   :  { %s8939_s21 = smov 0   ;;  %s8941_s22 = smov 0  }
   0x7 LB: > { %s8956_s10 = sadd.s32 4294967295, %s8866_s22   ;;  %s7741_s23 = sadd.s32 4294967294, %s8866_s22   ;;  %s8866_s22 = sphi %s8941_s22, %s14024_s22   ;;  %s8862_s21 = sphi %s8939_s21, %s14023_s21   ;;  %s8858_s20 = sphi %s8937_s20, %s14022_s20   ;;  %s8854_s19 = sphi %s8935_s19, %s14021_s19  }
   0x8   : > { %s8960_s24 = sadd.s32 1, %s8866_s22   ;;  %s270_s25 = sadd.s32 1, %s8862_s21 }
   0x9   : > { %s267_s26 = ssub.s32 %s8866_s22, %s8960_s24  ;;  %p280_p0 = scmp.ne.s32.totalorder %s8862_s21, %s8858_s20 }
   0xa   : > { %p268_p1 = scmp.eq.s32.totalorder %s267_s26, 0  ;;  %p281_p2 = scmp.eq.s32.totalorder %s8956_s10, 7 }
   0xb   : > { %p286_p3 = scmp.ne.s32.totalorder %s8858_s20, %s8854_s19  ;;  %p287_p4 = scmp.eq.s32.totalorder %s7741_s23, 7 }
   0xc   : > { %s8971_s27 = scalar_select %p268_p1, %s8862_s21, %s270_s25  }
   0xd   : > { %p8973_p5 = por %p281_p2, %p280_p0  ;;  %p8977_p6 = por %p287_p4, %p286_p3 }
   0xe   : > { %p7742_p7 = scmp.ge.s32.totalorder %s8866_s22, 1  ;;  %p294_p8 = scmp.lt.s32.totalorder %s8866_s22, 9 }
   0xf   : > { %p8696_p9 = scmp.eq.s32.totalorder %s8956_s10, 0  ;;  %s323_s13 = sshll.u32 %s13300_s7, 4  ;;  %s324_s13 = int_to_ptr.hbm [resolvable:$true] %s323_s13 }
  0x10   : > { %p295_p10 = pnand %p7742_p7, %p294_p8  ;;  %s8868_s14 = smov [#allocation3]  }
  0x11   : > { %s325_s15 = sshll.u32 %s8868_s14, 4  ;;  %s8869_s16 = smov 64   ;;  %s326_s15 = int_to_ptr.vmem [resolvable:$true] %s325_s15 }
  0x12   : > { %p8688_p11 = pneg %p295_p10  ;;  %s8870_s17 = smov 4  }
  0x13   : > { %359 = sbr.rel (%p295_p10) target bundleno = 2301 (0x8fd), region = 64 }
  0x14   : > { %p8689_p12 = pnand %p8696_p9, %p8688_p11 }
  0x16   : > { %8691 = dma.hbm_to_vmem [thread:$0]  (!%p8689_p12), %s324_s13, 1024, %s326_s15, [#allocation4], %s8869_s16, %s8869_s16, %s8870_s17  }
  0x18   : > { %8845 = dma.done.wait (%p8696_p9), [#allocation4], 1024  }
  0x19   : > { %8847 = vsyncadd (%p8696_p9), [#allocation4], 4294966272  ;;  %s7748_s18 = sshll.u32 %s8956_s10, 8  ;;  %vm1455_vm0 = vcmask 130048   ;;  %v693_v19 = vld [vmem:[%s13295_s2 + $0x70] sm:$0xff]  ;;  %v8871_v22 = vmov 0  }
  0x1a   : > { %p401_p13 = scmp.lt.s32.totalorder %s7748_s18, 2047  ;;  %8735 = vset.pattern.permute.xlu0 %v8871_v22  ;;  %8736 = vset.pattern.permute.xlu1 %v8871_v22  ;;  %v694_v29 = vld [vmem:[%s13295_s2 + $0x78] sm:$0xff]  ;;  %v687_v38 = vld [vmem:[%s13295_s2 + $0x40] sm:$0xff]  ;;  %v689_v51 = vld [vmem:[%s13295_s2 + $0x50] sm:$0xff]  ;;  %vm7629_vm1 = vcmask 1040384   ;;  %vm7631_vm2 = vcmask 1042434  }
  0x1b   : > { %767 = vperm.xlu0 %8735, %v693_v19   ;;  %8737 = vset.pattern.permute.xlu2 %v8871_v22  ;;  %v691_v45 = vld [vmem:[%s13295_s2 + $0x60] sm:$0xff]  ;;  %v686_v48 = vld [vmem:[%s13295_s2 + $0x38] sm:$0xff]  ;;  %v692_v56 = vld [vmem:[%s13295_s2 + $0x68] sm:$0xff]  ;;  %vm7633_vm3 = vcmask 1041408   ;;  %vm7635_vm4 = vcmask 1044484   ;;  %vm7637_vm5 = vcmask 1046534  }
  0x1c   : > { %s14026_s18 = smov (!%p401_p13, %s7748_s18), 2047  ;;  %757 = vperm.xlu1 %8736, %v691_v45   ;;  %747 = vperm.xlu2 %8737, %v689_v51   ;;  %v681_v57 = vld [vmem:[%s13295_s2 + $0x10] sm:$0xff]  ;;  %v683_v22 = vld [vmem:[%s13295_s2 + $0x20] sm:$0xff]  ;;  %vm7639_vm6 = vcmask 1045508   ;;  %vm7641_vm7 = vcmask 1043456   ;;  %s8820_s12 = scalar_lea.hbm %s13304_s11, 128 }
  0x1d   : > { %s7749_s23 = sshll.u32 %s14026_s18, 2 }
  0x1e   : > { %s8997_s30 = scalar_lea.vmem %s13293_s0, %s7749_s23  ;;  %s397_s23 = sand.u32 1, %s8858_s20  }
  0x1f   : > { %v8529_v1 = vld [vmem:[%s8997_s30 + $0x38] sm:$0xff]  ;;  %v8528_v9 = vld [vmem:[%s8997_s30 + $0x30] sm:$0xff]  ;;  %v8527_v17 = vld [vmem:[%s8997_s30 + $0x28] sm:$0xff]  ;;  %s7747_s25 = sshll.u32 %s397_s23, 4 }
  0x20   : > { %v8537_v2 = vld [vmem:[%s8997_s30 + $0x78] sm:$0xff]  ;;  %v1502_v5 = vsel %vm1455_vm0, %v8529_v1, 0  ;;  %v8536_v10 = vld [vmem:[%s8997_s30 + $0x70] sm:$0xff]  ;;  %v1499_v13 = vsel %vm1455_vm0, %v8528_v9, 0  ;;  %v8535_v18 = vld [vmem:[%s8997_s30 + $0x68] sm:$0xff]  ;;  %v1496_v23 = vsel %vm1455_vm0, %v8527_v17, 0 }
  0x21   : > { %v8545_v3 = vld [vmem:[%s8997_s30 + $0xb8] sm:$0xff]  ;;  %v1526_v6 = vsel %vm1455_vm0, %v8537_v2, 0  ;;  %1864 = vmatpush.bf16.xpose.msra.mxu0 %v1502_v5  ;;  %v8544_v11 = vld [vmem:[%s8997_s30 + $0xb0] sm:$0xff]  ;;  %v1523_v14 = vsel %vm1455_vm0, %v8536_v10, 0  ;;  %v8543_v20 = vld [vmem:[%s8997_s30 + $0xa8] sm:$0xff]  ;;  %v1520_v24 = vsel %vm1455_vm0, %v8535_v18, 0 }
  0x22   : > { %v8553_v4 = vld [vmem:[%s8997_s30 + $0xf8] sm:$0xff]  ;;  %v1550_v7 = vsel %vm1455_vm0, %v8545_v3, 0  ;;  %1913 = vmatpush.bf16.xpose.msra.mxu1 %v1526_v6  ;;  %v8552_v12 = vld [vmem:[%s8997_s30 + $0xf0] sm:$0xff]  ;;  %v1547_v15 = vsel %vm1455_vm0, %v8544_v11, 0  ;;  %v8551_v21 = vld [vmem:[%s8997_s30 + $0xe8] sm:$0xff]  ;;  %v1544_v25 = vsel %vm1455_vm0, %v8543_v20, 0 }
  0x23   : > { %v1574_v8 = vsel %vm1455_vm0, %v8553_v4, 0  ;;  %1962 = vmatpush.bf16.xpose.msra.mxu2 %v1550_v7  ;;  %v1571_v16 = vsel %vm1455_vm0, %v8552_v12, 0  ;;  %v1568_v26 = vsel %vm1455_vm0, %v8551_v21, 0  ;;  %v8526_v27 = vld [vmem:[%s8997_s30 + $0x20] sm:$0xff]  ;;  %772 = vperm.xlu0 %8735, %v694_v29   ;;  %v8525_v36 = vld [vmem:[%s8997_s30 + $0x18] sm:$0xff]  ;;  %v8524_v46 = vld [vmem:[%s8997_s30 + $0x10] sm:$0xff] }
  0x24   : > { %2011 = vmatpush.bf16.xpose.msra.mxu3 %v1574_v8  ;;  %v8534_v28 = vld [vmem:[%s8997_s30 + $0x60] sm:$0xff]  ;;  %v1493_v32 = vsel %vm1455_vm0, %v8526_v27, 0  ;;  %v8533_v37 = vld [vmem:[%s8997_s30 + $0x58] sm:$0xff]  ;;  %v1490_v41 = vsel %vm1455_vm0, %v8525_v36, 0  ;;  %v8532_v47 = vld [vmem:[%s8997_s30 + $0x50] sm:$0xff]  ;;  %v1487_v52 = vsel %vm1455_vm0, %v8524_v46, 0  ;;  %762 = vperm.xlu1 %8736, %v692_v56  }
  0x25   : > { %v8542_v30 = vld [vmem:[%s8997_s30 + $0xa0] sm:$0xff]  ;;  %v1517_v33 = vsel %vm1455_vm0, %v8534_v28, 0  ;;  %v8541_v39 = vld [vmem:[%s8997_s30 + $0x98] sm:$0xff]  ;;  %v1514_v42 = vsel %vm1455_vm0, %v8533_v37, 0  ;;  %v8540_v49 = vld [vmem:[%s8997_s30 + $0x90] sm:$0xff]  ;;  %v1511_v53 = vsel %vm1455_vm0, %v8532_v47, 0 }
  0x26   : > { %v8550_v31 = vld [vmem:[%s8997_s30 + $0xe0] sm:$0xff]  ;;  %v1541_v34 = vsel %vm1455_vm0, %v8542_v30, 0  ;;  %v8549_v40 = vld [vmem:[%s8997_s30 + $0xd8] sm:$0xff]  ;;  %v1538_v43 = vsel %vm1455_vm0, %v8541_v39, 0  ;;  %v8548_v50 = vld [vmem:[%s8997_s30 + $0xd0] sm:$0xff]  ;;  %v1535_v54 = vsel %vm1455_vm0, %v8540_v49, 0 }
  0x27   : > { %v1565_v35 = vsel %vm1455_vm0, %v8550_v31, 0  ;;  %v1562_v44 = vsel %vm1455_vm0, %v8549_v40, 0  ;;  %v1559_v55 = vsel %vm1455_vm0, %v8548_v50, 0  ;;  %v8523_v58 = vld [vmem:[%s8997_s30 + $0x8] sm:$0xff]  ;;  %v8522_v2 = vld [vmem:[%s8997_s30] sm:$0xff]  ;;  %v690_v3 = vld [vmem:[%s13295_s2 + $0x58] sm:$0xff] }
  0x28   : > { %v8531_v59 = vld [vmem:[%s8997_s30 + $0x48] sm:$0xff]  ;;  %v1484_v62 = vsel %vm1455_vm0, %v8523_v58, 0  ;;  %v8530_v4 = vld [vmem:[%s8997_s30 + $0x40] sm:$0xff]  ;;  %752 = vperm.xlu2 %8737, %v690_v3   ;;  %v8577_v9 = vld [vmem:[%s8997_s30 + $0x1b8] sm:$0xff]  ;;  %s12945_s26 = scalar_lea.vmem [#allocation6], %s7747_s25 }
  0x29   : > { %1865 = vmatpush.bf16.xpose.msra.mxu0 %v1499_v13  ;;  %v8539_v60 = vld [vmem:[%s8997_s30 + $0x88] sm:$0xff]  ;;  %v1508_v63 = vsel %vm1455_vm0, %v8531_v59, 0  ;;  %v8538_v7 = vld [vmem:[%s8997_s30 + $0x80] sm:$0xff]  ;;  %v8585_v10 = vld [vmem:[%s8997_s30 + $0x1f8] sm:$0xff]  ;;  %v1481_v13 = vsel %vm1455_vm0, %v8522_v2, 0  ;;  %v1646_v17 = vsel %vm1455_vm0, %v8577_v9, 0 }
  0x2a   : > { %1914 = vmatpush.bf16.xpose.msra.mxu1 %v1523_v14  ;;  %v8547_v61 = vld [vmem:[%s8997_s30 + $0xc8] sm:$0xff]  ;;  %v1532_v0 = vsel %vm1455_vm0, %v8539_v60, 0  ;;  %v8546_v8 = vld [vmem:[%s8997_s30 + $0xc0] sm:$0xff]  ;;  %v8561_v11 = vld [vmem:[%s8997_s30 + $0x138] sm:$0xff]  ;;  %v1505_v14 = vsel %vm1455_vm0, %v8530_v4, 0  ;;  %v1670_v18 = vsel %vm1455_vm0, %v8585_v10, 0 }
  0x2b   : > { %1963 = vmatpush.bf16.xpose.msra.mxu2 %v1547_v15  ;;  %737 = vperm.xlu0 %8735, %v687_v38   ;;  %v1556_v1 = vsel %vm1455_vm0, %v8547_v61, 0  ;;  %v688_v5 = vld [vmem:[%s13295_s2 + $0x48] sm:$0xff]  ;;  %v8569_v12 = vld [vmem:[%s8997_s30 + $0x178] sm:$0xff]  ;;  %v1529_v15 = vsel %vm1455_vm0, %v8538_v7, 0  ;;  %v1598_v19 = vsel %vm1455_vm0, %v8561_v11, 0  ;;  %v685_v21 = vld [vmem:[%s13295_s2 + $0x30] sm:$0xff] }
  0x2c   : > { %2012 = vmatpush.bf16.xpose.msra.mxu3 %v1571_v16  ;;  %v680_v6 = vld [vmem:[%s13295_s2 + $0x8] sm:$0xff]  ;;  %742 = vperm.xlu1 %8736, %v688_v5   ;;  %v1553_v16 = vsel %vm1455_vm0, %v8546_v8, 0  ;;  %v1622_v20 = vsel %vm1455_vm0, %v8569_v12, 0  ;;  %v8568_v27 = vld [vmem:[%s8997_s30 + $0x170] sm:$0xff]  ;;  %v8582_v45 = vld [vmem:[%s8997_s30 + $0x1e0] sm:$0xff]  ;;  %s7667_s15 = sshll.u32 %s12945_s26, 4  ;;  %s7668_s15 = int_to_ptr.vmem [resolvable:$true] %s7667_s15 }
  0x2d   : > { %v1619_v31 = vsel %vm1455_vm0, %v8568_v27, 0  ;;  %v8559_v36 = vld [vmem:[%s8997_s30 + $0x128] sm:$0xff]  ;;  %v8558_v46 = vld [vmem:[%s8997_s30 + $0x120] sm:$0xff]  ;;  %v1661_v49 = vsel %vm1455_vm0, %v8582_v45, 0  ;;  %v8565_v56 = vld [vmem:[%s8997_s30 + $0x158] sm:$0xff] }
  0x2e   : > { %v8567_v37 = vld [vmem:[%s8997_s30 + $0x168] sm:$0xff]  ;;  %v1592_v40 = vsel %vm1455_vm0, %v8559_v36, 0  ;;  %v8566_v47 = vld [vmem:[%s8997_s30 + $0x160] sm:$0xff]  ;;  %v1589_v50 = vsel %vm1455_vm0, %v8558_v46, 0  ;;  %v1610_v60 = vsel %vm1455_vm0, %v8565_v56, 0  ;;  %v9193_v61 = vld [vmem:[%s13294_s1 + $0x18] sm:$0xff] }
  0x2f   : > { %v1613_v51 = vsel %vm1455_vm0, %v8566_v47, 0  ;;  %v2932_v2 = vld [vmem:[%s13297_s4 + $0x60] sm:$0xff]  ;;  %v8571_v8 = vld [vmem:[%s8997_s30 + $0x188] sm:$0xff]  ;;  %v2934_v12 = vld [vmem:[%s13297_s4 + $0x70] sm:$0xff] }
  0x30   : > { %727 = vperm.xlu2 %8737, %v685_v21   ;;  %v9217_v7 = vld [vmem:[%s13294_s1 + $0x20] sm:$0xff]  ;;  %v8579_v9 = vld [vmem:[%s8997_s30 + $0x1c8] sm:$0xff]  ;;  %v2927_v36 = vld [vmem:[%s13297_s4 + $0x38] sm:$0xff] }
  0x31   : > { %1866 = vmatpush.bf16.xpose.msra.mxu0 %v1496_v23  ;;  %v9113_v23 = vld [vmem:[%s13294_s1] sm:$0xff]  ;;  %v8555_v10 = vld [vmem:[%s8997_s30 + $0x108] sm:$0xff]  ;;  %v8593_v45 = vld [vmem:[%s8997_s30 + $0x238] sm:$0xff] }
  0x32   : > { %1915 = vmatpush.bf16.xpose.msra.mxu1 %v1520_v24  ;;  %v8576_v24 = vld [vmem:[%s8997_s30 + $0x1b0] sm:$0xff]  ;;  %v8563_v11 = vld [vmem:[%s8997_s30 + $0x148] sm:$0xff]  ;;  %v2928_v27 = vld [vmem:[%s13297_s4 + $0x40] sm:$0xff] }
  0x33   : > { %1964 = vmatpush.bf16.xpose.msra.mxu2 %v1544_v25  ;;  %732 = vperm.xlu0 %8735, %v686_v48   ;;  %v8584_v25 = vld [vmem:[%s8997_s30 + $0x1f0] sm:$0xff]  ;;  %v1643_v28 = vsel %vm1455_vm0, %v8576_v24, 0  ;;  %v8578_v24 = vld [vmem:[%s8997_s30 + $0x1c0] sm:$0xff]  ;;  %v8601_v46 = vld [vmem:[%s8997_s30 + $0x278] sm:$0xff] }
  0x34   : > { %2013 = vmatpush.bf16.xpose.msra.mxu3 %v1568_v26  ;;  %v8560_v26 = vld [vmem:[%s8997_s30 + $0x130] sm:$0xff]  ;;  %717 = vperm.xlu1 %8736, %v683_v22   ;;  %v1667_v29 = vsel %vm1455_vm0, %v8584_v25, 0  ;;  %v8570_v22 = vld [vmem:[%s8997_s30 + $0x180] sm:$0xff]  ;;  %v2921_v56 = vld [vmem:[%s13297_s4 + $0x8] sm:$0xff] }
  0x35   : > { %v1595_v30 = vsel %vm1455_vm0, %v8560_v26, 0  ;;  %v8554_v25 = vld [vmem:[%s8997_s30 + $0x100] sm:$0xff]  ;;  %v2922_v47 = vld [vmem:[%s13297_s4 + $0x10] sm:$0xff] }
  0x36   : > { %v8562_v26 = vld [vmem:[%s8997_s30 + $0x140] sm:$0xff] }
  0x39   : > { %1867 = vmatpush.bf16.xpose.msra.mxu0 %v1493_v32  ;;  %v684_v32 = vld [vmem:[%s13295_s2 + $0x28] sm:$0xff] }
  0x3a   : > { %1916 = vmatpush.bf16.xpose.msra.mxu1 %v1517_v33  ;;  %v682_v33 = vld [vmem:[%s13295_s2 + $0x18] sm:$0xff]  ;;  %722 = vperm.xlu2 %8737, %v684_v32   ;;  %v1601_v32 = vsel %vm1455_vm0, %v8562_v26, 0  ;;  %v2929_v26 = vld [vmem:[%s13297_s4 + $0x48] sm:$0xff] }
  0x3b   : > { %1965 = vmatpush.bf16.xpose.msra.mxu2 %v1541_v34  ;;  %707 = vperm.xlu0 %8735, %v681_v57   ;;  %v8575_v34 = vld [vmem:[%s8997_s30 + $0x1a8] sm:$0xff] }
  0x3c   : > { %2014 = vmatpush.bf16.xpose.msra.mxu3 %v1565_v35  ;;  %v8583_v35 = vld [vmem:[%s8997_s30 + $0x1e8] sm:$0xff]  ;;  %712 = vperm.xlu1 %8736, %v682_v33   ;;  %v1640_v38 = vsel %vm1455_vm0, %v8575_v34, 0 }
  0x3d   : > { %v1664_v39 = vsel %vm1455_vm0, %v8583_v35, 0  ;;  %v9283_v35 = vld [vmem:[%s13294_s1 + $0x30] sm:$0xff] }
  0x41   : > { %1868 = vmatpush.bf16.xpose.msra.mxu0 %v1490_v41  ;;  %v1616_v41 = vsel %vm1455_vm0, %v8567_v37, 0  ;;  %v2920_v37 = vld [vmem:[%s13297_s4] sm:$0xff] }
  0x42   : > { %1917 = vmatpush.bf16.xpose.msra.mxu1 %v1514_v42  ;;  %v679_v42 = vld [vmem:[%s13295_s2] sm:$0xff] }
  0x43   : > { %1966 = vmatpush.bf16.xpose.msra.mxu2 %v1538_v43  ;;  %702 = vperm.xlu0 %8735, %v680_v6   ;;  %v9151_v43 = vld [vmem:[%s13294_s1 + $0x8] sm:$0xff] }
  0x44   : > { %2015 = vmatpush.bf16.xpose.msra.mxu3 %v1562_v44  ;;  %697 = vperm.xlu2 %8737, %v679_v42   ;;  %v8574_v44 = vld [vmem:[%s8997_s30 + $0x1a0] sm:$0xff] }
  0x45   : > { %v1637_v48 = vsel %vm1455_vm0, %v8574_v44, 0  ;;  %3136 = vperm.xlu1 %8736, %v2934_v12   ;;  %v8599_v12 = vld [vmem:[%s8997_s30 + $0x268] sm:$0xff] }
  0x49   : > { %1869 = vmatpush.bf16.xpose.msra.mxu0 %v1487_v52  ;;  %v9172_v52 = vld [vmem:[%s13294_s1 + $0x10] sm:$0xff] }
  0x4a   : > { %1918 = vmatpush.bf16.xpose.msra.mxu1 %v1511_v53  ;;  %v8573_v53 = vld [vmem:[%s8997_s30 + $0x198] sm:$0xff] }
  0x4b   : > { %1967 = vmatpush.bf16.xpose.msra.mxu2 %v1535_v54  ;;  %v8581_v54 = vld [vmem:[%s8997_s30 + $0x1d8] sm:$0xff]  ;;  %v1634_v57 = vsel %vm1455_vm0, %v8573_v53, 0  ;;  %3126 = vperm.xlu0 %8735, %v2932_v2  }
  0x4c   : > { %2016 = vmatpush.bf16.xpose.msra.mxu3 %v1559_v55  ;;  %v8557_v55 = vld [vmem:[%s8997_s30 + $0x118] sm:$0xff]  ;;  %v1658_v58 = vsel %vm1455_vm0, %v8581_v54, 0 }
  0x4d   : > { %v1586_v59 = vsel %vm1455_vm0, %v8557_v55, 0  ;;  %v9322_v53 = vld [vmem:[%s13294_s1 + $0x38] sm:$0xff] }
  0x51   : > { %1870 = vmatpush.bf16.xpose.msra.mxu0 %v1484_v62  ;;  %v8572_v62 = vld [vmem:[%s8997_s30 + $0x190] sm:$0xff] }
  0x52   : > { %1919 = vmatpush.bf16.xpose.msra.mxu1 %v1508_v63  ;;  %v8580_v63 = vld [vmem:[%s8997_s30 + $0x1d0] sm:$0xff]  ;;  %v1631_v3 = vsel %vm1455_vm0, %v8572_v62, 0 }
  0x53   : > { %1968 = vmatpush.bf16.xpose.msra.mxu2 %v1532_v0  ;;  %v8556_v0 = vld [vmem:[%s8997_s30 + $0x110] sm:$0xff]  ;;  %v1655_v4 = vsel %vm1455_vm0, %v8580_v63, 0 }
  0x54   : > { %2017 = vmatpush.bf16.xpose.msra.mxu3 %v1556_v1  ;;  %v8564_v1 = vld [vmem:[%s8997_s30 + $0x150] sm:$0xff]  ;;  %v1583_v5 = vsel %vm1455_vm0, %v8556_v0, 0 }
  0x55   : > { %v1607_v6 = vsel %vm1455_vm0, %v8564_v1, 0  ;;  %v8592_v0 = vld [vmem:[%s8997_s30 + $0x230] sm:$0xff] }
  0x56   : > { %v8600_v1 = vld [vmem:[%s8997_s30 + $0x270] sm:$0xff] }
  0x59   : > { %1871 = vmatpush.bf16.xpose.msra.mxu0 %v1481_v13  ;;  %v2931_v13 = vld [vmem:[%s13297_s4 + $0x58] sm:$0xff] }
  0x5a   : > { %1920 = vmatpush.bf16.xpose.msra.mxu1 %v1505_v14  ;;  %v1628_v14 = vsel %vm1455_vm0, %v8571_v8, 0  ;;  %3121 = vperm.xlu0 %8735, %v2931_v13   ;;  %v4257_v8 = vld [vmem:[%s13299_s6 + $0x48] sm:$0xff] }
  0x5b   : > { %1969 = vmatpush.bf16.xpose.msra.mxu2 %v1529_v15  ;;  %v1652_v15 = vsel %vm1455_vm0, %v8579_v9, 0  ;;  %v2930_v9 = vld [vmem:[%s13297_s4 + $0x50] sm:$0xff] }
  0x5c   : > { %2018 = vmatpush.bf16.xpose.msra.mxu3 %v1553_v16  ;;  %v1580_v16 = vsel %vm1455_vm0, %v8555_v10, 0 }
  0x60   : > { %8294 = vmatmul.msk.bf16.vlgmr.msra.gmra.mxu0 %vm1455_vm0, %v9113_v23 }
  0x61   : > { %2060 = vmatpush.bf16.xpose.msrb.mxu0 %v1598_v19  ;;  %8302 = vmatmul.msk.bf16.vlgmr.msra.gmra.mxu1 %vm1455_vm0, %v9113_v23  ;;  %v2926_v19 = vld [vmem:[%s13297_s4 + $0x30] sm:$0xff] }
  0x62   : > { %2109 = vmatpush.bf16.xpose.msrb.mxu1 %v1622_v20  ;;  %8310 = vmatmul.msk.bf16.vlgmr.msra.gmra.mxu2 %vm1455_vm0, %v9113_v23  ;;  %v9250_v20 = vld [vmem:[%s13294_s1 + $0x28] sm:$0xff] }
  0x63   : > { %2158 = vmatpush.bf16.xpose.msrb.mxu2 %v1646_v17  ;;  %8318 = vmatmul.msk.bf16.vlgmr.msra.gmra.mxu3 %vm1455_vm0, %v9113_v23  ;;  %v1604_v17 = vsel %vm1455_vm0, %v8563_v11, 0  ;;  %v8591_v11 = vld [vmem:[%s8997_s30 + $0x228] sm:$0xff] }
  0x64   : > { %2207 = vmatpush.bf16.xpose.msrb.mxu3 %v1670_v18  ;;  %v2933_v18 = vld [vmem:[%s13297_s4 + $0x68] sm:$0xff]  ;;  %3096 = vperm.xlu0 %8735, %v2926_v19  }
  0x65   : > { %3131 = vperm.xlu1 %8736, %v2933_v18   ;;  %v8615_v18 = vld [vmem:[%s8997_s30 + $0x2e8] sm:$0xff] }
  0x69   : > { %2061 = vmatpush.bf16.xpose.msrb.mxu0 %v1595_v30  ;;  %v1649_v30 = vsel %vm1455_vm0, %v8578_v24, 0  ;;  %v4259_v24 = vld [vmem:[%s13299_s6 + $0x58] sm:$0xff] }
  0x6a   : > { %2110 = vmatpush.bf16.xpose.msrb.mxu1 %v1619_v31  ;;  %v1577_v31 = vsel %vm1455_vm0, %v8554_v25, 0  ;;  %v4252_v25 = vld [vmem:[%s13299_s6 + $0x20] sm:$0xff] }
  0x6b   : > { %2159 = vmatpush.bf16.xpose.msrb.mxu2 %v1643_v28  ;;  %v2925_v28 = vld [vmem:[%s13297_s4 + $0x28] sm:$0xff] }
  0x6c   : > { %2208 = vmatpush.bf16.xpose.msrb.mxu3 %v1667_v29  ;;  %v1625_v29 = vsel %vm1455_vm0, %v8570_v22, 0  ;;  %3091 = vperm.xlu0 %8735, %v2925_v28   ;;  %v1760_v28 = vsel %vm1455_vm0, %v8615_v18, 0 }
  0x6d   : > { %3106 = vperm.xlu1 %8736, %v2928_v27  }
  0x70   : > { %8295 = vmatmul.msk.bf16.gmra.mxu0 %vm1455_vm0, %v9151_v43 }
  0x71   : > { %2062 = vmatpush.bf16.xpose.msrb.mxu0 %v1592_v40  ;;  %8303 = vmatmul.msk.bf16.gmra.mxu1 %vm1455_vm0, %v9151_v43 }
  0x72   : > { %2111 = vmatpush.bf16.xpose.msrb.mxu1 %v1616_v41  ;;  %8311 = vmatmul.msk.bf16.gmra.mxu2 %vm1455_vm0, %v9151_v43 }
  0x73   : > { %2160 = vmatpush.bf16.xpose.msrb.mxu2 %v1640_v38  ;;  %8319 = vmatmul.msk.bf16.gmra.mxu3 %vm1455_vm0, %v9151_v43  ;;  %v8609_v38 = vld [vmem:[%s8997_s30 + $0x2b8] sm:$0xff] }
  0x74   : > { %2209 = vmatpush.bf16.xpose.msrb.mxu3 %v1664_v39  ;;  %3066 = vperm.xlu0 %8735, %v2920_v37   ;;  %v8617_v39 = vld [vmem:[%s8997_s30 + $0x2f8] sm:$0xff]  ;;  %v1742_v41 = vsel %vm1455_vm0, %v8609_v38, 0  ;;  %v8590_v37 = vld [vmem:[%s8997_s30 + $0x220] sm:$0xff] }
  0x75   : > { %3101 = vperm.xlu1 %8736, %v2927_v36   ;;  %v1766_v42 = vsel %vm1455_vm0, %v8617_v39, 0  ;;  %v8598_v38 = vld [vmem:[%s8997_s30 + $0x260] sm:$0xff] }
  0x76   : > { %v9276_v33 = vpop.permute.xlu2 %747 }
  0x79   : > { %2063 = vmatpush.bf16.xpose.msrb.mxu0 %v1589_v50  ;;  %v1718_v50 = vsel %vm1455_vm0, %v8601_v46, 0  ;;  %v1709_v46 = vsel %vm1455_vm0, %v8598_v38, 0 }
  0x7a   : > { %2112 = vmatpush.bf16.xpose.msrb.mxu1 %v1613_v51 }
  0x7b   : > { %2161 = vmatpush.bf16.xpose.msrb.mxu2 %v1637_v48  ;;  %v4263_v48 = vld [vmem:[%s13299_s6 + $0x78] sm:$0xff] }
  0x7c   : > { %2210 = vmatpush.bf16.xpose.msrb.mxu3 %v1661_v49  ;;  %v1694_v49 = vsel %vm1455_vm0, %v8593_v45, 0  ;;  %4469 = vperm.xlu0 %8735, %v4263_v48   ;;  %v1685_v45 = vsel %vm1455_vm0, %v8590_v37, 0  ;;  %v8614_v48 = vld [vmem:[%s8997_s30 + $0x2e0] sm:$0xff] }
  0x7d   : > { %3076 = vperm.xlu1 %8736, %v2922_v47   ;;  %v8606_v47 = vld [vmem:[%s8997_s30 + $0x2a0] sm:$0xff] }
  0x80   : > { %8296 = vmatmul.msk.bf16.gmra.mxu0 %vm1455_vm0, %v9172_v52 }
  0x81   : > { %8304 = vmatmul.msk.bf16.gmra.mxu1 %vm1455_vm0, %v9172_v52  ;;  %2064 = vmatpush.bf16.xpose.msrb.mxu0 %v1586_v59  ;;  %v8608_v59 = vld [vmem:[%s8997_s30 + $0x2b0] sm:$0xff] }
  0x82   : > { %8312 = vmatmul.msk.bf16.gmra.mxu2 %vm1455_vm0, %v9172_v52  ;;  %2113 = vmatpush.bf16.xpose.msrb.mxu1 %v1610_v60  ;;  %v9301_v40 = vpop.permute.xlu2 %752  ;;  %v8616_v60 = vld [vmem:[%s8997_s30 + $0x2f0] sm:$0xff]  ;;  %v1739_v62 = vsel %vm1455_vm0, %v8608_v59, 0  ;;  %v4251_v59 = vld [vmem:[%s13299_s6 + $0x18] sm:$0xff] }
  0x83   : > { %8320 = vmatmul.msk.bf16.gmra.mxu3 %vm1455_vm0, %v9172_v52  ;;  %2162 = vmatpush.bf16.xpose.msrb.mxu2 %v1634_v57  ;;  %13534 = vst [vmem:[#allocation10_spill] sm:$0xff] %v9301_v40  ;;  %v4258_v57 = vld [vmem:[%s13299_s6 + $0x50] sm:$0xff]  ;;  %v1763_v63 = vsel %vm1455_vm0, %v8616_v60, 0  ;;  %v2924_v60 = vld [vmem:[%s13297_s4 + $0x20] sm:$0xff] }
  0x84   : > { %2211 = vmatpush.bf16.xpose.msrb.mxu3 %v1658_v58  ;;  %v2935_v58 = vld [vmem:[%s13297_s4 + $0x78] sm:$0xff]  ;;  %4444 = vperm.xlu0 %8735, %v4258_v57  }
  0x85   : > { %3071 = vperm.xlu1 %8736, %v2921_v56   ;;  %3141 = vperm.xlu2 %8737, %v2935_v58   ;;  %v4254_v58 = vld [vmem:[%s13299_s6 + $0x30] sm:$0xff] }
  0x89   : > { %2065 = vmatpush.bf16.xpose.msrb.mxu0 %v1583_v5  ;;  %v1715_v5 = vsel %vm1455_vm0, %v8600_v1, 0 }
  0x8a   : > { %2114 = vmatpush.bf16.xpose.msrb.mxu1 %v1607_v6  ;;  %v9324_v54 = vpop.permute.xlu2 %727  ;;  %v4260_v6 = vld [vmem:[%s13299_s6 + $0x60] sm:$0xff] }
  0x8b   : > { %2163 = vmatpush.bf16.xpose.msrb.mxu2 %v1631_v3  ;;  %13536 = vst [vmem:[#allocation12_spill] sm:$0xff] %v9324_v54 }
  0x8c   : > { %2212 = vmatpush.bf16.xpose.msrb.mxu3 %v1655_v4  ;;  %v1691_v4 = vsel %vm1455_vm0, %v8592_v0, 0  ;;  %4439 = vperm.xlu0 %8735, %v4257_v8   ;;  %v1757_v0 = vsel %vm1455_vm0, %v8614_v48, 0  ;;  %v8596_v48 = vld [vmem:[%s8997_s30 + $0x250] sm:$0xff] }
  0x8d   : > { %v9260_v21 = vpop.permute.xlu0 %767  ;;  %4454 = vperm.xlu1 %8736, %v4260_v6   ;;  %3116 = vperm.xlu2 %8737, %v2930_v9  }
  0x8e   : > { %13533 = vst [vmem:[#allocation9_spill] sm:$0xff] %v9260_v21  ;;  %v9317_v51 = vpop.permute.xlu1 %757 }
  0x90   : > { %8297 = vmatmul.msk.bf16.gmra.mxu0 %vm1455_vm0, %v9193_v61 }
  0x91   : > { %8305 = vmatmul.msk.bf16.gmra.mxu1 %vm1455_vm0, %v9193_v61  ;;  %2066 = vmatpush.bf16.xpose.msrb.mxu0 %v1580_v16  ;;  %v1712_v16 = vsel %vm1455_vm0, %v8599_v12, 0  ;;  %v8597_v12 = vld [vmem:[%s8997_s30 + $0x258] sm:$0xff] }
  0x92   : > { %8313 = vmatmul.msk.bf16.gmra.mxu2 %vm1455_vm0, %v9193_v61  ;;  %2115 = vmatpush.bf16.xpose.msrb.mxu1 %v1604_v17  ;;  %v8607_v17 = vld [vmem:[%s8997_s30 + $0x2a8] sm:$0xff]  ;;  %v1706_v18 = vsel %vm1455_vm0, %v8597_v12, 0  ;;  %v4262_v12 = vld [vmem:[%s13299_s6 + $0x70] sm:$0xff] }
  0x93   : > { %8321 = vmatmul.msk.bf16.gmra.mxu3 %vm1455_vm0, %v9193_v61  ;;  %2164 = vmatpush.bf16.xpose.msrb.mxu2 %v1628_v14  ;;  %v1736_v27 = vsel %vm1455_vm0, %v8607_v17, 0 }
  0x94   : > { %2213 = vmatpush.bf16.xpose.msrb.mxu3 %v1652_v15  ;;  %v9353_v3 = vpop.permute.xlu2 %722  ;;  %v1688_v15 = vsel %vm1455_vm0, %v8591_v11, 0  ;;  %4414 = vperm.xlu0 %8735, %v4252_v25   ;;  %v8589_v11 = vld [vmem:[%s8997_s30 + $0x218] sm:$0xff] }
  0x95   : > { %v9278_v34 = vpop.permute.xlu0 %772  ;;  %13539 = vst [vmem:[#allocation15_spill] sm:$0xff] %v9353_v3  ;;  %4449 = vperm.xlu1 %8736, %v4259_v24   ;;  %3111 = vperm.xlu2 %8737, %v2929_v26   ;;  %v1682_v17 = vsel %vm1455_vm0, %v8589_v11, 0  ;;  %v8605_v24 = vld [vmem:[%s8997_s30 + $0x298] sm:$0xff] }
  0x96   : > { %v9351_v2 = vpop.permute.xlu1 %762  ;;  %v8613_v25 = vld [vmem:[%s8997_s30 + $0x2d8] sm:$0xff]  ;;  %v1730_v37 = vsel %vm1455_vm0, %v8605_v24, 0 }
  0x97   : > { %13538 = vst [vmem:[#allocation14_spill] sm:$0xff] %v9351_v2  ;;  %v1754_v38 = vsel %vm1455_vm0, %v8613_v25, 0  ;;  %v5579_v11 = vld [vmem:[%s13301_s8 + $0x18] sm:$0xff] }
  0x99   : > { %2067 = vmatpush.bf16.xpose.msrb.mxu0 %v1577_v31 }
  0x9a   : > { %2116 = vmatpush.bf16.xpose.msrb.mxu1 %v1601_v32 }
  0x9b   : > { %2165 = vmatpush.bf16.xpose.msrb.mxu2 %v1625_v29 }
  0x9c   : > { %2214 = vmatpush.bf16.xpose.msrb.mxu3 %v1649_v30  ;;  %4409 = vperm.xlu0 %8735, %v4251_v59   ;;  %v1703_v59 = vsel %vm1455_vm0, %v8596_v48, 0  ;;  %v5577_v48 = vld [vmem:[%s13301_s8 + $0x8] sm:$0xff] }
  0x9d   : > { %v9305_v44 = vpop.permute.xlu0 %737  ;;  %4424 = vperm.xlu1 %8736, %v4254_v58   ;;  %3086 = vperm.xlu2 %8737, %v2924_v60   ;;  %v8604_v60 = vld [vmem:[%s8997_s30 + $0x290] sm:$0xff] }
  0x9e   : > { %13535 = vst [vmem:[#allocation11_spill] sm:$0xff] %v9305_v44  ;;  %v9374_v19 = vpop.permute.xlu1 %742  ;;  %v9380_v22 = vpop.permute.xlu2 %697 }
  0x9f   : > { %13540 = vst [vmem:[#allocation16_spill] sm:$0xff] %v9374_v19 }
  0xa0   : > { %8298 = vmatmul.msk.bf16.gmra.mxu0 %vm1455_vm0, %v9217_v7 }
  0xa1   : > { %8306 = vmatmul.msk.bf16.gmra.mxu1 %vm1455_vm0, %v9217_v7  ;;  %2256 = vmatpush.bf16.xpose.msra.mxu0 %v1694_v49 }
  0xa2   : > { %8314 = vmatmul.msk.bf16.gmra.mxu2 %vm1455_vm0, %v9217_v7  ;;  %2305 = vmatpush.bf16.xpose.msra.mxu1 %v1718_v50 }
  0xa3   : > { %8322 = vmatmul.msk.bf16.gmra.mxu3 %vm1455_vm0, %v9217_v7  ;;  %2354 = vmatpush.bf16.xpose.msra.mxu2 %v1742_v41 }
  0xa4   : > { %2403 = vmatpush.bf16.xpose.msra.mxu3 %v1766_v42 }
  0xa5   : > { %v9326_v55 = vpop.permute.xlu0 %732 }
  0xa6   : > { %13537 = vst [vmem:[#allocation13_spill] sm:$0xff] %v9326_v55 }
  0xa9   : > { %2257 = vmatpush.bf16.xpose.msra.mxu0 %v1691_v4 }
  0xaa   : > { %2306 = vmatpush.bf16.xpose.msra.mxu1 %v1715_v5 }
  0xab   : > { %2355 = vmatpush.bf16.xpose.msra.mxu2 %v1739_v62  ;;  %v1733_v62 = vsel %vm1455_vm0, %v8606_v47, 0  ;;  %v8588_v47 = vld [vmem:[%s8997_s30 + $0x210] sm:$0xff] }
  0xac   : > { %2404 = vmatpush.bf16.xpose.msra.mxu3 %v1763_v63  ;;  %v9419_v63 = vpop.permute.xlu1 %717  ;;  %v1679_v58 = vsel %vm1455_vm0, %v8588_v47, 0 }
  0xad   : > { %v9366_v10 = vpop.permute.xlu0 %707  ;;  %13541 = vst [vmem:[#allocation17_spill] sm:$0xff] %v9419_v63 }
  0xb0   : > { %8299 = vmatmul.msk.bf16.gmra.mxu0 %vm1455_vm0, %v9250_v20 }
  0xb1   : > { %8307 = vmatmul.msk.bf16.gmra.mxu1 %vm1455_vm0, %v9250_v20  ;;  %2258 = vmatpush.bf16.xpose.msra.mxu0 %v1688_v15 }
  0xb2   : > { %8315 = vmatmul.msk.bf16.gmra.mxu2 %vm1455_vm0, %v9250_v20  ;;  %2307 = vmatpush.bf16.xpose.msra.mxu1 %v1712_v16 }
  0xb3   : > { %8323 = vmatmul.msk.bf16.gmra.mxu3 %vm1455_vm0, %v9250_v20  ;;  %2356 = vmatpush.bf16.xpose.msra.mxu2 %v1736_v27 }
  0xb4   : > { %2405 = vmatpush.bf16.xpose.msra.mxu3 %v1760_v28 }
  0xb5   : > { %v9397_v29 = vpop.permute.xlu0 %702 }
  0xb9   : > { %2259 = vmatpush.bf16.xpose.msra.mxu0 %v1685_v45  ;;  %v9461_v45 = vpop.permute.xlu1 %712 }
  0xba   : > { %2308 = vmatpush.bf16.xpose.msra.mxu1 %v1709_v46 }
  0xbb   : > { %2357 = vmatpush.bf16.xpose.msra.mxu2 %v1733_v62  ;;  %v8612_v62 = vld [vmem:[%s8997_s30 + $0x2d0] sm:$0xff] }
  0xbc   : > { %2406 = vmatpush.bf16.xpose.msra.mxu3 %v1757_v0 }
  0xc0   : > { %8300 = vmatmul.msk.bf16.gmra.mxu0 %vm1455_vm0, %v9283_v35 }
  0xc1   : > { %8308 = vmatmul.msk.bf16.gmra.mxu1 %vm1455_vm0, %v9283_v35  ;;  %2260 = vmatpush.bf16.xpose.msra.mxu0 %v1682_v17 }
  0xc2   : > { %8316 = vmatmul.msk.bf16.gmra.mxu2 %vm1455_vm0, %v9283_v35  ;;  %2309 = vmatpush.bf16.xpose.msra.mxu1 %v1706_v18 }
  0xc3   : > { %8324 = vmatmul.msk.bf16.gmra.mxu3 %vm1455_vm0, %v9283_v35  ;;  %2358 = vmatpush.bf16.xpose.msra.mxu2 %v1730_v37 }
  0xc4   : > { %2407 = vmatpush.bf16.xpose.msra.mxu3 %v1754_v38  ;;  %v8603_v38 = vld [vmem:[%s8997_s30 + $0x288] sm:$0xff] }
  0xc9   : > { %2261 = vmatpush.bf16.xpose.msra.mxu0 %v1679_v58 }
  0xca   : > { %2310 = vmatpush.bf16.xpose.msra.mxu1 %v1703_v59 }
  0xd0   : > { %8301 = vmatmul.msk.bf16.gmra.mxu0 %vm1455_vm0, %v9322_v53 }
  0xd1   : > { %8309 = vmatmul.msk.bf16.gmra.mxu1 %vm1455_vm0, %v9322_v53 }
  0xd2   : > { %8317 = vmatmul.msk.bf16.gmra.mxu2 %vm1455_vm0, %v9322_v53 }
  0xd3   : > { %8325 = vmatmul.msk.bf16.gmra.mxu3 %vm1455_vm0, %v9322_v53 }
  0xdd   : > { %v1873_v13 = vpop.f32.mrf.mxu0 }
  0xde   : > { %v1922_v14 = vpop.f32.mrf.mxu1  ;;  %v1874_v30 = vadd.f32 %v1873_v13, %v9380_v22 }
  0xdf   : > { %v1923_v31 = vadd.f32 %v1922_v14, %v9380_v22 }
  0xe0   : > { %8326 = vmatmul.msk.bf16.vlgmr.msrb.gmra.mxu0 %vm1455_vm0, %v9113_v23  ;;  %v2648_v49 = vmax.f32 %v1874_v30, 0.0 }
  0xe1   : > { %8334 = vmatmul.msk.bf16.vlgmr.msrb.gmra.mxu1 %vm1455_vm0, %v9113_v23  ;;  %v2649_v50 = vmax.f32 %v1923_v31, 0.0  ;;  %v4253_v31 = vld [vmem:[%s13299_s6 + $0x28] sm:$0xff] }
  0xe2   : > { %8342 = vmatmul.msk.bf16.vlgmr.msrb.gmra.mxu2 %vm1455_vm0, %v9113_v23  ;;  %4419 = vperm.xlu1 %8736, %v4253_v31  }
  0xe3   : > { %8350 = vmatmul.msk.bf16.vlgmr.msrb.gmra.mxu3 %vm1455_vm0, %v9113_v23 }
  0xe5   : > { %v1971_v32 = vpop.f32.mrf.mxu2  ;;  %v1875_v23 = vpop.f32.mrf.mxu0 }
  0xe6   : > { %v2020_v36 = vpop.f32.mrf.mxu3  ;;  %v1924_v39 = vpop.f32.mrf.mxu1  ;;  %v1876_v41 = vadd.f32 %v1875_v23, %v9397_v29  ;;  %v1972_v5 = vadd.f32 %v1971_v32, %v9380_v22  ;;  %v5576_v32 = vld [vmem:[%s13301_s8] sm:$0xff] }
  0xe7   : > { %v1925_v42 = vadd.f32 %v1924_v39, %v9397_v29  ;;  %v2021_v6 = vadd.f32 %v2020_v36, %v9380_v22  ;;  %v2923_v36 = vld [vmem:[%s13297_s4 + $0x18] sm:$0xff]  ;;  %5722 = vperm.xlu0 %8735, %v5576_v32  }
  0xe8   : > { %v2664_v56 = vmax.f32 %v1876_v41, 0.0  ;;  %v2650_v26 = vmax.f32 %v1972_v5, 0.0  ;;  %3081 = vperm.xlu2 %8737, %v2923_v36  }
  0xe9   : > { %v2665_v57 = vmax.f32 %v1925_v42, 0.0  ;;  %v2651_v27 = vmax.f32 %v2021_v6, 0.0 }
  0xea   : > { %v9422_v1 = vpack.c.bf16 %v2664_v56, %v2648_v49 }
  0xeb   : > { %v9424_v4 = vpack.c.bf16 %v2665_v57, %v2649_v50 }
  0xec   : > { %13542 = vst [vmem:[#allocation18_spill] sm:$0xff] %v9422_v1 }
  0xed   : > { %13543 = vst [vmem:[#allocation19_spill] sm:$0xff] %v9424_v4  ;;  %v1973_v8 = vpop.f32.mrf.mxu2  ;;  %v1878_v15 = vpop.f32.mrf.mxu0 }
  0xee   : > { %v2022_v9 = vpop.f32.mrf.mxu3  ;;  %v1974_v13 = vadd.f32 %v1973_v8, %v9397_v29  ;;  %v1927_v16 = vpop.f32.mrf.mxu1  ;;  %v1879_v41 = vadd.f32 %v1878_v15, %v9366_v10 }
  0xef   : > { %v2023_v14 = vadd.f32 %v2022_v9, %v9397_v29  ;;  %v1928_v42 = vadd.f32 %v1927_v16, %v9366_v10  ;;  %v4248_v9 = vld [vmem:[%s13299_s6] sm:$0xff]  ;;  %5737 = vperm.xlu0 %8735, %v5579_v11   ;;  %v8625_v11 = vld [vmem:[%s8997_s30 + $0x338] sm:$0xff] }
  0xf0   : > { %v2666_v28 = vmax.f32 %v1974_v13, 0.0  ;;  %8327 = vmatmul.msk.bf16.gmra.mxu0 %vm1455_vm0, %v9151_v43  ;;  %v2680_v0 = vmax.f32 %v1879_v41, 0.0  ;;  %v1727_v13 = vsel %vm1455_vm0, %v8604_v60, 0  ;;  %4394 = vperm.xlu1 %8736, %v4248_v9   ;;  %v8611_v41 = vld [vmem:[%s8997_s30 + $0x2c8] sm:$0xff] }
  0xf1   : > { %v2667_v30 = vmax.f32 %v2023_v14, 0.0  ;;  %8335 = vmatmul.msk.bf16.gmra.mxu1 %vm1455_vm0, %v9151_v43  ;;  %v2681_v5 = vmax.f32 %v1928_v42, 0.0  ;;  %v1751_v14 = vsel %vm1455_vm0, %v8612_v62, 0  ;;  %4464 = vperm.xlu2 %8737, %v4262_v12   ;;  %v8633_v12 = vld [vmem:[%s8997_s30 + $0x378] sm:$0xff] }
  0xf2   : > { %8343 = vmatmul.msk.bf16.gmra.mxu2 %vm1455_vm0, %v9151_v43  ;;  %v9455_v23 = vpack.c.bf16 %v2666_v28, %v2650_v26  ;;  %2408 = vmatpush.bf16.xpose.msra.mxu3 %v1751_v14  ;;  %v8587_v26 = vld [vmem:[%s8997_s30 + $0x208] sm:$0xff] }
  0xf3   : > { %8351 = vmatmul.msk.bf16.gmra.mxu3 %vm1455_vm0, %v9151_v43  ;;  %v9457_v39 = vpack.c.bf16 %v2667_v30, %v2651_v27  ;;  %2359 = vmatpush.bf16.xpose.msra.mxu2 %v1727_v13  ;;  %v8595_v27 = vld [vmem:[%s8997_s30 + $0x248] sm:$0xff]  ;;  %v1676_v36 = vsel %vm1455_vm0, %v8587_v26, 0 }
  0xf4   : > { %13544 = vst [vmem:[#allocation20_spill] sm:$0xff] %v9455_v23  ;;  %v1700_v37 = vsel %vm1455_vm0, %v8595_v27, 0  ;;  %2262 = vmatpush.bf16.xpose.msra.mxu0 %v1676_v36 }
  0xf5   : > { %13545 = vst [vmem:[#allocation21_spill] sm:$0xff] %v9457_v39  ;;  %v1976_v46 = vpop.f32.mrf.mxu2  ;;  %v1880_v49 = vpop.f32.mrf.mxu0  ;;  %2311 = vmatpush.bf16.xpose.msra.mxu1 %v1700_v37 }
  0xf6   : > { %v2025_v43 = vpop.f32.mrf.mxu3  ;;  %v1929_v50 = vpop.f32.mrf.mxu1  ;;  %v1881_v56 = vadd.f32 %v1880_v49, %v9461_v45  ;;  %v1977_v17 = vadd.f32 %v1976_v46, %v9366_v10  ;;  %v5582_v49 = vld [vmem:[%s13301_s8 + $0x30] sm:$0xff] }
  0xf7   : > { %v1930_v57 = vadd.f32 %v1929_v50, %v9461_v45  ;;  %v2026_v18 = vadd.f32 %v2025_v43, %v9366_v10  ;;  %v4261_v50 = vld [vmem:[%s13299_s6 + $0x68] sm:$0xff]  ;;  %5752 = vperm.xlu0 %8735, %v5582_v49  }
  0xf8   : > { %v2696_v6 = vmax.f32 %v1881_v56, 0.0  ;;  %v2682_v42 = vmax.f32 %v1977_v17, 0.0  ;;  %v1724_v56 = vsel %vm1455_vm0, %v8603_v38, 0  ;;  %5727 = vperm.xlu1 %8736, %v5577_v48   ;;  %v5580_v38 = vld [vmem:[%s13301_s8 + $0x20] sm:$0xff] }
  0xf9   : > { %v2697_v8 = vmax.f32 %v1930_v57, 0.0  ;;  %v2683_v46 = vmax.f32 %v2026_v18, 0.0  ;;  %v1748_v57 = vsel %vm1455_vm0, %v8611_v41, 0  ;;  %4459 = vperm.xlu2 %8737, %v4261_v50   ;;  %v5585_v41 = vld [vmem:[%s13301_s8 + $0x48] sm:$0xff] }
  0xfa   : > { %v9482_v15 = vpack.c.bf16 %v2696_v6, %v2680_v0  ;;  %2409 = vmatpush.bf16.xpose.msra.mxu3 %v1748_v57  ;;  %v8594_v6 = vld [vmem:[%s8997_s30 + $0x240] sm:$0xff] }
  0xfb   : > { %v9484_v16 = vpack.c.bf16 %v2697_v8, %v2681_v5  ;;  %2360 = vmatpush.bf16.xpose.msra.mxu2 %v1724_v56  ;;  %v8586_v5 = vld [vmem:[%s8997_s30 + $0x200] sm:$0xff]  ;;  %v1697_v18 = vsel %vm1455_vm0, %v8594_v6, 0 }
  0xfc   : > { %v1673_v17 = vsel %vm1455_vm0, %v8586_v5, 0 }
  0xfd   : > { %v1978_v24 = vpop.f32.mrf.mxu2  ;;  %v1883_v31 = vpop.f32.mrf.mxu0  ;;  %2263 = vmatpush.bf16.xpose.msra.mxu0 %v1673_v17  ;;  %2312 = vmatpush.bf16.xpose.msra.mxu1 %v1697_v18  ;;  %v8640_v17 = vld [vmem:[%s8997_s30 + $0x3b0] sm:$0xff] }
  0xfe   : > { %v2027_v25 = vpop.f32.mrf.mxu3  ;;  %v1979_v28 = vadd.f32 %v1978_v24, %v9461_v45  ;;  %v1932_v32 = vpop.f32.mrf.mxu1  ;;  %v1884_v60 = vadd.f32 %v1883_v31, %v9419_v63  ;;  %v8602_v24 = vld [vmem:[%s8997_s30 + $0x280] sm:$0xff]  ;;  %v8641_v31 = vld [vmem:[%s8997_s30 + $0x3b8] sm:$0xff]  ;;  %v8648_v18 = vld [vmem:[%s8997_s30 + $0x3f0] sm:$0xff] }
  0xff   : > { %v2028_v30 = vadd.f32 %v2027_v25, %v9461_v45  ;;  %v1933_v62 = vadd.f32 %v1932_v32, %v9419_v63  ;;  %v8610_v25 = vld [vmem:[%s8997_s30 + $0x2c0] sm:$0xff]  ;;  %v8649_v32 = vld [vmem:[%s8997_s30 + $0x3f8] sm:$0xff]  ;;  %5767 = vperm.xlu0 %8735, %v5585_v41  }
 0x100   : > { %v2698_v43 = vmax.f32 %v1979_v28, 0.0  ;;  %8328 = vmatmul.msk.bf16.gmra.mxu0 %vm1455_vm0, %v9172_v52  ;;  %v2712_v26 = vmax.f32 %v1884_v60, 0.0  ;;  %v1790_v28 = vsel %vm1455_vm0, %v8625_v11, 0  ;;  %5742 = vperm.xlu1 %8736, %v5580_v38   ;;  %v1862_v48 = vsel %vm1455_vm0, %v8649_v32, 0  ;;  %v8624_v11 = vld [vmem:[%s8997_s30 + $0x330] sm:$0xff] }
 0x101   : > { %v2699_v47 = vmax.f32 %v2028_v30, 0.0  ;;  %8336 = vmatmul.msk.bf16.gmra.mxu1 %vm1455_vm0, %v9172_v52  ;;  %v2713_v27 = vmax.f32 %v1933_v62, 0.0  ;;  %v1814_v30 = vsel %vm1455_vm0, %v8633_v12, 0  ;;  %v8632_v12 = vld [vmem:[%s8997_s30 + $0x370] sm:$0xff] }
 0x102   : > { %8344 = vmatmul.msk.bf16.gmra.mxu2 %vm1455_vm0, %v9172_v52  ;;  %v9515_v58 = vpack.c.bf16 %v2698_v43, %v2682_v42  ;;  %v4256_v42 = vld [vmem:[%s13299_s6 + $0x40] sm:$0xff]  ;;  %v1745_v43 = vsel %vm1455_vm0, %v8610_v25, 0 }
 0x103   : > { %8352 = vmatmul.msk.bf16.gmra.mxu3 %vm1455_vm0, %v9172_v52  ;;  %v9517_v59 = vpack.c.bf16 %v2699_v47, %v2683_v46  ;;  %v1721_v46 = vsel %vm1455_vm0, %v8602_v24, 0  ;;  %v1838_v47 = vsel %vm1455_vm0, %v8641_v31, 0  ;;  %4434 = vperm.xlu2 %8737, %v4256_v42   ;;  %v5583_v24 = vld [vmem:[%s13301_s8 + $0x38] sm:$0xff]  ;;  %v5588_v25 = vld [vmem:[%s13301_s8 + $0x60] sm:$0xff] }
 0x104   : > { %13546 = vst [vmem:[#allocation22_spill] sm:$0xff] %v9515_v58  ;;  %2361 = vmatpush.bf16.xpose.msra.mxu2 %v1721_v46  ;;  %2410 = vmatpush.bf16.xpose.msra.mxu3 %v1745_v43  ;;  %v8623_v43 = vld [vmem:[%s8997_s30 + $0x328] sm:$0xff] }
 0x105   : > { %13547 = vst [vmem:[#allocation23_spill] sm:$0xff] %v9517_v59  ;;  %v1981_v0 = vpop.f32.mrf.mxu2  ;;  %v1885_v8 = vpop.f32.mrf.mxu0  ;;  %2452 = vmatpush.bf16.xpose.msrb.mxu0 %v1790_v28  ;;  %2501 = vmatpush.bf16.xpose.msrb.mxu1 %v1814_v30  ;;  %v1811_v28 = vsel %vm1455_vm0, %v8632_v12, 0  ;;  %v1835_v30 = vsel %vm1455_vm0, %v8640_v17, 0  ;;  %v4250_v12 = vld [vmem:[%s13299_s6 + $0x10] sm:$0xff] }
 0x106   : > { %v2030_v52 = vpop.f32.mrf.mxu3  ;;  %v1934_v9 = vpop.f32.mrf.mxu1  ;;  %v1886_v13 = vadd.f32 %v1885_v8, %v9353_v3  ;;  %v1982_v56 = vadd.f32 %v1981_v0, %v9419_v63 }
 0x107   : > { %v1935_v14 = vadd.f32 %v1934_v9, %v9353_v3  ;;  %v2031_v57 = vadd.f32 %v2030_v52, %v9419_v63  ;;  %5782 = vperm.xlu0 %8735, %v5588_v25  }
 0x108   : > { %v2728_v36 = vmax.f32 %v1886_v13, 0.0  ;;  %v2714_v0 = vmax.f32 %v1982_v56, 0.0  ;;  %5757 = vperm.xlu1 %8736, %v5583_v24  }
 0x109   : > { %v2729_v37 = vmax.f32 %v1935_v14, 0.0  ;;  %v2715_v13 = vmax.f32 %v2031_v57, 0.0 }
 0x10a   : > { %v9548_v49 = vpack.c.bf16 %v2728_v36, %v2712_v26  ;;  %v4255_v26 = vld [vmem:[%s13299_s6 + $0x38] sm:$0xff]  ;;  %v1859_v36 = vsel %vm1455_vm0, %v8648_v18, 0 }
 0x10b   : > { %v9550_v50 = vpack.c.bf16 %v2729_v37, %v2713_v27  ;;  %v1787_v27 = vsel %vm1455_vm0, %v8624_v11, 0  ;;  %4429 = vperm.xlu2 %8737, %v4255_v26   ;;  %v5591_v11 = vld [vmem:[%s13301_s8 + $0x78] sm:$0xff] }
 0x10c   : > { %2550 = vmatpush.bf16.xpose.msrb.mxu2 %v1838_v47  ;;  %2599 = vmatpush.bf16.xpose.msrb.mxu3 %v1862_v48  ;;  %v8631_v47 = vld [vmem:[%s8997_s30 + $0x368] sm:$0xff] }
 0x10d   : > { %v1983_v60 = vpop.f32.mrf.mxu2  ;;  %v1888_v8 = vpop.f32.mrf.mxu0  ;;  %2453 = vmatpush.bf16.xpose.msrb.mxu0 %v1787_v27  ;;  %2502 = vmatpush.bf16.xpose.msrb.mxu1 %v1811_v28 }
 0x10e   : > { %v2032_v62 = vpop.f32.mrf.mxu3  ;;  %v1984_v5 = vadd.f32 %v1983_v60, %v9353_v3  ;;  %v1937_v9 = vpop.f32.mrf.mxu1  ;;  %v1889_v37 = vadd.f32 %v1888_v8, %v9324_v54 }
 0x10f   : > { %v2033_v6 = vadd.f32 %v2032_v62, %v9353_v3  ;;  %v1938_v38 = vadd.f32 %v1937_v9, %v9324_v54  ;;  %v8639_v62 = vld [vmem:[%s8997_s30 + $0x3a8] sm:$0xff]  ;;  %v5586_v9 = vld [vmem:[%s13301_s8 + $0x50] sm:$0xff]  ;;  %5797 = vperm.xlu0 %8735, %v5591_v11  }
 0x110   : > { %v2730_v52 = vmax.f32 %v1984_v5, 0.0  ;;  %8329 = vmatmul.msk.bf16.gmra.mxu0 %vm1455_vm0, %v9193_v61  ;;  %v2744_v57 = vmax.f32 %v1889_v37, 0.0  ;;  %v8647_v5 = vld [vmem:[%s8997_s30 + $0x3e8] sm:$0xff]  ;;  %5772 = vperm.xlu1 %8736, %v5586_v9  }
 0x111   : > { %v2731_v14 = vmax.f32 %v2033_v6, 0.0  ;;  %8337 = vmatmul.msk.bf16.gmra.mxu1 %vm1455_vm0, %v9193_v61  ;;  %v2745_v60 = vmax.f32 %v1938_v38, 0.0  ;;  %v8622_v38 = vld [vmem:[%s8997_s30 + $0x320] sm:$0xff] }
 0x112   : > { %8345 = vmatmul.msk.bf16.gmra.mxu2 %vm1455_vm0, %v9193_v61  ;;  %v9580_v31 = vpack.c.bf16 %v2730_v52, %v2714_v0  ;;  %v1784_v0 = vsel %vm1455_vm0, %v8623_v43, 0  ;;  %v1832_v52 = vsel %vm1455_vm0, %v8639_v62, 0  ;;  %v1781_v62 = vsel %vm1455_vm0, %v8622_v38, 0 }
 0x113   : > { %8353 = vmatmul.msk.bf16.gmra.mxu3 %vm1455_vm0, %v9193_v61  ;;  %v9582_v32 = vpack.c.bf16 %v2731_v14, %v2715_v13  ;;  %v1808_v13 = vsel %vm1455_vm0, %v8631_v47, 0  ;;  %v1856_v14 = vsel %vm1455_vm0, %v8647_v5, 0  ;;  %4404 = vperm.xlu2 %8737, %v4250_v12   ;;  %v8638_v47 = vld [vmem:[%s8997_s30 + $0x3a0] sm:$0xff] }
 0x114   : > { %2551 = vmatpush.bf16.xpose.msrb.mxu2 %v1835_v30  ;;  %2600 = vmatpush.bf16.xpose.msrb.mxu3 %v1859_v36 }
 0x115   : > { %v1986_v61 = vpop.f32.mrf.mxu2  ;;  %v1890_v42 = vpop.f32.mrf.mxu0  ;;  %2454 = vmatpush.bf16.xpose.msrb.mxu0 %v1784_v0  ;;  %2503 = vmatpush.bf16.xpose.msrb.mxu1 %v1808_v13 }
 0x116   : > { %v2035_v41 = vpop.f32.mrf.mxu3  ;;  %v1939_v46 = vpop.f32.mrf.mxu1  ;;  %v1891_v48 = vadd.f32 %v1890_v42, %v9326_v55  ;;  %v1987_v24 = vadd.f32 %v1986_v61, %v9324_v54  ;;  %v8630_v61 = vld [vmem:[%s8997_s30 + $0x360] sm:$0xff] }
 0x117   : > { %v1940_v56 = vadd.f32 %v1939_v46, %v9326_v55  ;;  %v2036_v25 = vadd.f32 %v2035_v41, %v9324_v54  ;;  %v1805_v5 = vsel %vm1455_vm0, %v8630_v61, 0 }
 0x118   : > { %v2760_v6 = vmax.f32 %v1891_v48, 0.0  ;;  %v2746_v41 = vmax.f32 %v1987_v24, 0.0  ;;  %v8646_v48 = vld [vmem:[%s8997_s30 + $0x3e0] sm:$0xff]  ;;  %v8637_v24 = vld [vmem:[%s8997_s30 + $0x398] sm:$0xff] }
 0x119   : > { %v2761_v8 = vmax.f32 %v1940_v56, 0.0  ;;  %v2747_v42 = vmax.f32 %v2036_v25, 0.0  ;;  %v5589_v56 = vld [vmem:[%s13301_s8 + $0x68] sm:$0xff]  ;;  %v1853_v11 = vsel %vm1455_vm0, %v8646_v48, 0  ;;  %v8645_v25 = vld [vmem:[%s8997_s30 + $0x3d8] sm:$0xff]  ;;  %v1826_v61 = vsel %vm1455_vm0, %v8637_v24, 0 }
 0x11a   : > { %v9606_v17 = vpack.c.bf16 %v2760_v6, %v2744_v57  ;;  %v6890_v57 = vld [vmem:[%s13302_s9 + $0x10] sm:$0xff]  ;;  %v1829_v6 = vsel %vm1455_vm0, %v8638_v47, 0  ;;  %5787 = vperm.xlu1 %8736, %v5589_v56  }
 0x11b   : > { %v9608_v18 = vpack.c.bf16 %v2761_v8, %v2745_v60  ;;  %v4249_v60 = vld [vmem:[%s13299_s6 + $0x8] sm:$0xff]  ;;  %6917 = vperm.xlu0 %8735, %v6890_v57   ;;  %v8620_v48 = vld [vmem:[%s8997_s30 + $0x310] sm:$0xff] }
 0x11c   : > { %2552 = vmatpush.bf16.xpose.msrb.mxu2 %v1832_v52  ;;  %2601 = vmatpush.bf16.xpose.msrb.mxu3 %v1856_v14  ;;  %v8621_v52 = vld [vmem:[%s8997_s30 + $0x318] sm:$0xff]  ;;  %v8628_v56 = vld [vmem:[%s8997_s30 + $0x350] sm:$0xff] }
 0x11d   : > { %v1988_v26 = vpop.f32.mrf.mxu2  ;;  %v9614_v36 = vpop.f32.mrf.mxu0  ;;  %4399 = vperm.xlu2 %8737, %v4249_v60   ;;  %2455 = vmatpush.bf16.xpose.msrb.mxu0 %v1781_v62  ;;  %v8629_v14 = vld [vmem:[%s8997_s30 + $0x358] sm:$0xff]  ;;  %v8636_v57 = vld [vmem:[%s8997_s30 + $0x390] sm:$0xff] }
 0x11e   : > { %v2037_v27 = vpop.f32.mrf.mxu3  ;;  %v1989_v28 = vadd.f32 %v1988_v26, %v9326_v55  ;;  %v9616_v37 = vpop.f32.mrf.mxu1  ;;  %2504 = vmatpush.bf16.xpose.msrb.mxu1 %v1805_v5  ;;  %v6888_v26 = vld [vmem:[%s13302_s9] sm:$0xff]  ;;  %v1802_v38 = vsel %vm1455_vm0, %v8629_v14, 0  ;;  %v8644_v60 = vld [vmem:[%s8997_s30 + $0x3d0] sm:$0xff]  ;;  %v6891_v62 = vld [vmem:[%s13302_s9 + $0x18] sm:$0xff]  ;;  %v1823_v14 = vsel %vm1455_vm0, %v8636_v57, 0 }
 0x11f   : > { %v2038_v30 = vadd.f32 %v2037_v27, %v9326_v55  ;;  %v6893_v27 = vld [vmem:[%s13302_s9 + $0x28] sm:$0xff]  ;;  %v6896_v5 = vld [vmem:[%s13302_s9 + $0x40] sm:$0xff]  ;;  %v1847_v24 = vsel %vm1455_vm0, %v8644_v60, 0 }
 0x120   : > { %v2762_v46 = vmax.f32 %v1989_v28, 0.0  ;;  %8330 = vmatmul.msk.bf16.gmra.mxu0 %vm1455_vm0, %v9217_v7  ;;  %v5578_v28 = vld [vmem:[%s13301_s8 + $0x10] sm:$0xff]  ;;  %v5584_v57 = vld [vmem:[%s13301_s8 + $0x40] sm:$0xff] }
 0x121   : > { %v2763_v43 = vmax.f32 %v2038_v30, 0.0  ;;  %8338 = vmatmul.msk.bf16.gmra.mxu1 %vm1455_vm0, %v9217_v7  ;;  %v1778_v30 = vsel %vm1455_vm0, %v8621_v52, 0  ;;  %v1799_v52 = vsel %vm1455_vm0, %v8628_v56, 0  ;;  %v6899_v56 = vld [vmem:[%s13302_s9 + $0x58] sm:$0xff] }
 0x122   : > { %8346 = vmatmul.msk.bf16.gmra.mxu2 %vm1455_vm0, %v9217_v7  ;;  %v9642_v8 = vpack.c.bf16 %v2762_v46, %v2746_v41  ;;  %6907 = vperm.xlu1 %8736, %v6888_v26   ;;  %v1850_v41 = vsel %vm1455_vm0, %v8645_v25, 0 }
 0x123   : > { %8354 = vmatmul.msk.bf16.gmra.mxu3 %vm1455_vm0, %v9217_v7  ;;  %v9644_v9 = vpack.c.bf16 %v2763_v43, %v2747_v42  ;;  %6932 = vperm.xlu0 %8735, %v6893_v27  }
 0x124   : > { %2553 = vmatpush.bf16.xpose.msrb.mxu2 %v1829_v6  ;;  %2602 = vmatpush.bf16.xpose.msrb.mxu3 %v1853_v11  ;;  %v5581_v6 = vld [vmem:[%s13301_s8 + $0x28] sm:$0xff]  ;;  %v1775_v11 = vsel %vm1455_vm0, %v8620_v48, 0  ;;  %v6894_v48 = vld [vmem:[%s13302_s9 + $0x30] sm:$0xff] }
 0x125   : > { %v9647_v12 = vpop.f32.mrf.mxu2  ;;  %v9651_v0 = vpop.f32.mrf.mxu0  ;;  %5732 = vperm.xlu2 %8737, %v5578_v28   ;;  %2456 = vmatpush.bf16.xpose.msrb.mxu0 %v1778_v30  ;;  %v8619_v28 = vld [vmem:[%s8997_s30 + $0x308] sm:$0xff] }
 0x126   : > { %v9649_v7 = vpop.f32.mrf.mxu3  ;;  %v9653_v13 = vpop.f32.mrf.mxu1  ;;  %2505 = vmatpush.bf16.xpose.msrb.mxu1 %v1802_v38  ;;  %v8627_v30 = vld [vmem:[%s8997_s30 + $0x348] sm:$0xff] }
 0x127   : > { %v8635_v38 = vld [vmem:[%s8997_s30 + $0x388] sm:$0xff]  ;;  %v1796_v60 = vsel %vm1455_vm0, %v8627_v30, 0  ;;  %v8634_v30 = vld [vmem:[%s8997_s30 + $0x380] sm:$0xff] }
 0x12a   : > { %6922 = vperm.xlu1 %8736, %v6891_v62   ;;  %v1820_v62 = vsel %vm1455_vm0, %v8635_v38, 0  ;;  %v8642_v38 = vld [vmem:[%s8997_s30 + $0x3c0] sm:$0xff] }
 0x12b   : > { %6947 = vperm.xlu0 %8735, %v6896_v5  }
 0x12c   : > { %2554 = vmatpush.bf16.xpose.msrb.mxu2 %v1826_v61  ;;  %2603 = vmatpush.bf16.xpose.msrb.mxu3 %v1850_v41  ;;  %v8643_v61 = vld [vmem:[%s8997_s30 + $0x3c8] sm:$0xff]  ;;  %v1772_v41 = vsel %vm1455_vm0, %v8619_v28, 0  ;;  %v8626_v28 = vld [vmem:[%s8997_s30 + $0x340] sm:$0xff] }
 0x12d   : > { %v9672_v42 = vpop.f32.mrf.mxu2  ;;  %v9676_v43 = vpop.f32.mrf.mxu0  ;;  %5747 = vperm.xlu2 %8737, %v5581_v6   ;;  %2457 = vmatpush.bf16.xpose.msrb.mxu0 %v1775_v11  ;;  %v1844_v5 = vsel %vm1455_vm0, %v8643_v61, 0  ;;  %v6897_v61 = vld [vmem:[%s13302_s9 + $0x48] sm:$0xff] }
 0x12e   : > { %v9674_v46 = vpop.f32.mrf.mxu3  ;;  %v9678_v47 = vpop.f32.mrf.mxu1  ;;  %2506 = vmatpush.bf16.xpose.msrb.mxu1 %v1799_v52 }
 0x130   : > { %8331 = vmatmul.msk.bf16.gmra.mxu0 %vm1455_vm0, %v9250_v20 }
 0x131   : > { %8339 = vmatmul.msk.bf16.gmra.mxu1 %vm1455_vm0, %v9250_v20 }
 0x132   : > { %8347 = vmatmul.msk.bf16.gmra.mxu2 %vm1455_vm0, %v9250_v20  ;;  %6937 = vperm.xlu1 %8736, %v6894_v48   ;;  %v5587_v48 = vld [vmem:[%s13301_s8 + $0x58] sm:$0xff] }
 0x133   : > { %8355 = vmatmul.msk.bf16.gmra.mxu3 %vm1455_vm0, %v9250_v20  ;;  %6962 = vperm.xlu0 %8735, %v6899_v56  }
 0x134   : > { %2555 = vmatpush.bf16.xpose.msrb.mxu2 %v1823_v14  ;;  %2604 = vmatpush.bf16.xpose.msrb.mxu3 %v1847_v24  ;;  %v8618_v24 = vld [vmem:[%s8997_s30 + $0x300] sm:$0xff]  ;;  %s8519_s30 = sshll.u32 %s8956_s10, 4  ;;  %s7655_s10 = scalar_lea.sflag [#allocation5], %s397_s23 }
 0x135   : > { %v9705_v25 = vpop.f32.mrf.mxu2  ;;  %v9709_v20 = vpop.f32.mrf.mxu0  ;;  %5762 = vperm.xlu2 %8737, %v5584_v57   ;;  %2458 = vmatpush.bf16.xpose.msrb.mxu0 %v1772_v41  ;;  %v6902_v41 = vld [vmem:[%s13302_s9 + $0x70] sm:$0xff]  ;;  %v1769_v56 = vsel %vm1455_vm0, %v8618_v24, 0  ;;  %v1793_v57 = vsel %vm1455_vm0, %v8626_v28, 0  ;;  %v6900_v24 = vld [vmem:[%s13302_s9 + $0x60] sm:$0xff]  ;;  %s7665_s14 = scalar_lea.hbm %s13304_s11, %s8519_s30 }
 0x136   : > { %v9707_v26 = vpop.f32.mrf.mxu3  ;;  %v9711_v27 = vpop.f32.mrf.mxu1  ;;  %2507 = vmatpush.bf16.xpose.msrb.mxu1 %v1796_v60  ;;  %v1817_v60 = vsel %vm1455_vm0, %v8634_v30, 0  ;;  %v5590_v28 = vld [vmem:[%s13301_s8 + $0x70] sm:$0xff]  ;;  %s7669_s16 = sshll.u32 %s7665_s14, 4  ;;  %s7670_s16 = int_to_ptr.hbm [resolvable:$true] %s7669_s16 }
 0x137   : > { %s8814_s17 = sshra.s32 %s7670_s16, 4  ;;  %s8815_s17 = int_to_ptr.hbm [resolvable:$true] %s8814_s17 }
 0x138   : > { %s8816_s18 = scalar_lea.hbm %s8815_s17, 16  ;;  %p8821_p3 = scmp.lt.s32.totalorder %s8815_s17, %s13304_s11 }
 0x139   : > { %p8817_p0 = scmp.ne.s32.totalorder %s8815_s17, %s8816_s18  ;;  %p8822_p4 = scmp.lt.s32.totalorder %s8820_s12, %s8816_s18 }
 0x13a   : > { %6952 = vperm.xlu1 %8736, %v6897_v61  }
 0x13b   : > { %6977 = vperm.xlu0 %8735, %v6902_v41   ;;  %p8818_p1 = pnand %p8817_p0, %p8973_p5  ;;  %p8823_p7 = por %p8822_p4, %p8821_p3 }
 0x13c   : > { %2556 = vmatpush.bf16.xpose.msrb.mxu2 %v1820_v62  ;;  %2605 = vmatpush.bf16.xpose.msrb.mxu3 %v1844_v5 }
 0x13d   : > { %v9730_v6 = vpop.f32.mrf.mxu2  ;;  %v9734_v52 = vpop.f32.mrf.mxu0  ;;  %5777 = vperm.xlu2 %8737, %v5587_v48   ;;  %2459 = vmatpush.bf16.xpose.msrb.mxu0 %v1769_v56  ;;  %v6903_v48 = vld [vmem:[%s13302_s9 + $0x78] sm:$0xff]  ;;  %v6889_v56 = vld [vmem:[%s13302_s9 + $0x8] sm:$0xff]  ;;  %p8819_p2 = pneg %p8818_p1 }
 0x13e   : > { %v9732_v11 = vpop.f32.mrf.mxu3  ;;  %v9736_v14 = vpop.f32.mrf.mxu1  ;;  %2508 = vmatpush.bf16.xpose.msrb.mxu1 %v1793_v57 }
 0x13f   : > { %p8824_p8 = pnand %p8823_p7, %p8819_p2 }
 0x140   : > { %8332 = vmatmul.msk.bf16.gmra.mxu0 %vm1455_vm0, %v9283_v35 }
 0x141   : > { %8340 = vmatmul.msk.bf16.gmra.mxu1 %vm1455_vm0, %v9283_v35 }
 0x142   : > { %8348 = vmatmul.msk.bf16.gmra.mxu2 %vm1455_vm0, %v9283_v35  ;;  %6967 = vperm.xlu1 %8736, %v6900_v24   ;;  %v9793_v24 = vadd.f32 %v9678_v47, %v9276_v33  ;;  %v9813_v47 = vadd.f32 %v9651_v0, %v9374_v19 }
 0x143   : > { %8356 = vmatmul.msk.bf16.gmra.mxu3 %vm1455_vm0, %v9283_v35  ;;  %v1841_v35 = vsel %vm1455_vm0, %v8642_v38, 0 }
 0x144   : > { %2557 = vmatpush.bf16.xpose.msrb.mxu2 %v1817_v60  ;;  %2606 = vmatpush.bf16.xpose.msrb.mxu3 %v1841_v35  ;;  %v9789_v35 = vadd.f32 %v9676_v43, %v9276_v33  ;;  %v9809_v43 = vadd.f32 %v9649_v7, %v9305_v44 }
 0x145   : > { %v9763_v62 = vpop.f32.mrf.mxu2  ;;  %v1905_v55 = vpop.f32.mrf.mxu0  ;;  %5792 = vperm.xlu2 %8737, %v5590_v28  }
 0x146   : > { %v9765_v5 = vpop.f32.mrf.mxu3  ;;  %v1954_v54 = vpop.f32.mrf.mxu1 }
 0x147   : > { %v1955_v23 = vadd.f32 %v1954_v54, %v9351_v2  ;;  %v2051_v54 = vadd.f32 %v9765_v5, %v9317_v51  ;;  %v2046_v5 = vadd.f32 %v9707_v26, %v9276_v33 }
 0x14a   : > { %6982 = vperm.xlu1 %8736, %v6903_v48   ;;  %v9801_v48 = vadd.f32 %v9616_v37, %v9305_v44  ;;  %v9821_v37 = vadd.f32 %v9672_v42, %v9374_v19  ;;  %v9837_v42 = vadd.f32 %v9711_v27, %v9301_v40  ;;  %v1904_v27 = vadd.f32 %v9734_v52, %v9317_v51 }
 0x14d   : > { %v2003_v30 = vpop.f32.mrf.mxu2  ;;  %v1908_v61 = vpop.f32.mrf.mxu0  ;;  %6912 = vperm.xlu2 %8737, %v6889_v56   ;;  %v9805_v56 = vadd.f32 %v9647_v12, %v9305_v44  ;;  %v9825_v12 = vadd.f32 %v9674_v46, %v9374_v19  ;;  %v6892_v46 = vld [vmem:[%s13302_s9 + $0x20] sm:$0xff] }
 0x14e   : > { %v2052_v38 = vpop.f32.mrf.mxu3  ;;  %v1957_v41 = vpop.f32.mrf.mxu1  ;;  %v1909_v0 = vadd.f32 %v1908_v61, %v9260_v21 }
 0x14f   : > { %v2053_v52 = vadd.f32 %v2052_v38, %v9351_v2  ;;  %v2857_v38 = vmax.f32 %v1955_v23, 0.0  ;;  %v1997_v23 = vadd.f32 %v9705_v25, %v9276_v33 }
 0x150   : > { %8333 = vmatmul.msk.bf16.gmra.mxu0 %vm1455_vm0, %v9322_v53 }
 0x151   : > { %8341 = vmatmul.msk.bf16.gmra.mxu1 %vm1455_vm0, %v9322_v53 }
 0x152   : > { %8349 = vmatmul.msk.bf16.gmra.mxu2 %vm1455_vm0, %v9322_v53 }
 0x153   : > { %8357 = vmatmul.msk.bf16.gmra.mxu3 %vm1455_vm0, %v9322_v53  ;;  %v9797_v53 = vadd.f32 %v9614_v36, %v9305_v44  ;;  %v9817_v36 = vadd.f32 %v9653_v13, %v9374_v19  ;;  %v9833_v13 = vadd.f32 %v9709_v20, %v9301_v40  ;;  %v1958_v20 = vadd.f32 %v1957_v41, %v9260_v21 }
 0x154   : > { %v1953_v44 = vadd.f32 %v9736_v14, %v9317_v51  ;;  %v2004_v41 = vadd.f32 %v2003_v30, %v9351_v2 }
 0x155   : > { %v2006_v57 = vpop.f32.mrf.mxu2  ;;  %v1910_v28 = vpop.f32.mrf.mxu0  ;;  %6927 = vperm.xlu2 %8737, %v6892_v46  }
 0x156   : > { %v2055_v60 = vpop.f32.mrf.mxu3  ;;  %v1959_v3 = vpop.f32.mrf.mxu1  ;;  %v1911_v63 = vadd.f32 %v1910_v28, %v9278_v34  ;;  %v9844_v28 = vadd.f32 %v9730_v6, %v9301_v40  ;;  %v2007_v19 = vadd.f32 %v2006_v57, %v9260_v21  ;;  %v1906_v6 = vadd.f32 %v1905_v55, %v9351_v2 }
 0x157   : > { %v1960_v7 = vadd.f32 %v1959_v3, %v9278_v34  ;;  %v9848_v3 = vadd.f32 %v9732_v11, %v9301_v40  ;;  %v2056_v39 = vadd.f32 %v2055_v60, %v9260_v21  ;;  %v2002_v55 = vadd.f32 %v9763_v62, %v9317_v51 }
 0x158   : > { %v2888_v11 = vmax.f32 %v1911_v63, 0.0  ;;  %v2872_v63 = vmax.f32 %v1909_v0, 0.0  ;;  %v2873_v60 = vmax.f32 %v1958_v20, 0.0  ;;  %v2856_v58 = vmax.f32 %v1906_v6, 0.0 }
 0x159   : > { %v2889_v40 = vmax.f32 %v1960_v7, 0.0  ;;  %v2874_v7 = vmax.f32 %v2007_v19, 0.0  ;;  %v2875_v46 = vmax.f32 %v2056_v39, 0.0  ;;  %v2858_v62 = vmax.f32 %v2004_v41, 0.0 }
 0x15a   : > { %v3048_v2 = vpack.c.bf16 %v2888_v11, %v2872_v63  ;;  %v2859_v19 = vmax.f32 %v2053_v52, 0.0  ;;  %v2840_v0 = vmax.f32 %v1904_v27, 0.0  ;;  %v2841_v20 = vmax.f32 %v1953_v44, 0.0 }
 0x15b   : > { %v2825_v6 = vmax.f32 %v9837_v42, 0.0  ;;  %v2842_v11 = vmax.f32 %v2002_v55, 0.0  ;;  %v2843_v41 = vmax.f32 %v2051_v54, 0.0  ;;  %v2826_v44 = vmax.f32 %v9844_v28, 0.0 }
 0x15c   : > { %v3033_v26 = vpack.c.bf16 %v2857_v38, %v2841_v20  ;;  %v2792_v54 = vmax.f32 %v9813_v47, 0.0  ;;  %v13548_v28 = vmax.f32 %v9789_v35, 0.0  ;;  %v2776_v35 = vmax.f32 %v9797_v53, 0.0 }
 0x15d   : > { %v2008_v4 = vpop.f32.mrf.mxu2  ;;  %v2069_v57 = vpop.f32.mrf.mxu0  ;;  %v3034_v42 = vpack.c.bf16 %v2858_v62, %v2842_v11  ;;  %v3035_v55 = vpack.c.bf16 %v2859_v19, %v2843_v41  ;;  %v2794_v19 = vmax.f32 %v9821_v37, 0.0  ;;  %v2778_v37 = vmax.f32 %v9805_v56, 0.0 }
 0x15e   : > { %v2057_v61 = vpop.f32.mrf.mxu3  ;;  %v2009_v1 = vadd.f32 %v2008_v4, %v9278_v34  ;;  %v2118_v59 = vpop.f32.mrf.mxu1  ;;  %v3049_v4 = vpack.c.bf16 %v2889_v40, %v2873_v60  ;;  %v6895_v40 = vld [vmem:[%s13302_s9 + $0x38] sm:$0xff]  ;;  %v2070_v52 = vadd.f32 %v2069_v57, %v9380_v22  ;;  %v3032_v60 = vpack.c.bf16 %v2856_v58, %v2840_v0 }
 0x15f   : > { %v2058_v14 = vadd.f32 %v2057_v61, %v9278_v34  ;;  %v9871_v61 = vld [vmem:[%s13294_s1] sm:$0xff]  ;;  %6942 = vperm.xlu2 %8737, %v6895_v40   ;;  %v2810_v57 = vmax.f32 %v1997_v23, 0.0  ;;  %v6898_v23 = vld [vmem:[%s13302_s9 + $0x50] sm:$0xff]  ;;  %v3000_v11 = vpack.c.bf16 %v2792_v54, %v2776_v35  ;;  %v3002_v56 = vpack.c.bf16 %v2794_v19, %v2778_v37 }
 0x160   : > { %v2890_v21 = vmax.f32 %v2009_v1, 0.0  ;;  %8358 = vmatmul.msk.bf16.vlgmr.msra.gmra.mxu0 %vm1455_vm0, %v9871_v61  ;;  %v13558_v19 = vld [vmem:[#allocation18_spill] sm:$0xff]  ;;  %v13561_v37 = vld [vmem:[#allocation21_spill] sm:$0xff] }
 0x161   : > { %v2891_v30 = vmax.f32 %v2058_v14, 0.0  ;;  %8366 = vmatmul.msk.bf16.vlgmr.msra.gmra.mxu1 %vm1455_vm0, %v9871_v61  ;;  %3192 = vmatpush.bf16.msra.mxu0 %v3048_v2  ;;  %v2119_v14 = vadd.f32 %v2118_v59, %v9380_v22  ;;  %v2827_v2 = vmax.f32 %v9848_v3, 0.0 }
 0x162   : > { %v3050_v39 = vpack.c.bf16 %v2890_v21, %v2874_v7  ;;  %8374 = vmatmul.msk.bf16.vlgmr.msra.gmra.mxu2 %vm1455_vm0, %v9871_v61  ;;  %3241 = vmatpush.bf16.msra.mxu1 %v3049_v4  ;;  %v2824_v21 = vmax.f32 %v9833_v13, 0.0  ;;  %v2793_v7 = vmax.f32 %v9817_v36, 0.0  ;;  %v2652_v4 = vmax.f32 %v2070_v52, 0.0 }
 0x163   : > { %v3051_v1 = vpack.c.bf16 %v2891_v30, %v2875_v46  ;;  %8382 = vmatmul.msk.bf16.vlgmr.msra.gmra.mxu3 %vm1455_vm0, %v9871_v61  ;;  %v2811_v46 = vmax.f32 %v2046_v5, 0.0  ;;  %v13549_v30 = vmax.f32 %v9793_v24, 0.0  ;;  %v2653_v47 = vmax.f32 %v2119_v14, 0.0 }
 0x164   : > { %3290 = vmatpush.bf16.msra.mxu2 %v3050_v39  ;;  %v3016_v3 = vpack.c.bf16 %v2824_v21, %v13548_v28  ;;  %v2795_v39 = vmax.f32 %v9825_v12, 0.0  ;;  %v2777_v5 = vmax.f32 %v9801_v48, 0.0  ;;  %v2779_v12 = vmax.f32 %v9809_v43, 0.0 }
 0x165   : > { %3339 = vmatpush.bf16.msra.mxu3 %v3051_v1  ;;  %v2167_v25 = vpop.f32.mrf.mxu2  ;;  %v2071_v13 = vpop.f32.mrf.mxu0  ;;  %3193 = vmatpush.bf16.msra.mxu0 %v3032_v60  ;;  %v3017_v38 = vpack.c.bf16 %v2825_v6, %v13549_v30  ;;  %v3018_v1 = vpack.c.bf16 %v2826_v44, %v2810_v57  ;;  %v3019_v40 = vpack.c.bf16 %v2827_v2, %v2811_v46  ;;  %v9922_v2 = vld [vmem:[%s13294_s1 + $0x8] sm:$0xff] }
 0x166   : > { %v2216_v63 = vpop.f32.mrf.mxu3  ;;  %v2120_v27 = vpop.f32.mrf.mxu1  ;;  %3242 = vmatpush.bf16.msra.mxu1 %v3033_v26  ;;  %v2072_v59 = vadd.f32 %v2071_v13, %v9397_v29  ;;  %v2168_v20 = vadd.f32 %v2167_v25, %v9380_v22  ;;  %v3001_v48 = vpack.c.bf16 %v2793_v7, %v2777_v5  ;;  %v3003_v26 = vpack.c.bf16 %v2795_v39, %v2779_v12  ;;  %v6901_v13 = vld [vmem:[%s13302_s9 + $0x68] sm:$0xff]  ;;  %v13559_v39 = vld [vmem:[#allocation19_spill] sm:$0xff]  ;;  %v13560_v5 = vld [vmem:[#allocation20_spill] sm:$0xff] }
 0x167   : > { %v2121_v58 = vadd.f32 %v2120_v27, %v9397_v29  ;;  %v2217_v21 = vadd.f32 %v2216_v63, %v9380_v22  ;;  %6957 = vperm.xlu2 %8737, %v6898_v23   ;;  %v9970_v12 = vld [vmem:[%s13294_s1 + $0x10] sm:$0xff] }
 0x168   : > { %3291 = vmatpush.bf16.msra.mxu2 %v3034_v42  ;;  %v2668_v62 = vmax.f32 %v2072_v59, 0.0  ;;  %v2654_v43 = vmax.f32 %v2168_v20, 0.0 }
 0x169   : > { %3340 = vmatpush.bf16.msra.mxu3 %v3035_v55  ;;  %v2669_v36 = vmax.f32 %v2121_v58, 0.0  ;;  %3194 = vmatpush.bf16.msra.mxu0 %v3016_v3  ;;  %v2655_v25 = vmax.f32 %v2217_v21, 0.0  ;;  %v6904_v3 = vld [vmem:[#allocation2] sm:$0x1] }
 0x16a   : > { %3243 = vmatpush.bf16.msra.mxu1 %v3017_v38  ;;  %v9909_v24 = vpack.c.bf16 %v2668_v62, %v2652_v4 }
 0x16b   : > { %v9911_v0 = vpack.c.bf16 %v2669_v36, %v2653_v47 }
 0x16c   : > { %13550 = vst [vmem:[#allocation24_spill] sm:$0xff] %v9909_v24  ;;  %3292 = vmatpush.bf16.msra.mxu2 %v3018_v1 }
 0x16d   : > { %13551 = vst [vmem:[#allocation25_spill] sm:$0xff] %v9911_v0  ;;  %3341 = vmatpush.bf16.msra.mxu3 %v3019_v40  ;;  %v2169_v6 = vpop.f32.mrf.mxu2  ;;  %v2074_v14 = vpop.f32.mrf.mxu0  ;;  %3195 = vmatpush.bf16.msra.mxu0 %v3000_v11 }
 0x16e   : > { %v2218_v53 = vpop.f32.mrf.mxu3  ;;  %v2170_v41 = vadd.f32 %v2169_v6, %v9397_v29  ;;  %v2123_v60 = vpop.f32.mrf.mxu1  ;;  %3244 = vmatpush.bf16.msra.mxu1 %v3001_v48  ;;  %v2075_v55 = vadd.f32 %v2074_v14, %v9366_v10  ;;  %v13565_v6 = vld [vmem:[#allocation17_spill] sm:$0xff] }
 0x16f   : > { %v2219_v52 = vadd.f32 %v2218_v53, %v9397_v29  ;;  %v2124_v54 = vadd.f32 %v2123_v60, %v9366_v10  ;;  %6972 = vperm.xlu2 %8737, %v6901_v13   ;;  %v13566_v60 = vld [vmem:[#allocation15_spill] sm:$0xff] }
 0x170   : > { %v2670_v63 = vmax.f32 %v2170_v41, 0.0  ;;  %3293 = vmatpush.bf16.msra.mxu2 %v3002_v56  ;;  %8359 = vmatmul.msk.bf16.gmra.mxu0 %vm1455_vm0, %v9922_v2 }
 0x171   : > { %v2671_v44 = vmax.f32 %v2219_v52, 0.0  ;;  %3342 = vmatpush.bf16.msra.mxu3 %v3003_v26  ;;  %8367 = vmatmul.msk.bf16.gmra.mxu1 %vm1455_vm0, %v9922_v2 }
 0x172   : > { %8375 = vmatmul.msk.bf16.gmra.mxu2 %vm1455_vm0, %v9922_v2  ;;  %v9935_v27 = vpack.c.bf16 %v2670_v63, %v2654_v43  ;;  %3196 = vmatpush.bf16.msra.mxu0 %v9606_v17 }
 0x173   : > { %8383 = vmatmul.msk.bf16.gmra.mxu3 %vm1455_vm0, %v9922_v2  ;;  %v9937_v42 = vpack.c.bf16 %v2671_v44, %v2655_v25  ;;  %3245 = vmatpush.bf16.msra.mxu1 %v9608_v18 }
 0x174   : > { %13552 = vst [vmem:[#allocation26_spill] sm:$0xff] %v9935_v27  ;;  %3294 = vmatpush.bf16.msra.mxu2 %v9642_v8  ;;  %v2684_v8 = vmax.f32 %v2075_v55, 0.0 }
 0x175   : > { %13553 = vst [vmem:[#allocation27_spill] sm:$0xff] %v9937_v42  ;;  %3343 = vmatpush.bf16.msra.mxu3 %v9644_v9  ;;  %v2172_v7 = vpop.f32.mrf.mxu2  ;;  %v2076_v58 = vpop.f32.mrf.mxu0  ;;  %v2685_v9 = vmax.f32 %v2124_v54, 0.0 }
 0x176   : > { %v2221_v59 = vpop.f32.mrf.mxu3  ;;  %v2125_v57 = vpop.f32.mrf.mxu1  ;;  %3197 = vmatpush.bf16.msra.mxu0 %v9548_v49  ;;  %v2077_v17 = vadd.f32 %v2076_v58, %v9461_v45  ;;  %v2173_v30 = vadd.f32 %v2172_v7, %v9366_v10 }
 0x177   : > { %3246 = vmatpush.bf16.msra.mxu1 %v9550_v50  ;;  %v2126_v18 = vadd.f32 %v2125_v57, %v9461_v45  ;;  %v2222_v38 = vadd.f32 %v2221_v59, %v9366_v10  ;;  %7579 = vperm.xlu2 %8737, %v6904_v3  }
 0x178   : > { %3295 = vmatpush.bf16.msra.mxu2 %v9580_v31  ;;  %v2700_v46 = vmax.f32 %v2077_v17, 0.0  ;;  %v13556_v31 = vld [vmem:[#allocation22_spill] sm:$0xff]  ;;  %v2686_v1 = vmax.f32 %v2173_v30, 0.0  ;;  %v9999_v30 = vld [vmem:[%s13294_s1 + $0x18] sm:$0xff] }
 0x179   : > { %3344 = vmatpush.bf16.msra.mxu3 %v9582_v32  ;;  %v2701_v28 = vmax.f32 %v2126_v18, 0.0  ;;  %v13557_v32 = vld [vmem:[#allocation23_spill] sm:$0xff]  ;;  %v2687_v40 = vmax.f32 %v2222_v38, 0.0  ;;  %13562 = vst [vmem:[#allocation22_spill] sm:$0xff] %v9970_v12 }
 0x17a   : > { %3198 = vmatpush.bf16.msra.mxu0 %v9482_v15  ;;  %v9953_v49 = vpack.c.bf16 %v2700_v46, %v2684_v8  ;;  %13567 = vst [vmem:[#allocation19_spill] sm:$0xff] %v9999_v30 }
 0x17b   : > { %3247 = vmatpush.bf16.msra.mxu1 %v9484_v16  ;;  %v9955_v50 = vpack.c.bf16 %v2701_v28, %v2685_v9 }
 0x17c   : > { %13554 = vst [vmem:[#allocation28_spill] sm:$0xff] %v9953_v49  ;;  %3296 = vmatpush.bf16.msra.mxu2 %v13556_v31 }
 0x17d   : > { %13555 = vst [vmem:[#allocation29_spill] sm:$0xff] %v9955_v50  ;;  %3345 = vmatpush.bf16.msra.mxu3 %v13557_v32  ;;  %v2174_v4 = vpop.f32.mrf.mxu2  ;;  %v2079_v16 = vpop.f32.mrf.mxu0  ;;  %v13570_v32 = vld [vmem:[#allocation12_spill] sm:$0xff] }
 0x17e   : > { %v2223_v47 = vpop.f32.mrf.mxu3  ;;  %v2175_v62 = vadd.f32 %v2174_v4, %v9461_v45  ;;  %v2128_v36 = vpop.f32.mrf.mxu1  ;;  %3199 = vmatpush.bf16.msra.mxu0 %v13558_v19  ;;  %v2080_v53 = vadd.f32 %v2079_v16, %v13565_v6  ;;  %v13571_v19 = vld [vmem:[#allocation13_spill] sm:$0xff] }
 0x17f   : > { %v2224_v15 = vadd.f32 %v2223_v47, %v9461_v45  ;;  %3248 = vmatpush.bf16.msra.mxu1 %v13559_v39  ;;  %v2129_v11 = vadd.f32 %v2128_v36, %v13565_v6 }
 0x180   : > { %v2702_v23 = vmax.f32 %v2175_v62, 0.0  ;;  %3297 = vmatpush.bf16.msra.mxu2 %v13560_v5  ;;  %8360 = vmatmul.msk.bf16.gmra.mxu0 %vm1455_vm0, %v9970_v12  ;;  %v2716_v43 = vmax.f32 %v2080_v53, 0.0 }
 0x181   : > { %v2703_v35 = vmax.f32 %v2224_v15, 0.0  ;;  %3346 = vmatpush.bf16.msra.mxu3 %v13561_v37  ;;  %8368 = vmatmul.msk.bf16.gmra.mxu1 %vm1455_vm0, %v9970_v12  ;;  %v2717_v25 = vmax.f32 %v2129_v11, 0.0 }
 0x182   : > { %8376 = vmatmul.msk.bf16.gmra.mxu2 %vm1455_vm0, %v9970_v12  ;;  %v9980_v20 = vpack.c.bf16 %v2702_v23, %v2686_v1 }
 0x183   : > { %8384 = vmatmul.msk.bf16.gmra.mxu3 %vm1455_vm0, %v9970_v12  ;;  %v9982_v21 = vpack.c.bf16 %v2703_v35, %v2687_v40 }
 0x184   : > { %13563 = vst [vmem:[#allocation23_spill] sm:$0xff] %v9980_v20 }
 0x185   : > { %13564 = vst [vmem:[#allocation18_spill] sm:$0xff] %v9982_v21  ;;  %v2177_v48 = vpop.f32.mrf.mxu2  ;;  %v2081_v52 = vpop.f32.mrf.mxu0 }
 0x186   : > { %v2226_v41 = vpop.f32.mrf.mxu3  ;;  %v2130_v14 = vpop.f32.mrf.mxu1  ;;  %v2082_v56 = vadd.f32 %v2081_v52, %v13566_v60  ;;  %v2178_v54 = vadd.f32 %v2177_v48, %v13565_v6 }
 0x187   : > { %v2131_v26 = vadd.f32 %v2130_v14, %v13566_v60  ;;  %v2227_v7 = vadd.f32 %v2226_v41, %v13565_v6  ;;  %v13577_v6 = vld [vmem:[#allocation16_spill] sm:$0xff] }
 0x188   : > { %v2732_v63 = vmax.f32 %v2082_v56, 0.0  ;;  %v2718_v9 = vmax.f32 %v2178_v54, 0.0 }
 0x189   : > { %v2733_v44 = vmax.f32 %v2131_v26, 0.0  ;;  %v2719_v46 = vmax.f32 %v2227_v7, 0.0  ;;  %v10028_v7 = vld [vmem:[%s13294_s1 + $0x20] sm:$0xff] }
 0x18a   : > { %v9988_v13 = vpack.c.bf16 %v2732_v63, %v2716_v43  ;;  %13572 = vst [vmem:[#allocation30_spill] sm:$0xff] %v10028_v7 }
 0x18b   : > { %v9990_v55 = vpack.c.bf16 %v2733_v44, %v2717_v25 }
 0x18d   : > { %v2179_v59 = vpop.f32.mrf.mxu2  ;;  %v2084_v18 = vpop.f32.mrf.mxu0 }
 0x18e   : > { %v2228_v58 = vpop.f32.mrf.mxu3  ;;  %v2180_v57 = vadd.f32 %v2179_v59, %v13566_v60  ;;  %v2133_v8 = vpop.f32.mrf.mxu1  ;;  %v2085_v4 = vadd.f32 %v2084_v18, %v13570_v32 }
 0x18f   : > { %v2229_v17 = vadd.f32 %v2228_v58, %v13566_v60  ;;  %v2134_v47 = vadd.f32 %v2133_v8, %v13570_v32 }
 0x190   : > { %v2734_v28 = vmax.f32 %v2180_v57, 0.0  ;;  %8361 = vmatmul.msk.bf16.gmra.mxu0 %vm1455_vm0, %v9999_v30  ;;  %v2748_v40 = vmax.f32 %v2085_v4, 0.0  ;;  %v10045_v4 = vld [vmem:[%s13294_s1 + $0x28] sm:$0xff] }
 0x191   : > { %v2735_v3 = vmax.f32 %v2229_v17, 0.0  ;;  %8369 = vmatmul.msk.bf16.gmra.mxu1 %vm1455_vm0, %v9999_v30  ;;  %v2749_v23 = vmax.f32 %v2134_v47, 0.0  ;;  %13573 = vst [vmem:[#allocation31_spill] sm:$0xff] %v10045_v4 }
 0x192   : > { %8377 = vmatmul.msk.bf16.gmra.mxu2 %vm1455_vm0, %v9999_v30  ;;  %v10009_v38 = vpack.c.bf16 %v2734_v28, %v2718_v9 }
 0x193   : > { %8385 = vmatmul.msk.bf16.gmra.mxu3 %vm1455_vm0, %v9999_v30  ;;  %v10011_v31 = vpack.c.bf16 %v2735_v3, %v2719_v46 }
 0x194   : > { %13568 = vst [vmem:[#allocation20_spill] sm:$0xff] %v10009_v38 }
 0x195   : > { %13569 = vst [vmem:[#allocation21_spill] sm:$0xff] %v10011_v31  ;;  %v2182_v62 = vpop.f32.mrf.mxu2  ;;  %v2086_v16 = vpop.f32.mrf.mxu0 }
 0x196   : > { %v2231_v15 = vpop.f32.mrf.mxu3  ;;  %v2135_v36 = vpop.f32.mrf.mxu1  ;;  %v2087_v39 = vadd.f32 %v2086_v16, %v13571_v19  ;;  %v2183_v11 = vadd.f32 %v2182_v62, %v13570_v32 }
 0x197   : > { %v2136_v1 = vadd.f32 %v2135_v36, %v13571_v19  ;;  %v2232_v48 = vadd.f32 %v2231_v15, %v13570_v32 }
 0x198   : > { %v2764_v35 = vmax.f32 %v2087_v39, 0.0  ;;  %v2750_v25 = vmax.f32 %v2183_v11, 0.0 }
 0x199   : > { %v2765_v5 = vmax.f32 %v2136_v1, 0.0  ;;  %v2751_v63 = vmax.f32 %v2232_v48, 0.0 }
 0x19a   : > { %v10017_v37 = vpack.c.bf16 %v2764_v35, %v2748_v40 }
 0x19b   : > { %v10019_v53 = vpack.c.bf16 %v2765_v5, %v2749_v23  ;;  %v10062_v23 = vld [vmem:[%s13294_s1 + $0x30] sm:$0xff] }
 0x19c   : > { %13574 = vst [vmem:[#allocation32_spill] sm:$0xff] %v10062_v23 }
 0x19d   : > { %v2184_v41 = vpop.f32.mrf.mxu2  ;;  %v2089_v26 = vpop.f32.mrf.mxu0 }
 0x19e   : > { %v2233_v52 = vpop.f32.mrf.mxu3  ;;  %v2185_v14 = vadd.f32 %v2184_v41, %v13571_v19  ;;  %v2138_v43 = vpop.f32.mrf.mxu1 }
 0x19f   : > { %v2234_v56 = vadd.f32 %v2233_v52, %v13571_v19  ;;  %v13576_v19 = vld [vmem:[#allocation11_spill] sm:$0xff] }
 0x1a0   : > { %v2766_v44 = vmax.f32 %v2185_v14, 0.0  ;;  %8362 = vmatmul.msk.bf16.gmra.mxu0 %vm1455_vm0, %v10028_v7  ;;  %v10092_v32 = vadd.f32 %v2089_v26, %v13576_v19  ;;  %v10095_v30 = vadd.f32 %v2138_v43, %v13576_v19 }
 0x1a1   : > { %v2767_v54 = vmax.f32 %v2234_v56, 0.0  ;;  %8370 = vmatmul.msk.bf16.gmra.mxu1 %vm1455_vm0, %v10028_v7 }
 0x1a2   : > { %8378 = vmatmul.msk.bf16.gmra.mxu2 %vm1455_vm0, %v10028_v7  ;;  %v10038_v59 = vpack.c.bf16 %v2766_v44, %v2750_v25  ;;  %v10075_v25 = vld [vmem:[%s13294_s1 + $0x38] sm:$0xff] }
 0x1a3   : > { %8386 = vmatmul.msk.bf16.gmra.mxu3 %vm1455_vm0, %v10028_v7  ;;  %v10040_v58 = vpack.c.bf16 %v2767_v54, %v2751_v63  ;;  %13575 = vst [vmem:[#allocation33_spill] sm:$0xff] %v10075_v25 }
 0x1a5   : > { %v2187_v57 = vpop.f32.mrf.mxu2  ;;  %v2091_v18 = vpop.f32.mrf.mxu0 }
 0x1a6   : > { %v2236_v17 = vpop.f32.mrf.mxu3  ;;  %v2140_v8 = vpop.f32.mrf.mxu1  ;;  %v10098_v60 = vadd.f32 %v2187_v57, %v13576_v19 }
 0x1ad   : > { %v2189_v9 = vpop.f32.mrf.mxu2  ;;  %v2094_v28 = vpop.f32.mrf.mxu0 }
 0x1ae   : > { %v2238_v46 = vpop.f32.mrf.mxu3  ;;  %v2143_v3 = vpop.f32.mrf.mxu1  ;;  %v10086_v54 = vadd.f32 %v2094_v28, %v9276_v33  ;;  %v10104_v28 = vadd.f32 %v2091_v18, %v13577_v6  ;;  %v10110_v12 = vadd.f32 %v2189_v9, %v13577_v6 }
 0x1af   : > { %v10113_v26 = vadd.f32 %v2238_v46, %v13577_v6 }
 0x1b0   : > { %8363 = vmatmul.msk.bf16.gmra.mxu0 %vm1455_vm0, %v10045_v4 }
 0x1b1   : > { %8371 = vmatmul.msk.bf16.gmra.mxu1 %vm1455_vm0, %v10045_v4 }
 0x1b2   : > { %8379 = vmatmul.msk.bf16.gmra.mxu2 %vm1455_vm0, %v10045_v4 }
 0x1b3   : > { %8387 = vmatmul.msk.bf16.gmra.mxu3 %vm1455_vm0, %v10045_v4 }
 0x1b5   : > { %v10055_v47 = vpop.f32.mrf.mxu2  ;;  %v2096_v15 = vpop.f32.mrf.mxu0 }
 0x1b6   : > { %v10057_v62 = vpop.f32.mrf.mxu3  ;;  %v2145_v16 = vpop.f32.mrf.mxu1 }
 0x1bd   : > { %v2194_v36 = vpop.f32.mrf.mxu2  ;;  %v2099_v1 = vpop.f32.mrf.mxu0 }
 0x1be   : > { %v2243_v39 = vpop.f32.mrf.mxu3  ;;  %v2148_v40 = vpop.f32.mrf.mxu1  ;;  %v2100_v42 = vadd.f32 %v2099_v1, %v9317_v51 }
 0x1c0   : > { %8364 = vmatmul.msk.bf16.gmra.mxu0 %vm1455_vm0, %v10062_v23 }
 0x1c1   : > { %8372 = vmatmul.msk.bf16.gmra.mxu1 %vm1455_vm0, %v10062_v23 }
 0x1c2   : > { %8380 = vmatmul.msk.bf16.gmra.mxu2 %vm1455_vm0, %v10062_v23 }
 0x1c3   : > { %8388 = vmatmul.msk.bf16.gmra.mxu3 %vm1455_vm0, %v10062_v23  ;;  %v10089_v23 = vadd.f32 %v2143_v3, %v9276_v33  ;;  %v10107_v3 = vadd.f32 %v2140_v8, %v13577_v6  ;;  %v13579_v6 = vld [vmem:[#allocation9_spill] sm:$0xff] }
 0x1c5   : > { %v2197_v35 = vpop.f32.mrf.mxu2  ;;  %v2101_v11 = vpop.f32.mrf.mxu0 }
 0x1c6   : > { %v2246_v5 = vpop.f32.mrf.mxu3  ;;  %v2150_v48 = vpop.f32.mrf.mxu1 }
 0x1cd   : > { %v2199_v41 = vpop.f32.mrf.mxu2  ;;  %v2104_v14 = vpop.f32.mrf.mxu0 }
 0x1ce   : > { %v2248_v52 = vpop.f32.mrf.mxu3  ;;  %v2153_v56 = vpop.f32.mrf.mxu1 }
 0x1d0   : > { %8365 = vmatmul.msk.bf16.gmra.mxu0 %vm1455_vm0, %v10075_v25 }
 0x1d1   : > { %8373 = vmatmul.msk.bf16.gmra.mxu1 %vm1455_vm0, %v10075_v25 }
 0x1d2   : > { %8381 = vmatmul.msk.bf16.gmra.mxu2 %vm1455_vm0, %v10075_v25 }
 0x1d3   : > { %8389 = vmatmul.msk.bf16.gmra.mxu3 %vm1455_vm0, %v10075_v25  ;;  %v10101_v25 = vadd.f32 %v2236_v17, %v13576_v19  ;;  %v13578_v19 = vld [vmem:[#allocation10_spill] sm:$0xff]  ;;  %v2149_v17 = vadd.f32 %v2148_v40, %v9317_v51 }
 0x1d4   : > { %v10120_v18 = vadd.f32 %v2096_v15, %v13578_v19  ;;  %v10123_v8 = vadd.f32 %v2145_v16, %v13578_v19  ;;  %v10126_v9 = vadd.f32 %v2194_v36, %v13578_v19  ;;  %v10129_v46 = vadd.f32 %v2243_v39, %v13578_v19  ;;  %v13580_v16 = vld [vmem:[#allocation14_spill] sm:$0xff] }
 0x1d5   : > { %v2202_v63 = vpop.f32.mrf.mxu2  ;;  %v2106_v4 = vpop.f32.mrf.mxu0  ;;  %v2102_v0 = vadd.f32 %v2101_v11, %v13580_v16  ;;  %v2151_v36 = vadd.f32 %v2150_v48, %v13580_v16  ;;  %v2247_v11 = vadd.f32 %v2246_v5, %v9317_v51 }
 0x1d6   : > { %v2251_v44 = vpop.f32.mrf.mxu3  ;;  %v2155_v7 = vpop.f32.mrf.mxu1  ;;  %v2107_v43 = vadd.f32 %v2106_v4, %v9278_v34  ;;  %v2105_v4 = vadd.f32 %v2104_v14, %v13579_v6  ;;  %v2203_v15 = vadd.f32 %v2202_v63, %v13579_v6  ;;  %v2200_v14 = vadd.f32 %v2199_v41, %v13580_v16 }
 0x1d7   : > { %v2156_v57 = vadd.f32 %v2155_v7, %v9278_v34  ;;  %v2154_v7 = vadd.f32 %v2153_v56, %v13579_v6  ;;  %v2252_v27 = vadd.f32 %v2251_v44, %v13579_v6  ;;  %v2249_v56 = vadd.f32 %v2248_v52, %v13580_v16 }
 0x1d8   : > { %v2892_v24 = vmax.f32 %v2107_v43, 0.0  ;;  %v2198_v44 = vadd.f32 %v2197_v35, %v9317_v51  ;;  %v2876_v6 = vmax.f32 %v2105_v4, 0.0  ;;  %v2878_v43 = vmax.f32 %v2203_v15, 0.0 }
 0x1d9   : > { %v2893_v21 = vmax.f32 %v2156_v57, 0.0  ;;  %v2877_v48 = vmax.f32 %v2154_v7, 0.0  ;;  %v2879_v57 = vmax.f32 %v2252_v27, 0.0  ;;  %v2860_v31 = vmax.f32 %v2102_v0, 0.0 }
 0x1da   : > { %v2861_v41 = vmax.f32 %v2151_v36, 0.0  ;;  %v3052_v38 = vpack.c.bf16 %v2892_v24, %v2876_v6  ;;  %v2863_v35 = vmax.f32 %v2249_v56, 0.0  ;;  %v2193_v24 = vadd.f32 %v10055_v47, %v9276_v33 }
 0x1db   : > { %v3053_v52 = vpack.c.bf16 %v2893_v21, %v2877_v48  ;;  %v2242_v0 = vadd.f32 %v10057_v62, %v9276_v33  ;;  %v2844_v27 = vmax.f32 %v2100_v42, 0.0  ;;  %v2845_v21 = vmax.f32 %v2149_v17, 0.0 }
 0x1dc   : > { %v2828_v6 = vmax.f32 %v10120_v18, 0.0  ;;  %v2847_v4 = vmax.f32 %v2247_v11, 0.0  ;;  %v2830_v42 = vmax.f32 %v10126_v9, 0.0  ;;  %v2796_v56 = vmax.f32 %v10104_v28, 0.0 }
 0x1dd   : > { %v2204_v39 = vpop.f32.mrf.mxu2  ;;  %v2265_v20 = vpop.f32.mrf.mxu0  ;;  %v3036_v36 = vpack.c.bf16 %v2860_v31, %v2844_v27  ;;  %v3037_v62 = vpack.c.bf16 %v2861_v41, %v2845_v21  ;;  %v2814_v31 = vmax.f32 %v2193_v24, 0.0  ;;  %v13581_v9 = vmax.f32 %v10086_v54, 0.0 }
 0x1de   : > { %v2253_v19 = vpop.f32.mrf.mxu3  ;;  %v2205_v1 = vadd.f32 %v2204_v39, %v9278_v34  ;;  %v2314_v63 = vpop.f32.mrf.mxu1  ;;  %v2799_v41 = vmax.f32 %v10113_v26, 0.0  ;;  %v2783_v24 = vmax.f32 %v10101_v25, 0.0 }
 0x1df   : > { %v2254_v40 = vadd.f32 %v2253_v19, %v9278_v34  ;;  %v2862_v19 = vmax.f32 %v2200_v14, 0.0  ;;  %v2315_v7 = vadd.f32 %v2314_v63, %v9380_v22  ;;  %v2815_v63 = vmax.f32 %v2242_v0, 0.0 }
 0x1e0   : > { %v2894_v50 = vmax.f32 %v2205_v1, 0.0  ;;  %8390 = vmatmul.msk.bf16.vlgmr.msrb.gmra.mxu0 %vm1455_vm0, %v9871_v61  ;;  %v2797_v1 = vmax.f32 %v10107_v3, 0.0 }
 0x1e1   : > { %v2895_v49 = vmax.f32 %v2254_v40, 0.0  ;;  %8398 = vmatmul.msk.bf16.vlgmr.msrb.gmra.mxu1 %vm1455_vm0, %v9871_v61  ;;  %3388 = vmatpush.bf16.msrb.mxu0 %v3052_v38  ;;  %v2831_v38 = vmax.f32 %v10129_v46, 0.0  ;;  %v3020_v46 = vpack.c.bf16 %v2828_v6, %v13581_v9  ;;  %v2657_v28 = vmax.f32 %v2315_v7, 0.0  ;;  %v13593_v9 = vld [vmem:[#allocation23_spill] sm:$0xff] }
 0x1e2   : > { %v3054_v39 = vpack.c.bf16 %v2894_v50, %v2878_v43  ;;  %8406 = vmatmul.msk.bf16.vlgmr.msrb.gmra.mxu2 %vm1455_vm0, %v9871_v61  ;;  %3437 = vmatpush.bf16.msrb.mxu1 %v3053_v52  ;;  %v2846_v50 = vmax.f32 %v2198_v44, 0.0  ;;  %v13582_v44 = vmax.f32 %v10089_v23, 0.0  ;;  %v3022_v52 = vpack.c.bf16 %v2830_v42, %v2814_v31 }
 0x1e3   : > { %v3055_v5 = vpack.c.bf16 %v2895_v49, %v2879_v57  ;;  %8414 = vmatmul.msk.bf16.vlgmr.msrb.gmra.mxu3 %vm1455_vm0, %v9871_v61  ;;  %v2829_v49 = vmax.f32 %v10123_v8, 0.0  ;;  %v2266_v61 = vadd.f32 %v2265_v20, %v9380_v22  ;;  %v3039_v8 = vpack.c.bf16 %v2863_v35, %v2847_v4 }
 0x1e4   : > { %3486 = vmatpush.bf16.msrb.mxu2 %v3054_v39  ;;  %v3038_v14 = vpack.c.bf16 %v2862_v19, %v2846_v50  ;;  %v2798_v57 = vmax.f32 %v10110_v12, 0.0  ;;  %v3023_v19 = vpack.c.bf16 %v2831_v38, %v2815_v63  ;;  %v2780_v35 = vmax.f32 %v10092_v32, 0.0 }
 0x1e5   : > { %3535 = vmatpush.bf16.msrb.mxu3 %v3055_v5  ;;  %v2363_v47 = vpop.f32.mrf.mxu2  ;;  %v2267_v17 = vpop.f32.mrf.mxu0  ;;  %3389 = vmatpush.bf16.msrb.mxu0 %v3036_v36  ;;  %v3021_v11 = vpack.c.bf16 %v2829_v49, %v13582_v44  ;;  %v2656_v48 = vmax.f32 %v2266_v61, 0.0  ;;  %v2781_v39 = vmax.f32 %v10095_v30, 0.0  ;;  %v2782_v5 = vmax.f32 %v10098_v60, 0.0 }
 0x1e6   : > { %v2412_v15 = vpop.f32.mrf.mxu3  ;;  %v2316_v18 = vpop.f32.mrf.mxu1  ;;  %3438 = vmatpush.bf16.msrb.mxu1 %v3037_v62  ;;  %v2268_v20 = vadd.f32 %v2267_v17, %v9397_v29  ;;  %v2364_v12 = vadd.f32 %v2363_v47, %v9380_v22  ;;  %v3004_v27 = vpack.c.bf16 %v2796_v56, %v2780_v35  ;;  %v3007_v60 = vpack.c.bf16 %v2799_v41, %v2783_v24  ;;  %v13596_v41 = vld [vmem:[#allocation25_spill] sm:$0xff]  ;;  %v13598_v24 = vld [vmem:[#allocation27_spill] sm:$0xff] }
 0x1e7   : > { %v2317_v40 = vadd.f32 %v2316_v18, %v9397_v29  ;;  %v2413_v26 = vadd.f32 %v2412_v15, %v9380_v22  ;;  %v3005_v30 = vpack.c.bf16 %v2797_v1, %v2781_v39  ;;  %v3006_v4 = vpack.c.bf16 %v2798_v57, %v2782_v5  ;;  %v13595_v57 = vld [vmem:[#allocation24_spill] sm:$0xff]  ;;  %v13597_v5 = vld [vmem:[#allocation26_spill] sm:$0xff] }
 0x1e8   : > { %3487 = vmatpush.bf16.msrb.mxu2 %v3038_v14  ;;  %v2672_v43 = vmax.f32 %v2268_v20, 0.0  ;;  %v2658_v25 = vmax.f32 %v2364_v12, 0.0  ;;  %v13587_v14 = vld [vmem:[#allocation20_spill] sm:$0xff]  ;;  %v13599_v12 = vld [vmem:[#allocation22_spill] sm:$0xff] }
 0x1e9   : > { %3536 = vmatpush.bf16.msrb.mxu3 %v3039_v8  ;;  %v2673_v3 = vmax.f32 %v2317_v40, 0.0  ;;  %3390 = vmatpush.bf16.msrb.mxu0 %v3020_v46  ;;  %v2659_v61 = vmax.f32 %v2413_v26, 0.0  ;;  %v13589_v20 = vld [vmem:[#allocation28_spill] sm:$0xff]  ;;  %v13590_v40 = vld [vmem:[#allocation29_spill] sm:$0xff]  ;;  %v13594_v46 = vld [vmem:[#allocation18_spill] sm:$0xff] }
 0x1ea   : > { %3439 = vmatpush.bf16.msrb.mxu1 %v3021_v11  ;;  %v10175_v54 = vpack.c.bf16 %v2672_v43, %v2656_v48 }
 0x1eb   : > { %v10177_v23 = vpack.c.bf16 %v2673_v3, %v2657_v28 }
 0x1ec   : > { %13583 = vst [vmem:[#allocation34_spill] sm:$0xff] %v10175_v54  ;;  %3488 = vmatpush.bf16.msrb.mxu2 %v3022_v52 }
 0x1ed   : > { %13584 = vst [vmem:[#allocation35_spill] sm:$0xff] %v10177_v23  ;;  %3537 = vmatpush.bf16.msrb.mxu3 %v3023_v19  ;;  %v2365_v0 = vpop.f32.mrf.mxu2  ;;  %v2270_v49 = vpop.f32.mrf.mxu0  ;;  %3391 = vmatpush.bf16.msrb.mxu0 %v3004_v27 }
 0x1ee   : > { %v2414_v32 = vpop.f32.mrf.mxu3  ;;  %v2366_v21 = vadd.f32 %v2365_v0, %v9397_v29  ;;  %v2319_v50 = vpop.f32.mrf.mxu1  ;;  %3440 = vmatpush.bf16.msrb.mxu1 %v3005_v30  ;;  %v2271_v62 = vadd.f32 %v2270_v49, %v9366_v10 }
 0x1ef   : > { %v2415_v6 = vadd.f32 %v2414_v32, %v9397_v29  ;;  %v2320_v42 = vadd.f32 %v2319_v50, %v9366_v10  ;;  %v13602_v32 = vld [vmem:[#allocation17_spill] sm:$0xff] }
 0x1f0   : > { %v2674_v7 = vmax.f32 %v2366_v21, 0.0  ;;  %3489 = vmatpush.bf16.msrb.mxu2 %v3006_v4  ;;  %8391 = vmatmul.msk.bf16.gmra.mxu0 %vm1455_vm0, %v9922_v2  ;;  %v13603_v4 = vld [vmem:[#allocation15_spill] sm:$0xff] }
 0x1f1   : > { %v2675_v47 = vmax.f32 %v2415_v6, 0.0  ;;  %3538 = vmatpush.bf16.msrb.mxu3 %v3007_v60  ;;  %8399 = vmatmul.msk.bf16.gmra.mxu1 %vm1455_vm0, %v9922_v2  ;;  %v2689_v8 = vmax.f32 %v2320_v42, 0.0 }
 0x1f2   : > { %8407 = vmatmul.msk.bf16.gmra.mxu2 %vm1455_vm0, %v9922_v2  ;;  %v10193_v15 = vpack.c.bf16 %v2674_v7, %v2658_v25  ;;  %3392 = vmatpush.bf16.msrb.mxu0 %v10017_v37 }
 0x1f3   : > { %8415 = vmatmul.msk.bf16.gmra.mxu3 %vm1455_vm0, %v9922_v2  ;;  %v10195_v36 = vpack.c.bf16 %v2675_v47, %v2659_v61  ;;  %3441 = vmatpush.bf16.msrb.mxu1 %v10019_v53 }
 0x1f4   : > { %13585 = vst [vmem:[#allocation36_spill] sm:$0xff] %v10193_v15  ;;  %3490 = vmatpush.bf16.msrb.mxu2 %v10038_v59  ;;  %v13588_v59 = vld [vmem:[#allocation21_spill] sm:$0xff] }
 0x1f5   : > { %13586 = vst [vmem:[#allocation37_spill] sm:$0xff] %v10195_v36  ;;  %3539 = vmatpush.bf16.msrb.mxu3 %v10040_v58  ;;  %v2368_v38 = vpop.f32.mrf.mxu2  ;;  %v2272_v18 = vpop.f32.mrf.mxu0  ;;  %v2688_v58 = vmax.f32 %v2271_v62, 0.0 }
 0x1f6   : > { %v2417_v17 = vpop.f32.mrf.mxu3  ;;  %v2321_v2 = vpop.f32.mrf.mxu1  ;;  %3393 = vmatpush.bf16.msrb.mxu0 %v9988_v13  ;;  %v2273_v37 = vadd.f32 %v2272_v18, %v9461_v45 }
 0x1f7   : > { %3442 = vmatpush.bf16.msrb.mxu1 %v9990_v55  ;;  %v2322_v53 = vadd.f32 %v2321_v2, %v9461_v45  ;;  %v2369_v55 = vadd.f32 %v2368_v38, %v9366_v10  ;;  %v2418_v63 = vadd.f32 %v2417_v17, %v9366_v10 }
 0x1f8   : > { %3491 = vmatpush.bf16.msrb.mxu2 %v13587_v14  ;;  %v2704_v56 = vmax.f32 %v2273_v37, 0.0 }
 0x1f9   : > { %3540 = vmatpush.bf16.msrb.mxu3 %v13588_v59  ;;  %v2705_v1 = vmax.f32 %v2322_v53, 0.0  ;;  %v2690_v52 = vmax.f32 %v2369_v55, 0.0  ;;  %v2691_v19 = vmax.f32 %v2418_v63, 0.0 }
 0x1fa   : > { %3394 = vmatpush.bf16.msrb.mxu0 %v13589_v20  ;;  %v10211_v31 = vpack.c.bf16 %v2704_v56, %v2688_v58 }
 0x1fb   : > { %3443 = vmatpush.bf16.msrb.mxu1 %v13590_v40  ;;  %v10213_v13 = vpack.c.bf16 %v2705_v1, %v2689_v8  ;;  %v13604_v40 = vld [vmem:[#allocation19_spill] sm:$0xff] }
 0x1fc   : > { %13591 = vst [vmem:[#allocation20_spill] sm:$0xff] %v10211_v31  ;;  %3492 = vmatpush.bf16.msrb.mxu2 %v13593_v9  ;;  %v13606_v9 = vld [vmem:[#allocation12_spill] sm:$0xff] }
 0x1fd   : > { %13592 = vst [vmem:[#allocation21_spill] sm:$0xff] %v10213_v13  ;;  %3541 = vmatpush.bf16.msrb.mxu3 %v13594_v46  ;;  %v2370_v44 = vpop.f32.mrf.mxu2  ;;  %v2275_v43 = vpop.f32.mrf.mxu0 }
 0x1fe   : > { %v2419_v11 = vpop.f32.mrf.mxu3  ;;  %v2371_v48 = vadd.f32 %v2370_v44, %v9461_v45  ;;  %v2324_v3 = vpop.f32.mrf.mxu1  ;;  %3395 = vmatpush.bf16.msrb.mxu0 %v13595_v57  ;;  %v2276_v27 = vadd.f32 %v2275_v43, %v13602_v32 }
 0x1ff   : > { %v2420_v28 = vadd.f32 %v2419_v11, %v9461_v45  ;;  %3444 = vmatpush.bf16.msrb.mxu1 %v13596_v41  ;;  %v2325_v30 = vadd.f32 %v2324_v3, %v13602_v32  ;;  %v13607_v3 = vld [vmem:[#allocation13_spill] sm:$0xff] }
 0x200   : > { %v2706_v35 = vmax.f32 %v2371_v48, 0.0  ;;  %3493 = vmatpush.bf16.msrb.mxu2 %v13597_v5  ;;  %8392 = vmatmul.msk.bf16.gmra.mxu0 %vm1455_vm0, %v13599_v12  ;;  %v2720_v61 = vmax.f32 %v2276_v27, 0.0 }
 0x201   : > { %v2707_v39 = vmax.f32 %v2420_v28, 0.0  ;;  %3542 = vmatpush.bf16.msrb.mxu3 %v13598_v24  ;;  %8400 = vmatmul.msk.bf16.gmra.mxu1 %vm1455_vm0, %v13599_v12  ;;  %v2721_v7 = vmax.f32 %v2325_v30, 0.0 }
 0x202   : > { %8408 = vmatmul.msk.bf16.gmra.mxu2 %vm1455_vm0, %v13599_v12  ;;  %v10233_v26 = vpack.c.bf16 %v2706_v35, %v2690_v52 }
 0x203   : > { %8416 = vmatmul.msk.bf16.gmra.mxu3 %vm1455_vm0, %v13599_v12  ;;  %v10235_v0 = vpack.c.bf16 %v2707_v39, %v2691_v19 }
 0x204   : > { %13600 = vst [vmem:[#allocation28_spill] sm:$0xff] %v10233_v26 }
 0x205   : > { %13601 = vst [vmem:[#allocation29_spill] sm:$0xff] %v10235_v0  ;;  %v2373_v21 = vpop.f32.mrf.mxu2  ;;  %v2277_v49 = vpop.f32.mrf.mxu0 }
 0x206   : > { %v2422_v6 = vpop.f32.mrf.mxu3  ;;  %v2326_v50 = vpop.f32.mrf.mxu1  ;;  %v2278_v60 = vadd.f32 %v2277_v49, %v13603_v4  ;;  %v2374_v17 = vadd.f32 %v2373_v21, %v13602_v32 }
 0x207   : > { %v2327_v25 = vadd.f32 %v2326_v50, %v13603_v4  ;;  %v2423_v18 = vadd.f32 %v2422_v6, %v13602_v32 }
 0x208   : > { %v2736_v47 = vmax.f32 %v2278_v60, 0.0  ;;  %v2722_v8 = vmax.f32 %v2374_v17, 0.0 }
 0x209   : > { %v2737_v62 = vmax.f32 %v2327_v25, 0.0  ;;  %v2723_v56 = vmax.f32 %v2423_v18, 0.0 }
 0x20a   : > { %v10241_v42 = vpack.c.bf16 %v2736_v47, %v2720_v61 }
 0x20b   : > { %v10243_v38 = vpack.c.bf16 %v2737_v62, %v2721_v7  ;;  %v13608_v62 = vld [vmem:[#allocation30_spill] sm:$0xff] }
 0x20d   : > { %v2375_v2 = vpop.f32.mrf.mxu2  ;;  %v2280_v59 = vpop.f32.mrf.mxu0 }
 0x20e   : > { %v2424_v37 = vpop.f32.mrf.mxu3  ;;  %v2376_v53 = vadd.f32 %v2375_v2, %v13603_v4  ;;  %v2329_v58 = vpop.f32.mrf.mxu1  ;;  %v2281_v46 = vadd.f32 %v2280_v59, %v13606_v9 }
 0x20f   : > { %v2425_v14 = vadd.f32 %v2424_v37, %v13603_v4  ;;  %v2330_v44 = vadd.f32 %v2329_v58, %v13606_v9 }
 0x210   : > { %v2738_v1 = vmax.f32 %v2376_v53, 0.0  ;;  %8393 = vmatmul.msk.bf16.gmra.mxu0 %vm1455_vm0, %v13604_v40  ;;  %v2752_v52 = vmax.f32 %v2281_v46, 0.0 }
 0x211   : > { %v2739_v20 = vmax.f32 %v2425_v14, 0.0  ;;  %8401 = vmatmul.msk.bf16.gmra.mxu1 %vm1455_vm0, %v13604_v40  ;;  %v2753_v19 = vmax.f32 %v2330_v44, 0.0 }
 0x212   : > { %8409 = vmatmul.msk.bf16.gmra.mxu2 %vm1455_vm0, %v13604_v40  ;;  %v10257_v55 = vpack.c.bf16 %v2738_v1, %v2722_v8  ;;  %v13609_v1 = vld [vmem:[#allocation31_spill] sm:$0xff] }
 0x213   : > { %8417 = vmatmul.msk.bf16.gmra.mxu3 %vm1455_vm0, %v13604_v40  ;;  %v10259_v63 = vpack.c.bf16 %v2739_v20, %v2723_v56 }
 0x215   : > { %13605 = vst [vmem:[#allocation23_spill] sm:$0xff] %v10259_v63  ;;  %v2378_v11 = vpop.f32.mrf.mxu2  ;;  %v2282_v28 = vpop.f32.mrf.mxu0 }
 0x216   : > { %v2427_v48 = vpop.f32.mrf.mxu3  ;;  %v2331_v43 = vpop.f32.mrf.mxu1  ;;  %v2283_v57 = vadd.f32 %v2282_v28, %v13607_v3  ;;  %v2379_v12 = vadd.f32 %v2378_v11, %v13606_v9 }
 0x217   : > { %v2332_v41 = vadd.f32 %v2331_v43, %v13607_v3  ;;  %v2428_v27 = vadd.f32 %v2427_v48, %v13606_v9  ;;  %v13613_v9 = vld [vmem:[#allocation16_spill] sm:$0xff] }
 0x218   : > { %v2768_v35 = vmax.f32 %v2283_v57, 0.0  ;;  %v2754_v25 = vmax.f32 %v2379_v12, 0.0  ;;  %v13610_v57 = vld [vmem:[#allocation32_spill] sm:$0xff] }
 0x219   : > { %v2769_v39 = vmax.f32 %v2332_v41, 0.0  ;;  %v2755_v61 = vmax.f32 %v2428_v27, 0.0 }
 0x21a   : > { %v10265_v5 = vpack.c.bf16 %v2768_v35, %v2752_v52 }
 0x21b   : > { %v10267_v24 = vpack.c.bf16 %v2769_v39, %v2753_v19 }
 0x21d   : > { %v2380_v30 = vpop.f32.mrf.mxu2  ;;  %v2285_v50 = vpop.f32.mrf.mxu0 }
 0x21e   : > { %v2429_v21 = vpop.f32.mrf.mxu3  ;;  %v2381_v6 = vadd.f32 %v2380_v30, %v13607_v3  ;;  %v2334_v60 = vpop.f32.mrf.mxu1 }
 0x21f   : > { %v2430_v49 = vadd.f32 %v2429_v21, %v13607_v3  ;;  %v13611_v21 = vld [vmem:[#allocation33_spill] sm:$0xff] }
 0x220   : > { %v2770_v7 = vmax.f32 %v2381_v6, 0.0  ;;  %8394 = vmatmul.msk.bf16.gmra.mxu0 %vm1455_vm0, %v13608_v62 }
 0x221   : > { %v2771_v47 = vmax.f32 %v2430_v49, 0.0  ;;  %8402 = vmatmul.msk.bf16.gmra.mxu1 %vm1455_vm0, %v13608_v62 }
 0x222   : > { %8410 = vmatmul.msk.bf16.gmra.mxu2 %vm1455_vm0, %v13608_v62  ;;  %v10281_v17 = vpack.c.bf16 %v2770_v7, %v2754_v25 }
 0x223   : > { %8418 = vmatmul.msk.bf16.gmra.mxu3 %vm1455_vm0, %v13608_v62  ;;  %v10283_v18 = vpack.c.bf16 %v2771_v47, %v2755_v61  ;;  %v13612_v62 = vld [vmem:[#allocation11_spill] sm:$0xff] }
 0x225   : > { %v2383_v2 = vpop.f32.mrf.mxu2  ;;  %v2287_v53 = vpop.f32.mrf.mxu0 }
 0x226   : > { %v2432_v37 = vpop.f32.mrf.mxu3  ;;  %v2336_v14 = vpop.f32.mrf.mxu1  ;;  %v10326_v3 = vadd.f32 %v2383_v2, %v13612_v62 }
 0x22d   : > { %v2385_v59 = vpop.f32.mrf.mxu2  ;;  %v2290_v8 = vpop.f32.mrf.mxu0 }
 0x22e   : > { %v2434_v58 = vpop.f32.mrf.mxu3  ;;  %v2339_v56 = vpop.f32.mrf.mxu1  ;;  %v10314_v25 = vadd.f32 %v2290_v8, %v9276_v33  ;;  %v10332_v8 = vadd.f32 %v2287_v53, %v13613_v9  ;;  %v10338_v4 = vadd.f32 %v2385_v59, %v13613_v9 }
 0x22f   : > { %v10317_v61 = vadd.f32 %v2339_v56, %v9276_v33  ;;  %v10335_v56 = vadd.f32 %v2336_v14, %v13613_v9 }
 0x230   : > { %8395 = vmatmul.msk.bf16.gmra.mxu0 %vm1455_vm0, %v13609_v1 }
 0x231   : > { %8403 = vmatmul.msk.bf16.gmra.mxu1 %vm1455_vm0, %v13609_v1 }
 0x232   : > { %8411 = vmatmul.msk.bf16.gmra.mxu2 %vm1455_vm0, %v13609_v1 }
 0x233   : > { %8419 = vmatmul.msk.bf16.gmra.mxu3 %vm1455_vm0, %v13609_v1  ;;  %v10320_v1 = vadd.f32 %v2285_v50, %v13612_v62  ;;  %v10341_v50 = vadd.f32 %v2434_v58, %v13613_v9  ;;  %v13615_v9 = vld [vmem:[#allocation9_spill] sm:$0xff] }
 0x235   : > { %v10293_v20 = vpop.f32.mrf.mxu2  ;;  %v2292_v46 = vpop.f32.mrf.mxu0 }
 0x236   : > { %v10295_v40 = vpop.f32.mrf.mxu3  ;;  %v2341_v44 = vpop.f32.mrf.mxu1 }
 0x23d   : > { %v2390_v11 = vpop.f32.mrf.mxu2  ;;  %v2295_v28 = vpop.f32.mrf.mxu0 }
 0x23e   : > { %v2439_v48 = vpop.f32.mrf.mxu3  ;;  %v2344_v43 = vpop.f32.mrf.mxu1  ;;  %v2296_v32 = vadd.f32 %v2295_v28, %v9317_v51 }
 0x240   : > { %8396 = vmatmul.msk.bf16.gmra.mxu0 %vm1455_vm0, %v13610_v57 }
 0x241   : > { %8404 = vmatmul.msk.bf16.gmra.mxu1 %vm1455_vm0, %v13610_v57 }
 0x242   : > { %8412 = vmatmul.msk.bf16.gmra.mxu2 %vm1455_vm0, %v13610_v57 }
 0x243   : > { %8420 = vmatmul.msk.bf16.gmra.mxu3 %vm1455_vm0, %v13610_v57  ;;  %v10323_v57 = vadd.f32 %v2334_v60, %v13612_v62 }
 0x245   : > { %v2393_v41 = vpop.f32.mrf.mxu2  ;;  %v2297_v19 = vpop.f32.mrf.mxu0 }
 0x246   : > { %v2442_v52 = vpop.f32.mrf.mxu3  ;;  %v2346_v35 = vpop.f32.mrf.mxu1 }
 0x24d   : > { %v2395_v39 = vpop.f32.mrf.mxu2  ;;  %v2300_v27 = vpop.f32.mrf.mxu0 }
 0x24e   : > { %v2444_v12 = vpop.f32.mrf.mxu3  ;;  %v2349_v30 = vpop.f32.mrf.mxu1  ;;  %v2396_v28 = vadd.f32 %v2395_v39, %v13580_v16 }
 0x250   : > { %8397 = vmatmul.msk.bf16.gmra.mxu0 %vm1455_vm0, %v13611_v21 }
 0x251   : > { %8405 = vmatmul.msk.bf16.gmra.mxu1 %vm1455_vm0, %v13611_v21 }
 0x252   : > { %8413 = vmatmul.msk.bf16.gmra.mxu2 %vm1455_vm0, %v13611_v21 }
 0x253   : > { %8421 = vmatmul.msk.bf16.gmra.mxu3 %vm1455_vm0, %v13611_v21  ;;  %v10329_v21 = vadd.f32 %v2432_v37, %v13612_v62  ;;  %v13614_v62 = vld [vmem:[#allocation10_spill] sm:$0xff]  ;;  %v2345_v37 = vadd.f32 %v2344_v43, %v9317_v51  ;;  %v2445_v43 = vadd.f32 %v2444_v12, %v13580_v16 }
 0x254   : > { %v10348_v53 = vadd.f32 %v2292_v46, %v13614_v62  ;;  %v10351_v14 = vadd.f32 %v2341_v44, %v13614_v62  ;;  %v10354_v59 = vadd.f32 %v2390_v11, %v13614_v62  ;;  %v10357_v58 = vadd.f32 %v2439_v48, %v13614_v62 }
 0x255   : > { %v2398_v6 = vpop.f32.mrf.mxu2  ;;  %v2302_v7 = vpop.f32.mrf.mxu0  ;;  %v2298_v44 = vadd.f32 %v2297_v19, %v13580_v16  ;;  %v2347_v11 = vadd.f32 %v2346_v35, %v13580_v16  ;;  %v2394_v35 = vadd.f32 %v2393_v41, %v9317_v51 }
 0x256   : > { %v2447_v49 = vpop.f32.mrf.mxu3  ;;  %v2351_v47 = vpop.f32.mrf.mxu1  ;;  %v2303_v60 = vadd.f32 %v2302_v7, %v9278_v34  ;;  %v2301_v7 = vadd.f32 %v2300_v27, %v13615_v9  ;;  %v2399_v46 = vadd.f32 %v2398_v6, %v13615_v9  ;;  %v10370_v27 = vld [vmem:[%s13296_s3] sm:$0xff] }
 0x257   : > { %v2352_v2 = vadd.f32 %v2351_v47, %v9278_v34  ;;  %v2350_v47 = vadd.f32 %v2349_v30, %v13615_v9  ;;  %v2448_v36 = vadd.f32 %v2447_v49, %v13615_v9  ;;  %v2864_v31 = vmax.f32 %v2298_v44, 0.0 }
 0x258   : > { %v2896_v15 = vmax.f32 %v2303_v60, 0.0  ;;  %v2443_v60 = vadd.f32 %v2442_v52, %v9317_v51  ;;  %v2882_v54 = vmax.f32 %v2399_v46, 0.0  ;;  %v2865_v39 = vmax.f32 %v2347_v11, 0.0 }
 0x259   : > { %v2897_v23 = vmax.f32 %v2352_v2, 0.0  ;;  %v2880_v2 = vmax.f32 %v2301_v7, 0.0  ;;  %v2881_v9 = vmax.f32 %v2350_v47, 0.0  ;;  %v2883_v0 = vmax.f32 %v2448_v36, 0.0 }
 0x25a   : > { %v2389_v36 = vadd.f32 %v10293_v20, %v9276_v33  ;;  %v2438_v52 = vadd.f32 %v10295_v40, %v9276_v33  ;;  %v2833_v7 = vmax.f32 %v10351_v14, 0.0  ;;  %v2800_v11 = vmax.f32 %v10332_v8, 0.0 }
 0x25b   : > { %v3056_v63 = vpack.c.bf16 %v2896_v15, %v2880_v2  ;;  %v3057_v12 = vpack.c.bf16 %v2897_v23, %v2881_v9  ;;  %v2848_v15 = vmax.f32 %v2296_v32, 0.0  ;;  %v2849_v23 = vmax.f32 %v2345_v37, 0.0 }
 0x25c   : > { %v2832_v9 = vmax.f32 %v10348_v53, 0.0  ;;  %v2834_v32 = vmax.f32 %v10354_v59, 0.0  ;;  %v13616_v59 = vmax.f32 %v10314_v25, 0.0  ;;  %v2803_v2 = vmax.f32 %v10341_v50, 0.0 }
 0x25d   : > { %v2400_v48 = vpop.f32.mrf.mxu2  ;;  %v2461_v19 = vpop.f32.mrf.mxu0  ;;  %v3040_v46 = vpack.c.bf16 %v2864_v31, %v2848_v15  ;;  %v3041_v40 = vpack.c.bf16 %v2865_v39, %v2849_v23  ;;  %v2818_v31 = vmax.f32 %v2389_v36, 0.0  ;;  %v2787_v36 = vmax.f32 %v10329_v21, 0.0  ;;  %v10415_v23 = vld [vmem:[%s13296_s3 + $0x8] sm:$0xff] }
 0x25e   : > { %v2449_v62 = vpop.f32.mrf.mxu3  ;;  %v2401_v30 = vadd.f32 %v2400_v48, %v9278_v34  ;;  %v2510_v49 = vpop.f32.mrf.mxu1  ;;  %v2867_v48 = vmax.f32 %v2445_v43, 0.0 }
 0x25f   : > { %v2450_v6 = vadd.f32 %v2449_v62, %v9278_v34  ;;  %v2866_v62 = vmax.f32 %v2396_v28, 0.0  ;;  %v3026_v39 = vpack.c.bf16 %v2834_v32, %v2818_v31 }
 0x260   : > { %v2898_v26 = vmax.f32 %v2401_v30, 0.0  ;;  %3200 = vmatmul.bf16.vlgmr.msra.gmra.mxu0 %v10370_v27  ;;  %v2819_v30 = vmax.f32 %v2438_v52, 0.0 }
 0x261   : > { %v2899_v13 = vmax.f32 %v2450_v6, 0.0  ;;  %3249 = vmatmul.bf16.vlgmr.msra.gmra.mxu1 %v10370_v27  ;;  %3584 = vmatpush.bf16.msra.mxu0 %v3056_v63  ;;  %v2835_v63 = vmax.f32 %v10357_v58, 0.0  ;;  %v3024_v58 = vpack.c.bf16 %v2832_v9, %v13616_v59  ;;  %v13617_v6 = vmax.f32 %v10317_v61, 0.0 }
 0x262   : > { %v3058_v16 = vpack.c.bf16 %v2898_v26, %v2882_v54  ;;  %3298 = vmatmul.bf16.vlgmr.msra.gmra.mxu2 %v10370_v27  ;;  %3633 = vmatpush.bf16.msra.mxu1 %v3057_v12  ;;  %v2850_v54 = vmax.f32 %v2394_v35, 0.0  ;;  %v2462_v26 = vadd.f32 %v2461_v19, %v9380_v22 }
 0x263   : > { %v3059_v41 = vpack.c.bf16 %v2899_v13, %v2883_v0  ;;  %3347 = vmatmul.bf16.vlgmr.msra.gmra.mxu3 %v10370_v27  ;;  %v2851_v13 = vmax.f32 %v2443_v60, 0.0  ;;  %v2511_v0 = vadd.f32 %v2510_v49, %v9380_v22  ;;  %v3025_v19 = vpack.c.bf16 %v2833_v7, %v13617_v6  ;;  %v10452_v6 = vld [vmem:[%s13296_s3 + $0x10] sm:$0xff] }
 0x264   : > { %3682 = vmatpush.bf16.msra.mxu2 %v3058_v16  ;;  %v3042_v44 = vpack.c.bf16 %v2866_v62, %v2850_v54  ;;  %v2801_v16 = vmax.f32 %v10335_v56, 0.0  ;;  %v2660_v49 = vmax.f32 %v2462_v26, 0.0  ;;  %v2802_v60 = vmax.f32 %v10338_v4, 0.0  ;;  %13627 = vst [vmem:[#allocation27_spill] sm:$0xff] %v10452_v6 }
 0x265   : > { %3731 = vmatpush.bf16.msra.mxu3 %v3059_v41  ;;  %v2559_v20 = vpop.f32.mrf.mxu2  ;;  %v2463_v37 = vpop.f32.mrf.mxu0  ;;  %v3043_v14 = vpack.c.bf16 %v2867_v48, %v2851_v13  ;;  %3585 = vmatpush.bf16.msra.mxu0 %v3040_v46  ;;  %v2661_v8 = vmax.f32 %v2511_v0, 0.0  ;;  %v3027_v12 = vpack.c.bf16 %v2835_v63, %v2819_v30  ;;  %v2784_v62 = vmax.f32 %v10320_v1, 0.0  ;;  %v13625_v30 = vld [vmem:[#allocation28_spill] sm:$0xff] }
 0x266   : > { %v2608_v47 = vpop.f32.mrf.mxu3  ;;  %v2512_v53 = vpop.f32.mrf.mxu1  ;;  %3634 = vmatpush.bf16.msra.mxu1 %v3041_v40  ;;  %v2464_v28 = vadd.f32 %v2463_v37, %v9397_v29  ;;  %v2785_v48 = vmax.f32 %v10323_v57, 0.0  ;;  %v2786_v41 = vmax.f32 %v10326_v3, 0.0  ;;  %v2560_v4 = vadd.f32 %v2559_v20, %v9380_v22 }
 0x267   : > { %v2513_v43 = vadd.f32 %v2512_v53, %v9397_v29  ;;  %v2609_v50 = vadd.f32 %v2608_v47, %v9380_v22  ;;  %v3008_v15 = vpack.c.bf16 %v2800_v11, %v2784_v62  ;;  %v3011_v13 = vpack.c.bf16 %v2803_v2, %v2787_v36  ;;  %v13630_v62 = vld [vmem:[#allocation36_spill] sm:$0xff]  ;;  %v13634_v36 = vld [vmem:[#allocation17_spill] sm:$0xff] }
 0x268   : > { %3683 = vmatpush.bf16.msra.mxu2 %v3042_v44  ;;  %v2676_v35 = vmax.f32 %v2464_v28, 0.0  ;;  %v3009_v57 = vpack.c.bf16 %v2801_v16, %v2785_v48  ;;  %v3010_v54 = vpack.c.bf16 %v2802_v60, %v2786_v41  ;;  %v2662_v22 = vmax.f32 %v2560_v4, 0.0  ;;  %v13623_v16 = vld [vmem:[#allocation20_spill] sm:$0xff]  ;;  %v13624_v28 = vld [vmem:[#allocation21_spill] sm:$0xff] }
 0x269   : > { %3732 = vmatpush.bf16.msra.mxu3 %v3043_v14  ;;  %v2677_v56 = vmax.f32 %v2513_v43, 0.0  ;;  %3586 = vmatpush.bf16.msra.mxu0 %v3024_v58  ;;  %v2663_v26 = vmax.f32 %v2609_v50, 0.0  ;;  %v13631_v48 = vld [vmem:[#allocation37_spill] sm:$0xff] }
 0x26a   : > { %3635 = vmatpush.bf16.msra.mxu1 %v3025_v19  ;;  %v10404_v25 = vpack.c.bf16 %v2676_v35, %v2660_v49 }
 0x26b   : > { %v10406_v61 = vpack.c.bf16 %v2677_v56, %v2661_v8  ;;  %v13628_v56 = vld [vmem:[#allocation34_spill] sm:$0xff] }
 0x26c   : > { %13618 = vst [vmem:[#allocation18_spill] sm:$0xff] %v10404_v25  ;;  %3684 = vmatpush.bf16.msra.mxu2 %v3026_v39 }
 0x26d   : > { %13619 = vst [vmem:[#allocation24_spill] sm:$0xff] %v10406_v61  ;;  %3733 = vmatpush.bf16.msra.mxu3 %v3027_v12  ;;  %v2561_v52 = vpop.f32.mrf.mxu2  ;;  %v2466_v21 = vpop.f32.mrf.mxu0  ;;  %3587 = vmatpush.bf16.msra.mxu0 %v3008_v15 }
 0x26e   : > { %v2610_v1 = vpop.f32.mrf.mxu3  ;;  %v2562_v9 = vadd.f32 %v2561_v52, %v9397_v29  ;;  %v2515_v7 = vpop.f32.mrf.mxu1  ;;  %3636 = vmatpush.bf16.msra.mxu1 %v3009_v57  ;;  %v2467_v46 = vadd.f32 %v2466_v21, %v9366_v10 }
 0x26f   : > { %v2611_v3 = vadd.f32 %v2610_v1, %v9397_v29  ;;  %v2516_v40 = vadd.f32 %v2515_v7, %v9366_v10 }
 0x270   : > { %v2678_v0 = vmax.f32 %v2562_v9, 0.0  ;;  %3685 = vmatpush.bf16.msra.mxu2 %v3010_v54  ;;  %3205 = vmatmul.bf16.gmra.mxu0 %v10415_v23  ;;  %v13635_v9 = vld [vmem:[#allocation15_spill] sm:$0xff] }
 0x271   : > { %v2679_v20 = vmax.f32 %v2611_v3, 0.0  ;;  %3734 = vmatpush.bf16.msra.mxu3 %v3011_v13  ;;  %3254 = vmatmul.bf16.gmra.mxu1 %v10415_v23  ;;  %v2693_v44 = vmax.f32 %v2516_v40, 0.0 }
 0x272   : > { %3303 = vmatmul.bf16.gmra.mxu2 %v10415_v23  ;;  %v10423_v29 = vpack.c.bf16 %v2678_v0, %v2662_v22  ;;  %3588 = vmatpush.bf16.msra.mxu0 %v10265_v5 }
 0x273   : > { %3352 = vmatmul.bf16.gmra.mxu3 %v10415_v23  ;;  %v10425_v47 = vpack.c.bf16 %v2679_v20, %v2663_v26  ;;  %3637 = vmatpush.bf16.msra.mxu1 %v10267_v24 }
 0x274   : > { %13620 = vst [vmem:[#allocation25_spill] sm:$0xff] %v10423_v29  ;;  %3686 = vmatpush.bf16.msra.mxu2 %v10281_v17  ;;  %v13622_v17 = vld [vmem:[#allocation23_spill] sm:$0xff] }
 0x275   : > { %13621 = vst [vmem:[#allocation26_spill] sm:$0xff] %v10425_v47  ;;  %3735 = vmatpush.bf16.msra.mxu3 %v10283_v18  ;;  %v2564_v32 = vpop.f32.mrf.mxu2  ;;  %v2468_v37 = vpop.f32.mrf.mxu0  ;;  %v2692_v18 = vmax.f32 %v2467_v46, 0.0 }
 0x276   : > { %v2613_v63 = vpop.f32.mrf.mxu3  ;;  %v2517_v53 = vpop.f32.mrf.mxu1  ;;  %3589 = vmatpush.bf16.msra.mxu0 %v10241_v42  ;;  %v2469_v5 = vadd.f32 %v2468_v37, %v9461_v45 }
 0x277   : > { %3638 = vmatpush.bf16.msra.mxu1 %v10243_v38  ;;  %v2518_v24 = vadd.f32 %v2517_v53, %v9461_v45  ;;  %v2565_v38 = vadd.f32 %v2564_v32, %v9366_v10  ;;  %v2614_v31 = vadd.f32 %v2613_v63, %v9366_v10  ;;  %v13629_v10 = vld [vmem:[#allocation35_spill] sm:$0xff] }
 0x278   : > { %3687 = vmatpush.bf16.msra.mxu2 %v10257_v55  ;;  %v2708_v14 = vmax.f32 %v2469_v5, 0.0  ;;  %v13626_v55 = vld [vmem:[#allocation29_spill] sm:$0xff]  ;;  %v10481_v63 = vld [vmem:[%s13296_s3 + $0x18] sm:$0xff] }
 0x279   : > { %3736 = vmatpush.bf16.msra.mxu3 %v13622_v17  ;;  %v2709_v11 = vmax.f32 %v2518_v24, 0.0  ;;  %v2694_v60 = vmax.f32 %v2565_v38, 0.0  ;;  %v2695_v2 = vmax.f32 %v2614_v31, 0.0  ;;  %13636 = vst [vmem:[#allocation30_spill] sm:$0xff] %v10481_v63 }
 0x27a   : > { %3590 = vmatpush.bf16.msra.mxu0 %v13623_v16  ;;  %v10441_v43 = vpack.c.bf16 %v2708_v14, %v2692_v18 }
 0x27b   : > { %3639 = vmatpush.bf16.msra.mxu1 %v13624_v28  ;;  %v10443_v42 = vpack.c.bf16 %v2709_v11, %v2693_v44  ;;  %v13637_v28 = vld [vmem:[#allocation12_spill] sm:$0xff] }
 0x27c   : > { %3688 = vmatpush.bf16.msra.mxu2 %v13625_v30 }
 0x27d   : > { %3737 = vmatpush.bf16.msra.mxu3 %v13626_v55  ;;  %v2566_v59 = vpop.f32.mrf.mxu2  ;;  %v2471_v8 = vpop.f32.mrf.mxu0 }
 0x27e   : > { %v2615_v58 = vpop.f32.mrf.mxu3  ;;  %v2567_v19 = vadd.f32 %v2566_v59, %v9461_v45  ;;  %v2520_v35 = vpop.f32.mrf.mxu1  ;;  %3591 = vmatpush.bf16.msra.mxu0 %v13628_v56  ;;  %v2472_v4 = vadd.f32 %v2471_v8, %v13634_v36 }
 0x27f   : > { %v2616_v49 = vadd.f32 %v2615_v58, %v9461_v45  ;;  %3640 = vmatpush.bf16.msra.mxu1 %v13629_v10  ;;  %v2521_v50 = vadd.f32 %v2520_v35, %v13634_v36 }
 0x280   : > { %v2710_v39 = vmax.f32 %v2567_v19, 0.0  ;;  %3689 = vmatpush.bf16.msra.mxu2 %v13630_v62  ;;  %3210 = vmatmul.bf16.gmra.mxu0 %v10452_v6  ;;  %v2724_v7 = vmax.f32 %v2472_v4, 0.0  ;;  %v13638_v19 = vld [vmem:[#allocation13_spill] sm:$0xff] }
 0x281   : > { %v2711_v12 = vmax.f32 %v2616_v49, 0.0  ;;  %3738 = vmatpush.bf16.msra.mxu3 %v13631_v48  ;;  %3259 = vmatmul.bf16.gmra.mxu1 %v10452_v6  ;;  %v2725_v54 = vmax.f32 %v2521_v50, 0.0  ;;  %v10506_v4 = vld [vmem:[%s13296_s3 + $0x20] sm:$0xff] }
 0x282   : > { %3308 = vmatmul.bf16.gmra.mxu2 %v10452_v6  ;;  %v10464_v45 = vpack.c.bf16 %v2710_v39, %v2694_v60  ;;  %13639 = vst [vmem:[#allocation31_spill] sm:$0xff] %v10506_v4 }
 0x283   : > { %3357 = vmatmul.bf16.gmra.mxu3 %v10452_v6  ;;  %v10466_v41 = vpack.c.bf16 %v2711_v12, %v2695_v2 }
 0x284   : > { %13632 = vst [vmem:[#allocation22_spill] sm:$0xff] %v10464_v45 }
 0x285   : > { %13633 = vst [vmem:[#allocation19_spill] sm:$0xff] %v10466_v41  ;;  %v2569_v52 = vpop.f32.mrf.mxu2  ;;  %v2473_v15 = vpop.f32.mrf.mxu0 }
 0x286   : > { %v2618_v1 = vpop.f32.mrf.mxu3  ;;  %v2522_v57 = vpop.f32.mrf.mxu1  ;;  %v2474_v3 = vadd.f32 %v2473_v15, %v13635_v9  ;;  %v2570_v20 = vadd.f32 %v2569_v52, %v13634_v36 }
 0x287   : > { %v2523_v21 = vadd.f32 %v2522_v57, %v13635_v9  ;;  %v2619_v46 = vadd.f32 %v2618_v1, %v13634_v36 }
 0x288   : > { %v2740_v13 = vmax.f32 %v2474_v3, 0.0  ;;  %v2726_v17 = vmax.f32 %v2570_v20, 0.0 }
 0x289   : > { %v2741_v22 = vmax.f32 %v2523_v21, 0.0  ;;  %v2727_v18 = vmax.f32 %v2619_v46, 0.0 }
 0x28a   : > { %v10472_v26 = vpack.c.bf16 %v2740_v13, %v2724_v7 }
 0x28b   : > { %v10474_v0 = vpack.c.bf16 %v2741_v22, %v2725_v54 }
 0x28d   : > { %v2571_v40 = vpop.f32.mrf.mxu2  ;;  %v2476_v5 = vpop.f32.mrf.mxu0 }
 0x28e   : > { %v2620_v32 = vpop.f32.mrf.mxu3  ;;  %v2572_v37 = vadd.f32 %v2571_v40, %v13635_v9  ;;  %v2525_v24 = vpop.f32.mrf.mxu1  ;;  %v2477_v38 = vadd.f32 %v2476_v5, %v13637_v28 }
 0x28f   : > { %v2621_v53 = vadd.f32 %v2620_v32, %v13635_v9  ;;  %v2526_v31 = vadd.f32 %v2525_v24, %v13637_v28  ;;  %v10527_v24 = vpop.permute.xlu1 %3136 }
 0x290   : > { %v2742_v44 = vmax.f32 %v2572_v37, 0.0  ;;  %3215 = vmatmul.bf16.gmra.mxu0 %v10481_v63  ;;  %v2756_v35 = vmax.f32 %v2477_v38, 0.0  ;;  %v10525_v37 = vld [vmem:[%s13296_s3 + $0x28] sm:$0xff]  ;;  %13641 = vst [vmem:[#allocation33_spill] sm:$0xff] %v10527_v24 }
 0x291   : > { %v2743_v14 = vmax.f32 %v2621_v53, 0.0  ;;  %3264 = vmatmul.bf16.gmra.mxu1 %v10481_v63  ;;  %v2757_v56 = vmax.f32 %v2526_v31, 0.0  ;;  %13640 = vst [vmem:[#allocation32_spill] sm:$0xff] %v10525_v37 }
 0x292   : > { %3313 = vmatmul.bf16.gmra.mxu2 %v10481_v63  ;;  %v10489_v11 = vpack.c.bf16 %v2742_v44, %v2726_v17 }
 0x293   : > { %3362 = vmatmul.bf16.gmra.mxu3 %v10481_v63  ;;  %v10491_v16 = vpack.c.bf16 %v2743_v14, %v2727_v18 }
 0x295   : > { %v2574_v30 = vpop.f32.mrf.mxu2  ;;  %v2478_v59 = vpop.f32.mrf.mxu0 }
 0x296   : > { %v2623_v55 = vpop.f32.mrf.mxu3  ;;  %v2527_v58 = vpop.f32.mrf.mxu1  ;;  %v2479_v49 = vadd.f32 %v2478_v59, %v13638_v19  ;;  %v2575_v12 = vadd.f32 %v2574_v30, %v13637_v28 }
 0x297   : > { %v2528_v8 = vadd.f32 %v2527_v58, %v13638_v19  ;;  %v2624_v62 = vadd.f32 %v2623_v55, %v13637_v28  ;;  %v10537_v28 = vpop.permute.xlu0 %3126  ;;  %v10539_v38 = vpop.permute.xlu1 %3131  ;;  %v10544_v55 = vld [vmem:[%s13296_s3 + $0x30] sm:$0xff] }
 0x298   : > { %v2772_v10 = vmax.f32 %v2479_v49, 0.0  ;;  %v2758_v57 = vmax.f32 %v2575_v12, 0.0  ;;  %13642 = vst [vmem:[#allocation23_spill] sm:$0xff] %v10537_v28 }
 0x299   : > { %v2773_v60 = vmax.f32 %v2528_v8, 0.0  ;;  %v2759_v9 = vmax.f32 %v2624_v62, 0.0  ;;  %13643 = vst [vmem:[#allocation20_spill] sm:$0xff] %v10539_v38 }
 0x29a   : > { %v10497_v2 = vpack.c.bf16 %v2772_v10, %v2756_v35  ;;  %13644 = vst [vmem:[#allocation21_spill] sm:$0xff] %v10544_v55 }
 0x29b   : > { %v10499_v39 = vpack.c.bf16 %v2773_v60, %v2757_v56  ;;  %v10554_v60 = vpop.permute.xlu2 %3141 }
 0x29c   : > { %13647 = vst [vmem:[#allocation34_spill] sm:$0xff] %v10554_v60  ;;  %v13652_v60 = vld [vmem:[#allocation11_spill] sm:$0xff] }
 0x29d   : > { %v2576_v48 = vpop.f32.mrf.mxu2  ;;  %v10510_v1 = vpop.f32.mrf.mxu0 }
 0x29e   : > { %v2625_v36 = vpop.f32.mrf.mxu3  ;;  %v2577_v50 = vadd.f32 %v2576_v48, %v13638_v19  ;;  %v10512_v15 = vpop.f32.mrf.mxu1  ;;  %v10559_v48 = vld [vmem:[%s13296_s3 + $0x38] sm:$0xff] }
 0x29f   : > { %v2626_v52 = vadd.f32 %v2625_v36, %v13638_v19  ;;  %v10550_v19 = vpop.permute.xlu0 %3121  ;;  %v10552_v49 = vpop.permute.xlu1 %3106  ;;  %13648 = vst [vmem:[#allocation35_spill] sm:$0xff] %v10559_v48 }
 0x2a0   : > { %v2774_v3 = vmax.f32 %v2577_v50, 0.0  ;;  %3220 = vmatmul.bf16.gmra.mxu0 %v10506_v4  ;;  %13645 = vst [vmem:[#allocation28_spill] sm:$0xff] %v10550_v19 }
 0x2a1   : > { %v2775_v21 = vmax.f32 %v2626_v52, 0.0  ;;  %3269 = vmatmul.bf16.gmra.mxu1 %v10506_v4  ;;  %13646 = vst [vmem:[#allocation29_spill] sm:$0xff] %v10552_v49  ;;  %v10579_v49 = vadd.f32 %v10510_v1, %v13652_v60 }
 0x2a2   : > { %3318 = vmatmul.bf16.gmra.mxu2 %v10506_v4  ;;  %v10518_v7 = vpack.c.bf16 %v2774_v3, %v2758_v57 }
 0x2a3   : > { %3367 = vmatmul.bf16.gmra.mxu3 %v10506_v4  ;;  %v10520_v54 = vpack.c.bf16 %v2775_v21, %v2759_v9  ;;  %v10569_v9 = vpop.permute.xlu2 %3116 }
 0x2a4   : > { %13651 = vst [vmem:[#allocation17_spill] sm:$0xff] %v10569_v9 }
 0x2a5   : > { %v2579_v13 = vpop.f32.mrf.mxu2  ;;  %v2483_v20 = vpop.f32.mrf.mxu0 }
 0x2a6   : > { %v2628_v22 = vpop.f32.mrf.mxu3  ;;  %v2532_v46 = vpop.f32.mrf.mxu1  ;;  %v10586_v9 = vadd.f32 %v2579_v13, %v13652_v60 }
 0x2a7   : > { %v10561_v52 = vpop.permute.xlu0 %3096  ;;  %v10563_v57 = vpop.permute.xlu1 %3101 }
 0x2a8   : > { %13649 = vst [vmem:[#allocation36_spill] sm:$0xff] %v10561_v52 }
 0x2a9   : > { %13650 = vst [vmem:[#allocation37_spill] sm:$0xff] %v10563_v57 }
 0x2ad   : > { %v2581_v40 = vpop.f32.mrf.mxu2  ;;  %v2486_v53 = vpop.f32.mrf.mxu0 }
 0x2ae   : > { %v2630_v32 = vpop.f32.mrf.mxu3  ;;  %v2535_v5 = vpop.f32.mrf.mxu1  ;;  %v10572_v38 = vadd.f32 %v2486_v53, %v9276_v33  ;;  %v13653_v53 = vld [vmem:[#allocation16_spill] sm:$0xff] }
 0x2af   : > { %v10575_v28 = vadd.f32 %v2535_v5, %v9276_v33  ;;  %v10595_v5 = vadd.f32 %v2532_v46, %v13653_v53  ;;  %v10598_v4 = vadd.f32 %v2581_v40, %v13653_v53  ;;  %v10601_v1 = vadd.f32 %v2630_v32, %v13653_v53  ;;  %v10605_v57 = vpop.permute.xlu0 %3091  ;;  %v13655_v46 = vld [vmem:[#allocation10_spill] sm:$0xff] }
 0x2b0   : > { %3225 = vmatmul.bf16.gmra.mxu0 %v10525_v37  ;;  %13654 = vst [vmem:[#allocation15_spill] sm:$0xff] %v10605_v57 }
 0x2b1   : > { %3274 = vmatmul.bf16.gmra.mxu1 %v10525_v37 }
 0x2b2   : > { %3323 = vmatmul.bf16.gmra.mxu2 %v10525_v37 }
 0x2b3   : > { %3372 = vmatmul.bf16.gmra.mxu3 %v10525_v37  ;;  %v10592_v37 = vadd.f32 %v2483_v20, %v13653_v53 }
 0x2b5   : > { %v10533_v17 = vpop.f32.mrf.mxu2  ;;  %v2488_v44 = vpop.f32.mrf.mxu0 }
 0x2b6   : > { %v10535_v18 = vpop.f32.mrf.mxu3  ;;  %v2537_v14 = vpop.f32.mrf.mxu1  ;;  %v10612_v52 = vadd.f32 %v2488_v44, %v13655_v46 }
 0x2b7   : > { %v10615_v40 = vadd.f32 %v2537_v14, %v13655_v46  ;;  %v13657_v14 = vld [vmem:[#allocation14_spill] sm:$0xff] }
 0x2bd   : > { %v2586_v31 = vpop.f32.mrf.mxu2  ;;  %v2491_v59 = vpop.f32.mrf.mxu0 }
 0x2be   : > { %v2635_v30 = vpop.f32.mrf.mxu3  ;;  %v2540_v58 = vpop.f32.mrf.mxu1  ;;  %v10618_v32 = vadd.f32 %v2586_v31, %v13655_v46  ;;  %v2492_v20 = vadd.f32 %v2491_v59, %v9317_v51 }
 0x2c0   : > { %3230 = vmatmul.bf16.gmra.mxu0 %v10544_v55 }
 0x2c1   : > { %3279 = vmatmul.bf16.gmra.mxu1 %v10544_v55 }
 0x2c2   : > { %3328 = vmatmul.bf16.gmra.mxu2 %v10544_v55 }
 0x2c3   : > { %3377 = vmatmul.bf16.gmra.mxu3 %v10544_v55  ;;  %v10583_v55 = vadd.f32 %v10512_v15, %v13652_v60 }
 0x2c5   : > { %v2589_v8 = vpop.f32.mrf.mxu2  ;;  %v2493_v56 = vpop.f32.mrf.mxu0 }
 0x2c6   : > { %v2638_v35 = vpop.f32.mrf.mxu3  ;;  %v2542_v10 = vpop.f32.mrf.mxu1  ;;  %v2494_v6 = vadd.f32 %v2493_v56, %v13657_v14 }
 0x2c7   : > { %v2543_v31 = vadd.f32 %v2542_v10, %v13657_v14  ;;  %v2639_v56 = vadd.f32 %v2638_v35, %v9317_v51  ;;  %v10647_v35 = vpop.permute.xlu0 %3066 }
 0x2c8   : > { %v2868_v45 = vmax.f32 %v2494_v6, 0.0  ;;  %v2634_v6 = vadd.f32 %v10535_v18, %v9276_v33 }
 0x2cd   : > { %v2591_v12 = vpop.f32.mrf.mxu2  ;;  %v2496_v36 = vpop.f32.mrf.mxu0 }
 0x2ce   : > { %v2640_v62 = vpop.f32.mrf.mxu3  ;;  %v2545_v50 = vpop.f32.mrf.mxu1 }
 0x2d0   : > { %3235 = vmatmul.bf16.gmra.mxu0 %v10559_v48 }
 0x2d1   : > { %3284 = vmatmul.bf16.gmra.mxu1 %v10559_v48 }
 0x2d2   : > { %3333 = vmatmul.bf16.gmra.mxu2 %v10559_v48 }
 0x2d3   : > { %3382 = vmatmul.bf16.gmra.mxu3 %v10559_v48  ;;  %v10589_v48 = vadd.f32 %v2628_v22, %v13652_v60  ;;  %v10607_v22 = vpop.permute.xlu1 %3076  ;;  %v2541_v60 = vadd.f32 %v2540_v58, %v9317_v51 }
 0x2d5   : > { %v2594_v3 = vpop.f32.mrf.mxu2  ;;  %v2498_v24 = vpop.f32.mrf.mxu0 }
 0x2d6   : > { %v2643_v21 = vpop.f32.mrf.mxu3  ;;  %v2547_v19 = vpop.f32.mrf.mxu1  ;;  %v2499_v15 = vadd.f32 %v2498_v24, %v9278_v34  ;;  %v10621_v24 = vadd.f32 %v2635_v30, %v13655_v46 }
 0x2d7   : > { %v2548_v13 = vadd.f32 %v2547_v19, %v9278_v34  ;;  %v13656_v19 = vld [vmem:[#allocation9_spill] sm:$0xff] }
 0x2d8   : > { %v2497_v53 = vadd.f32 %v2496_v36, %v13656_v19  ;;  %v2546_v63 = vadd.f32 %v2545_v50, %v13656_v19  ;;  %v2595_v44 = vadd.f32 %v2594_v3, %v13656_v19  ;;  %v2644_v57 = vadd.f32 %v2643_v21, %v13656_v19 }
 0x2d9   : > { %v2900_v47 = vmax.f32 %v2499_v15, 0.0  ;;  %v2901_v29 = vmax.f32 %v2548_v13, 0.0  ;;  %v2592_v36 = vadd.f32 %v2591_v12, %v13657_v14  ;;  %v2641_v50 = vadd.f32 %v2640_v62, %v13657_v14  ;;  %v10637_v15 = vpop.permute.xlu2 %3111 }
 0x2da   : > { %v2590_v21 = vadd.f32 %v2589_v8, %v9317_v51  ;;  %v2884_v19 = vmax.f32 %v2497_v53, 0.0  ;;  %v2885_v10 = vmax.f32 %v2546_v63, 0.0  ;;  %13658 = vst [vmem:[#allocation12_spill] sm:$0xff] %v10637_v15  ;;  %v2886_v13 = vmax.f32 %v2595_v44, 0.0 }
 0x2db   : > { %v2887_v25 = vmax.f32 %v2644_v57, 0.0  ;;  %v2869_v62 = vmax.f32 %v2543_v31, 0.0  ;;  %v2871_v8 = vmax.f32 %v2641_v50, 0.0  ;;  %v2585_v63 = vadd.f32 %v10533_v17, %v9276_v33  ;;  %v10649_v57 = vpop.permute.xlu1 %3071 }
 0x2dc   : > { %v3060_v14 = vpack.c.bf16 %v2900_v47, %v2884_v19  ;;  %v2852_v47 = vmax.f32 %v2492_v20, 0.0  ;;  %v2854_v53 = vmax.f32 %v2590_v21, 0.0  ;;  %v2838_v31 = vmax.f32 %v10618_v32, 0.0 }
 0x2dd   : > { %v2596_v30 = vpop.f32.mrf.mxu2  ;;  %v3201_v61 = vpop.f32.mrf.mxu0  ;;  %v2805_v21 = vmax.f32 %v10595_v5, 0.0  ;;  %v13659_v32 = vmax.f32 %v10572_v38, 0.0  ;;  %v13660_v19 = vmax.f32 %v10575_v28, 0.0  ;;  %v2789_v38 = vmax.f32 %v10583_v55, 0.0 }
 0x2de   : > { %v2645_v46 = vpop.f32.mrf.mxu3  ;;  %v2597_v59 = vadd.f32 %v2596_v30, %v9278_v34  ;;  %v3250_v3 = vpop.f32.mrf.mxu1  ;;  %v3061_v30 = vpack.c.bf16 %v2901_v29, %v2885_v10  ;;  %v2853_v29 = vmax.f32 %v2541_v60, 0.0  ;;  %v3202_v17 = vadd.f32 %v3201_v61, %v10647_v35 }
 0x2df   : > { %v2646_v58 = vadd.f32 %v2645_v46, %v9278_v34  ;;  %v2870_v34 = vmax.f32 %v2592_v36, 0.0  ;;  %v3251_v33 = vadd.f32 %v3250_v3, %v10647_v35  ;;  %v3044_v60 = vpack.c.bf16 %v2868_v45, %v2852_v47 }
 0x2e0   : > { %v2902_v41 = vmax.f32 %v2597_v59, 0.0  ;;  %3396 = vmatmul.bf16.vlgmr.msrb.gmra.mxu0 %v10370_v27  ;;  %v3045_v44 = vpack.c.bf16 %v2869_v62, %v2853_v29  ;;  %v2839_v36 = vmax.f32 %v10621_v24, 0.0  ;;  %v2822_v45 = vmax.f32 %v2585_v63, 0.0 }
 0x2e1   : > { %v2903_v12 = vmax.f32 %v2646_v58, 0.0  ;;  %3445 = vmatmul.bf16.vlgmr.msrb.gmra.mxu1 %v10370_v27  ;;  %3780 = vmatpush.bf16.msrb.mxu0 %v3060_v14  ;;  %v3046_v59 = vpack.c.bf16 %v2870_v34, %v2854_v53  ;;  %v2804_v58 = vmax.f32 %v10592_v37, 0.0  ;;  %v3977_v37 = vmax.f32 %v3251_v33, 0.0  ;;  %v10665_v62 = vpop.permute.xlu2 %3086 }
 0x2e2   : > { %v3062_v46 = vpack.c.bf16 %v2902_v41, %v2886_v13  ;;  %3494 = vmatmul.bf16.vlgmr.msrb.gmra.mxu2 %v10370_v27  ;;  %3829 = vmatpush.bf16.msrb.mxu1 %v3061_v30  ;;  %v2837_v41 = vmax.f32 %v10615_v40, 0.0  ;;  %v3976_v13 = vmax.f32 %v3202_v17, 0.0  ;;  %13661 = vst [vmem:[#allocation13_spill] sm:$0xff] %v10665_v62  ;;  %v2806_v14 = vmax.f32 %v10598_v4, 0.0 }
 0x2e3   : > { %v3063_v51 = vpack.c.bf16 %v2903_v12, %v2887_v25  ;;  %3543 = vmatmul.bf16.vlgmr.msrb.gmra.mxu3 %v10370_v27  ;;  %v2836_v25 = vmax.f32 %v10612_v52, 0.0  ;;  %v2855_v27 = vmax.f32 %v2639_v56, 0.0  ;;  %v2823_v56 = vmax.f32 %v2634_v6, 0.0 }
 0x2e4   : > { %3878 = vmatpush.bf16.msrb.mxu2 %v3062_v46  ;;  %v3029_v10 = vpack.c.bf16 %v2837_v41, %v13660_v19  ;;  %v2807_v30 = vmax.f32 %v10601_v1, 0.0  ;;  %v3030_v34 = vpack.c.bf16 %v2838_v31, %v2822_v45  ;;  %v2788_v46 = vmax.f32 %v10579_v49, 0.0  ;;  %v13668_v45 = vld [vmem:[#allocation22_spill] sm:$0xff] }
 0x2e5   : > { %3927 = vmatpush.bf16.msrb.mxu3 %v3063_v51  ;;  %v3299_v18 = vpop.f32.mrf.mxu2  ;;  %v3203_v50 = vpop.f32.mrf.mxu0  ;;  %v3047_v40 = vpack.c.bf16 %v2871_v8, %v2855_v27  ;;  %3781 = vmatpush.bf16.msrb.mxu0 %v3044_v60  ;;  %v3028_v24 = vpack.c.bf16 %v2836_v25, %v13659_v32  ;;  %v3031_v8 = vpack.c.bf16 %v2839_v36, %v2823_v56  ;;  %v2790_v63 = vmax.f32 %v10586_v9, 0.0  ;;  %v13670_v19 = vld [vmem:[#allocation18_spill] sm:$0xff] }
 0x2e6   : > { %v3348_v20 = vpop.f32.mrf.mxu3  ;;  %v3252_v52 = vpop.f32.mrf.mxu1  ;;  %3830 = vmatpush.bf16.msrb.mxu1 %v3045_v44  ;;  %v3204_v61 = vadd.f32 %v3203_v50, %v10649_v57  ;;  %v2791_v6 = vmax.f32 %v10589_v48, 0.0  ;;  %v3300_v4 = vadd.f32 %v3299_v18, %v10647_v35  ;;  %v3012_v29 = vpack.c.bf16 %v2804_v58, %v2788_v46 }
 0x2e7   : > { %v3253_v3 = vadd.f32 %v3252_v52, %v10649_v57  ;;  %v3349_v1 = vadd.f32 %v3348_v20, %v10647_v35  ;;  %v3013_v55 = vpack.c.bf16 %v2805_v21, %v2789_v38  ;;  %v3014_v17 = vpack.c.bf16 %v2806_v14, %v2790_v63  ;;  %v13672_v14 = vld [vmem:[#allocation25_spill] sm:$0xff] }
 0x2e8   : > { %3879 = vmatpush.bf16.msrb.mxu2 %v3046_v59  ;;  %v3992_v12 = vmax.f32 %v3204_v61, 0.0  ;;  %v3015_v9 = vpack.c.bf16 %v2807_v30, %v2791_v6  ;;  %v3978_v48 = vmax.f32 %v3300_v4, 0.0  ;;  %v13673_v30 = vld [vmem:[#allocation26_spill] sm:$0xff] }
 0x2e9   : > { %3928 = vmatpush.bf16.msrb.mxu3 %v3047_v40  ;;  %v3993_v5 = vmax.f32 %v3253_v3, 0.0  ;;  %3782 = vmatpush.bf16.msrb.mxu0 %v3028_v24  ;;  %v3979_v33 = vmax.f32 %v3349_v1, 0.0  ;;  %v10691_v31 = vpop.permute.xlu2 %3081 }
 0x2ea   : > { %3831 = vmatpush.bf16.msrb.mxu1 %v3029_v10  ;;  %v10671_v28 = vpack.c.bf16 %v3992_v12, %v3976_v13  ;;  %v13671_v10 = vld [vmem:[#allocation24_spill] sm:$0xff] }
 0x2eb   : > { %v10673_v51 = vpack.c.bf16 %v3993_v5, %v3977_v37 }
 0x2ec   : > { %13662 = vst [vmem:[#allocation11_spill] sm:$0xff] %v10671_v28  ;;  %3880 = vmatpush.bf16.msrb.mxu2 %v3030_v34  ;;  %v13674_v34 = vld [vmem:[#allocation27_spill] sm:$0xff] }
 0x2ed   : > { %13663 = vst [vmem:[#allocation16_spill] sm:$0xff] %v10673_v51  ;;  %3929 = vmatpush.bf16.msrb.mxu3 %v3031_v8  ;;  %v3301_v47 = vpop.f32.mrf.mxu2  ;;  %v3206_v53 = vpop.f32.mrf.mxu0  ;;  %3783 = vmatpush.bf16.msrb.mxu0 %v3012_v29 }
 0x2ee   : > { %v3350_v49 = vpop.f32.mrf.mxu3  ;;  %v3302_v25 = vadd.f32 %v3301_v47, %v10649_v57  ;;  %v3255_v27 = vpop.f32.mrf.mxu1  ;;  %3832 = vmatpush.bf16.msrb.mxu1 %v3013_v55  ;;  %v3207_v36 = vadd.f32 %v3206_v53, %v10607_v22 }
 0x2ef   : > { %v3351_v41 = vadd.f32 %v3350_v49, %v10649_v57  ;;  %v3256_v50 = vadd.f32 %v3255_v27, %v10607_v22  ;;  %v13677_v49 = vld [vmem:[#allocation15_spill] sm:$0xff] }
 0x2f0   : > { %v3994_v18 = vmax.f32 %v3302_v25, 0.0  ;;  %3881 = vmatpush.bf16.msrb.mxu2 %v3014_v17  ;;  %3401 = vmatmul.bf16.gmra.mxu0 %v10415_v23 }
 0x2f1   : > { %v3995_v20 = vmax.f32 %v3351_v41, 0.0  ;;  %3930 = vmatpush.bf16.msrb.mxu3 %v3015_v9  ;;  %3450 = vmatmul.bf16.gmra.mxu1 %v10415_v23 }
 0x2f2   : > { %3499 = vmatmul.bf16.gmra.mxu2 %v10415_v23  ;;  %v10685_v60 = vpack.c.bf16 %v3994_v18, %v3978_v48  ;;  %3784 = vmatpush.bf16.msrb.mxu0 %v10497_v2 }
 0x2f3   : > { %3548 = vmatmul.bf16.gmra.mxu3 %v10415_v23  ;;  %v10687_v44 = vpack.c.bf16 %v3995_v20, %v3979_v33  ;;  %3833 = vmatpush.bf16.msrb.mxu1 %v10499_v39 }
 0x2f4   : > { %13664 = vst [vmem:[#allocation10_spill] sm:$0xff] %v10685_v60  ;;  %3882 = vmatpush.bf16.msrb.mxu2 %v10518_v7  ;;  %v4008_v7 = vmax.f32 %v3207_v36, 0.0 }
 0x2f5   : > { %13665 = vst [vmem:[#allocation9_spill] sm:$0xff] %v10687_v44  ;;  %3931 = vmatpush.bf16.msrb.mxu3 %v10520_v54  ;;  %v3304_v52 = vpop.f32.mrf.mxu2  ;;  %v3208_v59 = vpop.f32.mrf.mxu0  ;;  %v4009_v54 = vmax.f32 %v3256_v50, 0.0 }
 0x2f6   : > { %v3353_v23 = vpop.f32.mrf.mxu3  ;;  %v3257_v40 = vpop.f32.mrf.mxu1  ;;  %3785 = vmatpush.bf16.msrb.mxu0 %v10472_v26  ;;  %v3209_v2 = vadd.f32 %v3208_v59, %v10691_v31 }
 0x2f7   : > { %3834 = vmatpush.bf16.msrb.mxu1 %v10474_v0  ;;  %v3258_v39 = vadd.f32 %v3257_v40, %v10691_v31  ;;  %v3305_v0 = vadd.f32 %v3304_v52, %v10607_v22  ;;  %v3354_v3 = vadd.f32 %v3353_v23, %v10607_v22 }
 0x2f8   : > { %3883 = vmatpush.bf16.msrb.mxu2 %v10489_v11  ;;  %v4024_v58 = vmax.f32 %v3209_v2, 0.0  ;;  %v13669_v11 = vld [vmem:[#allocation19_spill] sm:$0xff] }
 0x2f9   : > { %3932 = vmatpush.bf16.msrb.mxu3 %v10491_v16  ;;  %v4025_v21 = vmax.f32 %v3258_v39, 0.0  ;;  %v4010_v13 = vmax.f32 %v3305_v0, 0.0  ;;  %v4011_v37 = vmax.f32 %v3354_v3, 0.0 }
 0x2fa   : > { %3786 = vmatpush.bf16.msrb.mxu0 %v10441_v43  ;;  %v10705_v61 = vpack.c.bf16 %v4024_v58, %v4008_v7  ;;  %v13678_v7 = vld [vmem:[#allocation30_spill] sm:$0xff] }
 0x2fb   : > { %3835 = vmatpush.bf16.msrb.mxu1 %v10443_v42  ;;  %v10707_v26 = vpack.c.bf16 %v4025_v21, %v4009_v54  ;;  %v13679_v21 = vld [vmem:[#allocation36_spill] sm:$0xff] }
 0x2fc   : > { %13666 = vst [vmem:[#allocation14_spill] sm:$0xff] %v10705_v61  ;;  %3884 = vmatpush.bf16.msrb.mxu2 %v13668_v45 }
 0x2fd   : > { %13667 = vst [vmem:[#allocation38_spill] sm:$0xff] %v10707_v26  ;;  %3933 = vmatpush.bf16.msrb.mxu3 %v13669_v11  ;;  %v3306_v16 = vpop.f32.mrf.mxu2  ;;  %v3211_v24 = vpop.f32.mrf.mxu0 }
 0x2fe   : > { %v3355_v56 = vpop.f32.mrf.mxu3  ;;  %v3307_v32 = vadd.f32 %v3306_v16, %v10691_v31  ;;  %v3260_v42 = vpop.f32.mrf.mxu1  ;;  %3787 = vmatpush.bf16.msrb.mxu0 %v13670_v19  ;;  %v3212_v38 = vadd.f32 %v3211_v24, %v10665_v62 }
 0x2ff   : > { %v3356_v43 = vadd.f32 %v3355_v56, %v10691_v31  ;;  %3836 = vmatpush.bf16.msrb.mxu1 %v13671_v10  ;;  %v3261_v63 = vadd.f32 %v3260_v42, %v10665_v62 }
 0x300   : > { %v4026_v12 = vmax.f32 %v3307_v32, 0.0  ;;  %3885 = vmatpush.bf16.msrb.mxu2 %v13672_v14  ;;  %3406 = vmatmul.bf16.gmra.mxu0 %v13674_v34  ;;  %v4040_v25 = vmax.f32 %v3212_v38, 0.0  ;;  %v13680_v32 = vld [vmem:[#allocation37_spill] sm:$0xff] }
 0x301   : > { %v4027_v5 = vmax.f32 %v3356_v43, 0.0  ;;  %3934 = vmatpush.bf16.msrb.mxu3 %v13673_v30  ;;  %3455 = vmatmul.bf16.gmra.mxu1 %v13674_v34  ;;  %v4041_v41 = vmax.f32 %v3261_v63, 0.0 }
 0x302   : > { %3504 = vmatmul.bf16.gmra.mxu2 %v13674_v34  ;;  %v10723_v8 = vpack.c.bf16 %v4026_v12, %v4010_v13 }
 0x303   : > { %3553 = vmatmul.bf16.gmra.mxu3 %v13674_v34  ;;  %v10725_v46 = vpack.c.bf16 %v4027_v5, %v4011_v37 }
 0x304   : > { %13675 = vst [vmem:[#allocation22_spill] sm:$0xff] %v10723_v8 }
 0x305   : > { %13676 = vst [vmem:[#allocation19_spill] sm:$0xff] %v10725_v46  ;;  %v3309_v6 = vpop.f32.mrf.mxu2  ;;  %v3213_v1 = vpop.f32.mrf.mxu0 }
 0x306   : > { %v3358_v4 = vpop.f32.mrf.mxu3  ;;  %v3262_v47 = vpop.f32.mrf.mxu1  ;;  %v3214_v29 = vadd.f32 %v3213_v1, %v13677_v49  ;;  %v3310_v48 = vadd.f32 %v3309_v6, %v10665_v62 }
 0x307   : > { %v3263_v55 = vadd.f32 %v3262_v47, %v13677_v49  ;;  %v3359_v33 = vadd.f32 %v3358_v4, %v10665_v62 }
 0x308   : > { %v4056_v53 = vmax.f32 %v3214_v29, 0.0  ;;  %v4042_v59 = vmax.f32 %v3310_v48, 0.0 }
 0x309   : > { %v4057_v27 = vmax.f32 %v3263_v55, 0.0  ;;  %v4043_v40 = vmax.f32 %v3359_v33, 0.0 }
 0x30a   : > { %v10731_v17 = vpack.c.bf16 %v4056_v53, %v4040_v25  ;;  %v13681_v25 = vld [vmem:[#allocation31_spill] sm:$0xff] }
 0x30b   : > { %v10733_v9 = vpack.c.bf16 %v4057_v27, %v4041_v41 }
 0x30d   : > { %v3311_v18 = vpop.f32.mrf.mxu2  ;;  %v3216_v52 = vpop.f32.mrf.mxu0 }
 0x30e   : > { %v3360_v20 = vpop.f32.mrf.mxu3  ;;  %v3312_v36 = vadd.f32 %v3311_v18, %v13677_v49  ;;  %v3265_v23 = vpop.f32.mrf.mxu1  ;;  %v3217_v0 = vadd.f32 %v3216_v52, %v13679_v21 }
 0x30f   : > { %v3361_v50 = vadd.f32 %v3360_v20, %v13677_v49  ;;  %v3266_v3 = vadd.f32 %v3265_v23, %v13679_v21  ;;  %v13682_v23 = vld [vmem:[#allocation32_spill] sm:$0xff]  ;;  %v13690_v49 = vld [vmem:[#allocation23_spill] sm:$0xff] }
 0x310   : > { %v4058_v2 = vmax.f32 %v3312_v36, 0.0  ;;  %3411 = vmatmul.bf16.gmra.mxu0 %v13678_v7  ;;  %v4072_v42 = vmax.f32 %v3217_v0, 0.0 }
 0x311   : > { %v4059_v39 = vmax.f32 %v3361_v50, 0.0  ;;  %3460 = vmatmul.bf16.gmra.mxu1 %v13678_v7  ;;  %v4073_v19 = vmax.f32 %v3266_v3, 0.0 }
 0x312   : > { %3509 = vmatmul.bf16.gmra.mxu2 %v13678_v7  ;;  %v10743_v54 = vpack.c.bf16 %v4058_v2, %v4042_v59 }
 0x313   : > { %3558 = vmatmul.bf16.gmra.mxu3 %v13678_v7  ;;  %v10745_v58 = vpack.c.bf16 %v4059_v39, %v4043_v40 }
 0x315   : > { %v3314_v45 = vpop.f32.mrf.mxu2  ;;  %v3218_v16 = vpop.f32.mrf.mxu0 }
 0x316   : > { %v3363_v11 = vpop.f32.mrf.mxu3  ;;  %v3267_v56 = vpop.f32.mrf.mxu1  ;;  %v3219_v43 = vadd.f32 %v3218_v16, %v13680_v32  ;;  %v3315_v5 = vadd.f32 %v3314_v45, %v13679_v21 }
 0x317   : > { %v3268_v24 = vadd.f32 %v3267_v56, %v13680_v32  ;;  %v3364_v14 = vadd.f32 %v3363_v11, %v13679_v21  ;;  %v13683_v11 = vld [vmem:[#allocation21_spill] sm:$0xff] }
 0x318   : > { %v4088_v10 = vmax.f32 %v3219_v43, 0.0  ;;  %v4074_v1 = vmax.f32 %v3315_v5, 0.0  ;;  %v13684_v5 = vld [vmem:[#allocation35_spill] sm:$0xff] }
 0x319   : > { %v4089_v13 = vmax.f32 %v3268_v24, 0.0  ;;  %v4075_v47 = vmax.f32 %v3364_v14, 0.0 }
 0x31a   : > { %v10751_v37 = vpack.c.bf16 %v4088_v10, %v4072_v42 }
 0x31b   : > { %v10753_v12 = vpack.c.bf16 %v4089_v13, %v4073_v19 }
 0x31d   : > { %v3316_v30 = vpop.f32.mrf.mxu2  ;;  %v3221_v6 = vpop.f32.mrf.mxu0 }
 0x31e   : > { %v3365_v34 = vpop.f32.mrf.mxu3  ;;  %v3317_v38 = vadd.f32 %v3316_v30, %v13680_v32  ;;  %v3270_v4 = vpop.f32.mrf.mxu1 }
 0x31f   : > { %v3366_v63 = vadd.f32 %v3365_v34, %v13680_v32  ;;  %v13685_v34 = vld [vmem:[#allocation17_spill] sm:$0xff] }
 0x320   : > { %v4090_v29 = vmax.f32 %v3317_v38, 0.0  ;;  %3416 = vmatmul.bf16.gmra.mxu0 %v13681_v25 }
 0x321   : > { %v4091_v55 = vmax.f32 %v3366_v63, 0.0  ;;  %3465 = vmatmul.bf16.gmra.mxu1 %v13681_v25 }
 0x322   : > { %3514 = vmatmul.bf16.gmra.mxu2 %v13681_v25  ;;  %v10763_v41 = vpack.c.bf16 %v4090_v29, %v4074_v1  ;;  %v13686_v29 = vld [vmem:[#allocation29_spill] sm:$0xff] }
 0x323   : > { %3563 = vmatmul.bf16.gmra.mxu3 %v13681_v25  ;;  %v10765_v53 = vpack.c.bf16 %v4091_v55, %v4075_v47  ;;  %v10790_v55 = vadd.f32 %v3221_v6, %v13686_v29  ;;  %v10793_v25 = vadd.f32 %v3270_v4, %v13686_v29  ;;  %v13687_v4 = vld [vmem:[#allocation34_spill] sm:$0xff] }
 0x325   : > { %v3319_v27 = vpop.f32.mrf.mxu2  ;;  %v3223_v33 = vpop.f32.mrf.mxu0 }
 0x326   : > { %v3368_v48 = vpop.f32.mrf.mxu3  ;;  %v3272_v18 = vpop.f32.mrf.mxu1 }
 0x32d   : > { %v3321_v20 = vpop.f32.mrf.mxu2  ;;  %v3226_v50 = vpop.f32.mrf.mxu0 }
 0x32e   : > { %v3370_v36 = vpop.f32.mrf.mxu3  ;;  %v3275_v52 = vpop.f32.mrf.mxu1  ;;  %v10784_v38 = vadd.f32 %v3226_v50, %v13685_v34  ;;  %v10802_v50 = vadd.f32 %v3223_v33, %v10637_v15 }
 0x32f   : > { %v10787_v63 = vadd.f32 %v3275_v52, %v13685_v34  ;;  %v10805_v52 = vadd.f32 %v3272_v18, %v10637_v15  ;;  %v10811_v6 = vadd.f32 %v3370_v36, %v10637_v15 }
 0x330   : > { %3421 = vmatmul.bf16.gmra.mxu0 %v13682_v23 }
 0x331   : > { %3470 = vmatmul.bf16.gmra.mxu1 %v13682_v23 }
 0x332   : > { %3519 = vmatmul.bf16.gmra.mxu2 %v13682_v23 }
 0x333   : > { %3568 = vmatmul.bf16.gmra.mxu3 %v13682_v23  ;;  %v10796_v23 = vadd.f32 %v3319_v27, %v13686_v29 }
 0x335   : > { %v10771_v59 = vpop.f32.mrf.mxu2  ;;  %v3228_v2 = vpop.f32.mrf.mxu0 }
 0x336   : > { %v10773_v40 = vpop.f32.mrf.mxu3  ;;  %v3277_v39 = vpop.f32.mrf.mxu1 }
 0x33d   : > { %v3326_v7 = vpop.f32.mrf.mxu2  ;;  %v3231_v3 = vpop.f32.mrf.mxu0 }
 0x33e   : > { %v3375_v0 = vpop.f32.mrf.mxu3  ;;  %v3280_v45 = vpop.f32.mrf.mxu1  ;;  %v3232_v21 = vadd.f32 %v3231_v3, %v13690_v49 }
 0x340   : > { %3426 = vmatmul.bf16.gmra.mxu0 %v13683_v11 }
 0x341   : > { %3475 = vmatmul.bf16.gmra.mxu1 %v13683_v11 }
 0x342   : > { %3524 = vmatmul.bf16.gmra.mxu2 %v13683_v11 }
 0x343   : > { %3573 = vmatmul.bf16.gmra.mxu3 %v13683_v11  ;;  %v10799_v11 = vadd.f32 %v3368_v48, %v13686_v29  ;;  %v13688_v29 = vld [vmem:[#allocation28_spill] sm:$0xff]  ;;  %v3281_v48 = vadd.f32 %v3280_v45, %v13690_v49 }
 0x344   : > { %v10818_v33 = vadd.f32 %v3228_v2, %v13688_v29  ;;  %v10821_v18 = vadd.f32 %v3277_v39, %v13688_v29  ;;  %v10827_v36 = vadd.f32 %v3375_v0, %v13688_v29  ;;  %v13691_v39 = vld [vmem:[#allocation20_spill] sm:$0xff] }
 0x345   : > { %v3329_v16 = vpop.f32.mrf.mxu2  ;;  %v3233_v43 = vpop.f32.mrf.mxu0 }
 0x346   : > { %v3378_v56 = vpop.f32.mrf.mxu3  ;;  %v3282_v24 = vpop.f32.mrf.mxu1  ;;  %v3234_v44 = vadd.f32 %v3233_v43, %v13691_v39 }
 0x347   : > { %v3379_v43 = vadd.f32 %v3378_v56, %v13690_v49 }
 0x348   : > { %v4184_v26 = vmax.f32 %v3234_v44, 0.0  ;;  %v4152_v44 = vmax.f32 %v10818_v33, 0.0 }
 0x34d   : > { %v3331_v42 = vpop.f32.mrf.mxu2  ;;  %v3236_v10 = vpop.f32.mrf.mxu0 }
 0x34e   : > { %v3380_v19 = vpop.f32.mrf.mxu3  ;;  %v3285_v13 = vpop.f32.mrf.mxu1 }
 0x350   : > { %3431 = vmatmul.bf16.gmra.mxu0 %v13684_v5 }
 0x351   : > { %3480 = vmatmul.bf16.gmra.mxu1 %v13684_v5 }
 0x352   : > { %3529 = vmatmul.bf16.gmra.mxu2 %v13684_v5 }
 0x353   : > { %3578 = vmatmul.bf16.gmra.mxu3 %v13684_v5  ;;  %v10808_v5 = vadd.f32 %v3321_v20, %v10637_v15  ;;  %v10824_v20 = vadd.f32 %v3326_v7, %v13688_v29  ;;  %v13689_v15 = vld [vmem:[#allocation33_spill] sm:$0xff]  ;;  %v3283_v7 = vadd.f32 %v3282_v24, %v13691_v39 }
 0x355   : > { %v3334_v14 = vpop.f32.mrf.mxu2  ;;  %v3238_v1 = vpop.f32.mrf.mxu0 }
 0x356   : > { %v3383_v30 = vpop.f32.mrf.mxu3  ;;  %v3287_v47 = vpop.f32.mrf.mxu1  ;;  %v3239_v32 = vadd.f32 %v3238_v1, %v13687_v4  ;;  %v3237_v1 = vadd.f32 %v3236_v10, %v13689_v15  ;;  %v3335_v2 = vadd.f32 %v3334_v14, %v13689_v15  ;;  %v3332_v10 = vadd.f32 %v3331_v42, %v13691_v39 }
 0x357   : > { %v3288_v27 = vadd.f32 %v3287_v47, %v13687_v4  ;;  %v3286_v47 = vadd.f32 %v3285_v13, %v13689_v15  ;;  %v3384_v62 = vadd.f32 %v3383_v30, %v13689_v15  ;;  %v3381_v13 = vadd.f32 %v3380_v19, %v13691_v39 }
 0x358   : > { %v4216_v60 = vmax.f32 %v3239_v32, 0.0  ;;  %v3330_v30 = vadd.f32 %v3329_v16, %v13690_v49  ;;  %v4200_v15 = vmax.f32 %v3237_v1, 0.0  ;;  %v4202_v32 = vmax.f32 %v3335_v2, 0.0 }
 0x359   : > { %v4217_v51 = vmax.f32 %v3288_v27, 0.0  ;;  %v4201_v24 = vmax.f32 %v3286_v47, 0.0  ;;  %v4203_v27 = vmax.f32 %v3384_v62, 0.0  ;;  %v4185_v42 = vmax.f32 %v3283_v7, 0.0 }
 0x35a   : > { %v4376_v61 = vpack.c.bf16 %v4216_v60, %v4200_v15  ;;  %v4186_v16 = vmax.f32 %v3332_v10, 0.0  ;;  %v4187_v56 = vmax.f32 %v3381_v13, 0.0  ;;  %v3325_v15 = vadd.f32 %v10771_v59, %v13685_v34 }
 0x35b   : > { %v4377_v19 = vpack.c.bf16 %v4217_v51, %v4201_v24  ;;  %v3374_v62 = vadd.f32 %v10773_v40, %v13685_v34  ;;  %v4168_v51 = vmax.f32 %v3232_v21, 0.0  ;;  %v4169_v60 = vmax.f32 %v3281_v48, 0.0 }
 0x35c   : > { %v4153_v2 = vmax.f32 %v10821_v18, 0.0  ;;  %v4154_v21 = vmax.f32 %v10824_v20, 0.0  ;;  %v13692_v20 = vmax.f32 %v10784_v38, 0.0  ;;  %v13693_v24 = vmax.f32 %v10787_v63, 0.0 }
 0x35d   : > { %v3336_v0 = vpop.f32.mrf.mxu2  ;;  %v3397_v28 = vpop.f32.mrf.mxu0  ;;  %v4360_v13 = vpack.c.bf16 %v4184_v26, %v4168_v51  ;;  %v4361_v40 = vpack.c.bf16 %v4185_v42, %v4169_v60  ;;  %v4138_v26 = vmax.f32 %v3325_v15, 0.0  ;;  %v4105_v15 = vmax.f32 %v10793_v25, 0.0 }
 0x35e   : > { %v3385_v29 = vpop.f32.mrf.mxu3  ;;  %v3337_v3 = vadd.f32 %v3336_v0, %v13687_v4  ;;  %v3446_v14 = vpop.f32.mrf.mxu1  ;;  %v3398_v7 = vadd.f32 %v3397_v28, %v10647_v35  ;;  %v4107_v51 = vmax.f32 %v10799_v11, 0.0 }
 0x35f   : > { %v3386_v45 = vadd.f32 %v3385_v29, %v13687_v4  ;;  %v10846_v29 = vld [vmem:[%s13296_s3] sm:$0xff]  ;;  %v3447_v0 = vadd.f32 %v3446_v14, %v10647_v35 }
 0x360   : > { %v4218_v46 = vmax.f32 %v3337_v3, 0.0  ;;  %3592 = vmatmul.bf16.vlgmr.msra.gmra.mxu0 %v10846_v29 }
 0x361   : > { %v4219_v8 = vmax.f32 %v3386_v45, 0.0  ;;  %3641 = vmatmul.bf16.vlgmr.msra.gmra.mxu1 %v10846_v29  ;;  %4520 = vmatpush.bf16.msra.mxu0 %v4376_v61  ;;  %v4155_v61 = vmax.f32 %v10827_v36, 0.0  ;;  %v4120_v45 = vmax.f32 %v10802_v50, 0.0  ;;  %v4344_v36 = vpack.c.bf16 %v4152_v44, %v13692_v20 }
 0x362   : > { %v4378_v1 = vpack.c.bf16 %v4218_v46, %v4202_v32  ;;  %3690 = vmatmul.bf16.vlgmr.msra.gmra.mxu2 %v10846_v29  ;;  %4569 = vmatpush.bf16.msra.mxu1 %v4377_v19  ;;  %v4170_v46 = vmax.f32 %v3330_v30, 0.0  ;;  %v4121_v30 = vmax.f32 %v10805_v52, 0.0  ;;  %v4345_v32 = vpack.c.bf16 %v4153_v2, %v13693_v24  ;;  %v13702_v24 = vld [vmem:[#allocation22_spill] sm:$0xff] }
 0x363   : > { %v4379_v47 = vpack.c.bf16 %v4219_v8, %v4203_v27  ;;  %3739 = vmatmul.bf16.vlgmr.msra.gmra.mxu3 %v10846_v29  ;;  %v4171_v8 = vmax.f32 %v3379_v43, 0.0  ;;  %v4139_v43 = vmax.f32 %v3374_v62, 0.0  ;;  %v3980_v27 = vmax.f32 %v3398_v7, 0.0 }
 0x364   : > { %4618 = vmatpush.bf16.msra.mxu2 %v4378_v1  ;;  %v4362_v3 = vpack.c.bf16 %v4186_v16, %v4170_v46  ;;  %v3981_v50 = vmax.f32 %v3447_v0, 0.0  ;;  %v4122_v19 = vmax.f32 %v10808_v5, 0.0  ;;  %v4123_v16 = vmax.f32 %v10811_v6, 0.0 }
 0x365   : > { %4667 = vmatpush.bf16.msra.mxu3 %v4379_v47  ;;  %v3495_v59 = vpop.f32.mrf.mxu2  ;;  %v3399_v48 = vpop.f32.mrf.mxu0  ;;  %v4363_v18 = vpack.c.bf16 %v4187_v56, %v4171_v8  ;;  %4521 = vmatpush.bf16.msra.mxu0 %v4360_v13  ;;  %v4346_v56 = vpack.c.bf16 %v4154_v21, %v4138_v26  ;;  %v4347_v1 = vpack.c.bf16 %v4155_v61, %v4139_v43  ;;  %v4104_v47 = vmax.f32 %v10790_v55, 0.0  ;;  %v13698_v26 = vld [vmem:[#allocation14_spill] sm:$0xff] }
 0x366   : > { %v3544_v10 = vpop.f32.mrf.mxu3  ;;  %v3448_v33 = vpop.f32.mrf.mxu1  ;;  %4570 = vmatpush.bf16.msra.mxu1 %v4361_v40  ;;  %v3400_v28 = vadd.f32 %v3399_v48, %v10649_v57  ;;  %v4106_v62 = vmax.f32 %v10796_v23, 0.0  ;;  %v3496_v5 = vadd.f32 %v3495_v59, %v10647_v35  ;;  %v4329_v25 = vpack.c.bf16 %v4121_v30, %v4105_v15  ;;  %v10887_v40 = vld [vmem:[%s13296_s3 + $0x8] sm:$0xff] }
 0x367   : > { %v3449_v14 = vadd.f32 %v3448_v33, %v10649_v57  ;;  %v3545_v6 = vadd.f32 %v3544_v10, %v10647_v35  ;;  %v4328_v44 = vpack.c.bf16 %v4120_v45, %v4104_v47  ;;  %v4331_v23 = vpack.c.bf16 %v4123_v16, %v4107_v51  ;;  %v13699_v43 = vld [vmem:[#allocation38_spill] sm:$0xff]  ;;  %v13705_v16 = vld [vmem:[#allocation16_spill] sm:$0xff]  ;;  %v13707_v51 = vld [vmem:[#allocation9_spill] sm:$0xff] }
 0x368   : > { %4619 = vmatpush.bf16.msra.mxu2 %v4362_v3  ;;  %v3996_v42 = vmax.f32 %v3400_v28, 0.0  ;;  %v4330_v0 = vpack.c.bf16 %v4122_v19, %v4106_v62  ;;  %v3982_v11 = vmax.f32 %v3496_v5, 0.0  ;;  %v13704_v19 = vld [vmem:[#allocation11_spill] sm:$0xff]  ;;  %v13706_v62 = vld [vmem:[#allocation10_spill] sm:$0xff] }
 0x369   : > { %4668 = vmatpush.bf16.msra.mxu3 %v4363_v18  ;;  %v3997_v52 = vmax.f32 %v3449_v14, 0.0  ;;  %4522 = vmatpush.bf16.msra.mxu0 %v4344_v36  ;;  %v3983_v59 = vmax.f32 %v3545_v6, 0.0  ;;  %v10928_v5 = vld [vmem:[%s13296_s3 + $0x10] sm:$0xff] }
 0x36a   : > { %4571 = vmatpush.bf16.msra.mxu1 %v4345_v32  ;;  %v10874_v38 = vpack.c.bf16 %v3996_v42, %v3980_v27  ;;  %13708 = vst [vmem:[#allocation31_spill] sm:$0xff] %v10928_v5 }
 0x36b   : > { %v10876_v63 = vpack.c.bf16 %v3997_v52, %v3981_v50 }
 0x36c   : > { %13694 = vst [vmem:[#allocation18_spill] sm:$0xff] %v10874_v38  ;;  %4620 = vmatpush.bf16.msra.mxu2 %v4346_v56 }
 0x36d   : > { %13695 = vst [vmem:[#allocation24_spill] sm:$0xff] %v10876_v63  ;;  %4669 = vmatpush.bf16.msra.mxu3 %v4347_v1  ;;  %v3497_v60 = vpop.f32.mrf.mxu2  ;;  %v3402_v8 = vpop.f32.mrf.mxu0  ;;  %4523 = vmatpush.bf16.msra.mxu0 %v4328_v44 }
 0x36e   : > { %v3546_v55 = vpop.f32.mrf.mxu3  ;;  %v3498_v2 = vadd.f32 %v3497_v60, %v10649_v57  ;;  %v3451_v7 = vpop.f32.mrf.mxu1  ;;  %4572 = vmatpush.bf16.msra.mxu1 %v4329_v25  ;;  %v3403_v48 = vadd.f32 %v3402_v8, %v10607_v22 }
 0x36f   : > { %v3547_v46 = vadd.f32 %v3546_v55, %v10649_v57  ;;  %v3452_v33 = vadd.f32 %v3451_v7, %v10607_v22  ;;  %v13711_v55 = vld [vmem:[#allocation13_spill] sm:$0xff] }
 0x370   : > { %v3998_v13 = vmax.f32 %v3498_v2, 0.0  ;;  %4621 = vmatpush.bf16.msra.mxu2 %v4330_v0  ;;  %3597 = vmatmul.bf16.gmra.mxu0 %v10887_v40  ;;  %v13712_v0 = vld [vmem:[#allocation15_spill] sm:$0xff] }
 0x371   : > { %v3999_v10 = vmax.f32 %v3547_v46, 0.0  ;;  %4670 = vmatpush.bf16.msra.mxu3 %v4331_v23  ;;  %3646 = vmatmul.bf16.gmra.mxu1 %v10887_v40 }
 0x372   : > { %3695 = vmatmul.bf16.gmra.mxu2 %v10887_v40  ;;  %v10893_v21 = vpack.c.bf16 %v3998_v13, %v3982_v11  ;;  %4524 = vmatpush.bf16.msra.mxu0 %v10751_v37 }
 0x373   : > { %3744 = vmatmul.bf16.gmra.mxu3 %v10887_v40  ;;  %v10895_v61 = vpack.c.bf16 %v3999_v10, %v3983_v59  ;;  %4573 = vmatpush.bf16.msra.mxu1 %v10753_v12 }
 0x374   : > { %13696 = vst [vmem:[#allocation25_spill] sm:$0xff] %v10893_v21  ;;  %4622 = vmatpush.bf16.msra.mxu2 %v10763_v41  ;;  %v4012_v41 = vmax.f32 %v3403_v48, 0.0 }
 0x375   : > { %13697 = vst [vmem:[#allocation26_spill] sm:$0xff] %v10895_v61  ;;  %4671 = vmatpush.bf16.msra.mxu3 %v10765_v53  ;;  %v3500_v3 = vpop.f32.mrf.mxu2  ;;  %v3404_v45 = vpop.f32.mrf.mxu0  ;;  %v4013_v53 = vmax.f32 %v3452_v33, 0.0 }
 0x376   : > { %v3549_v18 = vpop.f32.mrf.mxu3  ;;  %v3453_v30 = vpop.f32.mrf.mxu1  ;;  %4525 = vmatpush.bf16.msra.mxu0 %v10731_v17  ;;  %v3405_v37 = vadd.f32 %v3404_v45, %v10691_v31 }
 0x377   : > { %4574 = vmatpush.bf16.msra.mxu1 %v10733_v9  ;;  %v3454_v12 = vadd.f32 %v3453_v30, %v10691_v31  ;;  %v3501_v9 = vadd.f32 %v3500_v3, %v10607_v22  ;;  %v3550_v36 = vadd.f32 %v3549_v18, %v10607_v22 }
 0x378   : > { %4623 = vmatpush.bf16.msra.mxu2 %v10743_v54  ;;  %v4028_v28 = vmax.f32 %v3405_v37, 0.0  ;;  %v13703_v54 = vld [vmem:[#allocation19_spill] sm:$0xff] }
 0x379   : > { %4672 = vmatpush.bf16.msra.mxu3 %v10745_v58  ;;  %v4029_v14 = vmax.f32 %v3454_v12, 0.0  ;;  %v4014_v56 = vmax.f32 %v3501_v9, 0.0  ;;  %v4015_v1 = vmax.f32 %v3550_v36, 0.0  ;;  %v10953_v36 = vld [vmem:[%s13296_s3 + $0x18] sm:$0xff] }
 0x37a   : > { %4526 = vmatpush.bf16.msra.mxu0 %v13698_v26  ;;  %v10911_v20 = vpack.c.bf16 %v4028_v28, %v4012_v41  ;;  %13713 = vst [vmem:[#allocation35_spill] sm:$0xff] %v10953_v36 }
 0x37b   : > { %4575 = vmatpush.bf16.msra.mxu1 %v13699_v43  ;;  %v10913_v17 = vpack.c.bf16 %v4029_v14, %v4013_v53 }
 0x37c   : > { %13700 = vst [vmem:[#allocation27_spill] sm:$0xff] %v10911_v20  ;;  %4624 = vmatpush.bf16.msra.mxu2 %v13702_v24 }
 0x37d   : > { %13701 = vst [vmem:[#allocation30_spill] sm:$0xff] %v10913_v17  ;;  %4673 = vmatpush.bf16.msra.mxu3 %v13703_v54  ;;  %v3502_v58 = vpop.f32.mrf.mxu2  ;;  %v3407_v42 = vpop.f32.mrf.mxu0 }
 0x37e   : > { %v3551_v32 = vpop.f32.mrf.mxu3  ;;  %v3503_v27 = vadd.f32 %v3502_v58, %v10691_v31  ;;  %v3456_v52 = vpop.f32.mrf.mxu1  ;;  %4527 = vmatpush.bf16.msra.mxu0 %v13704_v19  ;;  %v3408_v44 = vadd.f32 %v3407_v42, %v13711_v55  ;;  %v13716_v58 = vld [vmem:[#allocation36_spill] sm:$0xff] }
 0x37f   : > { %v3552_v50 = vadd.f32 %v3551_v32, %v10691_v31  ;;  %4576 = vmatpush.bf16.msra.mxu1 %v13705_v16  ;;  %v3457_v25 = vadd.f32 %v3456_v52, %v13711_v55  ;;  %v13717_v16 = vld [vmem:[#allocation37_spill] sm:$0xff] }
 0x380   : > { %v4030_v47 = vmax.f32 %v3503_v27, 0.0  ;;  %4625 = vmatpush.bf16.msra.mxu2 %v13706_v62  ;;  %3602 = vmatmul.bf16.gmra.mxu0 %v10928_v5  ;;  %v4044_v59 = vmax.f32 %v3408_v44, 0.0 }
 0x381   : > { %v4031_v15 = vmax.f32 %v3552_v50, 0.0  ;;  %4674 = vmatpush.bf16.msra.mxu3 %v13707_v51  ;;  %3651 = vmatmul.bf16.gmra.mxu1 %v10928_v5  ;;  %v4045_v13 = vmax.f32 %v3457_v25, 0.0 }
 0x382   : > { %3700 = vmatmul.bf16.gmra.mxu2 %v10928_v5  ;;  %v10934_v6 = vpack.c.bf16 %v4030_v47, %v4014_v56 }
 0x383   : > { %3749 = vmatmul.bf16.gmra.mxu3 %v10928_v5  ;;  %v10936_v60 = vpack.c.bf16 %v4031_v15, %v4015_v1  ;;  %v13723_v5 = vld [vmem:[#allocation12_spill] sm:$0xff] }
 0x384   : > { %13709 = vst [vmem:[#allocation32_spill] sm:$0xff] %v10934_v6 }
 0x385   : > { %13710 = vst [vmem:[#allocation21_spill] sm:$0xff] %v10936_v60  ;;  %v3505_v2 = vpop.f32.mrf.mxu2  ;;  %v3409_v8 = vpop.f32.mrf.mxu0 }
 0x386   : > { %v3554_v46 = vpop.f32.mrf.mxu3  ;;  %v3458_v7 = vpop.f32.mrf.mxu1  ;;  %v3410_v23 = vadd.f32 %v3409_v8, %v13712_v0  ;;  %v3506_v18 = vadd.f32 %v3505_v2, %v13711_v55 }
 0x387   : > { %v3459_v11 = vadd.f32 %v3458_v7, %v13712_v0  ;;  %v3555_v45 = vadd.f32 %v3554_v46, %v13711_v55 }
 0x388   : > { %v4060_v10 = vmax.f32 %v3410_v23, 0.0  ;;  %v4046_v14 = vmax.f32 %v3506_v18, 0.0 }
 0x389   : > { %v4061_v48 = vmax.f32 %v3459_v11, 0.0  ;;  %v4047_v26 = vmax.f32 %v3555_v45, 0.0 }
 0x38a   : > { %v10942_v33 = vpack.c.bf16 %v4060_v10, %v4044_v59 }
 0x38b   : > { %v10944_v3 = vpack.c.bf16 %v4061_v48, %v4045_v13 }
 0x38d   : > { %v3507_v30 = vpop.f32.mrf.mxu2  ;;  %v3412_v53 = vpop.f32.mrf.mxu0 }
 0x38e   : > { %v3556_v37 = vpop.f32.mrf.mxu3  ;;  %v3508_v12 = vadd.f32 %v3507_v30, %v13712_v0  ;;  %v3461_v28 = vpop.f32.mrf.mxu1  ;;  %v3413_v32 = vadd.f32 %v3412_v53, %v13716_v58  ;;  %v10978_v30 = vld [vmem:[%s13296_s3 + $0x20] sm:$0xff] }
 0x38f   : > { %v3557_v41 = vadd.f32 %v3556_v37, %v13712_v0  ;;  %v3462_v27 = vadd.f32 %v3461_v28, %v13716_v58  ;;  %13718 = vst [vmem:[#allocation23_spill] sm:$0xff] %v10978_v30 }
 0x390   : > { %v4062_v43 = vmax.f32 %v3508_v12, 0.0  ;;  %3607 = vmatmul.bf16.gmra.mxu0 %v10953_v36  ;;  %v4076_v47 = vmax.f32 %v3413_v32, 0.0 }
 0x391   : > { %v4063_v9 = vmax.f32 %v3557_v41, 0.0  ;;  %3656 = vmatmul.bf16.gmra.mxu1 %v10953_v36  ;;  %v4077_v15 = vmax.f32 %v3462_v27, 0.0  ;;  %v10991_v27 = vld [vmem:[%s13296_s3 + $0x28] sm:$0xff] }
 0x392   : > { %3705 = vmatmul.bf16.gmra.mxu2 %v10953_v36  ;;  %v10959_v24 = vpack.c.bf16 %v4062_v43, %v4046_v14  ;;  %13719 = vst [vmem:[#allocation14_spill] sm:$0xff] %v10991_v27 }
 0x393   : > { %3754 = vmatmul.bf16.gmra.mxu3 %v10953_v36  ;;  %v10961_v54 = vpack.c.bf16 %v4063_v9, %v4047_v26 }
 0x394   : > { %13714 = vst [vmem:[#allocation17_spill] sm:$0xff] %v10959_v24 }
 0x395   : > { %13715 = vst [vmem:[#allocation34_spill] sm:$0xff] %v10961_v54  ;;  %v3510_v50 = vpop.f32.mrf.mxu2  ;;  %v3414_v52 = vpop.f32.mrf.mxu0 }
 0x396   : > { %v3559_v42 = vpop.f32.mrf.mxu3  ;;  %v3463_v19 = vpop.f32.mrf.mxu1  ;;  %v3415_v56 = vadd.f32 %v3414_v52, %v13717_v16  ;;  %v3511_v2 = vadd.f32 %v3510_v50, %v13716_v58 }
 0x397   : > { %v3464_v1 = vadd.f32 %v3463_v19, %v13717_v16  ;;  %v3560_v46 = vadd.f32 %v3559_v42, %v13716_v58  ;;  %v13722_v58 = vld [vmem:[#allocation29_spill] sm:$0xff] }
 0x398   : > { %v4092_v62 = vmax.f32 %v3415_v56, 0.0  ;;  %v4078_v10 = vmax.f32 %v3511_v2, 0.0 }
 0x399   : > { %v4093_v51 = vmax.f32 %v3464_v1, 0.0  ;;  %v4079_v48 = vmax.f32 %v3560_v46, 0.0 }
 0x39a   : > { %v10967_v44 = vpack.c.bf16 %v4092_v62, %v4076_v47  ;;  %v11004_v62 = vld [vmem:[%s13296_s3 + $0x30] sm:$0xff] }
 0x39b   : > { %v10969_v25 = vpack.c.bf16 %v4093_v51, %v4077_v15  ;;  %13720 = vst [vmem:[#allocation38_spill] sm:$0xff] %v11004_v62 }
 0x39d   : > { %v3512_v8 = vpop.f32.mrf.mxu2  ;;  %v3417_v59 = vpop.f32.mrf.mxu0 }
 0x39e   : > { %v3561_v7 = vpop.f32.mrf.mxu3  ;;  %v3513_v23 = vadd.f32 %v3512_v8, %v13717_v16  ;;  %v3466_v13 = vpop.f32.mrf.mxu1  ;;  %v11026_v36 = vadd.f32 %v3417_v59, %v13722_v58 }
 0x39f   : > { %v3562_v11 = vadd.f32 %v3561_v7, %v13717_v16  ;;  %v11029_v0 = vadd.f32 %v3466_v13, %v13722_v58 }
 0x3a0   : > { %v4094_v18 = vmax.f32 %v3513_v23, 0.0  ;;  %3612 = vmatmul.bf16.gmra.mxu0 %v10978_v30 }
 0x3a1   : > { %v4095_v45 = vmax.f32 %v3562_v11, 0.0  ;;  %3661 = vmatmul.bf16.gmra.mxu1 %v10978_v30 }
 0x3a2   : > { %3710 = vmatmul.bf16.gmra.mxu2 %v10978_v30  ;;  %v10984_v37 = vpack.c.bf16 %v4094_v18, %v4078_v10 }
 0x3a3   : > { %3759 = vmatmul.bf16.gmra.mxu3 %v10978_v30  ;;  %v10986_v12 = vpack.c.bf16 %v4095_v45, %v4079_v48  ;;  %v11013_v48 = vld [vmem:[%s13296_s3 + $0x38] sm:$0xff] }
 0x3a4   : > { %13721 = vst [vmem:[#allocation22_spill] sm:$0xff] %v11013_v48 }
 0x3a5   : > { %v3515_v41 = vpop.f32.mrf.mxu2  ;;  %v3419_v28 = vpop.f32.mrf.mxu0 }
 0x3a6   : > { %v3564_v53 = vpop.f32.mrf.mxu3  ;;  %v3468_v14 = vpop.f32.mrf.mxu1  ;;  %v11032_v55 = vadd.f32 %v3515_v41, %v13722_v58 }
 0x3ad   : > { %v3517_v26 = vpop.f32.mrf.mxu2  ;;  %v3422_v9 = vpop.f32.mrf.mxu0 }
 0x3ae   : > { %v3566_v43 = vpop.f32.mrf.mxu3  ;;  %v3471_v32 = vpop.f32.mrf.mxu1  ;;  %v11044_v61 = vadd.f32 %v3517_v26, %v13723_v5 }
 0x3af   : > { %v11047_v59 = vadd.f32 %v3566_v43, %v13723_v5 }
 0x3b0   : > { %3617 = vmatmul.bf16.gmra.mxu0 %v10991_v27 }
 0x3b1   : > { %3666 = vmatmul.bf16.gmra.mxu1 %v10991_v27 }
 0x3b2   : > { %3715 = vmatmul.bf16.gmra.mxu2 %v10991_v27 }
 0x3b3   : > { %3764 = vmatmul.bf16.gmra.mxu3 %v10991_v27  ;;  %v11023_v27 = vadd.f32 %v3471_v32, %v13685_v34  ;;  %v11041_v32 = vadd.f32 %v3468_v14, %v13723_v5 }
 0x3b5   : > { %v10997_v50 = vpop.f32.mrf.mxu2  ;;  %v3424_v52 = vpop.f32.mrf.mxu0 }
 0x3b6   : > { %v10999_v42 = vpop.f32.mrf.mxu3  ;;  %v3473_v19 = vpop.f32.mrf.mxu1 }
 0x3bd   : > { %v3522_v56 = vpop.f32.mrf.mxu2  ;;  %v3427_v47 = vpop.f32.mrf.mxu0 }
 0x3be   : > { %v3571_v1 = vpop.f32.mrf.mxu3  ;;  %v3476_v15 = vpop.f32.mrf.mxu1  ;;  %v3428_v21 = vadd.f32 %v3427_v47, %v13690_v49 }
 0x3c0   : > { %3622 = vmatmul.bf16.gmra.mxu0 %v11004_v62 }
 0x3c1   : > { %3671 = vmatmul.bf16.gmra.mxu1 %v11004_v62 }
 0x3c2   : > { %3720 = vmatmul.bf16.gmra.mxu2 %v11004_v62 }
 0x3c3   : > { %3769 = vmatmul.bf16.gmra.mxu3 %v11004_v62  ;;  %v11020_v62 = vadd.f32 %v3422_v9, %v13685_v34  ;;  %v11038_v9 = vadd.f32 %v3419_v28, %v13723_v5  ;;  %v13725_v5 = vld [vmem:[#allocation33_spill] sm:$0xff] }
 0x3c5   : > { %v3525_v51 = vpop.f32.mrf.mxu2  ;;  %v3429_v46 = vpop.f32.mrf.mxu0 }
 0x3c6   : > { %v3574_v2 = vpop.f32.mrf.mxu3  ;;  %v3478_v8 = vpop.f32.mrf.mxu1 }
 0x3cd   : > { %v3527_v7 = vpop.f32.mrf.mxu2  ;;  %v3432_v11 = vpop.f32.mrf.mxu0 }
 0x3ce   : > { %v3576_v23 = vpop.f32.mrf.mxu3  ;;  %v3481_v10 = vpop.f32.mrf.mxu1 }
 0x3d0   : > { %3627 = vmatmul.bf16.gmra.mxu0 %v11013_v48 }
 0x3d1   : > { %3676 = vmatmul.bf16.gmra.mxu1 %v11013_v48 }
 0x3d2   : > { %3725 = vmatmul.bf16.gmra.mxu2 %v11013_v48 }
 0x3d3   : > { %3774 = vmatmul.bf16.gmra.mxu3 %v11013_v48  ;;  %v11035_v48 = vadd.f32 %v3564_v53, %v13722_v58  ;;  %v13724_v58 = vld [vmem:[#allocation28_spill] sm:$0xff]  ;;  %v3477_v53 = vadd.f32 %v3476_v15, %v13690_v49 }
 0x3d4   : > { %v11054_v28 = vadd.f32 %v3424_v52, %v13724_v58  ;;  %v11057_v14 = vadd.f32 %v3473_v19, %v13724_v58  ;;  %v11060_v26 = vadd.f32 %v3522_v56, %v13724_v58  ;;  %v11063_v43 = vadd.f32 %v3571_v1, %v13724_v58 }
 0x3d5   : > { %v3530_v18 = vpop.f32.mrf.mxu2  ;;  %v3434_v30 = vpop.f32.mrf.mxu0  ;;  %v3430_v19 = vadd.f32 %v3429_v46, %v13691_v39  ;;  %v3479_v56 = vadd.f32 %v3478_v8, %v13691_v39  ;;  %v3575_v46 = vadd.f32 %v3574_v2, %v13690_v49  ;;  %v3570_v2 = vadd.f32 %v10999_v42, %v13685_v34 }
 0x3d6   : > { %v3579_v45 = vpop.f32.mrf.mxu3  ;;  %v3483_v16 = vpop.f32.mrf.mxu1  ;;  %v3435_v13 = vadd.f32 %v3434_v30, %v13687_v4  ;;  %v3433_v30 = vadd.f32 %v3432_v11, %v13725_v5  ;;  %v3531_v52 = vadd.f32 %v3530_v18, %v13725_v5  ;;  %v3528_v11 = vadd.f32 %v3527_v7, %v13691_v39 }
 0x3d7   : > { %v3484_v41 = vadd.f32 %v3483_v16, %v13687_v4  ;;  %v3482_v16 = vadd.f32 %v3481_v10, %v13725_v5  ;;  %v3580_v63 = vadd.f32 %v3579_v45, %v13725_v5  ;;  %v3577_v10 = vadd.f32 %v3576_v23, %v13691_v39 }
 0x3d8   : > { %v4220_v38 = vmax.f32 %v3435_v13, 0.0  ;;  %v3526_v45 = vadd.f32 %v3525_v51, %v13690_v49  ;;  %v4204_v5 = vmax.f32 %v3433_v30, 0.0  ;;  %v4206_v13 = vmax.f32 %v3531_v52, 0.0 }
 0x3d9   : > { %v4221_v60 = vmax.f32 %v3484_v41, 0.0  ;;  %v4205_v8 = vmax.f32 %v3482_v16, 0.0  ;;  %v4207_v41 = vmax.f32 %v3580_v63, 0.0  ;;  %v4188_v54 = vmax.f32 %v3430_v19, 0.0 }
 0x3da   : > { %v4189_v7 = vmax.f32 %v3479_v56, 0.0  ;;  %v4380_v24 = vpack.c.bf16 %v4220_v38, %v4204_v5  ;;  %v3521_v63 = vadd.f32 %v10997_v50, %v13685_v34  ;;  %v4172_v38 = vmax.f32 %v3428_v21, 0.0 }
 0x3db   : > { %v4381_v23 = vpack.c.bf16 %v4221_v60, %v4205_v8  ;;  %v4173_v5 = vmax.f32 %v3477_v53, 0.0  ;;  %v4156_v60 = vmax.f32 %v11054_v28, 0.0  ;;  %v4157_v30 = vmax.f32 %v11057_v14, 0.0 }
 0x3dc   : > { %v4364_v19 = vpack.c.bf16 %v4188_v54, %v4172_v38  ;;  %v4158_v21 = vmax.f32 %v11060_v26, 0.0  ;;  %v4142_v54 = vmax.f32 %v3521_v63, 0.0  ;;  %v13726_v26 = vmax.f32 %v11020_v62, 0.0 }
 0x3dd   : > { %v3532_v1 = vpop.f32.mrf.mxu2  ;;  %v3593_v6 = vpop.f32.mrf.mxu0  ;;  %v4365_v42 = vpack.c.bf16 %v4189_v7, %v4173_v5  ;;  %v4126_v8 = vmax.f32 %v11044_v61, 0.0 }
 0x3de   : > { %v3581_v58 = vpop.f32.mrf.mxu3  ;;  %v3533_v47 = vadd.f32 %v3532_v1, %v13687_v4  ;;  %v3642_v18 = vpop.f32.mrf.mxu1  ;;  %v4191_v1 = vmax.f32 %v3577_v10, 0.0 }
 0x3df   : > { %v3582_v15 = vadd.f32 %v3581_v58, %v13687_v4  ;;  %v4190_v58 = vmax.f32 %v3528_v11, 0.0  ;;  %v3643_v16 = vadd.f32 %v3642_v18, %v10647_v35  ;;  %v4124_v11 = vmax.f32 %v11038_v9, 0.0 }
 0x3e0   : > { %v4222_v17 = vmax.f32 %v3533_v47, 0.0  ;;  %3788 = vmatmul.bf16.vlgmr.msrb.gmra.mxu0 %v10846_v29  ;;  %v4143_v47 = vmax.f32 %v3570_v2, 0.0 }
 0x3e1   : > { %v4223_v20 = vmax.f32 %v3582_v15, 0.0  ;;  %3837 = vmatmul.bf16.vlgmr.msrb.gmra.mxu1 %v10846_v29  ;;  %4716 = vmatpush.bf16.msrb.mxu0 %v4380_v24  ;;  %v4159_v24 = vmax.f32 %v11063_v43, 0.0  ;;  %v4348_v43 = vpack.c.bf16 %v4156_v60, %v13726_v26  ;;  %v13727_v15 = vmax.f32 %v11023_v27, 0.0  ;;  %v13739_v26 = vld [vmem:[#allocation21_spill] sm:$0xff] }
 0x3e2   : > { %v4382_v39 = vpack.c.bf16 %v4222_v17, %v4206_v13  ;;  %3886 = vmatmul.bf16.vlgmr.msrb.gmra.mxu2 %v10846_v29  ;;  %4765 = vmatpush.bf16.msrb.mxu1 %v4381_v23  ;;  %v4174_v17 = vmax.f32 %v3526_v45, 0.0  ;;  %v3985_v9 = vmax.f32 %v3643_v16, 0.0  ;;  %v4127_v13 = vmax.f32 %v11047_v59, 0.0 }
 0x3e3   : > { %v4383_v51 = vpack.c.bf16 %v4223_v20, %v4207_v41  ;;  %3935 = vmatmul.bf16.vlgmr.msrb.gmra.mxu3 %v10846_v29  ;;  %v4175_v20 = vmax.f32 %v3575_v46, 0.0  ;;  %v3594_v29 = vadd.f32 %v3593_v6, %v10647_v35  ;;  %v4349_v18 = vpack.c.bf16 %v4157_v30, %v13727_v15 }
 0x3e4   : > { %4814 = vmatpush.bf16.msrb.mxu2 %v4382_v39  ;;  %v4366_v56 = vpack.c.bf16 %v4190_v58, %v4174_v17  ;;  %v4125_v39 = vmax.f32 %v11041_v32, 0.0  ;;  %v4350_v41 = vpack.c.bf16 %v4158_v21, %v4142_v54  ;;  %v4351_v7 = vpack.c.bf16 %v4159_v24, %v4143_v47  ;;  %v13738_v47 = vld [vmem:[#allocation32_spill] sm:$0xff] }
 0x3e5   : > { %4863 = vmatpush.bf16.msrb.mxu3 %v4383_v51  ;;  %v3691_v50 = vpop.f32.mrf.mxu2  ;;  %v3595_v53 = vpop.f32.mrf.mxu0  ;;  %v4367_v14 = vpack.c.bf16 %v4191_v1, %v4175_v20  ;;  %4717 = vmatpush.bf16.msrb.mxu0 %v4364_v19  ;;  %v3984_v45 = vmax.f32 %v3594_v29, 0.0  ;;  %v4108_v23 = vmax.f32 %v11026_v36, 0.0  ;;  %v4109_v58 = vmax.f32 %v11029_v0, 0.0 }
 0x3e6   : > { %v3740_v52 = vpop.f32.mrf.mxu3  ;;  %v3644_v28 = vpop.f32.mrf.mxu1  ;;  %4766 = vmatpush.bf16.msrb.mxu1 %v4365_v42  ;;  %v3596_v6 = vadd.f32 %v3595_v53, %v10649_v57  ;;  %v4110_v1 = vmax.f32 %v11032_v55, 0.0  ;;  %v4111_v51 = vmax.f32 %v11035_v48, 0.0  ;;  %v3692_v61 = vadd.f32 %v3691_v50, %v10647_v35 }
 0x3e7   : > { %v3645_v10 = vadd.f32 %v3644_v28, %v10649_v57  ;;  %v3741_v59 = vadd.f32 %v3740_v52, %v10647_v35  ;;  %v4332_v2 = vpack.c.bf16 %v4124_v11, %v4108_v23  ;;  %v4333_v0 = vpack.c.bf16 %v4125_v39, %v4109_v58  ;;  %v13732_v28 = vld [vmem:[#allocation17_spill] sm:$0xff]  ;;  %v13734_v39 = vld [vmem:[#allocation27_spill] sm:$0xff] }
 0x3e8   : > { %4815 = vmatpush.bf16.msrb.mxu2 %v4366_v56  ;;  %v4000_v46 = vmax.f32 %v3596_v6, 0.0  ;;  %v4334_v17 = vpack.c.bf16 %v4126_v8, %v4110_v1  ;;  %v4335_v55 = vpack.c.bf16 %v4127_v13, %v4111_v51  ;;  %v3986_v48 = vmax.f32 %v3692_v61, 0.0  ;;  %v13735_v6 = vld [vmem:[#allocation30_spill] sm:$0xff]  ;;  %v13741_v8 = vld [vmem:[#allocation24_spill] sm:$0xff]  ;;  %v13742_v58 = vld [vmem:[#allocation25_spill] sm:$0xff] }
 0x3e9   : > { %4864 = vmatpush.bf16.msrb.mxu3 %v4367_v14  ;;  %v4001_v32 = vmax.f32 %v3645_v10, 0.0  ;;  %4718 = vmatpush.bf16.msrb.mxu0 %v4348_v43  ;;  %v3987_v20 = vmax.f32 %v3741_v59, 0.0  ;;  %v13743_v1 = vld [vmem:[#allocation26_spill] sm:$0xff]  ;;  %v13744_v51 = vld [vmem:[#allocation31_spill] sm:$0xff] }
 0x3ea   : > { %4767 = vmatpush.bf16.msrb.mxu1 %v4349_v18  ;;  %v11105_v62 = vpack.c.bf16 %v4000_v46, %v3984_v45 }
 0x3eb   : > { %v11107_v27 = vpack.c.bf16 %v4001_v32, %v3985_v9  ;;  %v13740_v32 = vld [vmem:[#allocation18_spill] sm:$0xff] }
 0x3ec   : > { %13728 = vst [vmem:[#allocation19_spill] sm:$0xff] %v11105_v62  ;;  %4816 = vmatpush.bf16.msrb.mxu2 %v4350_v41 }
 0x3ed   : > { %13729 = vst [vmem:[#allocation11_spill] sm:$0xff] %v11107_v27  ;;  %4865 = vmatpush.bf16.msrb.mxu3 %v4351_v7  ;;  %v3693_v63 = vpop.f32.mrf.mxu2  ;;  %v3598_v60 = vpop.f32.mrf.mxu0  ;;  %4719 = vmatpush.bf16.msrb.mxu0 %v4332_v2 }
 0x3ee   : > { %v3742_v36 = vpop.f32.mrf.mxu3  ;;  %v3694_v38 = vadd.f32 %v3693_v63, %v10649_v57  ;;  %v3647_v30 = vpop.f32.mrf.mxu1  ;;  %4768 = vmatpush.bf16.msrb.mxu1 %v4333_v0  ;;  %v3599_v19 = vadd.f32 %v3598_v60, %v10607_v22  ;;  %v13747_v63 = vld [vmem:[#allocation13_spill] sm:$0xff] }
 0x3ef   : > { %v3743_v5 = vadd.f32 %v3742_v36, %v10649_v57  ;;  %v3648_v42 = vadd.f32 %v3647_v30, %v10607_v22  ;;  %v13748_v30 = vld [vmem:[#allocation15_spill] sm:$0xff] }
 0x3f0   : > { %v4002_v29 = vmax.f32 %v3694_v38, 0.0  ;;  %4817 = vmatpush.bf16.msrb.mxu2 %v4334_v17  ;;  %3793 = vmatmul.bf16.gmra.mxu0 %v10887_v40 }
 0x3f1   : > { %v4003_v16 = vmax.f32 %v3743_v5, 0.0  ;;  %4866 = vmatpush.bf16.msrb.mxu3 %v4335_v55  ;;  %3842 = vmatmul.bf16.gmra.mxu1 %v10887_v40  ;;  %v4017_v56 = vmax.f32 %v3648_v42, 0.0 }
 0x3f2   : > { %3891 = vmatmul.bf16.gmra.mxu2 %v10887_v40  ;;  %v11119_v50 = vpack.c.bf16 %v4002_v29, %v3986_v48  ;;  %4720 = vmatpush.bf16.msrb.mxu0 %v10967_v44 }
 0x3f3   : > { %3940 = vmatmul.bf16.gmra.mxu3 %v10887_v40  ;;  %v11121_v52 = vpack.c.bf16 %v4003_v16, %v3987_v20  ;;  %4769 = vmatpush.bf16.msrb.mxu1 %v10969_v25 }
 0x3f4   : > { %13730 = vst [vmem:[#allocation16_spill] sm:$0xff] %v11119_v50  ;;  %4818 = vmatpush.bf16.msrb.mxu2 %v10984_v37  ;;  %v13733_v37 = vld [vmem:[#allocation34_spill] sm:$0xff] }
 0x3f5   : > { %13731 = vst [vmem:[#allocation10_spill] sm:$0xff] %v11121_v52  ;;  %4867 = vmatpush.bf16.msrb.mxu3 %v10986_v12  ;;  %v3696_v21 = vpop.f32.mrf.mxu2  ;;  %v3600_v53 = vpop.f32.mrf.mxu0  ;;  %v4016_v12 = vmax.f32 %v3599_v19, 0.0 }
 0x3f6   : > { %v3745_v24 = vpop.f32.mrf.mxu3  ;;  %v3649_v40 = vpop.f32.mrf.mxu1  ;;  %4721 = vmatpush.bf16.msrb.mxu0 %v10942_v33  ;;  %v3601_v44 = vadd.f32 %v3600_v53, %v10691_v31 }
 0x3f7   : > { %4770 = vmatpush.bf16.msrb.mxu1 %v10944_v3  ;;  %v3650_v25 = vadd.f32 %v3649_v40, %v10691_v31  ;;  %v3697_v3 = vadd.f32 %v3696_v21, %v10607_v22  ;;  %v3746_v54 = vadd.f32 %v3745_v24, %v10607_v22 }
 0x3f8   : > { %4819 = vmatpush.bf16.msrb.mxu2 %v13732_v28  ;;  %v4032_v14 = vmax.f32 %v3601_v44, 0.0 }
 0x3f9   : > { %4868 = vmatpush.bf16.msrb.mxu3 %v13733_v37  ;;  %v4033_v11 = vmax.f32 %v3650_v25, 0.0  ;;  %v4018_v13 = vmax.f32 %v3697_v3, 0.0  ;;  %v4019_v41 = vmax.f32 %v3746_v54, 0.0  ;;  %v13751_v54 = vld [vmem:[#allocation36_spill] sm:$0xff] }
 0x3fa   : > { %4722 = vmatpush.bf16.msrb.mxu0 %v13734_v39  ;;  %v11137_v10 = vpack.c.bf16 %v4032_v14, %v4016_v12  ;;  %v13749_v39 = vld [vmem:[#allocation35_spill] sm:$0xff] }
 0x3fb   : > { %4771 = vmatpush.bf16.msrb.mxu1 %v13735_v6  ;;  %v11139_v33 = vpack.c.bf16 %v4033_v11, %v4017_v56 }
 0x3fc   : > { %13736 = vst [vmem:[#allocation9_spill] sm:$0xff] %v11137_v10  ;;  %4820 = vmatpush.bf16.msrb.mxu2 %v13738_v47 }
 0x3fd   : > { %13737 = vst [vmem:[#allocation17_spill] sm:$0xff] %v11139_v33  ;;  %4869 = vmatpush.bf16.msrb.mxu3 %v13739_v26  ;;  %v3698_v43 = vpop.f32.mrf.mxu2  ;;  %v3603_v9 = vpop.f32.mrf.mxu0 }
 0x3fe   : > { %v3747_v15 = vpop.f32.mrf.mxu3  ;;  %v3699_v18 = vadd.f32 %v3698_v43, %v10691_v31  ;;  %v3652_v46 = vpop.f32.mrf.mxu1  ;;  %4723 = vmatpush.bf16.msrb.mxu0 %v13740_v32  ;;  %v3604_v36 = vadd.f32 %v3603_v9, %v13747_v63  ;;  %v13752_v9 = vld [vmem:[#allocation37_spill] sm:$0xff] }
 0x3ff   : > { %v3748_v45 = vadd.f32 %v3747_v15, %v10691_v31  ;;  %4772 = vmatpush.bf16.msrb.mxu1 %v13741_v8  ;;  %v3653_v2 = vadd.f32 %v3652_v46, %v13747_v63 }
 0x400   : > { %v4034_v7 = vmax.f32 %v3699_v18, 0.0  ;;  %4821 = vmatpush.bf16.msrb.mxu2 %v13742_v58  ;;  %3798 = vmatmul.bf16.gmra.mxu0 %v13744_v51  ;;  %v4048_v48 = vmax.f32 %v3604_v36, 0.0 }
 0x401   : > { %v4035_v23 = vmax.f32 %v3748_v45, 0.0  ;;  %4870 = vmatpush.bf16.msrb.mxu3 %v13743_v1  ;;  %3847 = vmatmul.bf16.gmra.mxu1 %v13744_v51  ;;  %v4049_v20 = vmax.f32 %v3653_v2, 0.0 }
 0x402   : > { %3896 = vmatmul.bf16.gmra.mxu2 %v13744_v51  ;;  %v11155_v61 = vpack.c.bf16 %v4034_v7, %v4018_v13 }
 0x403   : > { %3945 = vmatmul.bf16.gmra.mxu3 %v13744_v51  ;;  %v11157_v59 = vpack.c.bf16 %v4035_v23, %v4019_v41 }
 0x404   : > { %13745 = vst [vmem:[#allocation34_spill] sm:$0xff] %v11155_v61 }
 0x405   : > { %13746 = vst [vmem:[#allocation27_spill] sm:$0xff] %v11157_v59  ;;  %v3701_v0 = vpop.f32.mrf.mxu2  ;;  %v3605_v5 = vpop.f32.mrf.mxu0 }
 0x406   : > { %v3750_v38 = vpop.f32.mrf.mxu3  ;;  %v3654_v60 = vpop.f32.mrf.mxu1  ;;  %v3606_v17 = vadd.f32 %v3605_v5, %v13748_v30  ;;  %v3702_v21 = vadd.f32 %v3701_v0, %v13747_v63 }
 0x407   : > { %v3655_v55 = vadd.f32 %v3654_v60, %v13748_v30  ;;  %v3751_v24 = vadd.f32 %v3750_v38, %v13747_v63 }
 0x408   : > { %v4064_v29 = vmax.f32 %v3606_v17, 0.0  ;;  %v4050_v12 = vmax.f32 %v3702_v21, 0.0 }
 0x409   : > { %v4065_v16 = vmax.f32 %v3655_v55, 0.0  ;;  %v4051_v56 = vmax.f32 %v3751_v24, 0.0 }
 0x40a   : > { %v11163_v19 = vpack.c.bf16 %v4064_v29, %v4048_v48  ;;  %v13753_v29 = vld [vmem:[#allocation23_spill] sm:$0xff] }
 0x40b   : > { %v11165_v42 = vpack.c.bf16 %v4065_v16, %v4049_v20 }
 0x40d   : > { %v3703_v53 = vpop.f32.mrf.mxu2  ;;  %v3608_v28 = vpop.f32.mrf.mxu0 }
 0x40e   : > { %v3752_v40 = vpop.f32.mrf.mxu3  ;;  %v3704_v44 = vadd.f32 %v3703_v53, %v13748_v30  ;;  %v3657_v37 = vpop.f32.mrf.mxu1  ;;  %v3609_v47 = vadd.f32 %v3608_v28, %v13751_v54 }
 0x40f   : > { %v3753_v25 = vadd.f32 %v3752_v40, %v13748_v30  ;;  %v3658_v26 = vadd.f32 %v3657_v37, %v13751_v54 }
 0x410   : > { %v4066_v14 = vmax.f32 %v3704_v44, 0.0  ;;  %3803 = vmatmul.bf16.gmra.mxu0 %v13749_v39  ;;  %v4080_v8 = vmax.f32 %v3609_v47, 0.0 }
 0x411   : > { %v4067_v11 = vmax.f32 %v3753_v25, 0.0  ;;  %3852 = vmatmul.bf16.gmra.mxu1 %v13749_v39  ;;  %v4081_v13 = vmax.f32 %v3658_v26, 0.0 }
 0x412   : > { %3901 = vmatmul.bf16.gmra.mxu2 %v13749_v39  ;;  %v11175_v6 = vpack.c.bf16 %v4066_v14, %v4050_v12 }
 0x413   : > { %3950 = vmatmul.bf16.gmra.mxu3 %v13749_v39  ;;  %v11177_v3 = vpack.c.bf16 %v4067_v11, %v4051_v56  ;;  %v13754_v56 = vld [vmem:[#allocation14_spill] sm:$0xff] }
 0x415   : > { %13750 = vst [vmem:[#allocation30_spill] sm:$0xff] %v11177_v3  ;;  %v3706_v43 = vpop.f32.mrf.mxu2  ;;  %v3610_v18 = vpop.f32.mrf.mxu0 }
 0x416   : > { %v3755_v15 = vpop.f32.mrf.mxu3  ;;  %v3659_v45 = vpop.f32.mrf.mxu1  ;;  %v3611_v46 = vadd.f32 %v3610_v18, %v13752_v9  ;;  %v3707_v1 = vadd.f32 %v3706_v43, %v13751_v54 }
 0x417   : > { %v3660_v32 = vadd.f32 %v3659_v45, %v13752_v9  ;;  %v3756_v51 = vadd.f32 %v3755_v15, %v13751_v54  ;;  %v13755_v45 = vld [vmem:[#allocation38_spill] sm:$0xff] }
 0x418   : > { %v4096_v41 = vmax.f32 %v3611_v46, 0.0  ;;  %v4082_v17 = vmax.f32 %v3707_v1, 0.0 }
 0x419   : > { %v4097_v7 = vmax.f32 %v3660_v32, 0.0  ;;  %v4083_v55 = vmax.f32 %v3756_v51, 0.0 }
 0x41a   : > { %v11183_v23 = vpack.c.bf16 %v4096_v41, %v4080_v8 }
 0x41b   : > { %v11185_v58 = vpack.c.bf16 %v4097_v7, %v4081_v13 }
 0x41d   : > { %v3708_v36 = vpop.f32.mrf.mxu2  ;;  %v3613_v5 = vpop.f32.mrf.mxu0 }
 0x41e   : > { %v3757_v2 = vpop.f32.mrf.mxu3  ;;  %v3709_v0 = vadd.f32 %v3708_v36, %v13752_v9  ;;  %v3662_v60 = vpop.f32.mrf.mxu1  ;;  %v13756_v36 = vld [vmem:[#allocation22_spill] sm:$0xff] }
 0x41f   : > { %v3758_v38 = vadd.f32 %v3757_v2, %v13752_v9  ;;  %v13758_v9 = vld [vmem:[#allocation12_spill] sm:$0xff] }
 0x420   : > { %v4098_v48 = vmax.f32 %v3709_v0, 0.0  ;;  %3808 = vmatmul.bf16.gmra.mxu0 %v13753_v29 }
 0x421   : > { %v4099_v20 = vmax.f32 %v3758_v38, 0.0  ;;  %3857 = vmatmul.bf16.gmra.mxu1 %v13753_v29 }
 0x422   : > { %3906 = vmatmul.bf16.gmra.mxu2 %v13753_v29  ;;  %v11195_v16 = vpack.c.bf16 %v4098_v48, %v4082_v17 }
 0x423   : > { %3955 = vmatmul.bf16.gmra.mxu3 %v13753_v29  ;;  %v11197_v21 = vpack.c.bf16 %v4099_v20, %v4083_v55  ;;  %v13757_v20 = vld [vmem:[#allocation29_spill] sm:$0xff] }
 0x424   : > { %v11222_v29 = vadd.f32 %v3613_v5, %v13757_v20 }
 0x425   : > { %v3711_v24 = vpop.f32.mrf.mxu2  ;;  %v3615_v40 = vpop.f32.mrf.mxu0 }
 0x426   : > { %v3760_v53 = vpop.f32.mrf.mxu3  ;;  %v3664_v44 = vpop.f32.mrf.mxu1 }
 0x42d   : > { %v3713_v25 = vpop.f32.mrf.mxu2  ;;  %v3618_v37 = vpop.f32.mrf.mxu0 }
 0x42e   : > { %v3762_v28 = vpop.f32.mrf.mxu3  ;;  %v3667_v12 = vpop.f32.mrf.mxu1  ;;  %v11216_v38 = vadd.f32 %v3618_v37, %v13685_v34  ;;  %v11234_v37 = vadd.f32 %v3615_v40, %v13758_v9  ;;  %v11240_v54 = vadd.f32 %v3713_v25, %v13758_v9 }
 0x42f   : > { %v11219_v17 = vadd.f32 %v3667_v12, %v13685_v34  ;;  %v11237_v12 = vadd.f32 %v3664_v44, %v13758_v9  ;;  %v11243_v5 = vadd.f32 %v3762_v28, %v13758_v9  ;;  %v13760_v9 = vld [vmem:[#allocation33_spill] sm:$0xff] }
 0x430   : > { %3813 = vmatmul.bf16.gmra.mxu0 %v13754_v56 }
 0x431   : > { %3862 = vmatmul.bf16.gmra.mxu1 %v13754_v56 }
 0x432   : > { %3911 = vmatmul.bf16.gmra.mxu2 %v13754_v56 }
 0x433   : > { %3960 = vmatmul.bf16.gmra.mxu3 %v13754_v56  ;;  %v11225_v56 = vadd.f32 %v3662_v60, %v13757_v20 }
 0x435   : > { %v11203_v14 = vpop.f32.mrf.mxu2  ;;  %v3620_v39 = vpop.f32.mrf.mxu0 }
 0x436   : > { %v11205_v11 = vpop.f32.mrf.mxu3  ;;  %v3669_v47 = vpop.f32.mrf.mxu1 }
 0x43d   : > { %v3718_v26 = vpop.f32.mrf.mxu2  ;;  %v3623_v15 = vpop.f32.mrf.mxu0 }
 0x43e   : > { %v3767_v43 = vpop.f32.mrf.mxu3  ;;  %v3672_v18 = vpop.f32.mrf.mxu1  ;;  %v3624_v30 = vadd.f32 %v3623_v15, %v13690_v49 }
 0x440   : > { %3818 = vmatmul.bf16.gmra.mxu0 %v13755_v45 }
 0x441   : > { %3867 = vmatmul.bf16.gmra.mxu1 %v13755_v45 }
 0x442   : > { %3916 = vmatmul.bf16.gmra.mxu2 %v13755_v45 }
 0x443   : > { %3965 = vmatmul.bf16.gmra.mxu3 %v13755_v45  ;;  %v11228_v45 = vadd.f32 %v3711_v24, %v13757_v20 }
 0x445   : > { %v3721_v46 = vpop.f32.mrf.mxu2  ;;  %v3625_v8 = vpop.f32.mrf.mxu0 }
 0x446   : > { %v3770_v32 = vpop.f32.mrf.mxu3  ;;  %v3674_v13 = vpop.f32.mrf.mxu1 }
 0x44d   : > { %v3723_v41 = vpop.f32.mrf.mxu2  ;;  %v3628_v1 = vpop.f32.mrf.mxu0 }
 0x44e   : > { %v3772_v7 = vpop.f32.mrf.mxu3  ;;  %v3677_v51 = vpop.f32.mrf.mxu1 }
 0x450   : > { %3823 = vmatmul.bf16.gmra.mxu0 %v13756_v36 }
 0x451   : > { %3872 = vmatmul.bf16.gmra.mxu1 %v13756_v36 }
 0x452   : > { %3921 = vmatmul.bf16.gmra.mxu2 %v13756_v36 }
 0x453   : > { %3970 = vmatmul.bf16.gmra.mxu3 %v13756_v36  ;;  %v11231_v36 = vadd.f32 %v3760_v53, %v13757_v20  ;;  %v13759_v20 = vld [vmem:[#allocation28_spill] sm:$0xff]  ;;  %v3673_v53 = vadd.f32 %v3672_v18, %v13690_v49 }
 0x454   : > { %v11250_v40 = vadd.f32 %v3620_v39, %v13759_v20  ;;  %v11253_v44 = vadd.f32 %v3669_v47, %v13759_v20  ;;  %v11256_v25 = vadd.f32 %v3718_v26, %v13759_v20  ;;  %v11259_v28 = vadd.f32 %v3767_v43, %v13759_v20  ;;  %v13761_v47 = vld [vmem:[#allocation20_spill] sm:$0xff] }
 0x455   : > { %v3726_v2 = vpop.f32.mrf.mxu2  ;;  %v3630_v55 = vpop.f32.mrf.mxu0  ;;  %v3626_v52 = vadd.f32 %v3625_v8, %v13761_v47  ;;  %v3675_v26 = vadd.f32 %v3674_v13, %v13761_v47  ;;  %v3724_v15 = vadd.f32 %v3723_v41, %v13761_v47  ;;  %v3773_v18 = vadd.f32 %v3772_v7, %v13761_v47 }
 0x456   : > { %v3775_v0 = vpop.f32.mrf.mxu3  ;;  %v3679_v48 = vpop.f32.mrf.mxu1  ;;  %v3631_v60 = vadd.f32 %v3630_v55, %v13687_v4  ;;  %v3629_v55 = vadd.f32 %v3628_v1, %v13760_v9  ;;  %v3727_v39 = vadd.f32 %v3726_v2, %v13760_v9  ;;  %v11272_v1 = vld [vmem:[%s13298_s5] sm:$0xff]  ;;  %v3722_v13 = vadd.f32 %v3721_v46, %v13690_v49 }
 0x457   : > { %v3680_v24 = vadd.f32 %v3679_v48, %v13687_v4  ;;  %v3678_v48 = vadd.f32 %v3677_v51, %v13760_v9  ;;  %v3776_v63 = vadd.f32 %v3775_v0, %v13760_v9  ;;  %v4192_v10 = vmax.f32 %v3626_v52, 0.0 }
 0x458   : > { %v4224_v50 = vmax.f32 %v3631_v60, 0.0  ;;  %v3771_v60 = vadd.f32 %v3770_v32, %v13690_v49  ;;  %v4210_v62 = vmax.f32 %v3727_v39, 0.0  ;;  %v4193_v41 = vmax.f32 %v3675_v26, 0.0 }
 0x459   : > { %v4225_v27 = vmax.f32 %v3680_v24, 0.0  ;;  %v4208_v24 = vmax.f32 %v3629_v55, 0.0  ;;  %v4209_v9 = vmax.f32 %v3678_v48, 0.0  ;;  %v4211_v59 = vmax.f32 %v3776_v63, 0.0 }
 0x45a   : > { %v3717_v63 = vadd.f32 %v11203_v14, %v13685_v34  ;;  %v3766_v52 = vadd.f32 %v11205_v11, %v13685_v34  ;;  %v4161_v32 = vmax.f32 %v11253_v44, 0.0  ;;  %v4128_v26 = vmax.f32 %v11234_v37, 0.0 }
 0x45b   : > { %v4384_v3 = vpack.c.bf16 %v4224_v50, %v4208_v24  ;;  %v4385_v7 = vpack.c.bf16 %v4225_v27, %v4209_v9  ;;  %v4176_v50 = vmax.f32 %v3624_v30, 0.0  ;;  %v4177_v27 = vmax.f32 %v3673_v53, 0.0 }
 0x45c   : > { %v4160_v9 = vmax.f32 %v11250_v40, 0.0  ;;  %v4162_v30 = vmax.f32 %v11256_v25, 0.0  ;;  %v13762_v25 = vmax.f32 %v11216_v38, 0.0  ;;  %v4131_v24 = vmax.f32 %v11243_v5, 0.0 }
 0x45d   : > { %v3728_v43 = vpop.f32.mrf.mxu2  ;;  %v3789_v8 = vpop.f32.mrf.mxu0  ;;  %v4368_v48 = vpack.c.bf16 %v4192_v10, %v4176_v50  ;;  %v4369_v11 = vpack.c.bf16 %v4193_v41, %v4177_v27  ;;  %v4146_v10 = vmax.f32 %v3717_v63, 0.0  ;;  %v4115_v63 = vmax.f32 %v11231_v36, 0.0  ;;  %v11317_v27 = vld [vmem:[%s13298_s5 + $0x8] sm:$0xff] }
 0x45e   : > { %v3777_v20 = vpop.f32.mrf.mxu3  ;;  %v3729_v51 = vadd.f32 %v3728_v43, %v13687_v4  ;;  %v3838_v0 = vpop.f32.mrf.mxu1  ;;  %v4195_v43 = vmax.f32 %v3773_v18, 0.0 }
 0x45f   : > { %v3778_v2 = vadd.f32 %v3777_v20, %v13687_v4  ;;  %v4194_v20 = vmax.f32 %v3724_v15, 0.0  ;;  %v4354_v41 = vpack.c.bf16 %v4162_v30, %v4146_v10 }
 0x460   : > { %v4226_v61 = vmax.f32 %v3729_v51, 0.0  ;;  %4528 = vmatmul.bf16.vlgmr.msra.gmra.mxu0 %v11272_v1  ;;  %v4147_v51 = vmax.f32 %v3766_v52, 0.0 }
 0x461   : > { %v4227_v33 = vmax.f32 %v3778_v2, 0.0  ;;  %4577 = vmatmul.bf16.vlgmr.msra.gmra.mxu1 %v11272_v1  ;;  %4912 = vmatpush.bf16.msra.mxu0 %v4384_v3  ;;  %v4163_v3 = vmax.f32 %v11259_v28, 0.0  ;;  %v4352_v28 = vpack.c.bf16 %v4160_v9, %v13762_v25  ;;  %v13763_v2 = vmax.f32 %v11219_v17, 0.0 }
 0x462   : > { %v4386_v47 = vpack.c.bf16 %v4226_v61, %v4210_v62  ;;  %4626 = vmatmul.bf16.vlgmr.msra.gmra.mxu2 %v11272_v1  ;;  %4961 = vmatpush.bf16.msra.mxu1 %v4385_v7  ;;  %v4178_v62 = vmax.f32 %v3722_v13, 0.0  ;;  %v3790_v61 = vadd.f32 %v3789_v8, %v10647_v35 }
 0x463   : > { %v4387_v46 = vpack.c.bf16 %v4227_v33, %v4211_v59  ;;  %4675 = vmatmul.bf16.vlgmr.msra.gmra.mxu3 %v11272_v1  ;;  %v4179_v33 = vmax.f32 %v3771_v60, 0.0  ;;  %v3839_v59 = vadd.f32 %v3838_v0, %v10647_v35  ;;  %v4353_v8 = vpack.c.bf16 %v4161_v32, %v13763_v2  ;;  %v11354_v2 = vld [vmem:[%s13298_s5 + $0x10] sm:$0xff] }
 0x464   : > { %5010 = vmatpush.bf16.msra.mxu2 %v4386_v47  ;;  %v4370_v39 = vpack.c.bf16 %v4194_v20, %v4178_v62  ;;  %v4129_v47 = vmax.f32 %v11237_v12, 0.0  ;;  %v3988_v0 = vmax.f32 %v3790_v61, 0.0  ;;  %v4130_v60 = vmax.f32 %v11240_v54, 0.0  ;;  %13773 = vst [vmem:[#allocation25_spill] sm:$0xff] %v11354_v2 }
 0x465   : > { %5059 = vmatpush.bf16.msra.mxu3 %v4387_v46  ;;  %v3887_v14 = vpop.f32.mrf.mxu2  ;;  %v3791_v53 = vpop.f32.mrf.mxu0  ;;  %v4371_v44 = vpack.c.bf16 %v4195_v43, %v4179_v33  ;;  %4913 = vmatpush.bf16.msra.mxu0 %v4368_v48  ;;  %v3989_v37 = vmax.f32 %v3839_v59, 0.0  ;;  %v4355_v7 = vpack.c.bf16 %v4163_v3, %v4147_v51  ;;  %v4112_v20 = vmax.f32 %v11222_v29, 0.0  ;;  %v13771_v51 = vld [vmem:[#allocation34_spill] sm:$0xff] }
 0x466   : > { %v3936_v55 = vpop.f32.mrf.mxu3  ;;  %v3840_v40 = vpop.f32.mrf.mxu1  ;;  %4962 = vmatpush.bf16.msra.mxu1 %v4369_v11  ;;  %v3792_v15 = vadd.f32 %v3791_v53, %v10649_v57  ;;  %v4113_v43 = vmax.f32 %v11225_v56, 0.0  ;;  %v4114_v46 = vmax.f32 %v11228_v45, 0.0  ;;  %v3888_v54 = vadd.f32 %v3887_v14, %v10647_v35 }
 0x467   : > { %v3841_v18 = vadd.f32 %v3840_v40, %v10649_v57  ;;  %v3937_v5 = vadd.f32 %v3936_v55, %v10647_v35  ;;  %v4336_v50 = vpack.c.bf16 %v4128_v26, %v4112_v20  ;;  %v4339_v33 = vpack.c.bf16 %v4131_v24, %v4115_v63  ;;  %v13776_v20 = vld [vmem:[#allocation16_spill] sm:$0xff]  ;;  %v13780_v63 = vld [vmem:[#allocation13_spill] sm:$0xff] }
 0x468   : > { %5011 = vmatpush.bf16.msra.mxu2 %v4370_v39  ;;  %v4004_v13 = vmax.f32 %v3792_v15, 0.0  ;;  %v4337_v56 = vpack.c.bf16 %v4129_v47, %v4113_v43  ;;  %v4338_v62 = vpack.c.bf16 %v4130_v60, %v4114_v46  ;;  %v3990_v35 = vmax.f32 %v3888_v54, 0.0  ;;  %v13769_v47 = vld [vmem:[#allocation9_spill] sm:$0xff]  ;;  %v13777_v43 = vld [vmem:[#allocation10_spill] sm:$0xff] }
 0x469   : > { %5060 = vmatpush.bf16.msra.mxu3 %v4371_v44  ;;  %v4005_v12 = vmax.f32 %v3841_v18, 0.0  ;;  %4914 = vmatpush.bf16.msra.mxu0 %v4352_v28  ;;  %v3991_v61 = vmax.f32 %v3937_v5, 0.0  ;;  %v13770_v15 = vld [vmem:[#allocation17_spill] sm:$0xff] }
 0x46a   : > { %4963 = vmatpush.bf16.msra.mxu1 %v4353_v8  ;;  %v11306_v38 = vpack.c.bf16 %v4004_v13, %v3988_v0 }
 0x46b   : > { %v11308_v17 = vpack.c.bf16 %v4005_v12, %v3989_v37  ;;  %v13774_v12 = vld [vmem:[#allocation19_spill] sm:$0xff] }
 0x46c   : > { %13764 = vst [vmem:[#allocation32_spill] sm:$0xff] %v11306_v38  ;;  %5012 = vmatpush.bf16.msra.mxu2 %v4354_v41 }
 0x46d   : > { %13765 = vst [vmem:[#allocation21_spill] sm:$0xff] %v11308_v17  ;;  %5061 = vmatpush.bf16.msra.mxu3 %v4355_v7  ;;  %v3889_v52 = vpop.f32.mrf.mxu2  ;;  %v3794_v36 = vpop.f32.mrf.mxu0  ;;  %4915 = vmatpush.bf16.msra.mxu0 %v4336_v50 }
 0x46e   : > { %v3938_v29 = vpop.f32.mrf.mxu3  ;;  %v3890_v9 = vadd.f32 %v3889_v52, %v10649_v57  ;;  %v3843_v32 = vpop.f32.mrf.mxu1  ;;  %4964 = vmatpush.bf16.msra.mxu1 %v4337_v56  ;;  %v3795_v48 = vadd.f32 %v3794_v36, %v10607_v22 }
 0x46f   : > { %v3939_v45 = vadd.f32 %v3938_v29, %v10649_v57  ;;  %v3844_v11 = vadd.f32 %v3843_v32, %v10607_v22 }
 0x470   : > { %v4006_v59 = vmax.f32 %v3890_v9, 0.0  ;;  %5013 = vmatpush.bf16.msra.mxu2 %v4338_v62  ;;  %4533 = vmatmul.bf16.gmra.mxu0 %v11317_v27  ;;  %v13781_v9 = vld [vmem:[#allocation15_spill] sm:$0xff] }
 0x471   : > { %v4007_v14 = vmax.f32 %v3939_v45, 0.0  ;;  %5062 = vmatpush.bf16.msra.mxu3 %v4339_v33  ;;  %4582 = vmatmul.bf16.gmra.mxu1 %v11317_v27  ;;  %v4021_v39 = vmax.f32 %v3844_v11, 0.0 }
 0x472   : > { %4631 = vmatmul.bf16.gmra.mxu2 %v11317_v27  ;;  %v11325_v57 = vpack.c.bf16 %v4006_v59, %v3990_v35  ;;  %4916 = vmatpush.bf16.msra.mxu0 %v11183_v23 }
 0x473   : > { %4680 = vmatmul.bf16.gmra.mxu3 %v11317_v27  ;;  %v11327_v55 = vpack.c.bf16 %v4007_v14, %v3991_v61  ;;  %4965 = vmatpush.bf16.msra.mxu1 %v11185_v58 }
 0x474   : > { %13766 = vst [vmem:[#allocation18_spill] sm:$0xff] %v11325_v57  ;;  %5014 = vmatpush.bf16.msra.mxu2 %v11195_v16  ;;  %v13768_v16 = vld [vmem:[#allocation30_spill] sm:$0xff] }
 0x475   : > { %13767 = vst [vmem:[#allocation24_spill] sm:$0xff] %v11327_v55  ;;  %5063 = vmatpush.bf16.msra.mxu3 %v11197_v21  ;;  %v3892_v30 = vpop.f32.mrf.mxu2  ;;  %v3796_v53 = vpop.f32.mrf.mxu0  ;;  %v4020_v21 = vmax.f32 %v3795_v48, 0.0 }
 0x476   : > { %v3941_v3 = vpop.f32.mrf.mxu3  ;;  %v3845_v40 = vpop.f32.mrf.mxu1  ;;  %4917 = vmatpush.bf16.msra.mxu0 %v11163_v19  ;;  %v3797_v23 = vadd.f32 %v3796_v53, %v10691_v31 }
 0x477   : > { %4966 = vmatpush.bf16.msra.mxu1 %v11165_v42  ;;  %v3846_v58 = vadd.f32 %v3845_v40, %v10691_v31  ;;  %v3893_v42 = vadd.f32 %v3892_v30, %v10607_v22  ;;  %v3942_v10 = vadd.f32 %v3941_v3, %v10607_v22  ;;  %v13775_v22 = vld [vmem:[#allocation11_spill] sm:$0xff] }
 0x478   : > { %5015 = vmatpush.bf16.msra.mxu2 %v11175_v6  ;;  %v4036_v44 = vmax.f32 %v3797_v23, 0.0  ;;  %v13772_v6 = vld [vmem:[#allocation27_spill] sm:$0xff] }
 0x479   : > { %5064 = vmatpush.bf16.msra.mxu3 %v13768_v16  ;;  %v4037_v26 = vmax.f32 %v3846_v58, 0.0  ;;  %v4022_v60 = vmax.f32 %v3893_v42, 0.0  ;;  %v4023_v24 = vmax.f32 %v3942_v10, 0.0  ;;  %v11383_v3 = vld [vmem:[%s13298_s5 + $0x18] sm:$0xff] }
 0x47a   : > { %4918 = vmatpush.bf16.msra.mxu0 %v13769_v47  ;;  %v11343_v18 = vpack.c.bf16 %v4036_v44, %v4020_v21  ;;  %13782 = vst [vmem:[#allocation35_spill] sm:$0xff] %v11383_v3 }
 0x47b   : > { %4967 = vmatpush.bf16.msra.mxu1 %v13770_v15  ;;  %v11345_v19 = vpack.c.bf16 %v4037_v26, %v4021_v39  ;;  %v13783_v15 = vld [vmem:[#allocation36_spill] sm:$0xff] }
 0x47c   : > { %5016 = vmatpush.bf16.msra.mxu2 %v13771_v51 }
 0x47d   : > { %5065 = vmatpush.bf16.msra.mxu3 %v13772_v6  ;;  %v3894_v25 = vpop.f32.mrf.mxu2  ;;  %v3799_v37 = vpop.f32.mrf.mxu0 }
 0x47e   : > { %v3943_v28 = vpop.f32.mrf.mxu3  ;;  %v3895_v8 = vadd.f32 %v3894_v25, %v10691_v31  ;;  %v3848_v13 = vpop.f32.mrf.mxu1  ;;  %4919 = vmatpush.bf16.msra.mxu0 %v13774_v12  ;;  %v3800_v54 = vadd.f32 %v3799_v37, %v13780_v63 }
 0x47f   : > { %v3944_v0 = vadd.f32 %v3943_v28, %v10691_v31  ;;  %4968 = vmatpush.bf16.msra.mxu1 %v13775_v22  ;;  %v3849_v5 = vadd.f32 %v3848_v13, %v13780_v63 }
 0x480   : > { %v4038_v41 = vmax.f32 %v3895_v8, 0.0  ;;  %5017 = vmatpush.bf16.msra.mxu2 %v13776_v20  ;;  %4538 = vmatmul.bf16.gmra.mxu0 %v11354_v2  ;;  %v4052_v32 = vmax.f32 %v3800_v54, 0.0  ;;  %v13784_v8 = vld [vmem:[#allocation37_spill] sm:$0xff] }
 0x481   : > { %v4039_v7 = vmax.f32 %v3944_v0, 0.0  ;;  %5066 = vmatpush.bf16.msra.mxu3 %v13777_v43  ;;  %4587 = vmatmul.bf16.gmra.mxu1 %v11354_v2  ;;  %v4053_v62 = vmax.f32 %v3849_v5, 0.0  ;;  %v11408_v54 = vld [vmem:[%s13298_s5 + $0x20] sm:$0xff] }
 0x482   : > { %4636 = vmatmul.bf16.gmra.mxu2 %v11354_v2  ;;  %v11366_v31 = vpack.c.bf16 %v4038_v41, %v4022_v60  ;;  %13785 = vst [vmem:[#allocation23_spill] sm:$0xff] %v11408_v54 }
 0x483   : > { %4685 = vmatmul.bf16.gmra.mxu3 %v11354_v2  ;;  %v11368_v46 = vpack.c.bf16 %v4039_v7, %v4023_v24 }
 0x484   : > { %13778 = vst [vmem:[#allocation26_spill] sm:$0xff] %v11366_v31 }
 0x485   : > { %13779 = vst [vmem:[#allocation31_spill] sm:$0xff] %v11368_v46  ;;  %v3897_v52 = vpop.f32.mrf.mxu2  ;;  %v3801_v50 = vpop.f32.mrf.mxu0 }
 0x486   : > { %v3946_v29 = vpop.f32.mrf.mxu3  ;;  %v3850_v56 = vpop.f32.mrf.mxu1  ;;  %v3802_v45 = vadd.f32 %v3801_v50, %v13781_v9  ;;  %v3898_v14 = vadd.f32 %v3897_v52, %v13780_v63 }
 0x487   : > { %v3851_v36 = vadd.f32 %v3850_v56, %v13781_v9  ;;  %v3947_v48 = vadd.f32 %v3946_v29, %v13780_v63 }
 0x488   : > { %v4068_v33 = vmax.f32 %v3802_v45, 0.0  ;;  %v4054_v16 = vmax.f32 %v3898_v14, 0.0 }
 0x489   : > { %v4069_v35 = vmax.f32 %v3851_v36, 0.0  ;;  %v4055_v21 = vmax.f32 %v3947_v48, 0.0 }
 0x48a   : > { %v11374_v61 = vpack.c.bf16 %v4068_v33, %v4052_v32 }
 0x48b   : > { %v11376_v59 = vpack.c.bf16 %v4069_v35, %v4053_v62 }
 0x48d   : > { %v3899_v11 = vpop.f32.mrf.mxu2  ;;  %v3804_v23 = vpop.f32.mrf.mxu0 }
 0x48e   : > { %v3948_v30 = vpop.f32.mrf.mxu3  ;;  %v3900_v53 = vadd.f32 %v3899_v11, %v13781_v9  ;;  %v3853_v58 = vpop.f32.mrf.mxu1  ;;  %v3805_v42 = vadd.f32 %v3804_v23, %v13783_v15 }
 0x48f   : > { %v3949_v40 = vadd.f32 %v3948_v30, %v13781_v9  ;;  %v3854_v10 = vadd.f32 %v3853_v58, %v13783_v15  ;;  %v11429_v58 = vpop.permute.xlu2 %4464 }
 0x490   : > { %v4070_v39 = vmax.f32 %v3900_v53, 0.0  ;;  %4543 = vmatmul.bf16.gmra.mxu0 %v11383_v3  ;;  %v4084_v13 = vmax.f32 %v3805_v42, 0.0  ;;  %v11427_v53 = vld [vmem:[%s13298_s5 + $0x28] sm:$0xff]  ;;  %13787 = vst [vmem:[#allocation38_spill] sm:$0xff] %v11429_v58 }
 0x491   : > { %v4071_v44 = vmax.f32 %v3949_v40, 0.0  ;;  %4592 = vmatmul.bf16.gmra.mxu1 %v11383_v3  ;;  %v4085_v12 = vmax.f32 %v3854_v10, 0.0  ;;  %13786 = vst [vmem:[#allocation14_spill] sm:$0xff] %v11427_v53 }
 0x492   : > { %4641 = vmatmul.bf16.gmra.mxu2 %v11383_v3  ;;  %v11391_v26 = vpack.c.bf16 %v4070_v39, %v4054_v16 }
 0x493   : > { %4690 = vmatmul.bf16.gmra.mxu3 %v11383_v3  ;;  %v11393_v47 = vpack.c.bf16 %v4071_v44, %v4055_v21 }
 0x495   : > { %v3902_v51 = vpop.f32.mrf.mxu2  ;;  %v3806_v25 = vpop.f32.mrf.mxu0 }
 0x496   : > { %v3951_v6 = vpop.f32.mrf.mxu3  ;;  %v3855_v28 = vpop.f32.mrf.mxu1  ;;  %v3807_v0 = vadd.f32 %v3806_v25, %v13784_v8  ;;  %v3903_v7 = vadd.f32 %v3902_v51, %v13783_v15 }
 0x497   : > { %v3856_v37 = vadd.f32 %v3855_v28, %v13784_v8  ;;  %v3952_v20 = vadd.f32 %v3951_v6, %v13783_v15  ;;  %v11439_v15 = vpop.permute.xlu1 %4454  ;;  %v11441_v42 = vpop.permute.xlu2 %4459  ;;  %v11446_v6 = vld [vmem:[%s13298_s5 + $0x30] sm:$0xff] }
 0x498   : > { %v4100_v22 = vmax.f32 %v3807_v0, 0.0  ;;  %v4086_v56 = vmax.f32 %v3903_v7, 0.0  ;;  %13788 = vst [vmem:[#allocation22_spill] sm:$0xff] %v11439_v15 }
 0x499   : > { %v4101_v60 = vmax.f32 %v3856_v37, 0.0  ;;  %v4087_v9 = vmax.f32 %v3952_v20, 0.0  ;;  %13789 = vst [vmem:[#allocation30_spill] sm:$0xff] %v11441_v42 }
 0x49a   : > { %v11399_v24 = vpack.c.bf16 %v4100_v22, %v4084_v13  ;;  %13790 = vst [vmem:[#allocation9_spill] sm:$0xff] %v11446_v6 }
 0x49b   : > { %v11401_v41 = vpack.c.bf16 %v4101_v60, %v4085_v12  ;;  %v11456_v60 = vpop.permute.xlu0 %4469 }
 0x49c   : > { %13793 = vst [vmem:[#allocation27_spill] sm:$0xff] %v11456_v60  ;;  %v13798_v60 = vld [vmem:[#allocation29_spill] sm:$0xff] }
 0x49d   : > { %v3904_v43 = vpop.f32.mrf.mxu2  ;;  %v11412_v29 = vpop.f32.mrf.mxu0 }
 0x49e   : > { %v3953_v63 = vpop.f32.mrf.mxu3  ;;  %v3905_v5 = vadd.f32 %v3904_v43, %v13784_v8  ;;  %v11414_v50 = vpop.f32.mrf.mxu1  ;;  %v11461_v43 = vld [vmem:[%s13298_s5 + $0x38] sm:$0xff] }
 0x49f   : > { %v3954_v52 = vadd.f32 %v3953_v63, %v13784_v8  ;;  %v11452_v8 = vpop.permute.xlu1 %4449  ;;  %v11454_v0 = vpop.permute.xlu2 %4434  ;;  %13794 = vst [vmem:[#allocation19_spill] sm:$0xff] %v11461_v43 }
 0x4a0   : > { %v4102_v45 = vmax.f32 %v3905_v5, 0.0  ;;  %4548 = vmatmul.bf16.gmra.mxu0 %v11408_v54  ;;  %13791 = vst [vmem:[#allocation17_spill] sm:$0xff] %v11452_v8 }
 0x4a1   : > { %v4103_v36 = vmax.f32 %v3954_v52, 0.0  ;;  %4597 = vmatmul.bf16.gmra.mxu1 %v11408_v54  ;;  %13792 = vst [vmem:[#allocation34_spill] sm:$0xff] %v11454_v0  ;;  %v11481_v0 = vadd.f32 %v11412_v29, %v13798_v60 }
 0x4a2   : > { %4646 = vmatmul.bf16.gmra.mxu2 %v11408_v54  ;;  %v11420_v32 = vpack.c.bf16 %v4102_v45, %v4086_v56 }
 0x4a3   : > { %4695 = vmatmul.bf16.gmra.mxu3 %v11408_v54  ;;  %v11422_v62 = vpack.c.bf16 %v4103_v36, %v4087_v9  ;;  %v11471_v9 = vpop.permute.xlu0 %4444 }
 0x4a4   : > { %13797 = vst [vmem:[#allocation10_spill] sm:$0xff] %v11471_v9 }
 0x4a5   : > { %v3907_v33 = vpop.f32.mrf.mxu2  ;;  %v3811_v14 = vpop.f32.mrf.mxu0 }
 0x4a6   : > { %v3956_v35 = vpop.f32.mrf.mxu3  ;;  %v3860_v48 = vpop.f32.mrf.mxu1  ;;  %v11488_v9 = vadd.f32 %v3907_v33, %v13798_v60 }
 0x4a7   : > { %v11463_v52 = vpop.permute.xlu1 %4424  ;;  %v11465_v56 = vpop.permute.xlu2 %4429 }
 0x4a8   : > { %13795 = vst [vmem:[#allocation11_spill] sm:$0xff] %v11463_v52 }
 0x4a9   : > { %13796 = vst [vmem:[#allocation16_spill] sm:$0xff] %v11465_v56 }
 0x4ad   : > { %v3909_v11 = vpop.f32.mrf.mxu2  ;;  %v3814_v40 = vpop.f32.mrf.mxu0 }
 0x4ae   : > { %v3958_v30 = vpop.f32.mrf.mxu3  ;;  %v3863_v23 = vpop.f32.mrf.mxu1  ;;  %v11474_v42 = vadd.f32 %v3814_v40, %v13685_v34  ;;  %v13799_v40 = vld [vmem:[#allocation12_spill] sm:$0xff] }
 0x4af   : > { %v11477_v15 = vadd.f32 %v3863_v23, %v13685_v34  ;;  %v11497_v23 = vadd.f32 %v3860_v48, %v13799_v40  ;;  %v11500_v54 = vadd.f32 %v3909_v11, %v13799_v40  ;;  %v11503_v29 = vadd.f32 %v3958_v30, %v13799_v40  ;;  %v11507_v56 = vpop.permute.xlu1 %4419  ;;  %v13801_v48 = vld [vmem:[#allocation28_spill] sm:$0xff] }
 0x4b0   : > { %4553 = vmatmul.bf16.gmra.mxu0 %v11427_v53  ;;  %13800 = vst [vmem:[#allocation13_spill] sm:$0xff] %v11507_v56 }
 0x4b1   : > { %4602 = vmatmul.bf16.gmra.mxu1 %v11427_v53 }
 0x4b2   : > { %4651 = vmatmul.bf16.gmra.mxu2 %v11427_v53 }
 0x4b3   : > { %4700 = vmatmul.bf16.gmra.mxu3 %v11427_v53  ;;  %v11494_v53 = vadd.f32 %v3811_v14, %v13799_v40 }
 0x4b5   : > { %v11435_v16 = vpop.f32.mrf.mxu2  ;;  %v3816_v39 = vpop.f32.mrf.mxu0 }
 0x4b6   : > { %v11437_v21 = vpop.f32.mrf.mxu3  ;;  %v3865_v44 = vpop.f32.mrf.mxu1  ;;  %v11514_v52 = vadd.f32 %v3816_v39, %v13801_v48 }
 0x4b7   : > { %v11517_v11 = vadd.f32 %v3865_v44, %v13801_v48  ;;  %v13803_v44 = vld [vmem:[#allocation20_spill] sm:$0xff] }
 0x4bd   : > { %v3914_v10 = vpop.f32.mrf.mxu2  ;;  %v3819_v25 = vpop.f32.mrf.mxu0 }
 0x4be   : > { %v3963_v51 = vpop.f32.mrf.mxu3  ;;  %v3868_v28 = vpop.f32.mrf.mxu1  ;;  %v11520_v30 = vadd.f32 %v3914_v10, %v13801_v48  ;;  %v3820_v14 = vadd.f32 %v3819_v25, %v13690_v49 }
 0x4c0   : > { %4558 = vmatmul.bf16.gmra.mxu0 %v11446_v6 }
 0x4c1   : > { %4607 = vmatmul.bf16.gmra.mxu1 %v11446_v6 }
 0x4c2   : > { %4656 = vmatmul.bf16.gmra.mxu2 %v11446_v6 }
 0x4c3   : > { %4705 = vmatmul.bf16.gmra.mxu3 %v11446_v6  ;;  %v11485_v6 = vadd.f32 %v11414_v50, %v13798_v60 }
 0x4c5   : > { %v3917_v37 = vpop.f32.mrf.mxu2  ;;  %v3821_v12 = vpop.f32.mrf.mxu0 }
 0x4c6   : > { %v3966_v13 = vpop.f32.mrf.mxu3  ;;  %v3870_v22 = vpop.f32.mrf.mxu1  ;;  %v3822_v2 = vadd.f32 %v3821_v12, %v13803_v44 }
 0x4c7   : > { %v3871_v10 = vadd.f32 %v3870_v22, %v13803_v44  ;;  %v3967_v12 = vadd.f32 %v3966_v13, %v13690_v49  ;;  %v11549_v13 = vpop.permute.xlu1 %4394 }
 0x4c8   : > { %v4196_v31 = vmax.f32 %v3822_v2, 0.0  ;;  %v3962_v2 = vadd.f32 %v11437_v21, %v13685_v34 }
 0x4cd   : > { %v3919_v7 = vpop.f32.mrf.mxu2  ;;  %v3824_v63 = vpop.f32.mrf.mxu0 }
 0x4ce   : > { %v3968_v20 = vpop.f32.mrf.mxu3  ;;  %v3873_v5 = vpop.f32.mrf.mxu1 }
 0x4d0   : > { %4563 = vmatmul.bf16.gmra.mxu0 %v11461_v43 }
 0x4d1   : > { %4612 = vmatmul.bf16.gmra.mxu1 %v11461_v43 }
 0x4d2   : > { %4661 = vmatmul.bf16.gmra.mxu2 %v11461_v43 }
 0x4d3   : > { %4710 = vmatmul.bf16.gmra.mxu3 %v11461_v43  ;;  %v11491_v43 = vadd.f32 %v3956_v35, %v13798_v60  ;;  %v11509_v35 = vpop.permute.xlu2 %4404  ;;  %v3869_v60 = vadd.f32 %v3868_v28, %v13690_v49 }
 0x4d5   : > { %v3922_v45 = vpop.f32.mrf.mxu2  ;;  %v3826_v58 = vpop.f32.mrf.mxu0 }
 0x4d6   : > { %v3971_v36 = vpop.f32.mrf.mxu3  ;;  %v3875_v8 = vpop.f32.mrf.mxu1  ;;  %v3827_v50 = vadd.f32 %v3826_v58, %v13687_v4  ;;  %v11523_v58 = vadd.f32 %v3963_v51, %v13801_v48 }
 0x4d7   : > { %v3876_v33 = vadd.f32 %v3875_v8, %v13687_v4  ;;  %v13802_v8 = vld [vmem:[#allocation33_spill] sm:$0xff] }
 0x4d8   : > { %v3825_v40 = vadd.f32 %v3824_v63, %v13802_v8  ;;  %v3874_v3 = vadd.f32 %v3873_v5, %v13802_v8  ;;  %v3923_v39 = vadd.f32 %v3922_v45, %v13802_v8  ;;  %v3972_v56 = vadd.f32 %v3971_v36, %v13802_v8 }
 0x4d9   : > { %v4228_v55 = vmax.f32 %v3827_v50, 0.0  ;;  %v4229_v57 = vmax.f32 %v3876_v33, 0.0  ;;  %v3920_v63 = vadd.f32 %v3919_v7, %v13803_v44  ;;  %v3969_v5 = vadd.f32 %v3968_v20, %v13803_v44  ;;  %v11539_v50 = vpop.permute.xlu0 %4439 }
 0x4da   : > { %v3918_v36 = vadd.f32 %v3917_v37, %v13690_v49  ;;  %v4212_v8 = vmax.f32 %v3825_v40, 0.0  ;;  %v4213_v22 = vmax.f32 %v3874_v3, 0.0  ;;  %13804 = vst [vmem:[#allocation15_spill] sm:$0xff] %v11539_v50  ;;  %v4214_v33 = vmax.f32 %v3923_v39, 0.0 }
 0x4db   : > { %v4215_v38 = vmax.f32 %v3972_v56, 0.0  ;;  %v4197_v20 = vmax.f32 %v3871_v10, 0.0  ;;  %v4199_v37 = vmax.f32 %v3969_v5, 0.0  ;;  %v3913_v3 = vadd.f32 %v11435_v16, %v13685_v34  ;;  %v11551_v56 = vpop.permute.xlu2 %4399 }
 0x4dc   : > { %v4388_v44 = vpack.c.bf16 %v4228_v55, %v4212_v8  ;;  %v4180_v55 = vmax.f32 %v3820_v14, 0.0  ;;  %v4182_v40 = vmax.f32 %v3918_v36, 0.0  ;;  %v4166_v10 = vmax.f32 %v11520_v30, 0.0 }
 0x4dd   : > { %v3924_v51 = vpop.f32.mrf.mxu2  ;;  %v4529_v17 = vpop.f32.mrf.mxu0  ;;  %v4133_v36 = vmax.f32 %v11497_v23, 0.0  ;;  %v13805_v30 = vmax.f32 %v11474_v42, 0.0  ;;  %v13806_v8 = vmax.f32 %v11477_v15, 0.0  ;;  %v4117_v42 = vmax.f32 %v11485_v6, 0.0 }
 0x4de   : > { %v3973_v48 = vpop.f32.mrf.mxu3  ;;  %v3925_v25 = vadd.f32 %v3924_v51, %v13687_v4  ;;  %v4578_v45 = vpop.f32.mrf.mxu1  ;;  %v4389_v51 = vpack.c.bf16 %v4229_v57, %v4213_v22  ;;  %v4181_v57 = vmax.f32 %v3869_v60, 0.0  ;;  %v4530_v16 = vadd.f32 %v4529_v17, %v11549_v13 }
 0x4df   : > { %v3974_v28 = vadd.f32 %v3973_v48, %v13687_v4  ;;  %v4198_v4 = vmax.f32 %v3920_v63, 0.0  ;;  %v4579_v34 = vadd.f32 %v4578_v45, %v11549_v13  ;;  %v4372_v60 = vpack.c.bf16 %v4196_v31, %v4180_v55 }
 0x4e0   : > { %v4230_v46 = vmax.f32 %v3925_v25, 0.0  ;;  %4724 = vmatmul.bf16.vlgmr.msrb.gmra.mxu0 %v11272_v1  ;;  %v4373_v39 = vpack.c.bf16 %v4197_v20, %v4181_v57  ;;  %v4167_v63 = vmax.f32 %v11523_v58, 0.0  ;;  %v4150_v31 = vmax.f32 %v3913_v3, 0.0 }
 0x4e1   : > { %v4231_v7 = vmax.f32 %v3974_v28, 0.0  ;;  %4773 = vmatmul.bf16.vlgmr.msrb.gmra.mxu1 %v11272_v1  ;;  %5108 = vmatpush.bf16.msrb.mxu0 %v4388_v44  ;;  %v4374_v25 = vpack.c.bf16 %v4198_v4, %v4182_v40  ;;  %v4132_v28 = vmax.f32 %v11494_v53, 0.0  ;;  %v5305_v53 = vmax.f32 %v4579_v34, 0.0  ;;  %v11567_v20 = vpop.permute.xlu0 %4414 }
 0x4e2   : > { %v4390_v48 = vpack.c.bf16 %v4230_v46, %v4214_v33  ;;  %4822 = vmatmul.bf16.vlgmr.msrb.gmra.mxu2 %v11272_v1  ;;  %5157 = vmatpush.bf16.msrb.mxu1 %v4389_v51  ;;  %v4165_v46 = vmax.f32 %v11517_v11, 0.0  ;;  %v5304_v33 = vmax.f32 %v4530_v16, 0.0  ;;  %13807 = vst [vmem:[#allocation36_spill] sm:$0xff] %v11567_v20  ;;  %v4134_v44 = vmax.f32 %v11500_v54, 0.0 }
 0x4e3   : > { %v4391_v49 = vpack.c.bf16 %v4231_v7, %v4215_v38  ;;  %4871 = vmatmul.bf16.vlgmr.msrb.gmra.mxu3 %v11272_v1  ;;  %v4164_v38 = vmax.f32 %v11514_v52, 0.0  ;;  %v4183_v1 = vmax.f32 %v3967_v12, 0.0  ;;  %v4151_v12 = vmax.f32 %v3962_v2, 0.0 }
 0x4e4   : > { %5206 = vmatpush.bf16.msrb.mxu2 %v4390_v48  ;;  %v4357_v22 = vpack.c.bf16 %v4165_v46, %v13806_v8  ;;  %v4135_v51 = vmax.f32 %v11503_v29, 0.0  ;;  %v4358_v4 = vpack.c.bf16 %v4166_v10, %v4150_v31  ;;  %v4116_v48 = vmax.f32 %v11481_v0, 0.0  ;;  %v13814_v31 = vld [vmem:[#allocation26_spill] sm:$0xff]  ;;  %v13816_v8 = vld [vmem:[#allocation32_spill] sm:$0xff] }
 0x4e5   : > { %5255 = vmatpush.bf16.msrb.mxu3 %v4391_v49  ;;  %v4627_v21 = vpop.f32.mrf.mxu2  ;;  %v4531_v5 = vpop.f32.mrf.mxu0  ;;  %v4375_v11 = vpack.c.bf16 %v4199_v37, %v4183_v1  ;;  %5109 = vmatpush.bf16.msrb.mxu0 %v4372_v60  ;;  %v4356_v58 = vpack.c.bf16 %v4164_v38, %v13805_v30  ;;  %v4359_v37 = vpack.c.bf16 %v4167_v63, %v4151_v12  ;;  %v4118_v3 = vmax.f32 %v11488_v9, 0.0 }
 0x4e6   : > { %v4676_v14 = vpop.f32.mrf.mxu3  ;;  %v4580_v52 = vpop.f32.mrf.mxu1  ;;  %5158 = vmatpush.bf16.msrb.mxu1 %v4373_v39  ;;  %v4532_v17 = vadd.f32 %v4531_v5, %v11551_v56  ;;  %v4119_v2 = vmax.f32 %v11491_v43, 0.0  ;;  %v4628_v54 = vadd.f32 %v4627_v21, %v11549_v13  ;;  %v4340_v57 = vpack.c.bf16 %v4132_v28, %v4116_v48 }
 0x4e7   : > { %v4581_v45 = vadd.f32 %v4580_v52, %v11551_v56  ;;  %v4677_v29 = vadd.f32 %v4676_v14, %v11549_v13  ;;  %v4341_v6 = vpack.c.bf16 %v4133_v36, %v4117_v42  ;;  %v4342_v16 = vpack.c.bf16 %v4134_v44, %v4118_v3  ;;  %v13818_v44 = vld [vmem:[#allocation18_spill] sm:$0xff] }
 0x4e8   : > { %5207 = vmatpush.bf16.msrb.mxu2 %v4374_v25  ;;  %v5320_v7 = vmax.f32 %v4532_v17, 0.0  ;;  %v4343_v9 = vpack.c.bf16 %v4135_v51, %v4119_v2  ;;  %v5306_v43 = vmax.f32 %v4628_v54, 0.0  ;;  %v13819_v51 = vld [vmem:[#allocation24_spill] sm:$0xff] }
 0x4e9   : > { %5256 = vmatpush.bf16.msrb.mxu3 %v4375_v11  ;;  %v5321_v23 = vmax.f32 %v4581_v45, 0.0  ;;  %5110 = vmatpush.bf16.msrb.mxu0 %v4356_v58  ;;  %v5307_v34 = vmax.f32 %v4677_v29, 0.0  ;;  %v11593_v10 = vpop.permute.xlu0 %4409 }
 0x4ea   : > { %5159 = vmatpush.bf16.msrb.mxu1 %v4357_v22  ;;  %v11573_v15 = vpack.c.bf16 %v5320_v7, %v5304_v33  ;;  %v13817_v22 = vld [vmem:[#allocation21_spill] sm:$0xff] }
 0x4eb   : > { %v11575_v49 = vpack.c.bf16 %v5321_v23, %v5305_v53 }
 0x4ec   : > { %13808 = vst [vmem:[#allocation37_spill] sm:$0xff] %v11573_v15  ;;  %5208 = vmatpush.bf16.msrb.mxu2 %v4358_v4  ;;  %v13820_v4 = vld [vmem:[#allocation25_spill] sm:$0xff] }
 0x4ed   : > { %13809 = vst [vmem:[#allocation29_spill] sm:$0xff] %v11575_v49  ;;  %5257 = vmatpush.bf16.msrb.mxu3 %v4359_v37  ;;  %v4629_v55 = vpop.f32.mrf.mxu2  ;;  %v4534_v40 = vpop.f32.mrf.mxu0  ;;  %5111 = vmatpush.bf16.msrb.mxu0 %v4340_v57 }
 0x4ee   : > { %v4678_v0 = vpop.f32.mrf.mxu3  ;;  %v4630_v38 = vadd.f32 %v4629_v55, %v11551_v56  ;;  %v4583_v1 = vpop.f32.mrf.mxu1  ;;  %5160 = vmatpush.bf16.msrb.mxu1 %v4341_v6  ;;  %v4535_v63 = vadd.f32 %v4534_v40, %v11509_v35 }
 0x4ef   : > { %v4679_v46 = vadd.f32 %v4678_v0, %v11551_v56  ;;  %v4584_v5 = vadd.f32 %v4583_v1, %v11509_v35  ;;  %v13823_v0 = vld [vmem:[#allocation13_spill] sm:$0xff] }
 0x4f0   : > { %v5322_v21 = vmax.f32 %v4630_v38, 0.0  ;;  %5209 = vmatpush.bf16.msrb.mxu2 %v4342_v16  ;;  %4729 = vmatmul.bf16.gmra.mxu0 %v11317_v27 }
 0x4f1   : > { %v5323_v14 = vmax.f32 %v4679_v46, 0.0  ;;  %5258 = vmatpush.bf16.msrb.mxu3 %v4343_v9  ;;  %4778 = vmatmul.bf16.gmra.mxu1 %v11317_v27 }
 0x4f2   : > { %4827 = vmatmul.bf16.gmra.mxu2 %v11317_v27  ;;  %v11587_v60 = vpack.c.bf16 %v5322_v21, %v5306_v43  ;;  %5112 = vmatpush.bf16.msrb.mxu0 %v11399_v24 }
 0x4f3   : > { %4876 = vmatmul.bf16.gmra.mxu3 %v11317_v27  ;;  %v11589_v39 = vpack.c.bf16 %v5323_v14, %v5307_v34  ;;  %5161 = vmatpush.bf16.msrb.mxu1 %v11401_v41 }
 0x4f4   : > { %13810 = vst [vmem:[#allocation12_spill] sm:$0xff] %v11587_v60  ;;  %5210 = vmatpush.bf16.msrb.mxu2 %v11420_v32  ;;  %v5336_v32 = vmax.f32 %v4535_v63, 0.0 }
 0x4f5   : > { %13811 = vst [vmem:[#allocation28_spill] sm:$0xff] %v11589_v39  ;;  %5259 = vmatpush.bf16.msrb.mxu3 %v11422_v62  ;;  %v4632_v52 = vpop.f32.mrf.mxu2  ;;  %v4536_v25 = vpop.f32.mrf.mxu0  ;;  %v5337_v62 = vmax.f32 %v4584_v5, 0.0 }
 0x4f6   : > { %v4681_v27 = vpop.f32.mrf.mxu3  ;;  %v4585_v11 = vpop.f32.mrf.mxu1  ;;  %5113 = vmatpush.bf16.msrb.mxu0 %v11374_v61  ;;  %v4537_v24 = vadd.f32 %v4536_v25, %v11593_v10 }
 0x4f7   : > { %5162 = vmatpush.bf16.msrb.mxu1 %v11376_v59  ;;  %v4586_v41 = vadd.f32 %v4585_v11, %v11593_v10  ;;  %v4633_v59 = vadd.f32 %v4632_v52, %v11509_v35  ;;  %v4682_v45 = vadd.f32 %v4681_v27, %v11509_v35 }
 0x4f8   : > { %5211 = vmatpush.bf16.msrb.mxu2 %v11391_v26  ;;  %v5352_v28 = vmax.f32 %v4537_v24, 0.0  ;;  %v13815_v26 = vld [vmem:[#allocation31_spill] sm:$0xff] }
 0x4f9   : > { %5260 = vmatpush.bf16.msrb.mxu3 %v11393_v47  ;;  %v5353_v36 = vmax.f32 %v4586_v41, 0.0  ;;  %v5338_v33 = vmax.f32 %v4633_v59, 0.0  ;;  %v5339_v53 = vmax.f32 %v4682_v45, 0.0 }
 0x4fa   : > { %5114 = vmatpush.bf16.msrb.mxu0 %v11343_v18  ;;  %v11607_v17 = vpack.c.bf16 %v5352_v28, %v5336_v32  ;;  %v13824_v32 = vld [vmem:[#allocation35_spill] sm:$0xff] }
 0x4fb   : > { %5163 = vmatpush.bf16.msrb.mxu1 %v11345_v19  ;;  %v11609_v61 = vpack.c.bf16 %v5353_v36, %v5337_v62  ;;  %v13825_v36 = vld [vmem:[#allocation11_spill] sm:$0xff] }
 0x4fc   : > { %13812 = vst [vmem:[#allocation33_spill] sm:$0xff] %v11607_v17  ;;  %5212 = vmatpush.bf16.msrb.mxu2 %v13814_v31 }
 0x4fd   : > { %13813 = vst [vmem:[#allocation20_spill] sm:$0xff] %v11609_v61  ;;  %5261 = vmatpush.bf16.msrb.mxu3 %v13815_v26  ;;  %v4634_v47 = vpop.f32.mrf.mxu2  ;;  %v4539_v58 = vpop.f32.mrf.mxu0 }
 0x4fe   : > { %v4683_v12 = vpop.f32.mrf.mxu3  ;;  %v4635_v30 = vadd.f32 %v4634_v47, %v11593_v10  ;;  %v4588_v19 = vpop.f32.mrf.mxu1  ;;  %5115 = vmatpush.bf16.msrb.mxu0 %v13816_v8  ;;  %v4540_v42 = vadd.f32 %v4539_v58, %v11567_v20 }
 0x4ff   : > { %v4684_v18 = vadd.f32 %v4683_v12, %v11593_v10  ;;  %5164 = vmatpush.bf16.msrb.mxu1 %v13817_v22  ;;  %v4589_v3 = vadd.f32 %v4588_v19, %v11567_v20 }
 0x500   : > { %v5354_v7 = vmax.f32 %v4635_v30, 0.0  ;;  %5213 = vmatpush.bf16.msrb.mxu2 %v13818_v44  ;;  %4734 = vmatmul.bf16.gmra.mxu0 %v13820_v4  ;;  %v5368_v38 = vmax.f32 %v4540_v42, 0.0  ;;  %v13826_v30 = vld [vmem:[#allocation16_spill] sm:$0xff] }
 0x501   : > { %v5355_v23 = vmax.f32 %v4684_v18, 0.0  ;;  %5262 = vmatpush.bf16.msrb.mxu3 %v13819_v51  ;;  %4783 = vmatmul.bf16.gmra.mxu1 %v13820_v4  ;;  %v5369_v46 = vmax.f32 %v4589_v3, 0.0 }
 0x502   : > { %4832 = vmatmul.bf16.gmra.mxu2 %v13820_v4  ;;  %v11625_v37 = vpack.c.bf16 %v5354_v7, %v5338_v33 }
 0x503   : > { %4881 = vmatmul.bf16.gmra.mxu3 %v13820_v4  ;;  %v11627_v48 = vpack.c.bf16 %v5355_v23, %v5339_v53 }
 0x504   : > { %13821 = vst [vmem:[#allocation26_spill] sm:$0xff] %v11625_v37 }
 0x505   : > { %13822 = vst [vmem:[#allocation31_spill] sm:$0xff] %v11627_v48  ;;  %v4637_v2 = vpop.f32.mrf.mxu2  ;;  %v4541_v29 = vpop.f32.mrf.mxu0 }
 0x506   : > { %v4686_v54 = vpop.f32.mrf.mxu3  ;;  %v4590_v55 = vpop.f32.mrf.mxu1  ;;  %v4542_v57 = vadd.f32 %v4541_v29, %v13823_v0  ;;  %v4638_v43 = vadd.f32 %v4637_v2, %v11567_v20 }
 0x507   : > { %v4591_v6 = vadd.f32 %v4590_v55, %v13823_v0  ;;  %v4687_v34 = vadd.f32 %v4686_v54, %v11567_v20 }
 0x508   : > { %v5384_v40 = vmax.f32 %v4542_v57, 0.0  ;;  %v5370_v25 = vmax.f32 %v4638_v43, 0.0 }
 0x509   : > { %v5385_v1 = vmax.f32 %v4591_v6, 0.0  ;;  %v5371_v11 = vmax.f32 %v4687_v34, 0.0 }
 0x50a   : > { %v11633_v16 = vpack.c.bf16 %v5384_v40, %v5368_v38  ;;  %v13827_v38 = vld [vmem:[#allocation23_spill] sm:$0xff] }
 0x50b   : > { %v11635_v9 = vpack.c.bf16 %v5385_v1, %v5369_v46 }
 0x50d   : > { %v4639_v21 = vpop.f32.mrf.mxu2  ;;  %v4544_v52 = vpop.f32.mrf.mxu0 }
 0x50e   : > { %v4688_v14 = vpop.f32.mrf.mxu3  ;;  %v4640_v63 = vadd.f32 %v4639_v21, %v13823_v0  ;;  %v4593_v27 = vpop.f32.mrf.mxu1  ;;  %v4545_v59 = vadd.f32 %v4544_v52, %v13825_v36 }
 0x50f   : > { %v4689_v5 = vadd.f32 %v4688_v14, %v13823_v0  ;;  %v4594_v45 = vadd.f32 %v4593_v27, %v13825_v36  ;;  %v13828_v27 = vld [vmem:[#allocation14_spill] sm:$0xff] }
 0x510   : > { %v5386_v24 = vmax.f32 %v4640_v63, 0.0  ;;  %4739 = vmatmul.bf16.gmra.mxu0 %v13824_v32  ;;  %v5400_v19 = vmax.f32 %v4545_v59, 0.0  ;;  %v13836_v0 = vld [vmem:[#allocation22_spill] sm:$0xff] }
 0x511   : > { %v5387_v41 = vmax.f32 %v4689_v5, 0.0  ;;  %4788 = vmatmul.bf16.gmra.mxu1 %v13824_v32  ;;  %v5401_v8 = vmax.f32 %v4594_v45, 0.0 }
 0x512   : > { %4837 = vmatmul.bf16.gmra.mxu2 %v13824_v32  ;;  %v11645_v62 = vpack.c.bf16 %v5386_v24, %v5370_v25 }
 0x513   : > { %4886 = vmatmul.bf16.gmra.mxu3 %v13824_v32  ;;  %v11647_v28 = vpack.c.bf16 %v5387_v41, %v5371_v11 }
 0x515   : > { %v4642_v31 = vpop.f32.mrf.mxu2  ;;  %v4546_v47 = vpop.f32.mrf.mxu0 }
 0x516   : > { %v4691_v26 = vpop.f32.mrf.mxu3  ;;  %v4595_v12 = vpop.f32.mrf.mxu1  ;;  %v4547_v18 = vadd.f32 %v4546_v47, %v13826_v30  ;;  %v4643_v23 = vadd.f32 %v4642_v31, %v13825_v36 }
 0x517   : > { %v4596_v58 = vadd.f32 %v4595_v12, %v13826_v30  ;;  %v4692_v44 = vadd.f32 %v4691_v26, %v13825_v36  ;;  %v13829_v26 = vld [vmem:[#allocation9_spill] sm:$0xff] }
 0x518   : > { %v5416_v22 = vmax.f32 %v4547_v18, 0.0  ;;  %v5402_v29 = vmax.f32 %v4643_v23, 0.0  ;;  %v13830_v23 = vld [vmem:[#allocation19_spill] sm:$0xff] }
 0x519   : > { %v5417_v33 = vmax.f32 %v4596_v58, 0.0  ;;  %v5403_v55 = vmax.f32 %v4692_v44, 0.0 }
 0x51a   : > { %v11653_v53 = vpack.c.bf16 %v5416_v22, %v5400_v19 }
 0x51b   : > { %v11655_v7 = vpack.c.bf16 %v5417_v33, %v5401_v8 }
 0x51d   : > { %v4644_v51 = vpop.f32.mrf.mxu2  ;;  %v4549_v2 = vpop.f32.mrf.mxu0 }
 0x51e   : > { %v4693_v4 = vpop.f32.mrf.mxu3  ;;  %v4645_v42 = vadd.f32 %v4644_v51, %v13826_v30  ;;  %v4598_v54 = vpop.f32.mrf.mxu1 }
 0x51f   : > { %v4694_v3 = vadd.f32 %v4693_v4, %v13826_v30  ;;  %v13831_v4 = vld [vmem:[#allocation10_spill] sm:$0xff] }
 0x520   : > { %v5418_v57 = vmax.f32 %v4645_v42, 0.0  ;;  %4744 = vmatmul.bf16.gmra.mxu0 %v13827_v38 }
 0x521   : > { %v5419_v6 = vmax.f32 %v4694_v3, 0.0  ;;  %4793 = vmatmul.bf16.gmra.mxu1 %v13827_v38 }
 0x522   : > { %4842 = vmatmul.bf16.gmra.mxu2 %v13827_v38  ;;  %v11665_v46 = vpack.c.bf16 %v5418_v57, %v5402_v29  ;;  %v13832_v57 = vld [vmem:[#allocation34_spill] sm:$0xff] }
 0x523   : > { %4891 = vmatmul.bf16.gmra.mxu3 %v13827_v38  ;;  %v11667_v40 = vpack.c.bf16 %v5419_v6, %v5403_v55  ;;  %v11692_v6 = vadd.f32 %v4549_v2, %v13832_v57  ;;  %v11695_v38 = vadd.f32 %v4598_v54, %v13832_v57  ;;  %v13833_v54 = vld [vmem:[#allocation27_spill] sm:$0xff] }
 0x525   : > { %v4647_v1 = vpop.f32.mrf.mxu2  ;;  %v4551_v34 = vpop.f32.mrf.mxu0 }
 0x526   : > { %v4696_v43 = vpop.f32.mrf.mxu3  ;;  %v4600_v21 = vpop.f32.mrf.mxu1 }
 0x52d   : > { %v4649_v14 = vpop.f32.mrf.mxu2  ;;  %v4554_v5 = vpop.f32.mrf.mxu0 }
 0x52e   : > { %v4698_v63 = vpop.f32.mrf.mxu3  ;;  %v4603_v52 = vpop.f32.mrf.mxu1  ;;  %v11686_v42 = vadd.f32 %v4554_v5, %v13831_v4  ;;  %v11704_v5 = vadd.f32 %v4551_v34, %v11539_v50 }
 0x52f   : > { %v11689_v3 = vadd.f32 %v4603_v52, %v13831_v4  ;;  %v11707_v52 = vadd.f32 %v4600_v21, %v11539_v50  ;;  %v11713_v2 = vadd.f32 %v4698_v63, %v11539_v50 }
 0x530   : > { %4749 = vmatmul.bf16.gmra.mxu0 %v13828_v27 }
 0x531   : > { %4798 = vmatmul.bf16.gmra.mxu1 %v13828_v27 }
 0x532   : > { %4847 = vmatmul.bf16.gmra.mxu2 %v13828_v27 }
 0x533   : > { %4896 = vmatmul.bf16.gmra.mxu3 %v13828_v27  ;;  %v11698_v27 = vadd.f32 %v4647_v1, %v13832_v57 }
 0x535   : > { %v11673_v25 = vpop.f32.mrf.mxu2  ;;  %v4556_v24 = vpop.f32.mrf.mxu0 }
 0x536   : > { %v11675_v11 = vpop.f32.mrf.mxu3  ;;  %v4605_v41 = vpop.f32.mrf.mxu1 }
 0x53d   : > { %v4654_v32 = vpop.f32.mrf.mxu2  ;;  %v4559_v45 = vpop.f32.mrf.mxu0 }
 0x53e   : > { %v4703_v59 = vpop.f32.mrf.mxu3  ;;  %v4608_v31 = vpop.f32.mrf.mxu1  ;;  %v4560_v36 = vadd.f32 %v4559_v45, %v13836_v0 }
 0x540   : > { %4754 = vmatmul.bf16.gmra.mxu0 %v13829_v26 }
 0x541   : > { %4803 = vmatmul.bf16.gmra.mxu1 %v13829_v26 }
 0x542   : > { %4852 = vmatmul.bf16.gmra.mxu2 %v13829_v26 }
 0x543   : > { %4901 = vmatmul.bf16.gmra.mxu3 %v13829_v26  ;;  %v11701_v26 = vadd.f32 %v4696_v43, %v13832_v57  ;;  %v13834_v57 = vld [vmem:[#allocation17_spill] sm:$0xff]  ;;  %v4609_v43 = vadd.f32 %v4608_v31, %v13836_v0 }
 0x544   : > { %v11720_v34 = vadd.f32 %v4556_v24, %v13834_v57  ;;  %v11723_v21 = vadd.f32 %v4605_v41, %v13834_v57  ;;  %v11729_v63 = vadd.f32 %v4703_v59, %v13834_v57  ;;  %v13837_v41 = vld [vmem:[#allocation30_spill] sm:$0xff] }
 0x545   : > { %v4657_v47 = vpop.f32.mrf.mxu2  ;;  %v4561_v18 = vpop.f32.mrf.mxu0 }
 0x546   : > { %v4706_v12 = vpop.f32.mrf.mxu3  ;;  %v4610_v58 = vpop.f32.mrf.mxu1  ;;  %v4562_v39 = vadd.f32 %v4561_v18, %v13837_v41 }
 0x547   : > { %v4707_v18 = vadd.f32 %v4706_v12, %v13836_v0 }
 0x548   : > { %v5512_v61 = vmax.f32 %v4562_v39, 0.0  ;;  %v5480_v39 = vmax.f32 %v11720_v34, 0.0 }
 0x54d   : > { %v4659_v19 = vpop.f32.mrf.mxu2  ;;  %v4564_v22 = vpop.f32.mrf.mxu0 }
 0x54e   : > { %v4708_v8 = vpop.f32.mrf.mxu3  ;;  %v4613_v33 = vpop.f32.mrf.mxu1 }
 0x550   : > { %4759 = vmatmul.bf16.gmra.mxu0 %v13830_v23 }
 0x551   : > { %4808 = vmatmul.bf16.gmra.mxu1 %v13830_v23 }
 0x552   : > { %4857 = vmatmul.bf16.gmra.mxu2 %v13830_v23 }
 0x553   : > { %4906 = vmatmul.bf16.gmra.mxu3 %v13830_v23  ;;  %v11710_v23 = vadd.f32 %v4649_v14, %v11539_v50  ;;  %v11726_v14 = vadd.f32 %v4654_v32, %v13834_v57  ;;  %v13835_v50 = vld [vmem:[#allocation38_spill] sm:$0xff]  ;;  %v4611_v32 = vadd.f32 %v4610_v58, %v13837_v41 }
 0x555   : > { %v4662_v44 = vpop.f32.mrf.mxu2  ;;  %v4566_v29 = vpop.f32.mrf.mxu0 }
 0x556   : > { %v4711_v51 = vpop.f32.mrf.mxu3  ;;  %v4615_v55 = vpop.f32.mrf.mxu1  ;;  %v4567_v30 = vadd.f32 %v4566_v29, %v13833_v54  ;;  %v4565_v29 = vadd.f32 %v4564_v22, %v13835_v50  ;;  %v4663_v24 = vadd.f32 %v4662_v44, %v13835_v50  ;;  %v4660_v22 = vadd.f32 %v4659_v19, %v13837_v41 }
 0x557   : > { %v4616_v1 = vadd.f32 %v4615_v55, %v13833_v54  ;;  %v4614_v55 = vadd.f32 %v4613_v33, %v13835_v50  ;;  %v4712_v20 = vadd.f32 %v4711_v51, %v13835_v50  ;;  %v4709_v33 = vadd.f32 %v4708_v8, %v13837_v41 }
 0x558   : > { %v5544_v60 = vmax.f32 %v4567_v30, 0.0  ;;  %v4658_v51 = vadd.f32 %v4657_v47, %v13836_v0  ;;  %v5528_v50 = vmax.f32 %v4565_v29, 0.0  ;;  %v5530_v30 = vmax.f32 %v4663_v24, 0.0 }
 0x559   : > { %v5545_v49 = vmax.f32 %v4616_v1, 0.0  ;;  %v5529_v58 = vmax.f32 %v4614_v55, 0.0  ;;  %v5531_v1 = vmax.f32 %v4712_v20, 0.0  ;;  %v5513_v19 = vmax.f32 %v4611_v32, 0.0 }
 0x55a   : > { %v5704_v17 = vpack.c.bf16 %v5544_v60, %v5528_v50  ;;  %v5514_v47 = vmax.f32 %v4660_v22, 0.0  ;;  %v5515_v12 = vmax.f32 %v4709_v33, 0.0  ;;  %v4653_v50 = vadd.f32 %v11673_v25, %v13831_v4 }
 0x55b   : > { %v5705_v8 = vpack.c.bf16 %v5545_v49, %v5529_v58  ;;  %v4702_v20 = vadd.f32 %v11675_v11, %v13831_v4  ;;  %v5496_v49 = vmax.f32 %v4560_v36, 0.0  ;;  %v5497_v60 = vmax.f32 %v4609_v43, 0.0 }
 0x55c   : > { %v5481_v24 = vmax.f32 %v11723_v21, 0.0  ;;  %v5482_v36 = vmax.f32 %v11726_v14, 0.0  ;;  %v13838_v14 = vmax.f32 %v11686_v42, 0.0  ;;  %v13839_v58 = vmax.f32 %v11689_v3, 0.0 }
 0x55d   : > { %v4664_v59 = vpop.f32.mrf.mxu2  ;;  %v4725_v15 = vpop.f32.mrf.mxu0  ;;  %v5688_v33 = vpack.c.bf16 %v5512_v61, %v5496_v49  ;;  %v5689_v11 = vpack.c.bf16 %v5513_v19, %v5497_v60  ;;  %v5466_v61 = vmax.f32 %v4653_v50, 0.0  ;;  %v5433_v50 = vmax.f32 %v11695_v38, 0.0 }
 0x55e   : > { %v4713_v57 = vpop.f32.mrf.mxu3  ;;  %v4665_v45 = vadd.f32 %v4664_v59, %v13833_v54  ;;  %v4774_v44 = vpop.f32.mrf.mxu1  ;;  %v4726_v32 = vadd.f32 %v4725_v15, %v11549_v13  ;;  %v5435_v49 = vmax.f32 %v11701_v26, 0.0 }
 0x55f   : > { %v4714_v31 = vadd.f32 %v4713_v57, %v13833_v54  ;;  %v11748_v57 = vld [vmem:[%s13298_s5] sm:$0xff]  ;;  %v4775_v59 = vadd.f32 %v4774_v44, %v11549_v13 }
 0x560   : > { %v5546_v48 = vmax.f32 %v4665_v45, 0.0  ;;  %4920 = vmatmul.bf16.vlgmr.msra.gmra.mxu0 %v11748_v57 }
 0x561   : > { %v5547_v37 = vmax.f32 %v4714_v31, 0.0  ;;  %4969 = vmatmul.bf16.vlgmr.msra.gmra.mxu1 %v11748_v57  ;;  %5848 = vmatpush.bf16.msra.mxu0 %v5704_v17  ;;  %v5483_v17 = vmax.f32 %v11729_v63, 0.0  ;;  %v5448_v31 = vmax.f32 %v11704_v5, 0.0  ;;  %v5672_v63 = vpack.c.bf16 %v5480_v39, %v13838_v14 }
 0x562   : > { %v5706_v29 = vpack.c.bf16 %v5546_v48, %v5530_v30  ;;  %5018 = vmatmul.bf16.vlgmr.msra.gmra.mxu2 %v11748_v57  ;;  %5897 = vmatpush.bf16.msra.mxu1 %v5705_v8  ;;  %v5498_v48 = vmax.f32 %v4658_v51, 0.0  ;;  %v5449_v51 = vmax.f32 %v11707_v52, 0.0  ;;  %v5673_v30 = vpack.c.bf16 %v5481_v24, %v13839_v58  ;;  %v13848_v58 = vld [vmem:[#allocation26_spill] sm:$0xff] }
 0x563   : > { %v5707_v55 = vpack.c.bf16 %v5547_v37, %v5531_v1  ;;  %5067 = vmatmul.bf16.vlgmr.msra.gmra.mxu3 %v11748_v57  ;;  %v5499_v37 = vmax.f32 %v4707_v18, 0.0  ;;  %v5467_v18 = vmax.f32 %v4702_v20, 0.0  ;;  %v5308_v1 = vmax.f32 %v4726_v32, 0.0 }
 0x564   : > { %5946 = vmatpush.bf16.msra.mxu2 %v5706_v29  ;;  %v5690_v45 = vpack.c.bf16 %v5514_v47, %v5498_v48  ;;  %v5309_v5 = vmax.f32 %v4775_v59, 0.0  ;;  %v5450_v8 = vmax.f32 %v11710_v23, 0.0  ;;  %v5451_v47 = vmax.f32 %v11713_v2, 0.0 }
 0x565   : > { %5995 = vmatpush.bf16.msra.mxu3 %v5707_v55  ;;  %v4823_v25 = vpop.f32.mrf.mxu2  ;;  %v4727_v43 = vpop.f32.mrf.mxu0  ;;  %v5691_v21 = vpack.c.bf16 %v5515_v12, %v5499_v37  ;;  %5849 = vmatpush.bf16.msra.mxu0 %v5688_v33  ;;  %v5674_v12 = vpack.c.bf16 %v5482_v36, %v5466_v61  ;;  %v5675_v29 = vpack.c.bf16 %v5483_v17, %v5467_v18  ;;  %v5432_v55 = vmax.f32 %v11692_v6, 0.0  ;;  %v13844_v61 = vld [vmem:[#allocation33_spill] sm:$0xff]  ;;  %v13845_v18 = vld [vmem:[#allocation20_spill] sm:$0xff] }
 0x566   : > { %v4872_v22 = vpop.f32.mrf.mxu3  ;;  %v4776_v34 = vpop.f32.mrf.mxu1  ;;  %5898 = vmatpush.bf16.msra.mxu1 %v5689_v11  ;;  %v4728_v15 = vadd.f32 %v4727_v43, %v11551_v56  ;;  %v5434_v20 = vmax.f32 %v11698_v27, 0.0  ;;  %v4824_v23 = vadd.f32 %v4823_v25, %v11549_v13  ;;  %v5657_v38 = vpack.c.bf16 %v5449_v51, %v5433_v50  ;;  %v11789_v11 = vld [vmem:[%s13298_s5 + $0x8] sm:$0xff] }
 0x567   : > { %v4777_v44 = vadd.f32 %v4776_v34, %v11551_v56  ;;  %v4873_v2 = vadd.f32 %v4872_v22, %v11549_v13  ;;  %v5656_v39 = vpack.c.bf16 %v5448_v31, %v5432_v55  ;;  %v5659_v27 = vpack.c.bf16 %v5451_v47, %v5435_v49  ;;  %v13851_v47 = vld [vmem:[#allocation29_spill] sm:$0xff]  ;;  %v13853_v49 = vld [vmem:[#allocation28_spill] sm:$0xff] }
 0x568   : > { %5947 = vmatpush.bf16.msra.mxu2 %v5690_v45  ;;  %v5324_v19 = vmax.f32 %v4728_v15, 0.0  ;;  %v5658_v59 = vpack.c.bf16 %v5450_v8, %v5434_v20  ;;  %v5310_v26 = vmax.f32 %v4824_v23, 0.0  ;;  %v13850_v8 = vld [vmem:[#allocation37_spill] sm:$0xff]  ;;  %v13852_v20 = vld [vmem:[#allocation12_spill] sm:$0xff]  ;;  %v11830_v23 = vld [vmem:[%s13298_s5 + $0x10] sm:$0xff] }
 0x569   : > { %5996 = vmatpush.bf16.msra.mxu3 %v5691_v21  ;;  %v5325_v52 = vmax.f32 %v4777_v44, 0.0  ;;  %5850 = vmatpush.bf16.msra.mxu0 %v5672_v63  ;;  %v5311_v25 = vmax.f32 %v4873_v2, 0.0  ;;  %13854 = vst [vmem:[#allocation23_spill] sm:$0xff] %v11830_v23 }
 0x56a   : > { %5899 = vmatpush.bf16.msra.mxu1 %v5673_v30  ;;  %v11776_v42 = vpack.c.bf16 %v5324_v19, %v5308_v1 }
 0x56b   : > { %v11778_v3 = vpack.c.bf16 %v5325_v52, %v5309_v5 }
 0x56c   : > { %13840 = vst [vmem:[#allocation32_spill] sm:$0xff] %v11776_v42  ;;  %5948 = vmatpush.bf16.msra.mxu2 %v5674_v12 }
 0x56d   : > { %13841 = vst [vmem:[#allocation21_spill] sm:$0xff] %v11778_v3  ;;  %5997 = vmatpush.bf16.msra.mxu3 %v5675_v29  ;;  %v4825_v60 = vpop.f32.mrf.mxu2  ;;  %v4730_v37 = vpop.f32.mrf.mxu0  ;;  %5851 = vmatpush.bf16.msra.mxu0 %v5656_v39 }
 0x56e   : > { %v4874_v6 = vpop.f32.mrf.mxu3  ;;  %v4826_v24 = vadd.f32 %v4825_v60, %v11551_v56  ;;  %v4779_v32 = vpop.f32.mrf.mxu1  ;;  %5900 = vmatpush.bf16.msra.mxu1 %v5657_v38  ;;  %v4731_v43 = vadd.f32 %v4730_v37, %v11509_v35 }
 0x56f   : > { %v4875_v48 = vadd.f32 %v4874_v6, %v11551_v56  ;;  %v4780_v34 = vadd.f32 %v4779_v32, %v11509_v35  ;;  %v13857_v6 = vld [vmem:[#allocation36_spill] sm:$0xff] }
 0x570   : > { %v5326_v33 = vmax.f32 %v4826_v24, 0.0  ;;  %5949 = vmatpush.bf16.msra.mxu2 %v5658_v59  ;;  %4925 = vmatmul.bf16.gmra.mxu0 %v11789_v11  ;;  %v13858_v59 = vld [vmem:[#allocation13_spill] sm:$0xff] }
 0x571   : > { %v5327_v22 = vmax.f32 %v4875_v48, 0.0  ;;  %5998 = vmatpush.bf16.msra.mxu3 %v5659_v27  ;;  %4974 = vmatmul.bf16.gmra.mxu1 %v11789_v11 }
 0x572   : > { %5023 = vmatmul.bf16.gmra.mxu2 %v11789_v11  ;;  %v11795_v36 = vpack.c.bf16 %v5326_v33, %v5310_v26  ;;  %5852 = vmatpush.bf16.msra.mxu0 %v11653_v53 }
 0x573   : > { %5072 = vmatmul.bf16.gmra.mxu3 %v11789_v11  ;;  %v11797_v17 = vpack.c.bf16 %v5327_v22, %v5311_v25  ;;  %5901 = vmatpush.bf16.msra.mxu1 %v11655_v7 }
 0x574   : > { %13842 = vst [vmem:[#allocation18_spill] sm:$0xff] %v11795_v36  ;;  %5950 = vmatpush.bf16.msra.mxu2 %v11665_v46  ;;  %v5340_v46 = vmax.f32 %v4731_v43, 0.0 }
 0x575   : > { %13843 = vst [vmem:[#allocation24_spill] sm:$0xff] %v11797_v17  ;;  %5999 = vmatpush.bf16.msra.mxu3 %v11667_v40  ;;  %v4828_v45 = vpop.f32.mrf.mxu2  ;;  %v4732_v31 = vpop.f32.mrf.mxu0  ;;  %v5341_v40 = vmax.f32 %v4780_v34, 0.0 }
 0x576   : > { %v4877_v21 = vpop.f32.mrf.mxu3  ;;  %v4781_v51 = vpop.f32.mrf.mxu1  ;;  %5853 = vmatpush.bf16.msra.mxu0 %v11633_v16  ;;  %v4733_v53 = vadd.f32 %v4732_v31, %v11593_v10 }
 0x577   : > { %5902 = vmatpush.bf16.msra.mxu1 %v11635_v9  ;;  %v4782_v7 = vadd.f32 %v4781_v51, %v11593_v10  ;;  %v4829_v9 = vadd.f32 %v4828_v45, %v11509_v35  ;;  %v4878_v63 = vadd.f32 %v4877_v21, %v11509_v35 }
 0x578   : > { %5951 = vmatpush.bf16.msra.mxu2 %v11645_v62  ;;  %v5356_v15 = vmax.f32 %v4733_v53, 0.0  ;;  %v13849_v62 = vld [vmem:[#allocation31_spill] sm:$0xff] }
 0x579   : > { %6000 = vmatpush.bf16.msra.mxu3 %v11647_v28  ;;  %v5357_v44 = vmax.f32 %v4782_v7, 0.0  ;;  %v5342_v12 = vmax.f32 %v4829_v9, 0.0  ;;  %v5343_v29 = vmax.f32 %v4878_v63, 0.0  ;;  %v11855_v63 = vld [vmem:[%s13298_s5 + $0x18] sm:$0xff] }
 0x57a   : > { %5854 = vmatpush.bf16.msra.mxu0 %v13844_v61  ;;  %v11813_v14 = vpack.c.bf16 %v5356_v15, %v5340_v46  ;;  %13859 = vst [vmem:[#allocation19_spill] sm:$0xff] %v11855_v63 }
 0x57b   : > { %5903 = vmatpush.bf16.msra.mxu1 %v13845_v18  ;;  %v11815_v16 = vpack.c.bf16 %v5357_v44, %v5341_v40 }
 0x57c   : > { %13846 = vst [vmem:[#allocation25_spill] sm:$0xff] %v11813_v14  ;;  %5952 = vmatpush.bf16.msra.mxu2 %v13848_v58 }
 0x57d   : > { %13847 = vst [vmem:[#allocation35_spill] sm:$0xff] %v11815_v16  ;;  %6001 = vmatpush.bf16.msra.mxu3 %v13849_v62  ;;  %v4830_v28 = vpop.f32.mrf.mxu2  ;;  %v4735_v19 = vpop.f32.mrf.mxu0 }
 0x57e   : > { %v4879_v30 = vpop.f32.mrf.mxu3  ;;  %v4831_v1 = vadd.f32 %v4830_v28, %v11593_v10  ;;  %v4784_v52 = vpop.f32.mrf.mxu1  ;;  %5855 = vmatpush.bf16.msra.mxu0 %v13850_v8  ;;  %v4736_v39 = vadd.f32 %v4735_v19, %v13857_v6  ;;  %v13862_v28 = vld [vmem:[#allocation11_spill] sm:$0xff] }
 0x57f   : > { %v4880_v5 = vadd.f32 %v4879_v30, %v11593_v10  ;;  %5904 = vmatpush.bf16.msra.mxu1 %v13851_v47  ;;  %v4785_v38 = vadd.f32 %v4784_v52, %v13857_v6  ;;  %v13863_v47 = vld [vmem:[#allocation16_spill] sm:$0xff] }
 0x580   : > { %v5358_v55 = vmax.f32 %v4831_v1, 0.0  ;;  %5953 = vmatpush.bf16.msra.mxu2 %v13852_v20  ;;  %4930 = vmatmul.bf16.gmra.mxu0 %v11830_v23  ;;  %v5372_v25 = vmax.f32 %v4736_v39, 0.0 }
 0x581   : > { %v5359_v50 = vmax.f32 %v4880_v5, 0.0  ;;  %6002 = vmatpush.bf16.msra.mxu3 %v13853_v49  ;;  %4979 = vmatmul.bf16.gmra.mxu1 %v11830_v23  ;;  %v5373_v33 = vmax.f32 %v4785_v38, 0.0 }
 0x582   : > { %5028 = vmatmul.bf16.gmra.mxu2 %v11830_v23  ;;  %v11836_v2 = vpack.c.bf16 %v5358_v55, %v5342_v12 }
 0x583   : > { %5077 = vmatmul.bf16.gmra.mxu3 %v11830_v23  ;;  %v11838_v60 = vpack.c.bf16 %v5359_v50, %v5343_v29  ;;  %v13869_v23 = vld [vmem:[#allocation15_spill] sm:$0xff] }
 0x584   : > { %13855 = vst [vmem:[#allocation14_spill] sm:$0xff] %v11836_v2 }
 0x585   : > { %13856 = vst [vmem:[#allocation9_spill] sm:$0xff] %v11838_v60  ;;  %v4833_v24 = vpop.f32.mrf.mxu2  ;;  %v4737_v37 = vpop.f32.mrf.mxu0 }
 0x586   : > { %v4882_v48 = vpop.f32.mrf.mxu3  ;;  %v4786_v32 = vpop.f32.mrf.mxu1  ;;  %v4738_v27 = vadd.f32 %v4737_v37, %v13858_v59  ;;  %v4834_v21 = vadd.f32 %v4833_v24, %v13857_v6 }
 0x587   : > { %v4787_v26 = vadd.f32 %v4786_v32, %v13858_v59  ;;  %v4883_v31 = vadd.f32 %v4882_v48, %v13857_v6 }
 0x588   : > { %v5388_v22 = vmax.f32 %v4738_v27, 0.0  ;;  %v5374_v44 = vmax.f32 %v4834_v21, 0.0 }
 0x589   : > { %v5389_v43 = vmax.f32 %v4787_v26, 0.0  ;;  %v5375_v61 = vmax.f32 %v4883_v31, 0.0 }
 0x58a   : > { %v11844_v34 = vpack.c.bf16 %v5388_v22, %v5372_v25 }
 0x58b   : > { %v11846_v45 = vpack.c.bf16 %v5389_v43, %v5373_v33 }
 0x58d   : > { %v4835_v51 = vpop.f32.mrf.mxu2  ;;  %v4740_v40 = vpop.f32.mrf.mxu0 }
 0x58e   : > { %v4884_v53 = vpop.f32.mrf.mxu3  ;;  %v4836_v7 = vadd.f32 %v4835_v51, %v13858_v59  ;;  %v4789_v15 = vpop.f32.mrf.mxu1  ;;  %v4741_v30 = vadd.f32 %v4740_v40, %v13862_v28  ;;  %v11880_v51 = vld [vmem:[%s13298_s5 + $0x20] sm:$0xff] }
 0x58f   : > { %v4885_v46 = vadd.f32 %v4884_v53, %v13858_v59  ;;  %v4790_v1 = vadd.f32 %v4789_v15, %v13862_v28  ;;  %13864 = vst [vmem:[#allocation22_spill] sm:$0xff] %v11880_v51 }
 0x590   : > { %v5390_v18 = vmax.f32 %v4836_v7, 0.0  ;;  %4935 = vmatmul.bf16.gmra.mxu0 %v11855_v63  ;;  %v5404_v55 = vmax.f32 %v4741_v30, 0.0 }
 0x591   : > { %v5391_v9 = vmax.f32 %v4885_v46, 0.0  ;;  %4984 = vmatmul.bf16.gmra.mxu1 %v11855_v63  ;;  %v5405_v50 = vmax.f32 %v4790_v1, 0.0  ;;  %v11893_v1 = vld [vmem:[%s13298_s5 + $0x28] sm:$0xff] }
 0x592   : > { %5033 = vmatmul.bf16.gmra.mxu2 %v11855_v63  ;;  %v11861_v58 = vpack.c.bf16 %v5390_v18, %v5374_v44  ;;  %13865 = vst [vmem:[#allocation33_spill] sm:$0xff] %v11893_v1 }
 0x593   : > { %5082 = vmatmul.bf16.gmra.mxu3 %v11855_v63  ;;  %v11863_v62 = vpack.c.bf16 %v5391_v9, %v5375_v61 }
 0x594   : > { %13860 = vst [vmem:[#allocation10_spill] sm:$0xff] %v11861_v58 }
 0x595   : > { %13861 = vst [vmem:[#allocation27_spill] sm:$0xff] %v11863_v62  ;;  %v4838_v5 = vpop.f32.mrf.mxu2  ;;  %v4742_v52 = vpop.f32.mrf.mxu0 }
 0x596   : > { %v4887_v19 = vpop.f32.mrf.mxu3  ;;  %v4791_v8 = vpop.f32.mrf.mxu1  ;;  %v4743_v12 = vadd.f32 %v4742_v52, %v13863_v47  ;;  %v4839_v24 = vadd.f32 %v4838_v5, %v13862_v28 }
 0x597   : > { %v4792_v29 = vadd.f32 %v4791_v8, %v13863_v47  ;;  %v4888_v48 = vadd.f32 %v4887_v19, %v13862_v28  ;;  %v13868_v28 = vld [vmem:[#allocation34_spill] sm:$0xff] }
 0x598   : > { %v5420_v20 = vmax.f32 %v4743_v12, 0.0  ;;  %v5406_v22 = vmax.f32 %v4839_v24, 0.0 }
 0x599   : > { %v5421_v49 = vmax.f32 %v4792_v29, 0.0  ;;  %v5407_v43 = vmax.f32 %v4888_v48, 0.0 }
 0x59a   : > { %v11869_v39 = vpack.c.bf16 %v5420_v20, %v5404_v55  ;;  %v11906_v20 = vld [vmem:[%s13298_s5 + $0x30] sm:$0xff] }
 0x59b   : > { %v11871_v38 = vpack.c.bf16 %v5421_v49, %v5405_v50  ;;  %13866 = vst [vmem:[#allocation20_spill] sm:$0xff] %v11906_v20 }
 0x59d   : > { %v4840_v37 = vpop.f32.mrf.mxu2  ;;  %v4745_v25 = vpop.f32.mrf.mxu0 }
 0x59e   : > { %v4889_v32 = vpop.f32.mrf.mxu3  ;;  %v4841_v27 = vadd.f32 %v4840_v37, %v13863_v47  ;;  %v4794_v33 = vpop.f32.mrf.mxu1  ;;  %v11928_v63 = vadd.f32 %v4745_v25, %v13868_v28 }
 0x59f   : > { %v4890_v26 = vadd.f32 %v4889_v32, %v13863_v47  ;;  %v11931_v59 = vadd.f32 %v4794_v33, %v13868_v28 }
 0x5a0   : > { %v5422_v21 = vmax.f32 %v4841_v27, 0.0  ;;  %4940 = vmatmul.bf16.gmra.mxu0 %v11880_v51 }
 0x5a1   : > { %v5423_v31 = vmax.f32 %v4890_v26, 0.0  ;;  %4989 = vmatmul.bf16.gmra.mxu1 %v11880_v51 }
 0x5a2   : > { %5038 = vmatmul.bf16.gmra.mxu2 %v11880_v51  ;;  %v11886_v53 = vpack.c.bf16 %v5422_v21, %v5406_v22 }
 0x5a3   : > { %5087 = vmatmul.bf16.gmra.mxu3 %v11880_v51  ;;  %v11888_v7 = vpack.c.bf16 %v5423_v31, %v5407_v43  ;;  %v11915_v43 = vld [vmem:[%s13298_s5 + $0x38] sm:$0xff] }
 0x5a4   : > { %13867 = vst [vmem:[#allocation26_spill] sm:$0xff] %v11915_v43 }
 0x5a5   : > { %v4843_v46 = vpop.f32.mrf.mxu2  ;;  %v4747_v15 = vpop.f32.mrf.mxu0 }
 0x5a6   : > { %v4892_v40 = vpop.f32.mrf.mxu3  ;;  %v4796_v44 = vpop.f32.mrf.mxu1  ;;  %v11934_v6 = vadd.f32 %v4843_v46, %v13868_v28 }
 0x5ad   : > { %v4845_v61 = vpop.f32.mrf.mxu2  ;;  %v4750_v9 = vpop.f32.mrf.mxu0 }
 0x5ae   : > { %v4894_v18 = vpop.f32.mrf.mxu3  ;;  %v4799_v30 = vpop.f32.mrf.mxu1  ;;  %v11946_v17 = vadd.f32 %v4845_v61, %v13869_v23 }
 0x5af   : > { %v11949_v25 = vadd.f32 %v4894_v18, %v13869_v23 }
 0x5b0   : > { %4945 = vmatmul.bf16.gmra.mxu0 %v11893_v1 }
 0x5b1   : > { %4994 = vmatmul.bf16.gmra.mxu1 %v11893_v1 }
 0x5b2   : > { %5043 = vmatmul.bf16.gmra.mxu2 %v11893_v1 }
 0x5b3   : > { %5092 = vmatmul.bf16.gmra.mxu3 %v11893_v1  ;;  %v11925_v1 = vadd.f32 %v4799_v30, %v13831_v4  ;;  %v11943_v30 = vadd.f32 %v4796_v44, %v13869_v23 }
 0x5b5   : > { %v11899_v5 = vpop.f32.mrf.mxu2  ;;  %v4752_v52 = vpop.f32.mrf.mxu0 }
 0x5b6   : > { %v11901_v19 = vpop.f32.mrf.mxu3  ;;  %v4801_v8 = vpop.f32.mrf.mxu1 }
 0x5bd   : > { %v4850_v12 = vpop.f32.mrf.mxu2  ;;  %v4755_v55 = vpop.f32.mrf.mxu0 }
 0x5be   : > { %v4899_v29 = vpop.f32.mrf.mxu3  ;;  %v4804_v50 = vpop.f32.mrf.mxu1  ;;  %v4756_v36 = vadd.f32 %v4755_v55, %v13836_v0 }
 0x5c0   : > { %4950 = vmatmul.bf16.gmra.mxu0 %v11906_v20 }
 0x5c1   : > { %4999 = vmatmul.bf16.gmra.mxu1 %v11906_v20 }
 0x5c2   : > { %5048 = vmatmul.bf16.gmra.mxu2 %v11906_v20 }
 0x5c3   : > { %5097 = vmatmul.bf16.gmra.mxu3 %v11906_v20  ;;  %v11922_v20 = vadd.f32 %v4750_v9, %v13831_v4  ;;  %v11940_v9 = vadd.f32 %v4747_v15, %v13869_v23  ;;  %v13871_v23 = vld [vmem:[#allocation38_spill] sm:$0xff] }
 0x5c5   : > { %v4853_v49 = vpop.f32.mrf.mxu2  ;;  %v4757_v48 = vpop.f32.mrf.mxu0 }
 0x5c6   : > { %v4902_v24 = vpop.f32.mrf.mxu3  ;;  %v4806_v37 = vpop.f32.mrf.mxu1 }
 0x5cd   : > { %v4855_v32 = vpop.f32.mrf.mxu2  ;;  %v4760_v26 = vpop.f32.mrf.mxu0 }
 0x5ce   : > { %v4904_v27 = vpop.f32.mrf.mxu3  ;;  %v4809_v22 = vpop.f32.mrf.mxu1 }
 0x5d0   : > { %4955 = vmatmul.bf16.gmra.mxu0 %v11915_v43 }
 0x5d1   : > { %5004 = vmatmul.bf16.gmra.mxu1 %v11915_v43 }
 0x5d2   : > { %5053 = vmatmul.bf16.gmra.mxu2 %v11915_v43 }
 0x5d3   : > { %5102 = vmatmul.bf16.gmra.mxu3 %v11915_v43  ;;  %v11937_v43 = vadd.f32 %v4892_v40, %v13868_v28  ;;  %v13870_v28 = vld [vmem:[#allocation17_spill] sm:$0xff]  ;;  %v4805_v40 = vadd.f32 %v4804_v50, %v13836_v0 }
 0x5d4   : > { %v11956_v15 = vadd.f32 %v4752_v52, %v13870_v28  ;;  %v11959_v44 = vadd.f32 %v4801_v8, %v13870_v28  ;;  %v11962_v61 = vadd.f32 %v4850_v12, %v13870_v28  ;;  %v11965_v18 = vadd.f32 %v4899_v29, %v13870_v28 }
 0x5d5   : > { %v4858_v21 = vpop.f32.mrf.mxu2  ;;  %v4762_v51 = vpop.f32.mrf.mxu0  ;;  %v4758_v8 = vadd.f32 %v4757_v48, %v13837_v41  ;;  %v4807_v12 = vadd.f32 %v4806_v37, %v13837_v41  ;;  %v4903_v48 = vadd.f32 %v4902_v24, %v13836_v0  ;;  %v4898_v24 = vadd.f32 %v11901_v19, %v13831_v4 }
 0x5d6   : > { %v4907_v31 = vpop.f32.mrf.mxu3  ;;  %v4811_v47 = vpop.f32.mrf.mxu1  ;;  %v4763_v33 = vadd.f32 %v4762_v51, %v13833_v54  ;;  %v4761_v51 = vadd.f32 %v4760_v26, %v13871_v23  ;;  %v4859_v52 = vadd.f32 %v4858_v21, %v13871_v23  ;;  %v4856_v26 = vadd.f32 %v4855_v32, %v13837_v41 }
 0x5d7   : > { %v4812_v46 = vadd.f32 %v4811_v47, %v13833_v54  ;;  %v4810_v47 = vadd.f32 %v4809_v22, %v13871_v23  ;;  %v4908_v3 = vadd.f32 %v4907_v31, %v13871_v23  ;;  %v4905_v22 = vadd.f32 %v4904_v27, %v13837_v41 }
 0x5d8   : > { %v5548_v42 = vmax.f32 %v4763_v33, 0.0  ;;  %v4854_v31 = vadd.f32 %v4853_v49, %v13836_v0  ;;  %v5532_v23 = vmax.f32 %v4761_v51, 0.0  ;;  %v5534_v33 = vmax.f32 %v4859_v52, 0.0 }
 0x5d9   : > { %v5549_v60 = vmax.f32 %v4812_v46, 0.0  ;;  %v5533_v37 = vmax.f32 %v4810_v47, 0.0  ;;  %v5535_v46 = vmax.f32 %v4908_v3, 0.0  ;;  %v5516_v62 = vmax.f32 %v4758_v8, 0.0 }
 0x5da   : > { %v5517_v32 = vmax.f32 %v4807_v12, 0.0  ;;  %v5708_v58 = vpack.c.bf16 %v5548_v42, %v5532_v23  ;;  %v4849_v3 = vadd.f32 %v11899_v5, %v13831_v4  ;;  %v5500_v42 = vmax.f32 %v4756_v36, 0.0 }
 0x5db   : > { %v5709_v27 = vpack.c.bf16 %v5549_v60, %v5533_v37  ;;  %v5501_v23 = vmax.f32 %v4805_v40, 0.0  ;;  %v5484_v60 = vmax.f32 %v11956_v15, 0.0  ;;  %v5485_v51 = vmax.f32 %v11959_v44, 0.0 }
 0x5dc   : > { %v5692_v8 = vpack.c.bf16 %v5516_v62, %v5500_v42  ;;  %v5486_v36 = vmax.f32 %v11962_v61, 0.0  ;;  %v5470_v62 = vmax.f32 %v4849_v3, 0.0  ;;  %v13872_v61 = vmax.f32 %v11922_v20, 0.0 }
 0x5dd   : > { %v4860_v29 = vpop.f32.mrf.mxu2  ;;  %v4921_v2 = vpop.f32.mrf.mxu0  ;;  %v5693_v19 = vpack.c.bf16 %v5517_v32, %v5501_v23  ;;  %v5454_v37 = vmax.f32 %v11946_v17, 0.0 }
 0x5de   : > { %v4909_v28 = vpop.f32.mrf.mxu3  ;;  %v4861_v55 = vadd.f32 %v4860_v29, %v13833_v54  ;;  %v4970_v21 = vpop.f32.mrf.mxu1  ;;  %v5519_v29 = vmax.f32 %v4905_v22, 0.0 }
 0x5df   : > { %v4910_v50 = vadd.f32 %v4909_v28, %v13833_v54  ;;  %v5518_v28 = vmax.f32 %v4856_v26, 0.0  ;;  %v4971_v47 = vadd.f32 %v4970_v21, %v11549_v13  ;;  %v5452_v26 = vmax.f32 %v11940_v9, 0.0 }
 0x5e0   : > { %v5550_v16 = vmax.f32 %v4861_v55, 0.0  ;;  %5116 = vmatmul.bf16.vlgmr.msrb.gmra.mxu0 %v11748_v57  ;;  %v5471_v55 = vmax.f32 %v4898_v24, 0.0 }
 0x5e1   : > { %v5551_v14 = vmax.f32 %v4910_v50, 0.0  ;;  %5165 = vmatmul.bf16.vlgmr.msrb.gmra.mxu1 %v11748_v57  ;;  %6044 = vmatpush.bf16.msrb.mxu0 %v5708_v58  ;;  %v5487_v58 = vmax.f32 %v11965_v18, 0.0  ;;  %v5676_v18 = vpack.c.bf16 %v5484_v60, %v13872_v61  ;;  %v13873_v50 = vmax.f32 %v11925_v1, 0.0  ;;  %v13885_v61 = vld [vmem:[#allocation9_spill] sm:$0xff] }
 0x5e2   : > { %v5710_v41 = vpack.c.bf16 %v5550_v16, %v5534_v33  ;;  %5214 = vmatmul.bf16.vlgmr.msrb.gmra.mxu2 %v11748_v57  ;;  %6093 = vmatpush.bf16.msrb.mxu1 %v5709_v27  ;;  %v5502_v16 = vmax.f32 %v4854_v31, 0.0  ;;  %v5313_v9 = vmax.f32 %v4971_v47, 0.0  ;;  %v5455_v33 = vmax.f32 %v11949_v25, 0.0 }
 0x5e3   : > { %v5711_v49 = vpack.c.bf16 %v5551_v14, %v5535_v46  ;;  %5263 = vmatmul.bf16.vlgmr.msrb.gmra.mxu3 %v11748_v57  ;;  %v5503_v14 = vmax.f32 %v4903_v48, 0.0  ;;  %v4922_v57 = vadd.f32 %v4921_v2, %v11549_v13  ;;  %v5677_v21 = vpack.c.bf16 %v5485_v51, %v13873_v50 }
 0x5e4   : > { %6142 = vmatpush.bf16.msrb.mxu2 %v5710_v41  ;;  %v5694_v12 = vpack.c.bf16 %v5518_v28, %v5502_v16  ;;  %v5453_v41 = vmax.f32 %v11943_v30, 0.0  ;;  %v5678_v46 = vpack.c.bf16 %v5486_v36, %v5470_v62  ;;  %v5679_v32 = vpack.c.bf16 %v5487_v58, %v5471_v55  ;;  %v13884_v55 = vld [vmem:[#allocation14_spill] sm:$0xff] }
 0x5e5   : > { %6191 = vmatpush.bf16.msrb.mxu3 %v5711_v49  ;;  %v5019_v5 = vpop.f32.mrf.mxu2  ;;  %v4923_v40 = vpop.f32.mrf.mxu0  ;;  %v5695_v44 = vpack.c.bf16 %v5519_v29, %v5503_v14  ;;  %6045 = vmatpush.bf16.msrb.mxu0 %v5692_v8  ;;  %v5312_v31 = vmax.f32 %v4922_v57, 0.0  ;;  %v5436_v27 = vmax.f32 %v11928_v63, 0.0  ;;  %v5437_v28 = vmax.f32 %v11931_v59, 0.0 }
 0x5e6   : > { %v5068_v52 = vpop.f32.mrf.mxu3  ;;  %v4972_v15 = vpop.f32.mrf.mxu1  ;;  %6094 = vmatpush.bf16.msrb.mxu1 %v5693_v19  ;;  %v4924_v2 = vadd.f32 %v4923_v40, %v11551_v56  ;;  %v5438_v29 = vmax.f32 %v11934_v6, 0.0  ;;  %v5439_v49 = vmax.f32 %v11937_v43, 0.0  ;;  %v5020_v17 = vadd.f32 %v5019_v5, %v11549_v13 }
 0x5e7   : > { %v4973_v22 = vadd.f32 %v4972_v15, %v11551_v56  ;;  %v5069_v25 = vadd.f32 %v5068_v52, %v11549_v13  ;;  %v5660_v24 = vpack.c.bf16 %v5452_v26, %v5436_v27  ;;  %v5661_v59 = vpack.c.bf16 %v5453_v41, %v5437_v28  ;;  %v13878_v15 = vld [vmem:[#allocation10_spill] sm:$0xff]  ;;  %v13880_v41 = vld [vmem:[#allocation25_spill] sm:$0xff] }
 0x5e8   : > { %6143 = vmatpush.bf16.msrb.mxu2 %v5694_v12  ;;  %v5328_v48 = vmax.f32 %v4924_v2, 0.0  ;;  %v5662_v16 = vpack.c.bf16 %v5454_v37, %v5438_v29  ;;  %v5663_v6 = vpack.c.bf16 %v5455_v33, %v5439_v49  ;;  %v5314_v43 = vmax.f32 %v5020_v17, 0.0  ;;  %v13881_v2 = vld [vmem:[#allocation35_spill] sm:$0xff]  ;;  %v13887_v37 = vld [vmem:[#allocation21_spill] sm:$0xff]  ;;  %v13888_v28 = vld [vmem:[#allocation18_spill] sm:$0xff] }
 0x5e9   : > { %6192 = vmatpush.bf16.msrb.mxu3 %v5695_v44  ;;  %v5329_v30 = vmax.f32 %v4973_v22, 0.0  ;;  %6046 = vmatpush.bf16.msrb.mxu0 %v5676_v18  ;;  %v5315_v14 = vmax.f32 %v5069_v25, 0.0  ;;  %v13889_v29 = vld [vmem:[#allocation24_spill] sm:$0xff]  ;;  %v13890_v49 = vld [vmem:[#allocation23_spill] sm:$0xff] }
 0x5ea   : > { %6095 = vmatpush.bf16.msrb.mxu1 %v5677_v21  ;;  %v12007_v20 = vpack.c.bf16 %v5328_v48, %v5312_v31 }
 0x5eb   : > { %v12009_v1 = vpack.c.bf16 %v5329_v30, %v5313_v9  ;;  %v13886_v30 = vld [vmem:[#allocation32_spill] sm:$0xff] }
 0x5ec   : > { %13874 = vst [vmem:[#allocation31_spill] sm:$0xff] %v12007_v20  ;;  %6144 = vmatpush.bf16.msrb.mxu2 %v5678_v46  ;;  %v12171_v20 = vld [vmem:[#allocation3] sm:$0xff] }
 0x5ed   : > { %13875 = vst [vmem:[#allocation37_spill] sm:$0xff] %v12009_v1  ;;  %6193 = vmatpush.bf16.msrb.mxu3 %v5679_v32  ;;  %v5021_v3 = vpop.f32.mrf.mxu2  ;;  %v4926_v60 = vpop.f32.mrf.mxu0  ;;  %6047 = vmatpush.bf16.msrb.mxu0 %v5660_v24 }
 0x5ee   : > { %v5070_v63 = vpop.f32.mrf.mxu3  ;;  %v5022_v42 = vadd.f32 %v5021_v3, %v11551_v56  ;;  %v4975_v51 = vpop.f32.mrf.mxu1  ;;  %6096 = vmatpush.bf16.msrb.mxu1 %v5661_v59  ;;  %v4927_v8 = vadd.f32 %v4926_v60, %v11509_v35  ;;  %v13893_v3 = vld [vmem:[#allocation36_spill] sm:$0xff] }
 0x5ef   : > { %v5071_v23 = vadd.f32 %v5070_v63, %v11551_v56  ;;  %v4976_v19 = vadd.f32 %v4975_v51, %v11509_v35  ;;  %v13894_v51 = vld [vmem:[#allocation13_spill] sm:$0xff] }
 0x5f0   : > { %v5330_v57 = vmax.f32 %v5022_v42, 0.0  ;;  %6145 = vmatpush.bf16.msrb.mxu2 %v5662_v16  ;;  %5121 = vmatmul.bf16.gmra.mxu0 %v11789_v11 }
 0x5f1   : > { %v5331_v47 = vmax.f32 %v5071_v23, 0.0  ;;  %6194 = vmatpush.bf16.msrb.mxu3 %v5663_v6  ;;  %5170 = vmatmul.bf16.gmra.mxu1 %v11789_v11  ;;  %v5345_v12 = vmax.f32 %v4976_v19, 0.0 }
 0x5f2   : > { %5219 = vmatmul.bf16.gmra.mxu2 %v11789_v11  ;;  %v12021_v5 = vpack.c.bf16 %v5330_v57, %v5314_v43  ;;  %6048 = vmatpush.bf16.msrb.mxu0 %v11869_v39 }
 0x5f3   : > { %5268 = vmatmul.bf16.gmra.mxu3 %v11789_v11  ;;  %v12023_v52 = vpack.c.bf16 %v5331_v47, %v5315_v14  ;;  %6097 = vmatpush.bf16.msrb.mxu1 %v11871_v38 }
 0x5f4   : > { %13876 = vst [vmem:[#allocation29_spill] sm:$0xff] %v12021_v5  ;;  %6146 = vmatpush.bf16.msrb.mxu2 %v11886_v53  ;;  %v13879_v53 = vld [vmem:[#allocation27_spill] sm:$0xff] }
 0x5f5   : > { %13877 = vst [vmem:[#allocation12_spill] sm:$0xff] %v12023_v52  ;;  %6195 = vmatpush.bf16.msrb.mxu3 %v11888_v7  ;;  %v5024_v36 = vpop.f32.mrf.mxu2  ;;  %v4928_v40 = vpop.f32.mrf.mxu0  ;;  %v5344_v7 = vmax.f32 %v4927_v8, 0.0 }
 0x5f6   : > { %v5073_v58 = vpop.f32.mrf.mxu3  ;;  %v4977_v11 = vpop.f32.mrf.mxu1  ;;  %6049 = vmatpush.bf16.msrb.mxu0 %v11844_v34  ;;  %v4929_v39 = vadd.f32 %v4928_v40, %v11593_v10 }
 0x5f7   : > { %6098 = vmatpush.bf16.msrb.mxu1 %v11846_v45  ;;  %v4978_v38 = vadd.f32 %v4977_v11, %v11593_v10  ;;  %v5025_v45 = vadd.f32 %v5024_v36, %v11509_v35  ;;  %v5074_v62 = vadd.f32 %v5073_v58, %v11509_v35 }
 0x5f8   : > { %6147 = vmatpush.bf16.msrb.mxu2 %v13878_v15  ;;  %v5360_v44 = vmax.f32 %v4929_v39, 0.0 }
 0x5f9   : > { %6196 = vmatpush.bf16.msrb.mxu3 %v13879_v53  ;;  %v5361_v26 = vmax.f32 %v4978_v38, 0.0  ;;  %v5346_v33 = vmax.f32 %v5025_v45, 0.0  ;;  %v5347_v46 = vmax.f32 %v5074_v62, 0.0  ;;  %v13897_v62 = vld [vmem:[#allocation11_spill] sm:$0xff] }
 0x5fa   : > { %6050 = vmatpush.bf16.msrb.mxu0 %v13880_v41  ;;  %v12039_v22 = vpack.c.bf16 %v5360_v44, %v5344_v7  ;;  %v13895_v41 = vld [vmem:[#allocation19_spill] sm:$0xff] }
 0x5fb   : > { %6099 = vmatpush.bf16.msrb.mxu1 %v13881_v2  ;;  %v12041_v34 = vpack.c.bf16 %v5361_v26, %v5345_v12 }
 0x5fc   : > { %13882 = vst [vmem:[#allocation28_spill] sm:$0xff] %v12039_v22  ;;  %6148 = vmatpush.bf16.msrb.mxu2 %v13884_v55 }
 0x5fd   : > { %13883 = vst [vmem:[#allocation10_spill] sm:$0xff] %v12041_v34  ;;  %6197 = vmatpush.bf16.msrb.mxu3 %v13885_v61  ;;  %v5026_v18 = vpop.f32.mrf.mxu2  ;;  %v4931_v9 = vpop.f32.mrf.mxu0 }
 0x5fe   : > { %v5075_v50 = vpop.f32.mrf.mxu3  ;;  %v5027_v21 = vadd.f32 %v5026_v18, %v11593_v10  ;;  %v4980_v48 = vpop.f32.mrf.mxu1  ;;  %6051 = vmatpush.bf16.msrb.mxu0 %v13886_v30  ;;  %v4932_v63 = vadd.f32 %v4931_v9, %v13893_v3  ;;  %v13898_v9 = vld [vmem:[#allocation16_spill] sm:$0xff] }
 0x5ff   : > { %v5076_v31 = vadd.f32 %v5075_v50, %v11593_v10  ;;  %6100 = vmatpush.bf16.msrb.mxu1 %v13887_v37  ;;  %v4981_v24 = vadd.f32 %v4980_v48, %v13893_v3 }
 0x600   : > { %v5362_v32 = vmax.f32 %v5027_v21, 0.0  ;;  %6149 = vmatpush.bf16.msrb.mxu2 %v13888_v28  ;;  %5126 = vmatmul.bf16.gmra.mxu0 %v13890_v49  ;;  %v5376_v43 = vmax.f32 %v4932_v63, 0.0 }
 0x601   : > { %v5363_v27 = vmax.f32 %v5076_v31, 0.0  ;;  %6198 = vmatpush.bf16.msrb.mxu3 %v13889_v29  ;;  %5175 = vmatmul.bf16.gmra.mxu1 %v13890_v49  ;;  %v5377_v14 = vmax.f32 %v4981_v24, 0.0 }
 0x602   : > { %5224 = vmatmul.bf16.gmra.mxu2 %v13890_v49  ;;  %v12057_v17 = vpack.c.bf16 %v5362_v32, %v5346_v33 }
 0x603   : > { %5273 = vmatmul.bf16.gmra.mxu3 %v13890_v49  ;;  %v12059_v25 = vpack.c.bf16 %v5363_v27, %v5347_v46 }
 0x604   : > { %13891 = vst [vmem:[#allocation27_spill] sm:$0xff] %v12057_v17 }
 0x605   : > { %13892 = vst [vmem:[#allocation25_spill] sm:$0xff] %v12059_v25  ;;  %v5029_v59 = vpop.f32.mrf.mxu2  ;;  %v4933_v23 = vpop.f32.mrf.mxu0 }
 0x606   : > { %v5078_v42 = vpop.f32.mrf.mxu3  ;;  %v4982_v60 = vpop.f32.mrf.mxu1  ;;  %v4934_v16 = vadd.f32 %v4933_v23, %v13894_v51  ;;  %v5030_v36 = vadd.f32 %v5029_v59, %v13893_v3 }
 0x607   : > { %v4983_v6 = vadd.f32 %v4982_v60, %v13894_v51  ;;  %v5079_v58 = vadd.f32 %v5078_v42, %v13893_v3 }
 0x608   : > { %v5392_v57 = vmax.f32 %v4934_v16, 0.0  ;;  %v5378_v7 = vmax.f32 %v5030_v36, 0.0 }
 0x609   : > { %v5393_v47 = vmax.f32 %v4983_v6, 0.0  ;;  %v5379_v12 = vmax.f32 %v5079_v58, 0.0 }
 0x60a   : > { %v12065_v8 = vpack.c.bf16 %v5392_v57, %v5376_v43  ;;  %v13899_v57 = vld [vmem:[#allocation22_spill] sm:$0xff] }
 0x60b   : > { %v12067_v19 = vpack.c.bf16 %v5393_v47, %v5377_v14 }
 0x60d   : > { %v5031_v40 = vpop.f32.mrf.mxu2  ;;  %v4936_v15 = vpop.f32.mrf.mxu0 }
 0x60e   : > { %v5080_v11 = vpop.f32.mrf.mxu3  ;;  %v5032_v39 = vadd.f32 %v5031_v40, %v13894_v51  ;;  %v4985_v53 = vpop.f32.mrf.mxu1  ;;  %v4937_v55 = vadd.f32 %v4936_v15, %v13897_v62 }
 0x60f   : > { %v5081_v38 = vadd.f32 %v5080_v11, %v13894_v51  ;;  %v4986_v61 = vadd.f32 %v4985_v53, %v13897_v62 }
 0x610   : > { %v5394_v44 = vmax.f32 %v5032_v39, 0.0  ;;  %5131 = vmatmul.bf16.gmra.mxu0 %v13895_v41  ;;  %v5408_v37 = vmax.f32 %v4937_v55, 0.0 }
 0x611   : > { %v5395_v26 = vmax.f32 %v5081_v38, 0.0  ;;  %5180 = vmatmul.bf16.gmra.mxu1 %v13895_v41  ;;  %v5409_v33 = vmax.f32 %v4986_v61, 0.0 }
 0x612   : > { %5229 = vmatmul.bf16.gmra.mxu2 %v13895_v41  ;;  %v12077_v2 = vpack.c.bf16 %v5394_v44, %v5378_v7 }
 0x613   : > { %5278 = vmatmul.bf16.gmra.mxu3 %v13895_v41  ;;  %v12079_v45 = vpack.c.bf16 %v5395_v26, %v5379_v12  ;;  %v13900_v12 = vld [vmem:[#allocation33_spill] sm:$0xff] }
 0x615   : > { %13896 = vst [vmem:[#allocation35_spill] sm:$0xff] %v12079_v45  ;;  %v5034_v18 = vpop.f32.mrf.mxu2  ;;  %v4938_v21 = vpop.f32.mrf.mxu0 }
 0x616   : > { %v5083_v50 = vpop.f32.mrf.mxu3  ;;  %v4987_v31 = vpop.f32.mrf.mxu1  ;;  %v4939_v48 = vadd.f32 %v4938_v21, %v13898_v9  ;;  %v5035_v29 = vadd.f32 %v5034_v18, %v13897_v62 }
 0x617   : > { %v4988_v30 = vadd.f32 %v4987_v31, %v13898_v9  ;;  %v5084_v49 = vadd.f32 %v5083_v50, %v13897_v62  ;;  %v13901_v31 = vld [vmem:[#allocation20_spill] sm:$0xff] }
 0x618   : > { %v5424_v46 = vmax.f32 %v4939_v48, 0.0  ;;  %v5410_v16 = vmax.f32 %v5035_v29, 0.0 }
 0x619   : > { %v5425_v32 = vmax.f32 %v4988_v30, 0.0  ;;  %v5411_v6 = vmax.f32 %v5084_v49, 0.0 }
 0x61a   : > { %v12085_v27 = vpack.c.bf16 %v5424_v46, %v5408_v37 }
 0x61b   : > { %v12087_v28 = vpack.c.bf16 %v5425_v32, %v5409_v33 }
 0x61d   : > { %v5036_v63 = vpop.f32.mrf.mxu2  ;;  %v4941_v23 = vpop.f32.mrf.mxu0 }
 0x61e   : > { %v5085_v24 = vpop.f32.mrf.mxu3  ;;  %v5037_v59 = vadd.f32 %v5036_v63, %v13898_v9  ;;  %v4990_v60 = vpop.f32.mrf.mxu1  ;;  %v13902_v63 = vld [vmem:[#allocation26_spill] sm:$0xff] }
 0x61f   : > { %v5086_v42 = vadd.f32 %v5085_v24, %v13898_v9  ;;  %v13904_v9 = vld [vmem:[#allocation15_spill] sm:$0xff] }
 0x620   : > { %v5426_v43 = vmax.f32 %v5037_v59, 0.0  ;;  %5136 = vmatmul.bf16.gmra.mxu0 %v13899_v57 }
 0x621   : > { %v5427_v14 = vmax.f32 %v5086_v42, 0.0  ;;  %5185 = vmatmul.bf16.gmra.mxu1 %v13899_v57 }
 0x622   : > { %5234 = vmatmul.bf16.gmra.mxu2 %v13899_v57  ;;  %v12097_v47 = vpack.c.bf16 %v5426_v43, %v5410_v16 }
 0x623   : > { %5283 = vmatmul.bf16.gmra.mxu3 %v13899_v57  ;;  %v12099_v36 = vpack.c.bf16 %v5427_v14, %v5411_v6  ;;  %v13903_v14 = vld [vmem:[#allocation34_spill] sm:$0xff] }
 0x624   : > { %v12124_v57 = vadd.f32 %v4941_v23, %v13903_v14 }
 0x625   : > { %v5039_v58 = vpop.f32.mrf.mxu2  ;;  %v4943_v11 = vpop.f32.mrf.mxu0 }
 0x626   : > { %v5088_v40 = vpop.f32.mrf.mxu3  ;;  %v4992_v39 = vpop.f32.mrf.mxu1 }
 0x62d   : > { %v5041_v38 = vpop.f32.mrf.mxu2  ;;  %v4946_v53 = vpop.f32.mrf.mxu0 }
 0x62e   : > { %v5090_v15 = vpop.f32.mrf.mxu3  ;;  %v4995_v7 = vpop.f32.mrf.mxu1  ;;  %v12118_v42 = vadd.f32 %v4946_v53, %v13831_v4  ;;  %v12136_v53 = vadd.f32 %v4943_v11, %v13904_v9  ;;  %v12142_v62 = vadd.f32 %v5041_v38, %v13904_v9 }
 0x62f   : > { %v12121_v16 = vadd.f32 %v4995_v7, %v13831_v4  ;;  %v12139_v7 = vadd.f32 %v4992_v39, %v13904_v9  ;;  %v12145_v23 = vadd.f32 %v5090_v15, %v13904_v9  ;;  %v13906_v9 = vld [vmem:[#allocation38_spill] sm:$0xff] }
 0x630   : > { %5141 = vmatmul.bf16.gmra.mxu0 %v13900_v12 }
 0x631   : > { %5190 = vmatmul.bf16.gmra.mxu1 %v13900_v12 }
 0x632   : > { %5239 = vmatmul.bf16.gmra.mxu2 %v13900_v12 }
 0x633   : > { %5288 = vmatmul.bf16.gmra.mxu3 %v13900_v12  ;;  %v12127_v12 = vadd.f32 %v4990_v60, %v13903_v14 }
 0x635   : > { %v12105_v44 = vpop.f32.mrf.mxu2  ;;  %v4948_v41 = vpop.f32.mrf.mxu0 }
 0x636   : > { %v12107_v26 = vpop.f32.mrf.mxu3  ;;  %v4997_v55 = vpop.f32.mrf.mxu1 }
 0x63d   : > { %v5046_v61 = vpop.f32.mrf.mxu2  ;;  %v4951_v50 = vpop.f32.mrf.mxu0 }
 0x63e   : > { %v5095_v18 = vpop.f32.mrf.mxu3  ;;  %v5000_v21 = vpop.f32.mrf.mxu1  ;;  %v4952_v51 = vadd.f32 %v4951_v50, %v13836_v0 }
 0x640   : > { %5146 = vmatmul.bf16.gmra.mxu0 %v13901_v31 }
 0x641   : > { %5195 = vmatmul.bf16.gmra.mxu1 %v13901_v31 }
 0x642   : > { %5244 = vmatmul.bf16.gmra.mxu2 %v13901_v31 }
 0x643   : > { %5293 = vmatmul.bf16.gmra.mxu3 %v13901_v31  ;;  %v12130_v31 = vadd.f32 %v5039_v58, %v13903_v14 }
 0x645   : > { %v5049_v48 = vpop.f32.mrf.mxu2  ;;  %v4953_v37 = vpop.f32.mrf.mxu0 }
 0x646   : > { %v5098_v30 = vpop.f32.mrf.mxu3  ;;  %v5002_v33 = vpop.f32.mrf.mxu1 }
 0x64d   : > { %v5051_v46 = vpop.f32.mrf.mxu2  ;;  %v4956_v29 = vpop.f32.mrf.mxu0 }
 0x64e   : > { %v5100_v32 = vpop.f32.mrf.mxu3  ;;  %v5005_v49 = vpop.f32.mrf.mxu1 }
 0x650   : > { %5151 = vmatmul.bf16.gmra.mxu0 %v13902_v63 }
 0x651   : > { %5200 = vmatmul.bf16.gmra.mxu1 %v13902_v63 }
 0x652   : > { %5249 = vmatmul.bf16.gmra.mxu2 %v13902_v63 }
 0x653   : > { %5298 = vmatmul.bf16.gmra.mxu3 %v13902_v63  ;;  %v12133_v63 = vadd.f32 %v5088_v40, %v13903_v14  ;;  %v13905_v14 = vld [vmem:[#allocation17_spill] sm:$0xff]  ;;  %v5001_v40 = vadd.f32 %v5000_v21, %v13836_v0 }
 0x654   : > { %v12152_v11 = vadd.f32 %v4948_v41, %v13905_v14  ;;  %v12155_v39 = vadd.f32 %v4997_v55, %v13905_v14  ;;  %v12158_v38 = vadd.f32 %v5046_v61, %v13905_v14  ;;  %v12161_v15 = vadd.f32 %v5095_v18, %v13905_v14  ;;  %v13907_v55 = vld [vmem:[#allocation30_spill] sm:$0xff] }
 0x655   : > { %v5054_v24 = vpop.f32.mrf.mxu2  ;;  %v4958_v6 = vpop.f32.mrf.mxu0  ;;  %v4954_v52 = vadd.f32 %v4953_v37, %v13907_v55  ;;  %v5003_v61 = vadd.f32 %v5002_v33, %v13907_v55  ;;  %v5101_v50 = vadd.f32 %v5100_v32, %v13907_v55  ;;  %v5050_v37 = vadd.f32 %v5049_v48, %v13836_v0 }
 0x656   : > { %v5103_v59 = vpop.f32.mrf.mxu3  ;;  %v5007_v43 = vpop.f32.mrf.mxu1  ;;  %v4959_v60 = vadd.f32 %v4958_v6, %v13833_v54  ;;  %v4957_v6 = vadd.f32 %v4956_v29, %v13906_v9  ;;  %v5055_v41 = vadd.f32 %v5054_v24, %v13906_v9  ;;  %v5052_v29 = vadd.f32 %v5051_v46, %v13907_v55 }
 0x657   : > { %v5008_v58 = vadd.f32 %v5007_v43, %v13833_v54  ;;  %v5006_v43 = vadd.f32 %v5005_v49, %v13906_v9  ;;  %v5104_v3 = vadd.f32 %v5103_v59, %v13906_v9  ;;  %v5099_v33 = vadd.f32 %v5098_v30, %v13836_v0 }
 0x658   : > { %v5552_v5 = vmax.f32 %v4959_v60, 0.0  ;;  %v5536_v60 = vmax.f32 %v4957_v6, 0.0  ;;  %v5538_v9 = vmax.f32 %v5055_v41, 0.0  ;;  %v5520_v22 = vmax.f32 %v4954_v52, 0.0 }
 0x659   : > { %v5553_v1 = vmax.f32 %v5008_v58, 0.0  ;;  %v5537_v58 = vmax.f32 %v5006_v43, 0.0  ;;  %v5539_v25 = vmax.f32 %v5104_v3, 0.0  ;;  %v5521_v46 = vmax.f32 %v5003_v61, 0.0 }
 0x65a   : > { %v5712_v45 = vpack.c.bf16 %v5552_v5, %v5536_v60  ;;  %v5045_v3 = vadd.f32 %v12105_v44, %v13831_v4  ;;  %v5094_v52 = vadd.f32 %v12107_v26, %v13831_v4  ;;  %v5504_v5 = vmax.f32 %v4952_v51, 0.0 }
 0x65b   : > { %v5713_v32 = vpack.c.bf16 %v5553_v1, %v5537_v58  ;;  %v5505_v1 = vmax.f32 %v5001_v40, 0.0  ;;  %v5488_v30 = vmax.f32 %v12152_v11, 0.0  ;;  %v5489_v6 = vmax.f32 %v12155_v39, 0.0 }
 0x65c   : > { %v5696_v41 = vpack.c.bf16 %v5520_v22, %v5504_v5  ;;  %v5490_v51 = vmax.f32 %v12158_v38, 0.0  ;;  %v5474_v22 = vmax.f32 %v5045_v3, 0.0  ;;  %v13908_v38 = vmax.f32 %v12118_v42, 0.0 }
 0x65d   : > { %v5056_v18 = vpop.f32.mrf.mxu2  ;;  %v5117_v24 = vpop.f32.mrf.mxu0  ;;  %v5697_v26 = vpack.c.bf16 %v5521_v46, %v5505_v1  ;;  %v5458_v60 = vmax.f32 %v12142_v62, 0.0  ;;  %v5459_v58 = vmax.f32 %v12145_v23, 0.0  ;;  %v5443_v3 = vmax.f32 %v12133_v63, 0.0  ;;  %v12213_v1 = vld [vmem:[#allocation3 + $0x8] sm:$0xff] }
 0x65e   : > { %v5105_v14 = vpop.f32.mrf.mxu3  ;;  %v5057_v21 = vadd.f32 %v5056_v18, %v13833_v54  ;;  %v5166_v59 = vpop.f32.mrf.mxu1  ;;  %v5523_v18 = vmax.f32 %v5101_v50, 0.0  ;;  %v5682_v46 = vpack.c.bf16 %v5490_v51, %v5474_v22 }
 0x65f   : > { %v5106_v49 = vadd.f32 %v5105_v14, %v13833_v54  ;;  %v5522_v14 = vmax.f32 %v5052_v29, 0.0  ;;  %v5456_v29 = vmax.f32 %v12136_v53, 0.0  ;;  %v5667_v63 = vpack.c.bf16 %v5459_v58, %v5443_v3  ;;  %v13928_v3 = vld [vmem:[#allocation36_spill] sm:$0xff] }
 0x660   : > { %v5554_v17 = vmax.f32 %v5057_v21, 0.0  ;;  %5856 = vmatmul.bf16.vlgmr.msra.gmra.mxu0 %v12171_v20 }
 0x661   : > { %v5555_v34 = vmax.f32 %v5106_v49, 0.0  ;;  %5905 = vmatmul.bf16.vlgmr.msra.gmra.mxu1 %v12171_v20  ;;  %6240 = vmatpush.bf16.msra.mxu0 %v5712_v45  ;;  %v5491_v45 = vmax.f32 %v12161_v15, 0.0  ;;  %v5475_v49 = vmax.f32 %v5094_v52, 0.0  ;;  %v5680_v15 = vpack.c.bf16 %v5488_v30, %v13908_v38 }
 0x662   : > { %v5714_v55 = vpack.c.bf16 %v5554_v17, %v5538_v9  ;;  %5954 = vmatmul.bf16.vlgmr.msra.gmra.mxu2 %v12171_v20  ;;  %6289 = vmatpush.bf16.msra.mxu1 %v5713_v32  ;;  %v5506_v17 = vmax.f32 %v5050_v37, 0.0  ;;  %v5167_v9 = vadd.f32 %v5166_v59, %v11549_v13 }
 0x663   : > { %v5715_v48 = vpack.c.bf16 %v5555_v34, %v5539_v25  ;;  %6003 = vmatmul.bf16.vlgmr.msra.gmra.mxu3 %v12171_v20  ;;  %v5507_v34 = vmax.f32 %v5099_v33, 0.0  ;;  %v5118_v25 = vadd.f32 %v5117_v24, %v11549_v13  ;;  %v13909_v24 = vmax.f32 %v12121_v16, 0.0 }
 0x664   : > { %6338 = vmatpush.bf16.msra.mxu2 %v5714_v55  ;;  %v5698_v61 = vpack.c.bf16 %v5522_v14, %v5506_v17  ;;  %v5457_v55 = vmax.f32 %v12139_v7, 0.0  ;;  %v5317_v53 = vmax.f32 %v5167_v9, 0.0  ;;  %v5683_v32 = vpack.c.bf16 %v5491_v45, %v5475_v49  ;;  %v13919_v49 = vld [vmem:[#allocation27_spill] sm:$0xff] }
 0x665   : > { %6387 = vmatpush.bf16.msra.mxu3 %v5715_v48  ;;  %v5215_v44 = vpop.f32.mrf.mxu2  ;;  %v5119_v40 = vpop.f32.mrf.mxu0  ;;  %v5699_v39 = vpack.c.bf16 %v5523_v18, %v5507_v34  ;;  %6241 = vmatpush.bf16.msra.mxu0 %v5696_v41  ;;  %v5681_v59 = vpack.c.bf16 %v5489_v6, %v13909_v24  ;;  %v5316_v37 = vmax.f32 %v5118_v25, 0.0  ;;  %v5440_v14 = vmax.f32 %v12124_v57, 0.0  ;;  %v12247_v24 = vld [vmem:[#allocation3 + $0x10] sm:$0xff] }
 0x666   : > { %v5264_v43 = vpop.f32.mrf.mxu3  ;;  %v5168_v11 = vpop.f32.mrf.mxu1  ;;  %6290 = vmatpush.bf16.msra.mxu1 %v5697_v26  ;;  %v5120_v50 = vadd.f32 %v5119_v40, %v11551_v56  ;;  %v5441_v18 = vmax.f32 %v12127_v12, 0.0  ;;  %v5442_v48 = vmax.f32 %v12130_v31, 0.0  ;;  %v5216_v62 = vadd.f32 %v5215_v44, %v11549_v13  ;;  %13921 = vst [vmem:[#allocation23_spill] sm:$0xff] %v12247_v24 }
 0x667   : > { %v5169_v21 = vadd.f32 %v5168_v11, %v11551_v56  ;;  %v5265_v23 = vadd.f32 %v5264_v43, %v11549_v13  ;;  %v5664_v5 = vpack.c.bf16 %v5456_v29, %v5440_v14  ;;  %v13924_v14 = vld [vmem:[#allocation29_spill] sm:$0xff] }
 0x668   : > { %6339 = vmatpush.bf16.msra.mxu2 %v5698_v61  ;;  %v5332_v33 = vmax.f32 %v5120_v50, 0.0  ;;  %v5665_v12 = vpack.c.bf16 %v5457_v55, %v5441_v18  ;;  %v5666_v34 = vpack.c.bf16 %v5458_v60, %v5442_v48  ;;  %v5318_v25 = vmax.f32 %v5216_v62, 0.0  ;;  %v13915_v55 = vld [vmem:[#allocation28_spill] sm:$0xff]  ;;  %v13916_v50 = vld [vmem:[#allocation10_spill] sm:$0xff]  ;;  %v13923_v60 = vld [vmem:[#allocation37_spill] sm:$0xff] }
 0x669   : > { %6388 = vmatpush.bf16.msra.mxu3 %v5699_v39  ;;  %v5333_v7 = vmax.f32 %v5169_v21, 0.0  ;;  %6242 = vmatpush.bf16.msra.mxu0 %v5680_v15  ;;  %v5319_v13 = vmax.f32 %v5265_v23, 0.0  ;;  %v13925_v18 = vld [vmem:[#allocation12_spill] sm:$0xff] }
 0x66a   : > { %6291 = vmatpush.bf16.msra.mxu1 %v5681_v59  ;;  %v12205_v42 = vpack.c.bf16 %v5332_v33, %v5316_v37 }
 0x66b   : > { %v12207_v16 = vpack.c.bf16 %v5333_v7, %v5317_v53  ;;  %v13922_v7 = vld [vmem:[#allocation31_spill] sm:$0xff] }
 0x66c   : > { %13910 = vst [vmem:[#allocation14_spill] sm:$0xff] %v12205_v42  ;;  %6340 = vmatpush.bf16.msra.mxu2 %v5682_v46 }
 0x66d   : > { %13911 = vst [vmem:[#allocation9_spill] sm:$0xff] %v12207_v16  ;;  %6389 = vmatpush.bf16.msra.mxu3 %v5683_v32  ;;  %v5217_v52 = vpop.f32.mrf.mxu2  ;;  %v5122_v17 = vpop.f32.mrf.mxu0  ;;  %6243 = vmatpush.bf16.msra.mxu0 %v5664_v5 }
 0x66e   : > { %v5266_v57 = vpop.f32.mrf.mxu3  ;;  %v5218_v30 = vadd.f32 %v5217_v52, %v11551_v56  ;;  %v5171_v31 = vpop.f32.mrf.mxu1  ;;  %6292 = vmatpush.bf16.msra.mxu1 %v5665_v12  ;;  %v5123_v41 = vadd.f32 %v5122_v17, %v11509_v35 }
 0x66f   : > { %v5267_v6 = vadd.f32 %v5266_v57, %v11551_v56  ;;  %v5172_v26 = vadd.f32 %v5171_v31, %v11509_v35 }
 0x670   : > { %v5334_v9 = vmax.f32 %v5218_v30, 0.0  ;;  %6341 = vmatpush.bf16.msra.mxu2 %v5666_v34  ;;  %5861 = vmatmul.bf16.gmra.mxu0 %v12213_v1  ;;  %v13929_v30 = vld [vmem:[#allocation13_spill] sm:$0xff] }
 0x671   : > { %v5335_v44 = vmax.f32 %v5267_v6, 0.0  ;;  %6390 = vmatpush.bf16.msra.mxu3 %v5667_v63  ;;  %5910 = vmatmul.bf16.gmra.mxu1 %v12213_v1  ;;  %v5349_v61 = vmax.f32 %v5172_v26, 0.0 }
 0x672   : > { %5959 = vmatmul.bf16.gmra.mxu2 %v12213_v1  ;;  %v12221_v56 = vpack.c.bf16 %v5334_v9, %v5318_v25  ;;  %6244 = vmatpush.bf16.msra.mxu0 %v12085_v27 }
 0x673   : > { %6008 = vmatmul.bf16.gmra.mxu3 %v12213_v1  ;;  %v12223_v43 = vpack.c.bf16 %v5335_v44, %v5319_v13  ;;  %6293 = vmatpush.bf16.msra.mxu1 %v12087_v28 }
 0x674   : > { %13912 = vst [vmem:[#allocation32_spill] sm:$0xff] %v12221_v56  ;;  %6342 = vmatpush.bf16.msra.mxu2 %v12097_v47  ;;  %v13914_v47 = vld [vmem:[#allocation35_spill] sm:$0xff] }
 0x675   : > { %13913 = vst [vmem:[#allocation21_spill] sm:$0xff] %v12223_v43  ;;  %6391 = vmatpush.bf16.msra.mxu3 %v12099_v36  ;;  %v5220_v51 = vpop.f32.mrf.mxu2  ;;  %v5124_v40 = vpop.f32.mrf.mxu0  ;;  %v5348_v36 = vmax.f32 %v5123_v41, 0.0  ;;  %v13953_v43 = vld [vmem:[#allocation38_spill] sm:$0xff] }
 0x676   : > { %v5269_v45 = vpop.f32.mrf.mxu3  ;;  %v5173_v11 = vpop.f32.mrf.mxu1  ;;  %6245 = vmatpush.bf16.msra.mxu0 %v12065_v8  ;;  %v5125_v27 = vadd.f32 %v5124_v40, %v11593_v10 }
 0x677   : > { %6294 = vmatpush.bf16.msra.mxu1 %v12067_v19  ;;  %v5174_v28 = vadd.f32 %v5173_v11, %v11593_v10  ;;  %v5221_v19 = vadd.f32 %v5220_v51, %v11509_v35  ;;  %v5270_v22 = vadd.f32 %v5269_v45, %v11509_v35  ;;  %v12273_v45 = vld [vmem:[#allocation3 + $0x18] sm:$0xff] }
 0x678   : > { %6343 = vmatpush.bf16.msra.mxu2 %v12077_v2  ;;  %v5364_v39 = vmax.f32 %v5125_v27, 0.0  ;;  %v13920_v2 = vld [vmem:[#allocation25_spill] sm:$0xff]  ;;  %13930 = vst [vmem:[#allocation33_spill] sm:$0xff] %v12273_v45 }
 0x679   : > { %6392 = vmatpush.bf16.msra.mxu3 %v13914_v47  ;;  %v5365_v29 = vmax.f32 %v5174_v28, 0.0  ;;  %v5350_v58 = vmax.f32 %v5221_v19, 0.0  ;;  %v5351_v35 = vmax.f32 %v5270_v22, 0.0 }
 0x67a   : > { %6246 = vmatpush.bf16.msra.mxu0 %v13915_v55  ;;  %v12239_v21 = vpack.c.bf16 %v5364_v39, %v5348_v36 }
 0x67b   : > { %6295 = vmatpush.bf16.msra.mxu1 %v13916_v50  ;;  %v12241_v8 = vpack.c.bf16 %v5365_v29, %v5349_v61  ;;  %v13932_v50 = vld [vmem:[#allocation11_spill] sm:$0xff] }
 0x67c   : > { %13917 = vst [vmem:[#allocation18_spill] sm:$0xff] %v12239_v21  ;;  %6344 = vmatpush.bf16.msra.mxu2 %v13919_v49 }
 0x67d   : > { %13918 = vst [vmem:[#allocation24_spill] sm:$0xff] %v12241_v8  ;;  %6393 = vmatpush.bf16.msra.mxu3 %v13920_v2  ;;  %v5222_v38 = vpop.f32.mrf.mxu2  ;;  %v5127_v53 = vpop.f32.mrf.mxu0 }
 0x67e   : > { %v5271_v15 = vpop.f32.mrf.mxu3  ;;  %v5223_v59 = vadd.f32 %v5222_v38, %v11593_v10  ;;  %v5176_v33 = vpop.f32.mrf.mxu1  ;;  %6247 = vmatpush.bf16.msra.mxu0 %v13922_v7  ;;  %v5128_v62 = vadd.f32 %v5127_v53, %v13928_v3 }
 0x67f   : > { %v5272_v37 = vadd.f32 %v5271_v15, %v11593_v10  ;;  %6296 = vmatpush.bf16.msra.mxu1 %v13923_v60  ;;  %v5177_v23 = vadd.f32 %v5176_v33, %v13928_v3 }
 0x680   : > { %v5366_v46 = vmax.f32 %v5223_v59, 0.0  ;;  %6345 = vmatpush.bf16.msra.mxu2 %v13924_v14  ;;  %5866 = vmatmul.bf16.gmra.mxu0 %v12247_v24  ;;  %v5380_v31 = vmax.f32 %v5128_v62, 0.0  ;;  %v13933_v59 = vld [vmem:[#allocation16_spill] sm:$0xff]  ;;  %v12295_v62 = vld [vmem:[#allocation3 + $0x20] sm:$0xff] }
 0x681   : > { %v5367_v32 = vmax.f32 %v5272_v37, 0.0  ;;  %6394 = vmatpush.bf16.msra.mxu3 %v13925_v18  ;;  %5915 = vmatmul.bf16.gmra.mxu1 %v12247_v24  ;;  %v5381_v34 = vmax.f32 %v5177_v23, 0.0  ;;  %13934 = vst [vmem:[#allocation26_spill] sm:$0xff] %v12295_v62 }
 0x682   : > { %5964 = vmatmul.bf16.gmra.mxu2 %v12247_v24  ;;  %v12259_v10 = vpack.c.bf16 %v5366_v46, %v5350_v58 }
 0x683   : > { %6013 = vmatmul.bf16.gmra.mxu3 %v12247_v24  ;;  %v12261_v48 = vpack.c.bf16 %v5367_v32, %v5351_v35 }
 0x684   : > { %13926 = vst [vmem:[#allocation19_spill] sm:$0xff] %v12259_v10 }
 0x685   : > { %13927 = vst [vmem:[#allocation22_spill] sm:$0xff] %v12261_v48  ;;  %v5225_v52 = vpop.f32.mrf.mxu2  ;;  %v5129_v5 = vpop.f32.mrf.mxu0 }
 0x686   : > { %v5274_v57 = vpop.f32.mrf.mxu3  ;;  %v5178_v12 = vpop.f32.mrf.mxu1  ;;  %v5130_v6 = vadd.f32 %v5129_v5, %v13929_v30  ;;  %v5226_v44 = vadd.f32 %v5225_v52, %v13928_v3 }
 0x687   : > { %v5179_v17 = vadd.f32 %v5178_v12, %v13929_v30  ;;  %v5275_v41 = vadd.f32 %v5274_v57, %v13928_v3 }
 0x688   : > { %v5396_v63 = vmax.f32 %v5130_v6, 0.0  ;;  %v5382_v47 = vmax.f32 %v5226_v44, 0.0 }
 0x689   : > { %v5397_v25 = vmax.f32 %v5179_v17, 0.0  ;;  %v5383_v36 = vmax.f32 %v5275_v41, 0.0 }
 0x68a   : > { %v12267_v13 = vpack.c.bf16 %v5396_v63, %v5380_v31 }
 0x68b   : > { %v12269_v9 = vpack.c.bf16 %v5397_v25, %v5381_v34 }
 0x68d   : > { %v5227_v26 = vpop.f32.mrf.mxu2  ;;  %v5132_v27 = vpop.f32.mrf.mxu0 }
 0x68e   : > { %v5276_v51 = vpop.f32.mrf.mxu3  ;;  %v5228_v40 = vadd.f32 %v5227_v26, %v13929_v30  ;;  %v5181_v28 = vpop.f32.mrf.mxu1  ;;  %v5133_v19 = vadd.f32 %v5132_v27, %v13932_v50 }
 0x68f   : > { %v5277_v11 = vadd.f32 %v5276_v51, %v13929_v30  ;;  %v5182_v22 = vadd.f32 %v5181_v28, %v13932_v50  ;;  %v12315_v28 = vpop.permute.xlu0 %5722 }
 0x690   : > { %v5398_v61 = vmax.f32 %v5228_v40, 0.0  ;;  %5871 = vmatmul.bf16.gmra.mxu0 %v12273_v45  ;;  %v5412_v33 = vmax.f32 %v5133_v19, 0.0  ;;  %v12311_v40 = vld [vmem:[#allocation3 + $0x28] sm:$0xff] }
 0x691   : > { %v5399_v39 = vmax.f32 %v5277_v11, 0.0  ;;  %5920 = vmatmul.bf16.gmra.mxu1 %v12273_v45  ;;  %v5413_v7 = vmax.f32 %v5182_v22, 0.0  ;;  %13935 = vst [vmem:[#allocation35_spill] sm:$0xff] %v12311_v40 }
 0x692   : > { %5969 = vmatmul.bf16.gmra.mxu2 %v12273_v45  ;;  %v12281_v29 = vpack.c.bf16 %v5398_v61, %v5382_v47  ;;  %v12319_v47 = vpop.permute.xlu1 %5727 }
 0x693   : > { %6018 = vmatmul.bf16.gmra.mxu3 %v12273_v45  ;;  %v12283_v55 = vpack.c.bf16 %v5399_v39, %v5383_v36  ;;  %13936 = vst [vmem:[#allocation28_spill] sm:$0xff] %v12319_v47  ;;  %v12321_v36 = vpop.permute.xlu2 %5732 }
 0x694   : > { %13937 = vst [vmem:[#allocation10_spill] sm:$0xff] %v12321_v36 }
 0x695   : > { %13931 = vst [vmem:[#allocation20_spill] sm:$0xff] %v12283_v55  ;;  %v5230_v49 = vpop.f32.mrf.mxu2  ;;  %v5134_v38 = vpop.f32.mrf.mxu0 }
 0x696   : > { %v5279_v2 = vpop.f32.mrf.mxu3  ;;  %v5183_v15 = vpop.f32.mrf.mxu1  ;;  %v5135_v37 = vadd.f32 %v5134_v38, %v13933_v59  ;;  %v5231_v32 = vadd.f32 %v5230_v49, %v13932_v50  ;;  %v12329_v38 = vld [vmem:[#allocation3 + $0x30] sm:$0xff] }
 0x697   : > { %v5184_v53 = vadd.f32 %v5183_v15, %v13933_v59  ;;  %v5280_v14 = vadd.f32 %v5279_v2, %v13932_v50  ;;  %v12327_v22 = vpop.permute.xlu0 %5737  ;;  %13939 = vst [vmem:[#allocation25_spill] sm:$0xff] %v12329_v38 }
 0x698   : > { %v5428_v60 = vmax.f32 %v5135_v37, 0.0  ;;  %v5414_v12 = vmax.f32 %v5231_v32, 0.0  ;;  %13938 = vst [vmem:[#allocation27_spill] sm:$0xff] %v12327_v22 }
 0x699   : > { %v5429_v58 = vmax.f32 %v5184_v53, 0.0  ;;  %v5415_v30 = vmax.f32 %v5280_v14, 0.0 }
 0x69a   : > { %v12289_v35 = vpack.c.bf16 %v5428_v60, %v5412_v33  ;;  %v12331_v37 = vpop.permute.xlu1 %5742 }
 0x69b   : > { %v12291_v46 = vpack.c.bf16 %v5429_v58, %v5413_v7  ;;  %13940 = vst [vmem:[#allocation31_spill] sm:$0xff] %v12331_v37  ;;  %v12333_v53 = vpop.permute.xlu2 %5747 }
 0x69c   : > { %13941 = vst [vmem:[#allocation37_spill] sm:$0xff] %v12333_v53 }
 0x69d   : > { %v5232_v18 = vpop.f32.mrf.mxu2  ;;  %v5137_v57 = vpop.f32.mrf.mxu0 }
 0x69e   : > { %v5281_v3 = vpop.f32.mrf.mxu3  ;;  %v5233_v23 = vadd.f32 %v5232_v18, %v13933_v59  ;;  %v5186_v5 = vpop.f32.mrf.mxu1 }
 0x69f   : > { %v5282_v52 = vadd.f32 %v5281_v3, %v13933_v59  ;;  %v12341_v32 = vpop.permute.xlu0 %5752 }
 0x6a0   : > { %v5430_v6 = vmax.f32 %v5233_v23, 0.0  ;;  %5876 = vmatmul.bf16.gmra.mxu0 %v12295_v62  ;;  %13942 = vst [vmem:[#allocation29_spill] sm:$0xff] %v12341_v32 }
 0x6a1   : > { %v5431_v17 = vmax.f32 %v5282_v52, 0.0  ;;  %5925 = vmatmul.bf16.gmra.mxu1 %v12295_v62  ;;  %v12347_v52 = vld [vmem:[#allocation3 + $0x38] sm:$0xff] }
 0x6a2   : > { %5974 = vmatmul.bf16.gmra.mxu2 %v12295_v62  ;;  %v12303_v31 = vpack.c.bf16 %v5430_v6, %v5414_v12  ;;  %v12343_v14 = vpop.permute.xlu1 %5757  ;;  %13945 = vst [vmem:[#allocation13_spill] sm:$0xff] %v12347_v52 }
 0x6a3   : > { %6023 = vmatmul.bf16.gmra.mxu3 %v12295_v62  ;;  %v12305_v34 = vpack.c.bf16 %v5431_v17, %v5415_v30  ;;  %13943 = vst [vmem:[#allocation12_spill] sm:$0xff] %v12343_v14  ;;  %v12345_v18 = vpop.permute.xlu2 %5762  ;;  %v13947_v17 = vld [vmem:[#allocation34_spill] sm:$0xff]  ;;  %v13950_v14 = vld [vmem:[#allocation15_spill] sm:$0xff] }
 0x6a4   : > { %13944 = vst [vmem:[#allocation36_spill] sm:$0xff] %v12345_v18 }
 0x6a5   : > { %v12307_v63 = vpop.f32.mrf.mxu2  ;;  %v5139_v44 = vpop.f32.mrf.mxu0 }
 0x6a6   : > { %v12309_v25 = vpop.f32.mrf.mxu3  ;;  %v5188_v41 = vpop.f32.mrf.mxu1  ;;  %v12366_v45 = vadd.f32 %v5139_v44, %v13950_v14  ;;  %v12381_v44 = vadd.f32 %v12307_v63, %v13947_v17 }
 0x6a7   : > { %v12351_v6 = vpop.permute.xlu0 %5767  ;;  %v12369_v32 = vadd.f32 %v5188_v41, %v13950_v14  ;;  %v12385_v41 = vadd.f32 %v12309_v25, %v13947_v17  ;;  %v13951_v25 = vld [vmem:[#allocation17_spill] sm:$0xff] }
 0x6a8   : > { %13946 = vst [vmem:[#allocation11_spill] sm:$0xff] %v12351_v6 }
 0x6aa   : > { %v12361_v62 = vpop.permute.xlu1 %5772 }
 0x6ab   : > { %13948 = vst [vmem:[#allocation16_spill] sm:$0xff] %v12361_v62  ;;  %v12363_v18 = vpop.permute.xlu2 %5777 }
 0x6ac   : > { %13949 = vst [vmem:[#allocation34_spill] sm:$0xff] %v12363_v18 }
 0x6ad   : > { %v5237_v26 = vpop.f32.mrf.mxu2  ;;  %v5142_v11 = vpop.f32.mrf.mxu0 }
 0x6ae   : > { %v5286_v51 = vpop.f32.mrf.mxu3  ;;  %v5191_v27 = vpop.f32.mrf.mxu1  ;;  %v12372_v6 = vadd.f32 %v5237_v26, %v13950_v14 }
 0x6af   : > { %v12394_v62 = vadd.f32 %v5191_v27, %v13831_v4  ;;  %v13952_v27 = vld [vmem:[#allocation30_spill] sm:$0xff]  ;;  %v12414_v16 = vpop.permute.xlu0 %5782 }
 0x6b0   : > { %5881 = vmatmul.bf16.gmra.mxu0 %v12311_v40  ;;  %13954 = vst [vmem:[#allocation15_spill] sm:$0xff] %v12414_v16 }
 0x6b1   : > { %5930 = vmatmul.bf16.gmra.mxu1 %v12311_v40 }
 0x6b2   : > { %5979 = vmatmul.bf16.gmra.mxu2 %v12311_v40  ;;  %v12426_v8 = vpop.permute.xlu1 %5787 }
 0x6b3   : > { %6028 = vmatmul.bf16.gmra.mxu3 %v12311_v40  ;;  %v12359_v40 = vadd.f32 %v5186_v5, %v13947_v17  ;;  %13955 = vst [vmem:[#allocation17_spill] sm:$0xff] %v12426_v8 }
 0x6b5   : > { %v12323_v61 = vpop.f32.mrf.mxu2  ;;  %v5144_v50 = vpop.f32.mrf.mxu0 }
 0x6b6   : > { %v12325_v39 = vpop.f32.mrf.mxu3  ;;  %v5193_v19 = vpop.f32.mrf.mxu1 }
 0x6b7   : > { %v12403_v26 = vadd.f32 %v5193_v19, %v13951_v25 }
 0x6bd   : > { %v5242_v49 = vpop.f32.mrf.mxu2  ;;  %v5147_v15 = vpop.f32.mrf.mxu0 }
 0x6be   : > { %v5291_v2 = vpop.f32.mrf.mxu3  ;;  %v5196_v59 = vpop.f32.mrf.mxu1 }
 0x6bf   : > { %v5197_v37 = vadd.f32 %v5196_v59, %v13836_v0 }
 0x6c0   : > { %5886 = vmatmul.bf16.gmra.mxu0 %v12329_v38 }
 0x6c1   : > { %5935 = vmatmul.bf16.gmra.mxu1 %v12329_v38 }
 0x6c2   : > { %5984 = vmatmul.bf16.gmra.mxu2 %v12329_v38 }
 0x6c3   : > { %6033 = vmatmul.bf16.gmra.mxu3 %v12329_v38  ;;  %v12356_v38 = vadd.f32 %v5137_v57, %v13947_v17  ;;  %v12375_v57 = vadd.f32 %v5142_v11, %v13831_v4  ;;  %v12390_v11 = vadd.f32 %v5286_v51, %v13950_v14  ;;  %v12400_v17 = vadd.f32 %v5144_v50, %v13951_v25 }
 0x6c4   : > { %v12406_v51 = vadd.f32 %v5242_v49, %v13951_v25  ;;  %v12409_v14 = vadd.f32 %v5291_v2, %v13951_v25  ;;  %v5148_v50 = vadd.f32 %v5147_v15, %v13836_v0 }
 0x6c5   : > { %v5245_v33 = vpop.f32.mrf.mxu2  ;;  %v5149_v60 = vpop.f32.mrf.mxu0 }
 0x6c6   : > { %v12339_v7 = vpop.f32.mrf.mxu3  ;;  %v5198_v58 = vpop.f32.mrf.mxu1  ;;  %v5150_v56 = vadd.f32 %v5149_v60, %v13952_v27 }
 0x6c7   : > { %v5199_v42 = vadd.f32 %v5198_v58, %v13952_v27 }
 0x6cd   : > { %v5247_v3 = vpop.f32.mrf.mxu2  ;;  %v5152_v12 = vpop.f32.mrf.mxu0 }
 0x6ce   : > { %v5296_v23 = vpop.f32.mrf.mxu3  ;;  %v5201_v30 = vpop.f32.mrf.mxu1  ;;  %v5248_v2 = vadd.f32 %v5247_v3, %v13952_v27 }
 0x6cf   : > { %v5297_v16 = vadd.f32 %v5296_v23, %v13952_v27  ;;  %v12430_v3 = vpop.permute.xlu2 %5792  ;;  %v5525_v27 = vmax.f32 %v5199_v42, 0.0  ;;  %v5508_v42 = vmax.f32 %v5148_v50, 0.0 }
 0x6d0   : > { %5891 = vmatmul.bf16.gmra.mxu0 %v12347_v52 }
 0x6d1   : > { %5940 = vmatmul.bf16.gmra.mxu1 %v12347_v52 }
 0x6d2   : > { %5989 = vmatmul.bf16.gmra.mxu2 %v12347_v52 }
 0x6d3   : > { %6038 = vmatmul.bf16.gmra.mxu3 %v12347_v52 }
 0x6d5   : > { %v5250_v52 = vpop.f32.mrf.mxu2  ;;  %v5154_v5 = vpop.f32.mrf.mxu0 }
 0x6d6   : > { %v5299_v53 = vpop.f32.mrf.mxu3  ;;  %v5203_v24 = vpop.f32.mrf.mxu1  ;;  %v5155_v18 = vadd.f32 %v5154_v5, %v13833_v54  ;;  %v5153_v5 = vadd.f32 %v5152_v12, %v13953_v43  ;;  %v5251_v19 = vadd.f32 %v5250_v52, %v13953_v43 }
 0x6d7   : > { %v5204_v63 = vadd.f32 %v5203_v24, %v13833_v54  ;;  %v5202_v24 = vadd.f32 %v5201_v30, %v13953_v43  ;;  %v5300_v49 = vadd.f32 %v5299_v53, %v13953_v43  ;;  %v5246_v30 = vadd.f32 %v5245_v33, %v13836_v0 }
 0x6d8   : > { %v5556_v25 = vmax.f32 %v5155_v18, 0.0  ;;  %v5295_v43 = vadd.f32 %v12339_v7, %v13836_v0  ;;  %v5524_v53 = vmax.f32 %v5150_v56, 0.0  ;;  %v5540_v58 = vmax.f32 %v5153_v5, 0.0 }
 0x6d9   : > { %v5557_v60 = vmax.f32 %v5204_v63, 0.0  ;;  %v5541_v18 = vmax.f32 %v5202_v24, 0.0  ;;  %v5542_v63 = vmax.f32 %v5251_v19, 0.0  ;;  %v5543_v33 = vmax.f32 %v5300_v49, 0.0 }
 0x6da   : > { %v5716_v55 = vpack.c.bf16 %v5556_v25, %v5540_v58  ;;  %v5241_v7 = vadd.f32 %v12323_v61, %v13831_v4  ;;  %v5509_v5 = vmax.f32 %v5197_v37, 0.0  ;;  %v5510_v19 = vmax.f32 %v5246_v30, 0.0  ;;  %v12454_v58 = vpop.permute.xlu1 %6907 }
 0x6db   : > { %v5494_v49 = vmax.f32 %v12406_v51, 0.0  ;;  %v5700_v37 = vpack.c.bf16 %v5524_v53, %v5508_v42  ;;  %v12449_v51 = vpop.permute.xlu0 %5797  ;;  %13957 = vst [vmem:[#allocation30_spill] sm:$0xff] %v12454_v58  ;;  %v13959_v42 = vmax.f32 %v12356_v38, 0.0 }
 0x6dd   : > { %v5252_v48 = vpop.f32.mrf.mxu2  ;;  %v5857_v10 = vpop.f32.mrf.mxu0 }
 0x6de   : > { %v5301_v12 = vpop.f32.mrf.mxu3  ;;  %v5253_v15 = vadd.f32 %v5252_v48, %v13833_v54  ;;  %v5906_v52 = vpop.f32.mrf.mxu1  ;;  %v5526_v48 = vmax.f32 %v5248_v2, 0.0  ;;  %v5858_v56 = vadd.f32 %v5857_v10, %v12315_v28  ;;  %v5511_v10 = vmax.f32 %v5295_v43, 0.0 }
 0x6df   : > { %v5302_v59 = vadd.f32 %v5301_v12, %v13833_v54  ;;  %v5717_v54 = vpack.c.bf16 %v5557_v60, %v5541_v18  ;;  %v5527_v12 = vmax.f32 %v5297_v16, 0.0  ;;  %v5907_v24 = vadd.f32 %v5906_v52, %v12315_v28 }
 0x6e0   : > { %v5558_v21 = vmax.f32 %v5253_v15, 0.0  ;;  %6052 = vmatmul.bf16.vlgmr.msrb.gmra.mxu0 %v12171_v20  ;;  %v5290_v16 = vadd.f32 %v12325_v39, %v13831_v4  ;;  %v5701_v2 = vpack.c.bf16 %v5525_v27, %v5509_v5  ;;  %v6632_v25 = vmax.f32 %v5858_v56, 0.0 }
 0x6e1   : > { %v5559_v23 = vmax.f32 %v5302_v59, 0.0  ;;  %6101 = vmatmul.bf16.vlgmr.msrb.gmra.mxu1 %v12171_v20  ;;  %6436 = vmatpush.bf16.msrb.mxu0 %v5716_v55  ;;  %v5495_v55 = vmax.f32 %v12409_v14, 0.0  ;;  %v5702_v4 = vpack.c.bf16 %v5526_v48, %v5510_v19  ;;  %v5703_v39 = vpack.c.bf16 %v5527_v12, %v5511_v10 }
 0x6e2   : > { %v5718_v8 = vpack.c.bf16 %v5558_v21, %v5542_v63  ;;  %6150 = vmatmul.bf16.vlgmr.msrb.gmra.mxu2 %v12171_v20  ;;  %6485 = vmatpush.bf16.msrb.mxu1 %v5717_v54  ;;  %v5492_v21 = vmax.f32 %v12400_v17, 0.0  ;;  %v5477_v17 = vmax.f32 %v12394_v62, 0.0  ;;  %v6633_v30 = vmax.f32 %v5907_v24, 0.0 }
 0x6e3   : > { %v5719_v0 = vpack.c.bf16 %v5559_v23, %v5543_v33  ;;  %6199 = vmatmul.bf16.vlgmr.msrb.gmra.mxu3 %v12171_v20  ;;  %v5493_v20 = vmax.f32 %v12403_v26, 0.0  ;;  %v5463_v59 = vmax.f32 %v12390_v11, 0.0  ;;  %v5478_v52 = vmax.f32 %v5241_v7, 0.0  ;;  %v12457_v23 = vpop.permute.xlu2 %6912 }
 0x6e4   : > { %6534 = vmatpush.bf16.msrb.mxu2 %v5718_v8  ;;  %v5479_v14 = vmax.f32 %v5290_v16, 0.0  ;;  %v13956_v43 = vmax.f32 %v12375_v57, 0.0  ;;  %13958 = vst [vmem:[#allocation38_spill] sm:$0xff] %v12457_v23  ;;  %v6985_v27 = vmul.f32 %v12454_v58, %v6632_v25  ;;  %v5446_v12 = vmax.f32 %v12381_v44, 0.0 }
 0x6e5   : > { %6583 = vmatpush.bf16.msrb.mxu3 %v5719_v0  ;;  %v5955_v61 = vpop.f32.mrf.mxu2  ;;  %v5859_v60 = vpop.f32.mrf.mxu0  ;;  %6437 = vmatpush.bf16.msrb.mxu0 %v5700_v37  ;;  %v5685_v33 = vpack.c.bf16 %v5493_v20, %v5477_v17  ;;  %v5686_v48 = vpack.c.bf16 %v5494_v49, %v5478_v52  ;;  %v6986_v57 = vmul.f32 %v12454_v58, %v6633_v30  ;;  %v5447_v7 = vmax.f32 %v12385_v41, 0.0 }
 0x6e6   : > { %v6004_v50 = vpop.f32.mrf.mxu3  ;;  %v5908_v15 = vpop.f32.mrf.mxu1  ;;  %6486 = vmatpush.bf16.msrb.mxu1 %v5701_v2  ;;  %v5860_v8 = vadd.f32 %v5859_v60, %v12319_v47  ;;  %v5684_v53 = vpack.c.bf16 %v5492_v21, %v13956_v43  ;;  %v5956_v62 = vadd.f32 %v5955_v61, %v12315_v28  ;;  %v5687_v54 = vpack.c.bf16 %v5495_v55, %v5479_v14 }
 0x6e7   : > { %v5909_v26 = vadd.f32 %v5908_v15, %v12319_v47  ;;  %v6005_v11 = vadd.f32 %v6004_v50, %v12315_v28  ;;  %v13960_v5 = vmax.f32 %v12366_v45, 0.0  ;;  %v13961_v16 = vmax.f32 %v12359_v40, 0.0  ;;  %v12483_v17 = vpop.permute.xlu0 %6917 }
 0x6e8   : > { %6535 = vmatpush.bf16.msrb.mxu2 %v5702_v4  ;;  %v6648_v18 = vmax.f32 %v5860_v8, 0.0  ;;  %v13962_v44 = vmax.f32 %v12369_v32, 0.0  ;;  %v6634_v19 = vmax.f32 %v5956_v62, 0.0  ;;  %v13963_v50 = vmax.f32 %v12372_v6, 0.0  ;;  %13964 = vst [vmem:[#allocation39_spill] sm:$0xff] %v12483_v17 }
 0x6e9   : > { %6584 = vmatpush.bf16.msrb.mxu3 %v5703_v39  ;;  %v6649_v63 = vmax.f32 %v5909_v26, 0.0  ;;  %6438 = vmatpush.bf16.msrb.mxu0 %v5684_v53  ;;  %v5668_v24 = vpack.c.bf16 %v13960_v5, %v13959_v42  ;;  %v6635_v37 = vmax.f32 %v6005_v11, 0.0  ;;  %v5671_v25 = vpack.c.bf16 %v5463_v59, %v5447_v7  ;;  %v13967_v7 = vld [vmem:[#allocation18_spill] sm:$0xff]  ;;  %v13968_v42 = vld [vmem:[#allocation24_spill] sm:$0xff] }
 0x6ea   : > { %v7001_v0 = vmul.f32 %v12457_v23, %v6648_v18  ;;  %6487 = vmatpush.bf16.msrb.mxu1 %v5685_v33  ;;  %v5669_v21 = vpack.c.bf16 %v13962_v44, %v13961_v16  ;;  %v5670_v41 = vpack.c.bf16 %v13963_v50, %v5446_v12  ;;  %v6987_v6 = vmul.f32 %v12454_v58, %v6634_v19  ;;  %v13970_v16 = vld [vmem:[#allocation22_spill] sm:$0xff] }
 0x6eb   : > { %v7002_v56 = vmul.f32 %v12457_v23, %v6649_v63  ;;  %v6988_v30 = vmul.f32 %v12454_v58, %v6635_v37  ;;  %v13972_v37 = vld [vmem:[#allocation9_spill] sm:$0xff] }
 0x6ec   : > { %6536 = vmatpush.bf16.msrb.mxu2 %v5686_v48  ;;  %v7241_v10 = vadd.f32 %v7001_v0, %v6985_v27  ;;  %v13965_v48 = vld [vmem:[#allocation20_spill] sm:$0xff] }
 0x6ed   : > { %6585 = vmatpush.bf16.msrb.mxu3 %v5687_v54  ;;  %v7262_v20 = vadd.f32 %v7002_v56, %v6986_v57  ;;  %v5957_v49 = vpop.f32.mrf.mxu2  ;;  %v5862_v45 = vpop.f32.mrf.mxu0  ;;  %6439 = vmatpush.bf16.msrb.mxu0 %v5668_v24  ;;  %v13969_v24 = vld [vmem:[#allocation19_spill] sm:$0xff] }
 0x6ee   : > { %v6006_v61 = vpop.f32.mrf.mxu3  ;;  %v5958_v2 = vadd.f32 %v5957_v49, %v12319_v47  ;;  %v5911_v55 = vpop.f32.mrf.mxu1  ;;  %6488 = vmatpush.bf16.msrb.mxu1 %v5669_v21  ;;  %v5863_v40 = vadd.f32 %v5862_v45, %v12321_v36 }
 0x6ef   : > { %v6007_v38 = vadd.f32 %v6006_v61, %v12319_v47  ;;  %v5912_v32 = vadd.f32 %v5911_v55, %v12321_v36  ;;  %v12504_v57 = vpop.permute.xlu1 %6922 }
 0x6f0   : > { %v6650_v60 = vmax.f32 %v5958_v2, 0.0  ;;  %6537 = vmatpush.bf16.msrb.mxu2 %v5670_v41  ;;  %v6664_v4 = vmax.f32 %v5863_v40, 0.0  ;;  %6057 = vmatmul.bf16.gmra.mxu0 %v12213_v1  ;;  %13966 = vst [vmem:[#allocation20_spill] sm:$0xff] %v12504_v57  ;;  %v13971_v41 = vld [vmem:[#allocation14_spill] sm:$0xff]  ;;  %v13973_v2 = vld [vmem:[#allocation31_spill] sm:$0xff]  ;;  %v13974_v40 = vld [vmem:[#allocation32_spill] sm:$0xff] }
 0x6f1   : > { %v6651_v15 = vmax.f32 %v6007_v38, 0.0  ;;  %6586 = vmatpush.bf16.msrb.mxu3 %v5671_v25  ;;  %v6665_v39 = vmax.f32 %v5912_v32, 0.0  ;;  %6106 = vmatmul.bf16.gmra.mxu1 %v12213_v1  ;;  %v13975_v32 = vld [vmem:[#allocation21_spill] sm:$0xff] }
 0x6f2   : > { %v7003_v8 = vmul.f32 %v12457_v23, %v6650_v60  ;;  %6155 = vmatmul.bf16.gmra.mxu2 %v12213_v1  ;;  %v7017_v59 = vmul.f32 %v12483_v17, %v6664_v4  ;;  %6440 = vmatpush.bf16.msrb.mxu0 %v12289_v35  ;;  %v12524_v4 = vpop.permute.xlu2 %6927 }
 0x6f3   : > { %v7004_v26 = vmul.f32 %v12457_v23, %v6651_v15  ;;  %6204 = vmatmul.bf16.gmra.mxu3 %v12213_v1  ;;  %v7018_v52 = vmul.f32 %v12483_v17, %v6665_v39  ;;  %6489 = vmatpush.bf16.msrb.mxu1 %v12291_v46  ;;  %13977 = vst [vmem:[#allocation18_spill] sm:$0xff] %v12524_v4 }
 0x6f4   : > { %v7283_v14 = vadd.f32 %v7003_v8, %v6987_v6  ;;  %6538 = vmatpush.bf16.msrb.mxu2 %v12303_v31  ;;  %v7242_v53 = vadd.f32 %v7241_v10, %v7017_v59  ;;  %v13976_v6 = vld [vmem:[#allocation23_spill] sm:$0xff] }
 0x6f5   : > { %v7304_v43 = vadd.f32 %v7004_v26, %v6988_v30  ;;  %6587 = vmatpush.bf16.msrb.mxu3 %v12305_v34  ;;  %v7263_v62 = vadd.f32 %v7262_v20, %v7018_v52  ;;  %v5960_v18 = vpop.f32.mrf.mxu2  ;;  %v5864_v27 = vpop.f32.mrf.mxu0 }
 0x6f6   : > { %v6009_v63 = vpop.f32.mrf.mxu3  ;;  %v5961_v1 = vadd.f32 %v5960_v18, %v12321_v36  ;;  %v5913_v11 = vpop.f32.mrf.mxu1  ;;  %6441 = vmatpush.bf16.msrb.mxu0 %v12267_v13  ;;  %v5865_v35 = vadd.f32 %v5864_v27, %v12327_v22  ;;  %v13978_v27 = vld [vmem:[#allocation37_spill] sm:$0xff] }
 0x6f7   : > { %v6010_v33 = vadd.f32 %v6009_v63, %v12321_v36  ;;  %6490 = vmatpush.bf16.msrb.mxu1 %v12269_v9  ;;  %v5914_v46 = vadd.f32 %v5913_v11, %v12327_v22 }
 0x6f8   : > { %v6666_v31 = vmax.f32 %v5961_v1, 0.0  ;;  %6539 = vmatpush.bf16.msrb.mxu2 %v12281_v29  ;;  %v6680_v54 = vmax.f32 %v5865_v35, 0.0 }
 0x6f9   : > { %v6667_v34 = vmax.f32 %v6010_v33, 0.0  ;;  %6588 = vmatpush.bf16.msrb.mxu3 %v13965_v48  ;;  %v6681_v12 = vmax.f32 %v5914_v46, 0.0 }
 0x6fa   : > { %v7019_v0 = vmul.f32 %v12483_v17, %v6666_v31  ;;  %v7033_v9 = vmul.f32 %v12504_v57, %v6680_v54  ;;  %6442 = vmatpush.bf16.msrb.mxu0 %v13967_v7  ;;  %v12536_v54 = vpop.permute.xlu0 %6932 }
 0x6fb   : > { %v7020_v13 = vmul.f32 %v12483_v17, %v6667_v34  ;;  %v7034_v56 = vmul.f32 %v12504_v57, %v6681_v12  ;;  %6491 = vmatpush.bf16.msrb.mxu1 %v13968_v42 }
 0x6fc   : > { %v7284_v5 = vadd.f32 %v7283_v14, %v7019_v0  ;;  %6540 = vmatpush.bf16.msrb.mxu2 %v13969_v24  ;;  %v7243_v44 = vadd.f32 %v7242_v53, %v7033_v9 }
 0x6fd   : > { %v7305_v29 = vadd.f32 %v7304_v43, %v7020_v13  ;;  %6589 = vmatpush.bf16.msrb.mxu3 %v13970_v16  ;;  %v7264_v21 = vadd.f32 %v7263_v62, %v7034_v56  ;;  %v5962_v19 = vpop.f32.mrf.mxu2  ;;  %v5867_v61 = vpop.f32.mrf.mxu0 }
 0x6fe   : > { %v6011_v10 = vpop.f32.mrf.mxu3  ;;  %v5963_v20 = vadd.f32 %v5962_v19, %v12327_v22  ;;  %v5916_v50 = vpop.f32.mrf.mxu1  ;;  %6443 = vmatpush.bf16.msrb.mxu0 %v13971_v41  ;;  %v5868_v38 = vadd.f32 %v5867_v61, %v13973_v2 }
 0x6ff   : > { %v6012_v49 = vadd.f32 %v6011_v10, %v12327_v22  ;;  %6492 = vmatpush.bf16.msrb.mxu1 %v13972_v37  ;;  %v5917_v45 = vadd.f32 %v5916_v50, %v13973_v2  ;;  %v13979_v10 = vld [vmem:[#allocation29_spill] sm:$0xff] }
 0x700   : > { %v6682_v55 = vmax.f32 %v5963_v20, 0.0  ;;  %6541 = vmatpush.bf16.msrb.mxu2 %v13974_v40  ;;  %v6696_v60 = vmax.f32 %v5868_v38, 0.0  ;;  %6062 = vmatmul.bf16.gmra.mxu0 %v13976_v6  ;;  %v13980_v38 = vld [vmem:[#allocation33_spill] sm:$0xff] }
 0x701   : > { %v6683_v25 = vmax.f32 %v6012_v49, 0.0  ;;  %6590 = vmatpush.bf16.msrb.mxu3 %v13975_v32  ;;  %v6697_v15 = vmax.f32 %v5917_v45, 0.0  ;;  %6111 = vmatmul.bf16.gmra.mxu1 %v13976_v6  ;;  %v12548_v45 = vpop.permute.xlu1 %6937 }
 0x702   : > { %v7035_v39 = vmul.f32 %v12504_v57, %v6682_v55  ;;  %6160 = vmatmul.bf16.gmra.mxu2 %v13976_v6  ;;  %v7049_v8 = vmul.f32 %v12524_v4, %v6696_v60 }
 0x703   : > { %v7036_v30 = vmul.f32 %v12504_v57, %v6683_v25  ;;  %6209 = vmatmul.bf16.gmra.mxu3 %v13976_v6  ;;  %v7050_v26 = vmul.f32 %v12524_v4, %v6697_v15 }
 0x704   : > { %v7285_v59 = vadd.f32 %v7284_v5, %v7035_v39  ;;  %v7244_v14 = vadd.f32 %v7243_v44, %v7049_v8 }
 0x705   : > { %v7306_v52 = vadd.f32 %v7305_v29, %v7036_v30  ;;  %v7265_v43 = vadd.f32 %v7264_v21, %v7050_v26  ;;  %v5965_v53 = vpop.f32.mrf.mxu2  ;;  %v5869_v1 = vpop.f32.mrf.mxu0 }
 0x706   : > { %v6014_v62 = vpop.f32.mrf.mxu3  ;;  %v5966_v18 = vadd.f32 %v5965_v53, %v13973_v2  ;;  %v5918_v33 = vpop.f32.mrf.mxu1  ;;  %v5870_v11 = vadd.f32 %v5869_v1, %v13978_v27 }
 0x707   : > { %v6015_v63 = vadd.f32 %v6014_v62, %v13973_v2  ;;  %v5919_v35 = vadd.f32 %v5918_v33, %v13978_v27 }
 0x708   : > { %v6698_v46 = vmax.f32 %v5966_v18, 0.0  ;;  %v6712_v34 = vmax.f32 %v5870_v11, 0.0  ;;  %v12560_v11 = vpop.permute.xlu2 %6942 }
 0x709   : > { %v6699_v31 = vmax.f32 %v6015_v63, 0.0  ;;  %v6713_v48 = vmax.f32 %v5919_v35, 0.0 }
 0x70a   : > { %v7051_v12 = vmul.f32 %v12524_v4, %v6698_v46  ;;  %v7065_v13 = vmul.f32 %v12536_v54, %v6712_v34 }
 0x70b   : > { %v7052_v0 = vmul.f32 %v12524_v4, %v6699_v31  ;;  %v7066_v9 = vmul.f32 %v12536_v54, %v6713_v48 }
 0x70c   : > { %v7286_v56 = vadd.f32 %v7285_v59, %v7051_v12  ;;  %v7245_v42 = vadd.f32 %v7244_v14, %v7065_v13 }
 0x70d   : > { %v7307_v7 = vadd.f32 %v7306_v52, %v7052_v0  ;;  %v7266_v5 = vadd.f32 %v7265_v43, %v7066_v9  ;;  %v5967_v29 = vpop.f32.mrf.mxu2  ;;  %v5872_v21 = vpop.f32.mrf.mxu0  ;;  %v13981_v43 = vld [vmem:[#allocation12_spill] sm:$0xff] }
 0x70e   : > { %v6016_v24 = vpop.f32.mrf.mxu3  ;;  %v5968_v16 = vadd.f32 %v5967_v29, %v13978_v27  ;;  %v5921_v19 = vpop.f32.mrf.mxu1  ;;  %v5873_v20 = vadd.f32 %v5872_v21, %v13979_v10 }
 0x70f   : > { %v6017_v44 = vadd.f32 %v6016_v24, %v13978_v27  ;;  %v5922_v49 = vadd.f32 %v5921_v19, %v13979_v10  ;;  %v13982_v24 = vld [vmem:[#allocation36_spill] sm:$0xff] }
 0x710   : > { %v6714_v61 = vmax.f32 %v5968_v16, 0.0  ;;  %v6728_v41 = vmax.f32 %v5873_v20, 0.0  ;;  %6067 = vmatmul.bf16.gmra.mxu0 %v13980_v38 }
 0x711   : > { %v6715_v50 = vmax.f32 %v6017_v44, 0.0  ;;  %v6729_v37 = vmax.f32 %v5922_v49, 0.0  ;;  %6116 = vmatmul.bf16.gmra.mxu1 %v13980_v38 }
 0x712   : > { %v7067_v55 = vmul.f32 %v12536_v54, %v6714_v61  ;;  %6165 = vmatmul.bf16.gmra.mxu2 %v13980_v38  ;;  %v7081_v40 = vmul.f32 %v12548_v45, %v6728_v41  ;;  %v13983_v61 = vld [vmem:[#allocation26_spill] sm:$0xff] }
 0x713   : > { %v7068_v25 = vmul.f32 %v12536_v54, %v6715_v50  ;;  %6214 = vmatmul.bf16.gmra.mxu3 %v13980_v38  ;;  %v7082_v32 = vmul.f32 %v12548_v45, %v6729_v37  ;;  %v12572_v50 = vpop.permute.xlu0 %6947 }
 0x714   : > { %v7287_v60 = vadd.f32 %v7286_v56, %v7067_v55  ;;  %v7246_v6 = vadd.f32 %v7245_v42, %v7081_v40 }
 0x715   : > { %v7308_v15 = vadd.f32 %v7307_v7, %v7068_v25  ;;  %v7267_v39 = vadd.f32 %v7266_v5, %v7082_v32  ;;  %v5970_v30 = vpop.f32.mrf.mxu2  ;;  %v5874_v52 = vpop.f32.mrf.mxu0 }
 0x716   : > { %v6019_v8 = vpop.f32.mrf.mxu3  ;;  %v5971_v26 = vadd.f32 %v5970_v30, %v13979_v10  ;;  %v5923_v14 = vpop.f32.mrf.mxu1  ;;  %v5875_v53 = vadd.f32 %v5874_v52, %v13981_v43 }
 0x717   : > { %v6020_v59 = vadd.f32 %v6019_v8, %v13979_v10  ;;  %v5924_v62 = vadd.f32 %v5923_v14, %v13981_v43 }
 0x718   : > { %v6730_v18 = vmax.f32 %v5971_v26, 0.0  ;;  %v6744_v1 = vmax.f32 %v5875_v53, 0.0 }
 0x719   : > { %v6731_v63 = vmax.f32 %v6020_v59, 0.0  ;;  %v6745_v33 = vmax.f32 %v5924_v62, 0.0  ;;  %v13984_v59 = vld [vmem:[#allocation11_spill] sm:$0xff] }
 0x71a   : > { %v7083_v35 = vmul.f32 %v12548_v45, %v6730_v18  ;;  %v7097_v31 = vmul.f32 %v12560_v11, %v6744_v1  ;;  %v12584_v1 = vpop.permute.xlu1 %6952 }
 0x71b   : > { %v7084_v46 = vmul.f32 %v12548_v45, %v6731_v63  ;;  %v7098_v34 = vmul.f32 %v12560_v11, %v6745_v33 }
 0x71c   : > { %v7288_v48 = vadd.f32 %v7287_v60, %v7083_v35  ;;  %v7247_v0 = vadd.f32 %v7246_v6, %v7097_v31 }
 0x71d   : > { %v7309_v12 = vadd.f32 %v7308_v15, %v7084_v46  ;;  %v7268_v13 = vadd.f32 %v7267_v39, %v7098_v34  ;;  %v5972_v9 = vpop.f32.mrf.mxu2  ;;  %v5877_v5 = vpop.f32.mrf.mxu0 }
 0x71e   : > { %v6021_v56 = vpop.f32.mrf.mxu3  ;;  %v5973_v7 = vadd.f32 %v5972_v9, %v13981_v43  ;;  %v5926_v29 = vpop.f32.mrf.mxu1  ;;  %v5878_v16 = vadd.f32 %v5877_v5, %v13982_v24 }
 0x71f   : > { %v6022_v42 = vadd.f32 %v6021_v56, %v13981_v43  ;;  %v5927_v44 = vadd.f32 %v5926_v29, %v13982_v24  ;;  %v13985_v29 = vld [vmem:[#allocation16_spill] sm:$0xff] }
 0x720   : > { %v6746_v21 = vmax.f32 %v5973_v7, 0.0  ;;  %v6760_v20 = vmax.f32 %v5878_v16, 0.0  ;;  %6072 = vmatmul.bf16.gmra.mxu0 %v13983_v61 }
 0x721   : > { %v6747_v19 = vmax.f32 %v6022_v42, 0.0  ;;  %v6761_v49 = vmax.f32 %v5927_v44, 0.0  ;;  %6121 = vmatmul.bf16.gmra.mxu1 %v13983_v61 }
 0x722   : > { %v7099_v41 = vmul.f32 %v12560_v11, %v6746_v21  ;;  %6170 = vmatmul.bf16.gmra.mxu2 %v13983_v61  ;;  %v7113_v38 = vmul.f32 %v12572_v50, %v6760_v20 }
 0x723   : > { %v7100_v37 = vmul.f32 %v12560_v11, %v6747_v19  ;;  %6219 = vmatmul.bf16.gmra.mxu3 %v13983_v61  ;;  %v7114_v55 = vmul.f32 %v12572_v50, %v6761_v49  ;;  %v13986_v61 = vld [vmem:[#allocation35_spill] sm:$0xff] }
 0x724   : > { %v7289_v25 = vadd.f32 %v7288_v48, %v7099_v41  ;;  %v7248_v32 = vadd.f32 %v7247_v0, %v7113_v38  ;;  %v12596_v41 = vpop.permute.xlu2 %6957 }
 0x725   : > { %v7310_v40 = vadd.f32 %v7309_v12, %v7100_v37  ;;  %v7269_v60 = vadd.f32 %v7268_v13, %v7114_v55  ;;  %v5975_v15 = vpop.f32.mrf.mxu2  ;;  %v5879_v8 = vpop.f32.mrf.mxu0 }
 0x726   : > { %v6024_v6 = vpop.f32.mrf.mxu3  ;;  %v5976_v39 = vadd.f32 %v5975_v15, %v13982_v24  ;;  %v5928_v26 = vpop.f32.mrf.mxu1  ;;  %v5880_v52 = vadd.f32 %v5879_v8, %v13984_v59 }
 0x727   : > { %v6025_v30 = vadd.f32 %v6024_v6, %v13982_v24  ;;  %v5929_v14 = vadd.f32 %v5928_v26, %v13984_v59 }
 0x728   : > { %v6762_v53 = vmax.f32 %v5976_v39, 0.0  ;;  %v6776_v18 = vmax.f32 %v5880_v52, 0.0 }
 0x729   : > { %v6763_v62 = vmax.f32 %v6025_v30, 0.0  ;;  %v6777_v63 = vmax.f32 %v5929_v14, 0.0  ;;  %v13987_v14 = vld [vmem:[#allocation34_spill] sm:$0xff] }
 0x72a   : > { %v7115_v33 = vmul.f32 %v12572_v50, %v6762_v53  ;;  %v7129_v46 = vmul.f32 %v12584_v1, %v6776_v18 }
 0x72b   : > { %v7116_v35 = vmul.f32 %v12572_v50, %v6763_v62  ;;  %v7130_v31 = vmul.f32 %v12584_v1, %v6777_v63 }
 0x72c   : > { %v7290_v34 = vadd.f32 %v7289_v25, %v7115_v33  ;;  %v7249_v12 = vadd.f32 %v7248_v32, %v7129_v46  ;;  %v12608_v46 = vpop.permute.xlu0 %6962 }
 0x72d   : > { %v7311_v48 = vadd.f32 %v7310_v40, %v7116_v35  ;;  %v7270_v0 = vadd.f32 %v7269_v60, %v7130_v31  ;;  %v5977_v13 = vpop.f32.mrf.mxu2  ;;  %v5882_v42 = vpop.f32.mrf.mxu0 }
 0x72e   : > { %v6026_v9 = vpop.f32.mrf.mxu3  ;;  %v5978_v56 = vadd.f32 %v5977_v13, %v13984_v59  ;;  %v5931_v5 = vpop.f32.mrf.mxu1  ;;  %v5883_v16 = vadd.f32 %v5882_v42, %v13985_v29 }
 0x72f   : > { %v6027_v7 = vadd.f32 %v6026_v9, %v13984_v59  ;;  %v5932_v44 = vadd.f32 %v5931_v5, %v13985_v29 }
 0x730   : > { %v6778_v21 = vmax.f32 %v5978_v56, 0.0  ;;  %v6792_v20 = vmax.f32 %v5883_v16, 0.0  ;;  %6077 = vmatmul.bf16.gmra.mxu0 %v13986_v61 }
 0x731   : > { %v6779_v19 = vmax.f32 %v6027_v7, 0.0  ;;  %v6793_v49 = vmax.f32 %v5932_v44, 0.0  ;;  %6126 = vmatmul.bf16.gmra.mxu1 %v13986_v61 }
 0x732   : > { %v7131_v37 = vmul.f32 %v12584_v1, %v6778_v21  ;;  %6175 = vmatmul.bf16.gmra.mxu2 %v13986_v61  ;;  %v7145_v55 = vmul.f32 %v12596_v41, %v6792_v20 }
 0x733   : > { %v7132_v38 = vmul.f32 %v12584_v1, %v6779_v19  ;;  %6224 = vmatmul.bf16.gmra.mxu3 %v13986_v61  ;;  %v7146_v25 = vmul.f32 %v12596_v41, %v6793_v49  ;;  %v13988_v19 = vld [vmem:[#allocation15_spill] sm:$0xff] }
 0x734   : > { %v7291_v40 = vadd.f32 %v7290_v34, %v7131_v37  ;;  %v7250_v60 = vadd.f32 %v7249_v12, %v7145_v55 }
 0x735   : > { %v7312_v32 = vadd.f32 %v7311_v48, %v7132_v38  ;;  %v7271_v15 = vadd.f32 %v7270_v0, %v7146_v25  ;;  %v5980_v6 = vpop.f32.mrf.mxu2  ;;  %v5884_v26 = vpop.f32.mrf.mxu0  ;;  %v13989_v25 = vld [vmem:[#allocation25_spill] sm:$0xff] }
 0x736   : > { %v6029_v39 = vpop.f32.mrf.mxu3  ;;  %v5981_v30 = vadd.f32 %v5980_v6, %v13985_v29  ;;  %v5933_v52 = vpop.f32.mrf.mxu1  ;;  %v5885_v53 = vadd.f32 %v5884_v26, %v13987_v14 }
 0x737   : > { %v6030_v8 = vadd.f32 %v6029_v39, %v13985_v29  ;;  %v5934_v62 = vadd.f32 %v5933_v52, %v13987_v14 }
 0x738   : > { %v6794_v18 = vmax.f32 %v5981_v30, 0.0  ;;  %v6808_v33 = vmax.f32 %v5885_v53, 0.0 }
 0x739   : > { %v6795_v63 = vmax.f32 %v6030_v8, 0.0  ;;  %v6809_v35 = vmax.f32 %v5934_v62, 0.0 }
 0x73a   : > { %v7147_v31 = vmul.f32 %v12596_v41, %v6794_v18  ;;  %v7161_v48 = vmul.f32 %v12608_v46, %v6808_v33 }
 0x73b   : > { %v7148_v34 = vmul.f32 %v12596_v41, %v6795_v63  ;;  %v7162_v12 = vmul.f32 %v12608_v46, %v6809_v35  ;;  %v13990_v35 = vld [vmem:[#allocation17_spill] sm:$0xff] }
 0x73c   : > { %v7292_v0 = vadd.f32 %v7291_v40, %v7147_v31  ;;  %v7251_v9 = vadd.f32 %v7250_v60, %v7161_v48  ;;  %v12620_v40 = vpop.permute.xlu1 %6967 }
 0x73d   : > { %v7313_v13 = vadd.f32 %v7312_v32, %v7148_v34  ;;  %v7272_v56 = vadd.f32 %v7271_v15, %v7162_v12  ;;  %v5982_v7 = vpop.f32.mrf.mxu2  ;;  %v5887_v44 = vpop.f32.mrf.mxu0 }
 0x73e   : > { %v6031_v42 = vpop.f32.mrf.mxu3  ;;  %v5983_v5 = vadd.f32 %v5982_v7, %v13987_v14  ;;  %v5936_v21 = vpop.f32.mrf.mxu1  ;;  %v5888_v20 = vadd.f32 %v5887_v44, %v13988_v19 }
 0x73f   : > { %v6032_v16 = vadd.f32 %v6031_v42, %v13987_v14  ;;  %v5937_v49 = vadd.f32 %v5936_v21, %v13988_v19 }
 0x740   : > { %v6810_v61 = vmax.f32 %v5983_v5, 0.0  ;;  %v6824_v38 = vmax.f32 %v5888_v20, 0.0  ;;  %6082 = vmatmul.bf16.gmra.mxu0 %v13989_v25 }
 0x741   : > { %v6811_v37 = vmax.f32 %v6032_v16, 0.0  ;;  %v6825_v55 = vmax.f32 %v5937_v49, 0.0  ;;  %6131 = vmatmul.bf16.gmra.mxu1 %v13989_v25 }
 0x742   : > { %v7163_v32 = vmul.f32 %v12608_v46, %v6810_v61  ;;  %6180 = vmatmul.bf16.gmra.mxu2 %v13989_v25  ;;  %v7177_v15 = vmul.f32 %v12620_v40, %v6824_v38 }
 0x743   : > { %v7164_v60 = vmul.f32 %v12608_v46, %v6811_v37  ;;  %6229 = vmatmul.bf16.gmra.mxu3 %v13989_v25  ;;  %v7178_v6 = vmul.f32 %v12620_v40, %v6825_v55 }
 0x744   : > { %v7293_v39 = vadd.f32 %v7292_v0, %v7163_v32  ;;  %v7252_v8 = vadd.f32 %v7251_v9, %v7177_v15  ;;  %v12632_v0 = vpop.permute.xlu2 %6972 }
 0x745   : > { %v7314_v30 = vadd.f32 %v7313_v13, %v7164_v60  ;;  %v7273_v26 = vadd.f32 %v7272_v56, %v7178_v6  ;;  %v5985_v52 = vpop.f32.mrf.mxu2  ;;  %v5889_v63 = vpop.f32.mrf.mxu0 }
 0x746   : > { %v6034_v53 = vpop.f32.mrf.mxu3  ;;  %v5986_v62 = vadd.f32 %v5985_v52, %v13988_v19  ;;  %v5938_v33 = vpop.f32.mrf.mxu1  ;;  %v5890_v31 = vadd.f32 %v5889_v63, %v13990_v35 }
 0x747   : > { %v6035_v18 = vadd.f32 %v6034_v53, %v13988_v19  ;;  %v5939_v34 = vadd.f32 %v5938_v33, %v13990_v35 }
 0x748   : > { %v6826_v48 = vmax.f32 %v5986_v62, 0.0  ;;  %v6840_v7 = vmax.f32 %v5890_v31, 0.0 }
 0x749   : > { %v6827_v12 = vmax.f32 %v6035_v18, 0.0  ;;  %v6841_v42 = vmax.f32 %v5939_v34, 0.0 }
 0x74a   : > { %v7179_v13 = vmul.f32 %v12620_v40, %v6826_v48  ;;  %v7193_v56 = vmul.f32 %v12632_v0, %v6840_v7 }
 0x74b   : > { %v7180_v9 = vmul.f32 %v12620_v40, %v6827_v12  ;;  %v7194_v5 = vmul.f32 %v12632_v0, %v6841_v42 }
 0x74c   : > { %v7294_v16 = vadd.f32 %v7293_v39, %v7179_v13  ;;  %v7253_v21 = vadd.f32 %v7252_v8, %v7193_v56  ;;  %v13991_v39 = vld [vmem:[#allocation13_spill] sm:$0xff] }
 0x74d   : > { %v7315_v44 = vadd.f32 %v7314_v30, %v7180_v9  ;;  %v7274_v20 = vadd.f32 %v7273_v26, %v7194_v5  ;;  %v5987_v49 = vpop.f32.mrf.mxu2  ;;  %v5892_v55 = vpop.f32.mrf.mxu0 }
 0x74e   : > { %v6036_v61 = vpop.f32.mrf.mxu3  ;;  %v5988_v37 = vadd.f32 %v5987_v49, %v13990_v35  ;;  %v5941_v25 = vpop.f32.mrf.mxu1  ;;  %v5893_v32 = vadd.f32 %v5892_v55, %v12430_v3 }
 0x74f   : > { %v6037_v38 = vadd.f32 %v6036_v61, %v13990_v35  ;;  %v5942_v60 = vadd.f32 %v5941_v25, %v12430_v3  ;;  %v12644_v30 = vpop.permute.xlu0 %6977 }
 0x750   : > { %v6842_v15 = vmax.f32 %v5988_v37, 0.0  ;;  %v6856_v52 = vmax.f32 %v5893_v32, 0.0  ;;  %6087 = vmatmul.bf16.gmra.mxu0 %v13991_v39 }
 0x751   : > { %v6843_v6 = vmax.f32 %v6037_v38, 0.0  ;;  %v6857_v53 = vmax.f32 %v5942_v60, 0.0  ;;  %6136 = vmatmul.bf16.gmra.mxu1 %v13991_v39 }
 0x752   : > { %v7195_v8 = vmul.f32 %v12632_v0, %v6842_v15  ;;  %6185 = vmatmul.bf16.gmra.mxu2 %v13991_v39  ;;  %v7209_v62 = vmul.f32 %v12644_v30, %v6856_v52 }
 0x753   : > { %v7196_v26 = vmul.f32 %v12632_v0, %v6843_v6  ;;  %6234 = vmatmul.bf16.gmra.mxu3 %v13991_v39  ;;  %v7210_v18 = vmul.f32 %v12644_v30, %v6857_v53 }
 0x754   : > { %v7295_v63 = vadd.f32 %v7294_v16, %v7195_v8  ;;  %v7254_v31 = vadd.f32 %v7253_v21, %v7209_v62  ;;  %v12656_v16 = vpop.permute.xlu1 %6982 }
 0x755   : > { %v7316_v33 = vadd.f32 %v7315_v44, %v7196_v26  ;;  %v7275_v34 = vadd.f32 %v7274_v20, %v7210_v18  ;;  %v5990_v48 = vpop.f32.mrf.mxu2  ;;  %v5894_v13 = vpop.f32.mrf.mxu0 }
 0x756   : > { %v6039_v12 = vpop.f32.mrf.mxu3  ;;  %v5991_v7 = vadd.f32 %v5990_v48, %v12430_v3  ;;  %v5943_v9 = vpop.f32.mrf.mxu1  ;;  %v5895_v56 = vadd.f32 %v5894_v13, %v12449_v51 }
 0x757   : > { %v6040_v42 = vadd.f32 %v6039_v12, %v12430_v3  ;;  %v5944_v5 = vadd.f32 %v5943_v9, %v12449_v51 }
 0x758   : > { %v6858_v49 = vmax.f32 %v5991_v7, 0.0  ;;  %v6872_v37 = vmax.f32 %v5895_v56, 0.0 }
 0x759   : > { %v6859_v61 = vmax.f32 %v6040_v42, 0.0  ;;  %v6873_v38 = vmax.f32 %v5944_v5, 0.0 }
 0x75a   : > { %v7211_v44 = vmul.f32 %v12644_v30, %v6858_v49  ;;  %v7225_v20 = vmul.f32 %v12656_v16, %v6872_v37 }
 0x75b   : > { %v7212_v21 = vmul.f32 %v12644_v30, %v6859_v61  ;;  %v7226_v55 = vmul.f32 %v12656_v16, %v6873_v38 }
 0x75c   : > { %v7296_v25 = vadd.f32 %v7295_v63, %v7211_v44  ;;  %v7255_v60 = vadd.f32 %v7254_v31, %v7225_v20  ;;  %v12665_v63 = vld [vmem:[#allocation3] sm:$0xff] }
 0x75d   : > { %v7317_v32 = vadd.f32 %v7316_v33, %v7212_v21  ;;  %v7276_v15 = vadd.f32 %v7275_v34, %v7226_v55  ;;  %v5992_v6 = vpop.f32.mrf.mxu2  ;;  %v6053_v8 = vpop.f32.mrf.mxu0 }
 0x75e   : > { %v6041_v52 = vpop.f32.mrf.mxu3  ;;  %v5993_v53 = vadd.f32 %v5992_v6, %v12449_v51  ;;  %v6102_v26 = vpop.f32.mrf.mxu1  ;;  %v7256_v62 = vrot.slane %v7255_v60, 4  ;;  %v6054_v13 = vadd.f32 %v6053_v8, %v12315_v28 }
 0x75f   : > { %v6042_v39 = vadd.f32 %v6041_v52, %v12449_v51  ;;  %v7277_v18 = vrot.slane %v7276_v15, 4  ;;  %v7580_v33 = vpop.permute.xlu2 %7579  ;;  %v6103_v9 = vadd.f32 %v6102_v26, %v12315_v28 }
 0x760   : > { %v6874_v48 = vmax.f32 %v5993_v53, 0.0  ;;  %v7257_v7 = vadd.f32 %v7256_v62, %v7255_v60  ;;  %6248 = vmatmul.bf16.vlgmr.msra.gmra.mxu0 %v12665_v63  ;;  %v12674_v37 = vperm.slane %v7580_v33, 0 }
 0x761   : > { %v6875_v12 = vmax.f32 %v6042_v39, 0.0  ;;  %v7278_v42 = vadd.f32 %v7277_v18, %v7276_v15  ;;  %6297 = vmatmul.bf16.vlgmr.msra.gmra.mxu1 %v12665_v63  ;;  %v6636_v15 = vmax.f32 %v6054_v13, 0.0  ;;  %v6637_v6 = vmax.f32 %v6103_v9, 0.0 }
 0x762   : > { %v7227_v31 = vmul.f32 %v12656_v16, %v6874_v48  ;;  %6346 = vmatmul.bf16.vlgmr.msra.gmra.mxu2 %v12665_v63  ;;  %v7258_v56 = vrot.slane %v7257_v7, 2  ;;  %13992 = vst [vmem:[#allocation24_spill] sm:$0xff] %v12674_v37 }
 0x763   : > { %v7228_v34 = vmul.f32 %v12656_v16, %v6875_v12  ;;  %6395 = vmatmul.bf16.vlgmr.msra.gmra.mxu3 %v12665_v63  ;;  %v7279_v5 = vrot.slane %v7278_v42, 2 }
 0x764   : > { %v7297_v49 = vadd.f32 %v7296_v25, %v7227_v31  ;;  %v7259_v38 = vadd.f32 %v7258_v56, %v7257_v7  ;;  %v6990_v56 = vmul.f32 %v12454_v58, %v6637_v6 }
 0x765   : > { %v7318_v61 = vadd.f32 %v7317_v32, %v7228_v34  ;;  %v7280_v44 = vadd.f32 %v7279_v5, %v7278_v42  ;;  %v6151_v21 = vpop.f32.mrf.mxu2  ;;  %v6055_v52 = vpop.f32.mrf.mxu0  ;;  %v6989_v34 = vmul.f32 %v12454_v58, %v6636_v15 }
 0x766   : > { %v6200_v20 = vpop.f32.mrf.mxu3  ;;  %v7298_v55 = vrot.slane %v7297_v49, 4  ;;  %v6104_v53 = vpop.f32.mrf.mxu1  ;;  %v7260_v39 = vrot.slane %v7259_v38, 1  ;;  %v6056_v26 = vadd.f32 %v6055_v52, %v12319_v47  ;;  %v6152_v18 = vadd.f32 %v6151_v21, %v12315_v28 }
 0x767   : > { %v7319_v60 = vrot.slane %v7318_v61, 4  ;;  %v7281_v8 = vrot.slane %v7280_v44, 1  ;;  %v6105_v62 = vadd.f32 %v6104_v53, %v12319_v47  ;;  %v6201_v48 = vadd.f32 %v6200_v20, %v12315_v28 }
 0x768   : > { %v7299_v25 = vadd.f32 %v7298_v55, %v7297_v49  ;;  %v7261_v12 = vadd.f32 %v7260_v39, %v7259_v38  ;;  %v6652_v42 = vmax.f32 %v6056_v26, 0.0  ;;  %v6638_v20 = vmax.f32 %v6152_v18, 0.0 }
 0x769   : > { %v7320_v32 = vadd.f32 %v7319_v60, %v7318_v61  ;;  %v7282_v7 = vadd.f32 %v7281_v8, %v7280_v44  ;;  %v6653_v33 = vmax.f32 %v6105_v62, 0.0  ;;  %v6639_v38 = vmax.f32 %v6201_v48, 0.0 }
 0x76a   : > { %v7300_v13 = vrot.slane %v7299_v25, 2  ;;  %v7005_v5 = vmul.f32 %v12457_v23, %v6652_v42  ;;  %v7583_v44 = vadd.f32 %v12674_v37, %v7261_v12 }
 0x76b   : > { %v7321_v31 = vrot.slane %v7320_v32, 2  ;;  %v7584_v9 = vadd.f32 %v12674_v37, %v7282_v7  ;;  %v7006_v49 = vmul.f32 %v12457_v23, %v6653_v33 }
 0x76c   : > { %v7301_v61 = vadd.f32 %v7300_v13, %v7299_v25  ;;  %v7325_v60 = vadd.f32 %v7005_v5, %v6989_v34  ;;  %v6991_v13 = vmul.f32 %v12454_v58, %v6638_v20 }
 0x76d   : > { %v7322_v21 = vadd.f32 %v7321_v31, %v7320_v32  ;;  %v7615_v55 = vrot.slane %v7584_v9, 7  ;;  %v7346_v52 = vadd.f32 %v7006_v49, %v6990_v56  ;;  %v6153_v53 = vpop.f32.mrf.mxu2  ;;  %v6058_v62 = vpop.f32.mrf.mxu0  ;;  %v6992_v31 = vmul.f32 %v12454_v58, %v6639_v38  ;;  %v12693_v56 = vld [vmem:[#allocation3 + $0x8] sm:$0xff] }
 0x76e   : > { %v6202_v15 = vpop.f32.mrf.mxu3  ;;  %v7302_v39 = vrot.slane %v7301_v61, 1  ;;  %v6154_v26 = vadd.f32 %v6153_v53, %v12319_v47  ;;  %v6107_v7 = vpop.f32.mrf.mxu1  ;;  %v6059_v25 = vadd.f32 %v6058_v62, %v12321_v36  ;;  %13993 = vst [vmem:[#allocation19_spill] sm:$0xff] %v12693_v56 }
 0x76f   : > { %v7323_v8 = vrot.slane %v7322_v21, 1  ;;  %v6203_v6 = vadd.f32 %v6202_v15, %v12319_v47  ;;  %v6108_v32 = vadd.f32 %v6107_v7, %v12321_v36  ;;  %v7630_v18 = vsel %vm7629_vm1, %v7583_v44, %v7615_v55 }
 0x770   : > { %v7303_v48 = vadd.f32 %v7302_v39, %v7301_v61  ;;  %v6654_v42 = vmax.f32 %v6154_v26, 0.0  ;;  %v6668_v34 = vmax.f32 %v6059_v25, 0.0  ;;  %6253 = vmatmul.bf16.gmra.mxu0 %v12693_v56 }
 0x771   : > { %v7324_v12 = vadd.f32 %v7323_v8, %v7322_v21  ;;  %v6655_v33 = vmax.f32 %v6203_v6, 0.0  ;;  %v6669_v9 = vmax.f32 %v6108_v32, 0.0  ;;  %6302 = vmatmul.bf16.gmra.mxu1 %v12693_v56 }
 0x772   : > { %v7585_v5 = vadd.f32 %v12674_v37, %v7303_v48  ;;  %v7007_v61 = vmul.f32 %v12457_v23, %v6654_v42  ;;  %6351 = vmatmul.bf16.gmra.mxu2 %v12693_v56  ;;  %v7021_v20 = vmul.f32 %v12483_v17, %v6668_v34 }
 0x773   : > { %v7586_v49 = vadd.f32 %v12674_v37, %v7324_v12  ;;  %v7008_v21 = vmul.f32 %v12457_v23, %v6655_v33  ;;  %v7022_v38 = vmul.f32 %v12483_v17, %v6669_v9  ;;  %6400 = vmatmul.bf16.gmra.mxu3 %v12693_v56 }
 0x774   : > { %v7616_v44 = vrot.slane %v7585_v5, 6  ;;  %v7367_v53 = vadd.f32 %v7007_v61, %v6991_v13  ;;  %v7326_v39 = vadd.f32 %v7325_v60, %v7021_v20 }
 0x775   : > { %v7617_v55 = vrot.slane %v7586_v49, 5  ;;  %v7388_v15 = vadd.f32 %v7008_v21, %v6992_v31  ;;  %v7347_v8 = vadd.f32 %v7346_v52, %v7022_v38  ;;  %v6156_v26 = vpop.f32.mrf.mxu2  ;;  %v6060_v25 = vpop.f32.mrf.mxu0 }
 0x776   : > { %v6205_v6 = vpop.f32.mrf.mxu3  ;;  %v6157_v62 = vadd.f32 %v6156_v26, %v12321_v36  ;;  %v6109_v32 = vpop.f32.mrf.mxu1  ;;  %v6061_v12 = vadd.f32 %v6060_v25, %v12327_v22 }
 0x777   : > { %v6206_v7 = vadd.f32 %v6205_v6, %v12321_v36  ;;  %v7632_v48 = vsel %vm7631_vm2, %v7616_v44, %v7617_v55  ;;  %v6110_v42 = vadd.f32 %v6109_v32, %v12327_v22 }
 0x778   : > { %v12711_v33 = vsel %vm7633_vm3, %v7630_v18, %v7632_v48  ;;  %v6670_v13 = vmax.f32 %v6157_v62, 0.0  ;;  %v6684_v52 = vmax.f32 %v6061_v12, 0.0 }
 0x779   : > { %13994 = vst [vmem:[#allocation22_spill] sm:$0xff] %v12711_v33  ;;  %v6671_v60 = vmax.f32 %v6206_v7, 0.0  ;;  %v6685_v31 = vmax.f32 %v6110_v42, 0.0 }
 0x77a   : > { %v7023_v34 = vmul.f32 %v12483_v17, %v6670_v13  ;;  %v7037_v5 = vmul.f32 %v12504_v57, %v6684_v52 }
 0x77b   : > { %v7024_v9 = vmul.f32 %v12483_v17, %v6671_v60  ;;  %v7038_v49 = vmul.f32 %v12504_v57, %v6685_v31 }
 0x77c   : > { %v7368_v61 = vadd.f32 %v7367_v53, %v7023_v34  ;;  %v7327_v20 = vadd.f32 %v7326_v39, %v7037_v5  ;;  %v12721_v53 = vld [vmem:[#allocation3 + $0x10] sm:$0xff] }
 0x77d   : > { %v7389_v21 = vadd.f32 %v7388_v15, %v7024_v9  ;;  %v7348_v38 = vadd.f32 %v7347_v8, %v7038_v49  ;;  %v6158_v44 = vpop.f32.mrf.mxu2  ;;  %v6063_v6 = vpop.f32.mrf.mxu0  ;;  %13995 = vst [vmem:[#allocation14_spill] sm:$0xff] %v12721_v53 }
 0x77e   : > { %v6207_v55 = vpop.f32.mrf.mxu3  ;;  %v6159_v18 = vadd.f32 %v6158_v44, %v12327_v22  ;;  %v6112_v62 = vpop.f32.mrf.mxu1  ;;  %v6064_v7 = vadd.f32 %v6063_v6, %v13973_v2 }
 0x77f   : > { %v6208_v26 = vadd.f32 %v6207_v55, %v12327_v22  ;;  %v6113_v25 = vadd.f32 %v6112_v62, %v13973_v2 }
 0x780   : > { %v6686_v32 = vmax.f32 %v6159_v18, 0.0  ;;  %v6700_v12 = vmax.f32 %v6064_v7, 0.0  ;;  %6258 = vmatmul.bf16.gmra.mxu0 %v12721_v53 }
 0x781   : > { %v6687_v48 = vmax.f32 %v6208_v26, 0.0  ;;  %v6701_v42 = vmax.f32 %v6113_v25, 0.0  ;;  %6307 = vmatmul.bf16.gmra.mxu1 %v12721_v53 }
 0x782   : > { %v7039_v15 = vmul.f32 %v12504_v57, %v6686_v32  ;;  %6356 = vmatmul.bf16.gmra.mxu2 %v12721_v53  ;;  %v7053_v8 = vmul.f32 %v12524_v4, %v6700_v12 }
 0x783   : > { %v7040_v39 = vmul.f32 %v12504_v57, %v6687_v48  ;;  %v7054_v13 = vmul.f32 %v12524_v4, %v6701_v42  ;;  %6405 = vmatmul.bf16.gmra.mxu3 %v12721_v53  ;;  %v12743_v48 = vld [vmem:[#allocation3 + $0x18] sm:$0xff]  ;;  %v12771_v57 = vld [vmem:[#allocation3 + $0x28] sm:$0xff] }
 0x784   : > { %v7369_v60 = vadd.f32 %v7368_v61, %v7039_v15  ;;  %v12731_v31 = vadd.f32 %v7327_v20, %v7053_v8  ;;  %13996 = vst [vmem:[#allocation9_spill] sm:$0xff] %v12743_v48 }
 0x785   : > { %v7390_v52 = vadd.f32 %v7389_v21, %v7040_v39  ;;  %v12733_v34 = vadd.f32 %v7348_v38, %v7054_v13  ;;  %v6161_v9 = vpop.f32.mrf.mxu2  ;;  %v6065_v55 = vpop.f32.mrf.mxu0  ;;  %13998 = vst [vmem:[#allocation21_spill] sm:$0xff] %v12771_v57 }
 0x786   : > { %v6210_v5 = vpop.f32.mrf.mxu3  ;;  %v6162_v49 = vadd.f32 %v6161_v9, %v13973_v2  ;;  %v6114_v18 = vpop.f32.mrf.mxu1  ;;  %v12749_v9 = vld [vmem:[#allocation3 + $0x20] sm:$0xff] }
 0x787   : > { %v6211_v44 = vadd.f32 %v6210_v5, %v13973_v2  ;;  %13997 = vst [vmem:[#allocation32_spill] sm:$0xff] %v12749_v9  ;;  %v6115_v53 = vadd.f32 %v6114_v18, %v13978_v27 }
 0x788   : > { %v6702_v26 = vmax.f32 %v6162_v49, 0.0 }
 0x789   : > { %v6703_v6 = vmax.f32 %v6211_v44, 0.0 }
 0x78a   : > { %v7055_v62 = vmul.f32 %v12524_v4, %v6702_v26 }
 0x78b   : > { %v7056_v7 = vmul.f32 %v12524_v4, %v6703_v6  ;;  %v6066_v4 = vadd.f32 %v6065_v55, %v13978_v27  ;;  %v6717_v55 = vmax.f32 %v6115_v53, 0.0 }
 0x78c   : > { %v12739_v61 = vadd.f32 %v7369_v60, %v7055_v62 }
 0x78d   : > { %v12741_v21 = vadd.f32 %v7390_v52, %v7056_v7  ;;  %v6163_v20 = vpop.f32.mrf.mxu2  ;;  %v6068_v25 = vpop.f32.mrf.mxu0  ;;  %v6716_v17 = vmax.f32 %v6066_v4, 0.0  ;;  %v7070_v53 = vmul.f32 %v12536_v54, %v6717_v55 }
 0x78e   : > { %v6212_v38 = vpop.f32.mrf.mxu3  ;;  %v6117_v32 = vpop.f32.mrf.mxu1  ;;  %v6069_v33 = vadd.f32 %v6068_v25, %v13979_v10 }
 0x78f   : > { %v6213_v2 = vadd.f32 %v6212_v38, %v13978_v27  ;;  %v6118_v22 = vadd.f32 %v6117_v32, %v13979_v10  ;;  %v7069_v4 = vmul.f32 %v12536_v54, %v6716_v17 }
 0x790   : > { %6263 = vmatmul.bf16.gmra.mxu0 %v12743_v48 }
 0x791   : > { %6312 = vmatmul.bf16.gmra.mxu1 %v12743_v48  ;;  %v6733_v36 = vmax.f32 %v6118_v22, 0.0  ;;  %v7329_v55 = vadd.f32 %v12731_v31, %v7069_v4 }
 0x792   : > { %6361 = vmatmul.bf16.gmra.mxu2 %v12743_v48 }
 0x793   : > { %6410 = vmatmul.bf16.gmra.mxu3 %v12743_v48 }
 0x795   : > { %v6166_v12 = vpop.f32.mrf.mxu2  ;;  %v6070_v15 = vpop.f32.mrf.mxu0 }
 0x796   : > { %v6215_v42 = vpop.f32.mrf.mxu3  ;;  %v6119_v39 = vpop.f32.mrf.mxu1  ;;  %v6167_v23 = vadd.f32 %v6166_v12, %v13979_v10 }
 0x797   : > { %v6216_v25 = vadd.f32 %v6215_v42, %v13979_v10  ;;  %v7086_v10 = vmul.f32 %v12548_v45, %v6733_v36 }
 0x798   : > { %v6734_v58 = vmax.f32 %v6167_v23, 0.0 }
 0x799   : > { %v6735_v17 = vmax.f32 %v6216_v25, 0.0 }
 0x79d   : > { %v6168_v8 = vpop.f32.mrf.mxu2  ;;  %v6073_v60 = vpop.f32.mrf.mxu0 }
 0x79e   : > { %v6217_v13 = vpop.f32.mrf.mxu3  ;;  %v6122_v52 = vpop.f32.mrf.mxu1 }
 0x79f   : > { %v6218_v12 = vadd.f32 %v6217_v13, %v13981_v43  ;;  %v6123_v13 = vadd.f32 %v6122_v52, %v13982_v24 }
 0x7a0   : > { %6268 = vmatmul.bf16.gmra.mxu0 %v12749_v9 }
 0x7a1   : > { %6317 = vmatmul.bf16.gmra.mxu1 %v12749_v9 }
 0x7a2   : > { %6366 = vmatmul.bf16.gmra.mxu2 %v12749_v9 }
 0x7a3   : > { %6415 = vmatmul.bf16.gmra.mxu3 %v12749_v9  ;;  %v6164_v9 = vadd.f32 %v6163_v20, %v13978_v27  ;;  %v6719_v20 = vmax.f32 %v6213_v2, 0.0  ;;  %v6732_v27 = vmax.f32 %v6069_v33, 0.0  ;;  %v6071_v2 = vadd.f32 %v6070_v15, %v13981_v43 }
 0x7a4   : > { %v6169_v33 = vadd.f32 %v6168_v8, %v13981_v43  ;;  %v7350_v15 = vadd.f32 %v12733_v34, %v7070_v53  ;;  %v6074_v8 = vadd.f32 %v6073_v60, %v13982_v24 }
 0x7a5   : > { %v6171_v5 = vpop.f32.mrf.mxu2  ;;  %v12755_v44 = vpop.f32.mrf.mxu0  ;;  %v6718_v18 = vmax.f32 %v6164_v9, 0.0  ;;  %v6120_v9 = vadd.f32 %v6119_v39, %v13981_v43  ;;  %v7072_v22 = vmul.f32 %v12536_v54, %v6719_v20  ;;  %v7085_v42 = vmul.f32 %v12548_v45, %v6732_v27 }
 0x7a6   : > { %v6220_v49 = vpop.f32.mrf.mxu3  ;;  %v12757_v26 = vpop.f32.mrf.mxu1  ;;  %v6748_v47 = vmax.f32 %v6071_v2, 0.0  ;;  %v6750_v43 = vmax.f32 %v6169_v33, 0.0  ;;  %v6751_v27 = vmax.f32 %v6218_v12, 0.0  ;;  %v6172_v36 = vadd.f32 %v6171_v5, %v13982_v24 }
 0x7a7   : > { %v6749_v39 = vmax.f32 %v6120_v9, 0.0  ;;  %v7392_v20 = vadd.f32 %v12741_v21, %v7072_v22  ;;  %v6221_v23 = vadd.f32 %v6220_v49, %v13982_v24  ;;  %v7330_v34 = vadd.f32 %v7329_v55, %v7085_v42  ;;  %v12825_v42 = vld [vmem:[#allocation3 + $0x30] sm:$0xff] }
 0x7a8   : > { %v7351_v4 = vadd.f32 %v7350_v15, %v7086_v10  ;;  %v7101_v52 = vmul.f32 %v12560_v11, %v6748_v47  ;;  %v6076_v5 = vadd.f32 %v12755_v44, %v13984_v59  ;;  %v6125_v49 = vadd.f32 %v12757_v26, %v13984_v59 }
 0x7a9   : > { %v7102_v53 = vmul.f32 %v12560_v11, %v6749_v39  ;;  %v6764_v2 = vmax.f32 %v6074_v8, 0.0  ;;  %v6765_v9 = vmax.f32 %v6123_v13, 0.0  ;;  %v7103_v22 = vmul.f32 %v12560_v11, %v6750_v43 }
 0x7aa   : > { %v7104_v47 = vmul.f32 %v12560_v11, %v6751_v27  ;;  %v6766_v33 = vmax.f32 %v6172_v36, 0.0  ;;  %v6767_v12 = vmax.f32 %v6221_v23, 0.0  ;;  %v7331_v43 = vadd.f32 %v7330_v34, %v7101_v52 }
 0x7ab   : > { %v6780_v55 = vmax.f32 %v6076_v5, 0.0  ;;  %v6781_v15 = vmax.f32 %v6125_v49, 0.0  ;;  %v7117_v39 = vmul.f32 %v12572_v50, %v6764_v2  ;;  %v7118_v8 = vmul.f32 %v12572_v50, %v6765_v9 }
 0x7ad   : > { %v12759_v6 = vpop.f32.mrf.mxu2  ;;  %v12763_v7 = vpop.f32.mrf.mxu0  ;;  %v7133_v5 = vmul.f32 %v12584_v1, %v6780_v55  ;;  %v7134_v49 = vmul.f32 %v12584_v1, %v6781_v15 }
 0x7ae   : > { %v12761_v62 = vpop.f32.mrf.mxu3  ;;  %v12765_v48 = vpop.f32.mrf.mxu1  ;;  %v6174_v10 = vadd.f32 %v12759_v6, %v13984_v59  ;;  %v6079_v6 = vadd.f32 %v12763_v7, %v13985_v29  ;;  %v7119_v7 = vmul.f32 %v12572_v50, %v6766_v33 }
 0x7b0   : > { %6273 = vmatmul.bf16.gmra.mxu0 %v12771_v57  ;;  %v6796_v34 = vmax.f32 %v6079_v6, 0.0 }
 0x7b1   : > { %6322 = vmatmul.bf16.gmra.mxu1 %v12771_v57 }
 0x7b2   : > { %6371 = vmatmul.bf16.gmra.mxu2 %v12771_v57 }
 0x7b3   : > { %6420 = vmatmul.bf16.gmra.mxu3 %v12771_v57  ;;  %v7071_v57 = vmul.f32 %v12536_v54, %v6718_v18 }
 0x7b5   : > { %v12779_v56 = vpop.f32.mrf.mxu2  ;;  %v12785_v37 = vpop.f32.mrf.mxu0  ;;  %v7371_v18 = vadd.f32 %v12739_v61, %v7071_v57  ;;  %v7087_v57 = vmul.f32 %v12548_v45, %v6734_v58  ;;  %v7088_v61 = vmul.f32 %v12548_v45, %v6735_v17  ;;  %v6223_v58 = vadd.f32 %v12761_v62, %v13984_v59 }
 0x7b6   : > { %v12781_v38 = vpop.f32.mrf.mxu3  ;;  %v12787_v32 = vpop.f32.mrf.mxu1  ;;  %v6128_v62 = vadd.f32 %v12765_v48, %v13985_v29  ;;  %v7352_v17 = vadd.f32 %v7351_v4, %v7102_v53  ;;  %v7120_v48 = vmul.f32 %v12572_v50, %v6767_v12  ;;  %v6081_v2 = vadd.f32 %v12785_v37, %v13987_v14 }
 0x7b7   : > { %v7372_v44 = vadd.f32 %v7371_v18, %v7087_v57  ;;  %v7393_v26 = vadd.f32 %v7392_v20, %v7088_v61  ;;  %v6782_v18 = vmax.f32 %v6174_v10, 0.0  ;;  %v6783_v20 = vmax.f32 %v6223_v58, 0.0 }
 0x7b8   : > { %v6797_v4 = vmax.f32 %v6128_v62, 0.0  ;;  %v6177_v57 = vadd.f32 %v12779_v56, %v13985_v29  ;;  %v6226_v61 = vadd.f32 %v12781_v38, %v13985_v29  ;;  %v6130_v9 = vadd.f32 %v12787_v32, %v13987_v14 }
 0x7b9   : > { %v7373_v13 = vadd.f32 %v7372_v44, %v7103_v22  ;;  %v7394_v27 = vadd.f32 %v7393_v26, %v7104_v47  ;;  %v7332_v10 = vadd.f32 %v7331_v43, %v7117_v39  ;;  %v7353_v58 = vadd.f32 %v7352_v17, %v7118_v8 }
 0x7ba   : > { %v7135_v22 = vmul.f32 %v12584_v1, %v6782_v18  ;;  %v7136_v56 = vmul.f32 %v12584_v1, %v6783_v20  ;;  %v7149_v44 = vmul.f32 %v12596_v41, %v6796_v34  ;;  %v7150_v26 = vmul.f32 %v12596_v41, %v6797_v4 }
 0x7bb   : > { %v7374_v47 = vadd.f32 %v7373_v13, %v7119_v7  ;;  %v7395_v38 = vadd.f32 %v7394_v27, %v7120_v48  ;;  %v6798_v37 = vmax.f32 %v6177_v57, 0.0  ;;  %v6799_v6 = vmax.f32 %v6226_v61, 0.0 }
 0x7bc   : > { %v7333_v62 = vadd.f32 %v7332_v10, %v7133_v5  ;;  %v7354_v32 = vadd.f32 %v7353_v58, %v7134_v49  ;;  %v6812_v43 = vmax.f32 %v6081_v2, 0.0  ;;  %v6813_v17 = vmax.f32 %v6130_v9, 0.0 }
 0x7bd   : > { %v12807_v25 = vpop.f32.mrf.mxu2  ;;  %v6083_v21 = vpop.f32.mrf.mxu0  ;;  %v7375_v55 = vadd.f32 %v7374_v47, %v7135_v22  ;;  %v7396_v15 = vadd.f32 %v7395_v38, %v7136_v56  ;;  %v7151_v34 = vmul.f32 %v12596_v41, %v6798_v37  ;;  %v7152_v4 = vmul.f32 %v12596_v41, %v6799_v6  ;;  %v12871_v47 = vld [vmem:[#allocation3 + $0x38] sm:$0xff] }
 0x7be   : > { %v12809_v31 = vpop.f32.mrf.mxu3  ;;  %v6132_v60 = vpop.f32.mrf.mxu1  ;;  %v6084_v33 = vadd.f32 %v6083_v21, %v13988_v19  ;;  %v6179_v39 = vadd.f32 %v12807_v25, %v13987_v14  ;;  %v7334_v7 = vadd.f32 %v7333_v62, %v7149_v44  ;;  %v7355_v48 = vadd.f32 %v7354_v32, %v7150_v26 }
 0x7bf   : > { %v6133_v12 = vadd.f32 %v6132_v60, %v13988_v19  ;;  %v6228_v21 = vadd.f32 %v12809_v31, %v13987_v14  ;;  %v7165_v25 = vmul.f32 %v12608_v46, %v6812_v43  ;;  %v7376_v38 = vadd.f32 %v7375_v55, %v7151_v34 }
 0x7c0   : > { %6278 = vmatmul.bf16.gmra.mxu0 %v12825_v42  ;;  %v6828_v60 = vmax.f32 %v6084_v33, 0.0  ;;  %v6814_v49 = vmax.f32 %v6179_v39, 0.0  ;;  %v7397_v33 = vadd.f32 %v7396_v15, %v7152_v4 }
 0x7c1   : > { %6327 = vmatmul.bf16.gmra.mxu1 %v12825_v42  ;;  %v6829_v18 = vmax.f32 %v6133_v12, 0.0  ;;  %v6815_v10 = vmax.f32 %v6228_v21, 0.0 }
 0x7c2   : > { %6376 = vmatmul.bf16.gmra.mxu2 %v12825_v42  ;;  %v7181_v58 = vmul.f32 %v12620_v40, %v6828_v60  ;;  %v7167_v6 = vmul.f32 %v12608_v46, %v6814_v49 }
 0x7c3   : > { %6425 = vmatmul.bf16.gmra.mxu3 %v12825_v42  ;;  %v7182_v22 = vmul.f32 %v12620_v40, %v6829_v18 }
 0x7c5   : > { %v6181_v36 = vpop.f32.mrf.mxu2  ;;  %v6085_v52 = vpop.f32.mrf.mxu0 }
 0x7c6   : > { %v6230_v23 = vpop.f32.mrf.mxu3  ;;  %v6134_v53 = vpop.f32.mrf.mxu1  ;;  %v6086_v8 = vadd.f32 %v6085_v52, %v13990_v35  ;;  %v7166_v52 = vmul.f32 %v12608_v46, %v6813_v17  ;;  %v7168_v17 = vmul.f32 %v12608_v46, %v6815_v10 }
 0x7c7   : > { %v6135_v20 = vadd.f32 %v6134_v53, %v13990_v35  ;;  %v6182_v53 = vadd.f32 %v6181_v36, %v13988_v19  ;;  %v6231_v2 = vadd.f32 %v6230_v23, %v13988_v19  ;;  %v7335_v23 = vadd.f32 %v7334_v7, %v7165_v25 }
 0x7c8   : > { %v6844_v9 = vmax.f32 %v6086_v8, 0.0  ;;  %v7356_v44 = vadd.f32 %v7355_v48, %v7166_v52  ;;  %v7398_v10 = vadd.f32 %v7397_v33, %v7168_v17 }
 0x7c9   : > { %v6845_v56 = vmax.f32 %v6135_v20, 0.0  ;;  %v6830_v62 = vmax.f32 %v6182_v53, 0.0  ;;  %v6831_v32 = vmax.f32 %v6231_v2, 0.0  ;;  %v7336_v55 = vadd.f32 %v7335_v23, %v7181_v58 }
 0x7ca   : > { %v7197_v43 = vmul.f32 %v12632_v0, %v6844_v9  ;;  %v7357_v15 = vadd.f32 %v7356_v44, %v7182_v22  ;;  %v7377_v9 = vadd.f32 %v7376_v38, %v7167_v6 }
 0x7cb   : > { %v7198_v39 = vmul.f32 %v12632_v0, %v6845_v56  ;;  %v7184_v25 = vmul.f32 %v12620_v40, %v6831_v32 }
 0x7cc   : > { %v7337_v52 = vadd.f32 %v7336_v55, %v7197_v43 }
 0x7cd   : > { %v6183_v13 = vpop.f32.mrf.mxu2  ;;  %v6088_v57 = vpop.f32.mrf.mxu0 }
 0x7ce   : > { %v6232_v27 = vpop.f32.mrf.mxu3  ;;  %v6137_v61 = vpop.f32.mrf.mxu1  ;;  %v6089_v31 = vadd.f32 %v6088_v57, %v12430_v3  ;;  %v6184_v12 = vadd.f32 %v6183_v13, %v13990_v35 }
 0x7cf   : > { %v6138_v5 = vadd.f32 %v6137_v61, %v12430_v3  ;;  %v6233_v36 = vadd.f32 %v6232_v27, %v13990_v35  ;;  %v7183_v61 = vmul.f32 %v12620_v40, %v6830_v62 }
 0x7d0   : > { %6283 = vmatmul.bf16.gmra.mxu0 %v12871_v47  ;;  %v6860_v26 = vmax.f32 %v6089_v31, 0.0  ;;  %v6846_v60 = vmax.f32 %v6184_v12, 0.0 }
 0x7d1   : > { %6332 = vmatmul.bf16.gmra.mxu1 %v12871_v47  ;;  %v6861_v37 = vmax.f32 %v6138_v5, 0.0  ;;  %v6847_v18 = vmax.f32 %v6233_v36, 0.0  ;;  %v7358_v5 = vadd.f32 %v7357_v15, %v7198_v39  ;;  %v7378_v44 = vadd.f32 %v7377_v9, %v7183_v61 }
 0x7d2   : > { %6381 = vmatmul.bf16.gmra.mxu2 %v12871_v47  ;;  %v7213_v48 = vmul.f32 %v12644_v30, %v6860_v26  ;;  %v7199_v58 = vmul.f32 %v12632_v0, %v6846_v60 }
 0x7d3   : > { %6430 = vmatmul.bf16.gmra.mxu3 %v12871_v47  ;;  %v7214_v34 = vmul.f32 %v12644_v30, %v6861_v37  ;;  %v7200_v22 = vmul.f32 %v12632_v0, %v6847_v18  ;;  %v7399_v37 = vadd.f32 %v7398_v10, %v7184_v25 }
 0x7d4   : > { %v7338_v56 = vadd.f32 %v7337_v52, %v7213_v48  ;;  %v7379_v6 = vadd.f32 %v7378_v44, %v7199_v58 }
 0x7d5   : > { %v6186_v8 = vpop.f32.mrf.mxu2  ;;  %v6090_v27 = vpop.f32.mrf.mxu0  ;;  %v7359_v12 = vadd.f32 %v7358_v5, %v7214_v34 }
 0x7d6   : > { %v6235_v21 = vpop.f32.mrf.mxu3  ;;  %v6187_v20 = vadd.f32 %v6186_v8, %v12430_v3  ;;  %v6139_v7 = vpop.f32.mrf.mxu1  ;;  %v6091_v4 = vadd.f32 %v6090_v27, %v12449_v51  ;;  %v7400_v8 = vadd.f32 %v7399_v37, %v7200_v22 }
 0x7d7   : > { %v6236_v13 = vadd.f32 %v6235_v21, %v12430_v3  ;;  %v6140_v57 = vadd.f32 %v6139_v7, %v12449_v51 }
 0x7d8   : > { %v6862_v31 = vmax.f32 %v6187_v20, 0.0  ;;  %v6876_v53 = vmax.f32 %v6091_v4, 0.0 }
 0x7d9   : > { %v6863_v49 = vmax.f32 %v6236_v13, 0.0  ;;  %v6877_v2 = vmax.f32 %v6140_v57, 0.0 }
 0x7da   : > { %v7229_v36 = vmul.f32 %v12656_v16, %v6876_v53  ;;  %v7215_v26 = vmul.f32 %v12644_v30, %v6862_v31 }
 0x7db   : > { %v7230_v23 = vmul.f32 %v12656_v16, %v6877_v2  ;;  %v7216_v62 = vmul.f32 %v12644_v30, %v6863_v49 }
 0x7dc   : > { %v7339_v32 = vadd.f32 %v7338_v56, %v7229_v36  ;;  %v7380_v18 = vadd.f32 %v7379_v6, %v7215_v26  ;;  %v13999_v26 = vld [vmem:[#allocation28_spill] sm:$0xff] }
 0x7dd   : > { %v7360_v43 = vadd.f32 %v7359_v12, %v7230_v23  ;;  %v6188_v38 = vpop.f32.mrf.mxu2  ;;  %v6249_v15 = vpop.f32.mrf.mxu0  ;;  %v7401_v27 = vadd.f32 %v7400_v8, %v7216_v62  ;;  %v14000_v8 = vld [vmem:[#allocation30_spill] sm:$0xff] }
 0x7de   : > { %v6237_v33 = vpop.f32.mrf.mxu3  ;;  %v6189_v17 = vadd.f32 %v6188_v38, %v12449_v51  ;;  %v6298_v39 = vpop.f32.mrf.mxu1  ;;  %v7340_v21 = vrot.slane %v7339_v32, 4  ;;  %v6250_v57 = vadd.f32 %v6249_v15, %v12315_v28 }
 0x7df   : > { %v6238_v55 = vadd.f32 %v6237_v33, %v12449_v51  ;;  %v7361_v60 = vrot.slane %v7360_v43, 4  ;;  %v6299_v61 = vadd.f32 %v6298_v39, %v12315_v28 }
 0x7e0   : > { %v6878_v20 = vmax.f32 %v6189_v17, 0.0  ;;  %v7341_v7 = vadd.f32 %v7340_v21, %v7339_v32  ;;  %6444 = vmatmul.bf16.vlgmr.msrb.gmra.mxu0 %v12665_v63  ;;  %v6640_v22 = vmax.f32 %v6250_v57, 0.0 }
 0x7e1   : > { %v6879_v13 = vmax.f32 %v6238_v55, 0.0  ;;  %v7362_v48 = vadd.f32 %v7361_v60, %v7360_v43  ;;  %6493 = vmatmul.bf16.vlgmr.msrb.gmra.mxu1 %v12665_v63  ;;  %v6641_v56 = vmax.f32 %v6299_v61, 0.0 }
 0x7e2   : > { %v7231_v34 = vmul.f32 %v12656_v16, %v6878_v20  ;;  %6542 = vmatmul.bf16.vlgmr.msrb.gmra.mxu2 %v12665_v63  ;;  %v7342_v25 = vrot.slane %v7341_v7, 2  ;;  %v6993_v21 = vmul.f32 %v14000_v8, %v6640_v22 }
 0x7e3   : > { %v7232_v4 = vmul.f32 %v12656_v16, %v6879_v13  ;;  %v7363_v52 = vrot.slane %v7362_v48, 2  ;;  %6591 = vmatmul.bf16.vlgmr.msrb.gmra.mxu3 %v12665_v63  ;;  %v6994_v60 = vmul.f32 %v14000_v8, %v6641_v56 }
 0x7e4   : > { %v7381_v31 = vadd.f32 %v7380_v18, %v7231_v34  ;;  %v7343_v49 = vadd.f32 %v7342_v25, %v7341_v7  ;;  %v14001_v18 = vld [vmem:[#allocation24_spill] sm:$0xff] }
 0x7e5   : > { %v7402_v5 = vadd.f32 %v7401_v27, %v7232_v4  ;;  %v7364_v53 = vadd.f32 %v7363_v52, %v7362_v48  ;;  %v6347_v2 = vpop.f32.mrf.mxu2  ;;  %v6251_v12 = vpop.f32.mrf.mxu0  ;;  %v14002_v27 = vld [vmem:[#allocation38_spill] sm:$0xff] }
 0x7e6   : > { %v6396_v9 = vpop.f32.mrf.mxu3  ;;  %v7382_v10 = vrot.slane %v7381_v31, 4  ;;  %v6300_v36 = vpop.f32.mrf.mxu1  ;;  %v7344_v23 = vrot.slane %v7343_v49, 1  ;;  %v6252_v37 = vadd.f32 %v6251_v12, %v13999_v26  ;;  %v6348_v43 = vadd.f32 %v6347_v2, %v12315_v28  ;;  %v14003_v12 = vld [vmem:[#allocation10_spill] sm:$0xff] }
 0x7e7   : > { %v7403_v58 = vrot.slane %v7402_v5, 4  ;;  %v7365_v44 = vrot.slane %v7364_v53, 1  ;;  %v6301_v62 = vadd.f32 %v6300_v36, %v13999_v26  ;;  %v6397_v38 = vadd.f32 %v6396_v9, %v12315_v28 }
 0x7e8   : > { %v7383_v63 = vadd.f32 %v7382_v10, %v7381_v31  ;;  %v7345_v33 = vadd.f32 %v7344_v23, %v7343_v49  ;;  %v6656_v17 = vmax.f32 %v6252_v37, 0.0  ;;  %v6642_v57 = vmax.f32 %v6348_v43, 0.0 }
 0x7e9   : > { %v7404_v32 = vadd.f32 %v7403_v58, %v7402_v5  ;;  %v7366_v6 = vadd.f32 %v7365_v44, %v7364_v53  ;;  %v6657_v55 = vmax.f32 %v6301_v62, 0.0  ;;  %v6643_v61 = vmax.f32 %v6397_v38, 0.0 }
 0x7ea   : > { %v7384_v15 = vrot.slane %v7383_v63, 2  ;;  %v7587_v20 = vadd.f32 %v14001_v18, %v7345_v33  ;;  %v7009_v7 = vmul.f32 %v14002_v27, %v6656_v17  ;;  %v6995_v43 = vmul.f32 %v14000_v8, %v6642_v57  ;;  %v14004_v17 = vld [vmem:[#allocation19_spill] sm:$0xff] }
 0x7eb   : > { %v7405_v39 = vrot.slane %v7404_v32, 2  ;;  %v7588_v13 = vadd.f32 %v14001_v18, %v7366_v6  ;;  %v7010_v48 = vmul.f32 %v14002_v27, %v6657_v55  ;;  %v6996_v38 = vmul.f32 %v14000_v8, %v6643_v61 }
 0x7ec   : > { %v7385_v34 = vadd.f32 %v7384_v15, %v7383_v63  ;;  %v7618_v25 = vrot.slane %v7587_v20, 4  ;;  %v7409_v31 = vadd.f32 %v7009_v7, %v6993_v21 }
 0x7ed   : > { %v7406_v4 = vadd.f32 %v7405_v39, %v7404_v32  ;;  %v7619_v52 = vrot.slane %v7588_v13, 3  ;;  %v7430_v5 = vadd.f32 %v7010_v48, %v6994_v60  ;;  %v6349_v49 = vpop.f32.mrf.mxu2  ;;  %v6254_v22 = vpop.f32.mrf.mxu0  ;;  %v14005_v60 = vld [vmem:[#allocation39_spill] sm:$0xff] }
 0x7ee   : > { %v6398_v53 = vpop.f32.mrf.mxu3  ;;  %v7386_v2 = vrot.slane %v7385_v34, 1  ;;  %v6350_v10 = vadd.f32 %v6349_v49, %v13999_v26  ;;  %v6303_v56 = vpop.f32.mrf.mxu1  ;;  %v6255_v36 = vadd.f32 %v6254_v22, %v14003_v12 }
 0x7ef   : > { %v7407_v9 = vrot.slane %v7406_v4, 1  ;;  %v6399_v58 = vadd.f32 %v6398_v53, %v13999_v26  ;;  %v6304_v23 = vadd.f32 %v6303_v56, %v14003_v12  ;;  %v7636_v44 = vsel %vm7635_vm4, %v7618_v25, %v7619_v52 }
 0x7f0   : > { %v7387_v37 = vadd.f32 %v7386_v2, %v7385_v34  ;;  %v6658_v63 = vmax.f32 %v6350_v10, 0.0  ;;  %v6672_v33 = vmax.f32 %v6255_v36, 0.0  ;;  %6449 = vmatmul.bf16.gmra.mxu0 %v14004_v17  ;;  %v14006_v10 = vld [vmem:[#allocation27_spill] sm:$0xff] }
 0x7f1   : > { %v7408_v62 = vadd.f32 %v7407_v9, %v7406_v4  ;;  %v6659_v32 = vmax.f32 %v6399_v58, 0.0  ;;  %v6673_v6 = vmax.f32 %v6304_v23, 0.0  ;;  %6498 = vmatmul.bf16.gmra.mxu1 %v14004_v17 }
 0x7f2   : > { %v7589_v55 = vadd.f32 %v14001_v18, %v7387_v37  ;;  %v7011_v39 = vmul.f32 %v14002_v27, %v6658_v63  ;;  %6547 = vmatmul.bf16.gmra.mxu2 %v14004_v17  ;;  %v7025_v20 = vmul.f32 %v14005_v60, %v6672_v33 }
 0x7f3   : > { %v7590_v15 = vadd.f32 %v14001_v18, %v7408_v62  ;;  %v7012_v21 = vmul.f32 %v14002_v27, %v6659_v32  ;;  %v7026_v13 = vmul.f32 %v14005_v60, %v6673_v6  ;;  %6596 = vmatmul.bf16.gmra.mxu3 %v14004_v17 }
 0x7f4   : > { %v7620_v7 = vrot.slane %v7589_v55, 2  ;;  %v7451_v34 = vadd.f32 %v7011_v39, %v6995_v43  ;;  %v7410_v57 = vadd.f32 %v7409_v31, %v7025_v20  ;;  %v14007_v31 = vld [vmem:[#allocation22_spill] sm:$0xff] }
 0x7f5   : > { %v7621_v48 = vrot.slane %v7590_v15, 1  ;;  %v7472_v4 = vadd.f32 %v7012_v21, %v6996_v38  ;;  %v7431_v61 = vadd.f32 %v7430_v5, %v7026_v13  ;;  %v6352_v25 = vpop.f32.mrf.mxu2  ;;  %v6256_v53 = vpop.f32.mrf.mxu0  ;;  %v14008_v38 = vld [vmem:[#allocation20_spill] sm:$0xff] }
 0x7f6   : > { %v6353_v52 = vadd.f32 %v6352_v25, %v14003_v12  ;;  %v6401_v49 = vpop.f32.mrf.mxu3  ;;  %v6257_v58 = vadd.f32 %v6256_v53, %v14006_v10  ;;  %v6305_v22 = vpop.f32.mrf.mxu1 }
 0x7f7   : > { %v7638_v2 = vsel %vm7637_vm5, %v7620_v7, %v7621_v48  ;;  %v6402_v9 = vadd.f32 %v6401_v49, %v14003_v12  ;;  %v6306_v23 = vadd.f32 %v6305_v22, %v14006_v10  ;;  %v14009_v48 = vld [vmem:[#allocation31_spill] sm:$0xff] }
 0x7f8   : > { %v7640_v56 = vsel %vm7639_vm6, %v7636_v44, %v7638_v2  ;;  %v6674_v36 = vmax.f32 %v6353_v52, 0.0  ;;  %v6688_v62 = vmax.f32 %v6257_v58, 0.0  ;;  %v14011_v58 = vld [vmem:[#allocation18_spill] sm:$0xff] }
 0x7f9   : > { %v7642_v5 = vsel %vm7641_vm7, %v14007_v31, %v7640_v56  ;;  %v6675_v37 = vmax.f32 %v6402_v9, 0.0  ;;  %v6689_v32 = vmax.f32 %v6306_v23, 0.0  ;;  %v14010_v9 = vld [vmem:[#allocation14_spill] sm:$0xff] }
 0x7fa   : > { %7652 = vst [vmem:[%s12945_s26] sm:$0xff] %v7642_v5  ;;  %v7027_v63 = vmul.f32 %v14005_v60, %v6674_v36  ;;  %v7041_v33 = vmul.f32 %v14008_v38, %v6688_v62 }
 0x7fb   : > { %v7028_v43 = vmul.f32 %v14005_v60, %v6675_v37  ;;  %v7042_v6 = vmul.f32 %v14008_v38, %v6689_v32 }
 0x7fc   : > { %v7452_v44 = vadd.f32 %v7451_v34, %v7027_v63  ;;  %v7411_v55 = vadd.f32 %v7410_v57, %v7041_v33  ;;  %v14012_v33 = vld [vmem:[#allocation37_spill] sm:$0xff] }
 0x7fd   : > { %v7473_v17 = vadd.f32 %v7472_v4, %v7028_v43  ;;  %v6354_v15 = vpop.f32.mrf.mxu2  ;;  %v7432_v39 = vadd.f32 %v7431_v61, %v7042_v6  ;;  %v6259_v13 = vpop.f32.mrf.mxu0 }
 0x7fe   : > { %v6355_v21 = vadd.f32 %v6354_v15, %v14006_v10  ;;  %v6403_v20 = vpop.f32.mrf.mxu3  ;;  %v6260_v25 = vadd.f32 %v6259_v13, %v14009_v48  ;;  %v6308_v52 = vpop.f32.mrf.mxu1 }
 0x7ff   : > { %v6404_v7 = vadd.f32 %v6403_v20, %v14006_v10  ;;  %v6309_v53 = vadd.f32 %v6308_v52, %v14009_v48 }
 0x800   : > { %v6690_v49 = vmax.f32 %v6355_v21, 0.0  ;;  %v6704_v34 = vmax.f32 %v6260_v25, 0.0  ;;  %6454 = vmatmul.bf16.gmra.mxu0 %v14010_v9 }
 0x801   : > { %v6691_v2 = vmax.f32 %v6404_v7, 0.0  ;;  %6503 = vmatmul.bf16.gmra.mxu1 %v14010_v9  ;;  %v6705_v57 = vmax.f32 %v6309_v53, 0.0 }
 0x802   : > { %v7043_v4 = vmul.f32 %v14008_v38, %v6690_v49  ;;  %6552 = vmatmul.bf16.gmra.mxu2 %v14010_v9  ;;  %v7057_v22 = vmul.f32 %v14011_v58, %v6704_v34 }
 0x803   : > { %v7044_v61 = vmul.f32 %v14008_v38, %v6691_v2  ;;  %6601 = vmatmul.bf16.gmra.mxu3 %v14010_v9  ;;  %v7058_v36 = vmul.f32 %v14011_v58, %v6705_v57 }
 0x804   : > { %v7453_v56 = vadd.f32 %v7452_v44, %v7043_v4  ;;  %v7412_v31 = vadd.f32 %v7411_v55, %v7057_v22  ;;  %v14013_v22 = vld [vmem:[#allocation29_spill] sm:$0xff] }
 0x805   : > { %v7474_v23 = vadd.f32 %v7473_v17, %v7044_v61  ;;  %v6357_v5 = vpop.f32.mrf.mxu2  ;;  %v7433_v37 = vadd.f32 %v7432_v39, %v7058_v36  ;;  %v6261_v32 = vpop.f32.mrf.mxu0 }
 0x806   : > { %v6358_v62 = vadd.f32 %v6357_v5, %v14009_v48  ;;  %v6406_v63 = vpop.f32.mrf.mxu3  ;;  %v6262_v6 = vadd.f32 %v6261_v32, %v14012_v33  ;;  %v6310_v15 = vpop.f32.mrf.mxu1 }
 0x807   : > { %v6407_v43 = vadd.f32 %v6406_v63, %v14009_v48  ;;  %v6311_v20 = vadd.f32 %v6310_v15, %v14012_v33 }
 0x808   : > { %v6706_v21 = vmax.f32 %v6358_v62, 0.0  ;;  %v6720_v44 = vmax.f32 %v6262_v6, 0.0 }
 0x809   : > { %v6707_v13 = vmax.f32 %v6407_v43, 0.0  ;;  %v6721_v17 = vmax.f32 %v6311_v20, 0.0  ;;  %v14014_v43 = vld [vmem:[#allocation9_spill] sm:$0xff] }
 0x80a   : > { %v7059_v7 = vmul.f32 %v14011_v58, %v6706_v21  ;;  %v7073_v39 = vmul.f32 %v12536_v54, %v6720_v44 }
 0x80b   : > { %v7060_v55 = vmul.f32 %v14011_v58, %v6707_v13  ;;  %v7074_v52 = vmul.f32 %v12536_v54, %v6721_v17 }
 0x80c   : > { %v7454_v25 = vadd.f32 %v7453_v56, %v7059_v7  ;;  %v7413_v53 = vadd.f32 %v7412_v31, %v7073_v39 }
 0x80d   : > { %v7475_v49 = vadd.f32 %v7474_v23, %v7060_v55  ;;  %v6359_v2 = vpop.f32.mrf.mxu2  ;;  %v7434_v34 = vadd.f32 %v7433_v37, %v7074_v52  ;;  %v6264_v57 = vpop.f32.mrf.mxu0 }
 0x80e   : > { %v6360_v9 = vadd.f32 %v6359_v2, %v14012_v33  ;;  %v6408_v4 = vpop.f32.mrf.mxu3  ;;  %v6265_v36 = vadd.f32 %v6264_v57, %v14013_v22  ;;  %v6313_v5 = vpop.f32.mrf.mxu1  ;;  %v14015_v2 = vld [vmem:[#allocation12_spill] sm:$0xff] }
 0x80f   : > { %v6409_v61 = vadd.f32 %v6408_v4, %v14012_v33  ;;  %v6314_v63 = vadd.f32 %v6313_v5, %v14013_v22 }
 0x810   : > { %v6722_v62 = vmax.f32 %v6360_v9, 0.0  ;;  %v6736_v56 = vmax.f32 %v6265_v36, 0.0  ;;  %6459 = vmatmul.bf16.gmra.mxu0 %v14014_v43 }
 0x811   : > { %v6723_v32 = vmax.f32 %v6409_v61, 0.0  ;;  %6508 = vmatmul.bf16.gmra.mxu1 %v14014_v43  ;;  %v6737_v31 = vmax.f32 %v6314_v63, 0.0 }
 0x812   : > { %v7075_v23 = vmul.f32 %v12536_v54, %v6722_v62  ;;  %6557 = vmatmul.bf16.gmra.mxu2 %v14014_v43  ;;  %v7089_v6 = vmul.f32 %v12548_v45, %v6736_v56 }
 0x813   : > { %v7076_v37 = vmul.f32 %v12536_v54, %v6723_v32  ;;  %6606 = vmatmul.bf16.gmra.mxu3 %v14014_v43  ;;  %v7090_v21 = vmul.f32 %v12548_v45, %v6737_v31 }
 0x814   : > { %v7455_v15 = vadd.f32 %v7454_v25, %v7075_v23  ;;  %v7414_v13 = vadd.f32 %v7413_v53, %v7089_v6 }
 0x815   : > { %v7476_v20 = vadd.f32 %v7475_v49, %v7076_v37  ;;  %v6362_v44 = vpop.f32.mrf.mxu2  ;;  %v7435_v7 = vadd.f32 %v7434_v34, %v7090_v21  ;;  %v6266_v39 = vpop.f32.mrf.mxu0 }
 0x816   : > { %v6363_v17 = vadd.f32 %v6362_v44, %v14013_v22  ;;  %v6411_v55 = vpop.f32.mrf.mxu3  ;;  %v6267_v9 = vadd.f32 %v6266_v39, %v14015_v2  ;;  %v6315_v4 = vpop.f32.mrf.mxu1 }
 0x817   : > { %v6412_v52 = vadd.f32 %v6411_v55, %v14013_v22  ;;  %v6316_v61 = vadd.f32 %v6315_v4, %v14015_v2 }
 0x818   : > { %v6738_v57 = vmax.f32 %v6363_v17, 0.0  ;;  %v6752_v25 = vmax.f32 %v6267_v9, 0.0  ;;  %v14016_v9 = vld [vmem:[#allocation32_spill] sm:$0xff] }
 0x819   : > { %v6739_v36 = vmax.f32 %v6412_v52, 0.0  ;;  %v6753_v49 = vmax.f32 %v6316_v61, 0.0 }
 0x81a   : > { %v7091_v5 = vmul.f32 %v12548_v45, %v6738_v57  ;;  %v7105_v34 = vmul.f32 %v12560_v11, %v6752_v25 }
 0x81b   : > { %v7092_v53 = vmul.f32 %v12548_v45, %v6739_v36  ;;  %v7106_v63 = vmul.f32 %v12560_v11, %v6753_v49 }
 0x81c   : > { %v7456_v62 = vadd.f32 %v7455_v15, %v7091_v5  ;;  %v7415_v56 = vadd.f32 %v7414_v13, %v7105_v34 }
 0x81d   : > { %v7477_v32 = vadd.f32 %v7476_v20, %v7092_v53  ;;  %v6364_v43 = vpop.f32.mrf.mxu2  ;;  %v7436_v23 = vadd.f32 %v7435_v7, %v7106_v63  ;;  %v6269_v6 = vpop.f32.mrf.mxu0 }
 0x81e   : > { %v6365_v31 = vadd.f32 %v6364_v43, %v14015_v2  ;;  %v6413_v37 = vpop.f32.mrf.mxu3  ;;  %v6270_v44 = vadd.f32 %v6269_v6, %v13982_v24  ;;  %v6318_v17 = vpop.f32.mrf.mxu1 }
 0x81f   : > { %v6414_v21 = vadd.f32 %v6413_v37, %v14015_v2  ;;  %v6319_v39 = vadd.f32 %v6318_v17, %v13982_v24 }
 0x820   : > { %v6754_v55 = vmax.f32 %v6365_v31, 0.0  ;;  %v6768_v15 = vmax.f32 %v6270_v44, 0.0  ;;  %6464 = vmatmul.bf16.gmra.mxu0 %v14016_v9 }
 0x821   : > { %v6755_v52 = vmax.f32 %v6414_v21, 0.0  ;;  %6513 = vmatmul.bf16.gmra.mxu1 %v14016_v9  ;;  %v6769_v13 = vmax.f32 %v6319_v39, 0.0 }
 0x822   : > { %v7107_v20 = vmul.f32 %v12560_v11, %v6754_v55  ;;  %6562 = vmatmul.bf16.gmra.mxu2 %v14016_v9  ;;  %v7121_v4 = vmul.f32 %v12572_v50, %v6768_v15 }
 0x823   : > { %v7108_v7 = vmul.f32 %v12560_v11, %v6755_v52  ;;  %6611 = vmatmul.bf16.gmra.mxu3 %v14016_v9  ;;  %v7122_v61 = vmul.f32 %v12572_v50, %v6769_v13 }
 0x824   : > { %v7457_v57 = vadd.f32 %v7456_v62, %v7107_v20  ;;  %v7416_v25 = vadd.f32 %v7415_v56, %v7121_v4 }
 0x825   : > { %v7478_v36 = vadd.f32 %v7477_v32, %v7108_v7  ;;  %v6367_v5 = vpop.f32.mrf.mxu2  ;;  %v7437_v49 = vadd.f32 %v7436_v23, %v7122_v61  ;;  %v6271_v63 = vpop.f32.mrf.mxu0 }
 0x826   : > { %v6368_v53 = vadd.f32 %v6367_v5, %v13982_v24  ;;  %v6416_v34 = vpop.f32.mrf.mxu3  ;;  %v6272_v31 = vadd.f32 %v6271_v63, %v13984_v59  ;;  %v6320_v37 = vpop.f32.mrf.mxu1 }
 0x827   : > { %v6417_v43 = vadd.f32 %v6416_v34, %v13982_v24  ;;  %v6321_v21 = vadd.f32 %v6320_v37, %v13984_v59 }
 0x828   : > { %v6770_v6 = vmax.f32 %v6368_v53, 0.0  ;;  %v6784_v62 = vmax.f32 %v6272_v31, 0.0  ;;  %v14017_v31 = vld [vmem:[#allocation21_spill] sm:$0xff] }
 0x829   : > { %v6771_v44 = vmax.f32 %v6417_v43, 0.0  ;;  %v6785_v32 = vmax.f32 %v6321_v21, 0.0 }
 0x82a   : > { %v7123_v17 = vmul.f32 %v12572_v50, %v6770_v6  ;;  %v7137_v23 = vmul.f32 %v12584_v1, %v6784_v62 }
 0x82b   : > { %v7124_v56 = vmul.f32 %v12572_v50, %v6771_v44  ;;  %v7138_v39 = vmul.f32 %v12584_v1, %v6785_v32 }
 0x82c   : > { %v7458_v55 = vadd.f32 %v7457_v57, %v7123_v17  ;;  %v7417_v15 = vadd.f32 %v7416_v25, %v7137_v23 }
 0x82d   : > { %v7479_v52 = vadd.f32 %v7478_v36, %v7124_v56  ;;  %v6369_v9 = vpop.f32.mrf.mxu2  ;;  %v7438_v20 = vadd.f32 %v7437_v49, %v7138_v39  ;;  %v6274_v4 = vpop.f32.mrf.mxu0 }
 0x82e   : > { %v6370_v13 = vadd.f32 %v6369_v9, %v13984_v59  ;;  %v6418_v7 = vpop.f32.mrf.mxu3  ;;  %v6275_v5 = vadd.f32 %v6274_v4, %v13985_v29  ;;  %v6323_v53 = vpop.f32.mrf.mxu1 }
 0x82f   : > { %v6419_v61 = vadd.f32 %v6418_v7, %v13984_v59  ;;  %v6324_v63 = vadd.f32 %v6323_v53, %v13985_v29 }
 0x830   : > { %v6786_v34 = vmax.f32 %v6370_v13, 0.0  ;;  %v6800_v57 = vmax.f32 %v6275_v5, 0.0  ;;  %6469 = vmatmul.bf16.gmra.mxu0 %v14017_v31 }
 0x831   : > { %v6787_v43 = vmax.f32 %v6419_v61, 0.0  ;;  %6518 = vmatmul.bf16.gmra.mxu1 %v14017_v31  ;;  %v6801_v25 = vmax.f32 %v6324_v63, 0.0 }
 0x832   : > { %v7139_v36 = vmul.f32 %v12584_v1, %v6786_v34  ;;  %6567 = vmatmul.bf16.gmra.mxu2 %v14017_v31  ;;  %v7153_v37 = vmul.f32 %v12596_v41, %v6800_v57 }
 0x833   : > { %v7140_v49 = vmul.f32 %v12584_v1, %v6787_v43  ;;  %6616 = vmatmul.bf16.gmra.mxu3 %v14017_v31  ;;  %v7154_v21 = vmul.f32 %v12596_v41, %v6801_v25 }
 0x834   : > { %v7459_v6 = vadd.f32 %v7458_v55, %v7139_v36  ;;  %v7418_v62 = vadd.f32 %v7417_v15, %v7153_v37 }
 0x835   : > { %v7480_v44 = vadd.f32 %v7479_v52, %v7140_v49  ;;  %v6372_v17 = vpop.f32.mrf.mxu2  ;;  %v7439_v32 = vadd.f32 %v7438_v20, %v7154_v21  ;;  %v6276_v39 = vpop.f32.mrf.mxu0 }
 0x836   : > { %v6373_v56 = vadd.f32 %v6372_v17, %v13985_v29  ;;  %v6421_v23 = vpop.f32.mrf.mxu3  ;;  %v6277_v13 = vadd.f32 %v6276_v39, %v13987_v14  ;;  %v6325_v7 = vpop.f32.mrf.mxu1 }
 0x837   : > { %v6422_v9 = vadd.f32 %v6421_v23, %v13985_v29  ;;  %v6326_v61 = vadd.f32 %v6325_v7, %v13987_v14 }
 0x838   : > { %v6802_v4 = vmax.f32 %v6373_v56, 0.0  ;;  %v6816_v55 = vmax.f32 %v6277_v13, 0.0 }
 0x839   : > { %v6803_v5 = vmax.f32 %v6422_v9, 0.0  ;;  %v6817_v52 = vmax.f32 %v6326_v61, 0.0 }
 0x83a   : > { %v7155_v53 = vmul.f32 %v12596_v41, %v6802_v4  ;;  %v7169_v20 = vmul.f32 %v12608_v46, %v6816_v55 }
 0x83b   : > { %v7156_v15 = vmul.f32 %v12596_v41, %v6803_v5  ;;  %v7170_v63 = vmul.f32 %v12608_v46, %v6817_v52 }
 0x83c   : > { %v7460_v34 = vadd.f32 %v7459_v6, %v7155_v53  ;;  %v7419_v57 = vadd.f32 %v7418_v62, %v7169_v20 }
 0x83d   : > { %v7481_v43 = vadd.f32 %v7480_v44, %v7156_v15  ;;  %v6374_v31 = vpop.f32.mrf.mxu2  ;;  %v7440_v36 = vadd.f32 %v7439_v32, %v7170_v63  ;;  %v6279_v37 = vpop.f32.mrf.mxu0 }
 0x83e   : > { %v6375_v25 = vadd.f32 %v6374_v31, %v13987_v14  ;;  %v6423_v49 = vpop.f32.mrf.mxu3  ;;  %v6280_v17 = vadd.f32 %v6279_v37, %v13988_v19  ;;  %v6328_v56 = vpop.f32.mrf.mxu1 }
 0x83f   : > { %v6424_v21 = vadd.f32 %v6423_v49, %v13987_v14  ;;  %v6329_v39 = vadd.f32 %v6328_v56, %v13988_v19 }
 0x840   : > { %v6818_v23 = vmax.f32 %v6375_v25, 0.0  ;;  %v6832_v6 = vmax.f32 %v6280_v17, 0.0  ;;  %6474 = vmatmul.bf16.gmra.mxu0 %v12825_v42 }
 0x841   : > { %v6819_v9 = vmax.f32 %v6424_v21, 0.0  ;;  %6523 = vmatmul.bf16.gmra.mxu1 %v12825_v42  ;;  %v6833_v62 = vmax.f32 %v6329_v39, 0.0 }
 0x842   : > { %v7171_v44 = vmul.f32 %v12608_v46, %v6818_v23  ;;  %6572 = vmatmul.bf16.gmra.mxu2 %v12825_v42  ;;  %v7185_v13 = vmul.f32 %v12620_v40, %v6832_v6 }
 0x843   : > { %v7172_v32 = vmul.f32 %v12608_v46, %v6819_v9  ;;  %6621 = vmatmul.bf16.gmra.mxu3 %v12825_v42  ;;  %v7186_v4 = vmul.f32 %v12620_v40, %v6833_v62 }
 0x844   : > { %v7461_v7 = vadd.f32 %v7460_v34, %v7171_v44  ;;  %v7420_v5 = vadd.f32 %v7419_v57, %v7185_v13 }
 0x845   : > { %v7482_v61 = vadd.f32 %v7481_v43, %v7172_v32  ;;  %v6377_v55 = vpop.f32.mrf.mxu2  ;;  %v7441_v53 = vadd.f32 %v7440_v36, %v7186_v4  ;;  %v6281_v20 = vpop.f32.mrf.mxu0 }
 0x846   : > { %v6378_v52 = vadd.f32 %v6377_v55, %v13988_v19  ;;  %v6426_v15 = vpop.f32.mrf.mxu3  ;;  %v6282_v31 = vadd.f32 %v6281_v20, %v13990_v35  ;;  %v6330_v25 = vpop.f32.mrf.mxu1 }
 0x847   : > { %v6427_v63 = vadd.f32 %v6426_v15, %v13988_v19  ;;  %v6331_v37 = vadd.f32 %v6330_v25, %v13990_v35 }
 0x848   : > { %v6834_v49 = vmax.f32 %v6378_v52, 0.0  ;;  %v6848_v34 = vmax.f32 %v6282_v31, 0.0 }
 0x849   : > { %v6835_v42 = vmax.f32 %v6427_v63, 0.0  ;;  %v6849_v43 = vmax.f32 %v6331_v37, 0.0 }
 0x84a   : > { %v7187_v21 = vmul.f32 %v12620_v40, %v6834_v49  ;;  %v7201_v36 = vmul.f32 %v12632_v0, %v6848_v34 }
 0x84b   : > { %v7188_v57 = vmul.f32 %v12620_v40, %v6835_v42  ;;  %v7202_v56 = vmul.f32 %v12632_v0, %v6849_v43 }
 0x84c   : > { %v7462_v17 = vadd.f32 %v7461_v7, %v7187_v21  ;;  %v7421_v39 = vadd.f32 %v7420_v5, %v7201_v36 }
 0x84d   : > { %v7483_v23 = vadd.f32 %v7482_v61, %v7188_v57  ;;  %v6379_v9 = vpop.f32.mrf.mxu2  ;;  %v7442_v6 = vadd.f32 %v7441_v53, %v7202_v56  ;;  %v6284_v32 = vpop.f32.mrf.mxu0 }
 0x84e   : > { %v6380_v44 = vadd.f32 %v6379_v9, %v13990_v35  ;;  %v6428_v62 = vpop.f32.mrf.mxu3  ;;  %v6285_v4 = vadd.f32 %v6284_v32, %v12430_v3  ;;  %v6333_v55 = vpop.f32.mrf.mxu1 }
 0x84f   : > { %v6429_v13 = vadd.f32 %v6428_v62, %v13990_v35  ;;  %v6334_v15 = vadd.f32 %v6333_v55, %v12430_v3 }
 0x850   : > { %v6850_v52 = vmax.f32 %v6380_v44, 0.0  ;;  %v6864_v7 = vmax.f32 %v6285_v4, 0.0  ;;  %6479 = vmatmul.bf16.gmra.mxu0 %v12871_v47 }
 0x851   : > { %v6851_v20 = vmax.f32 %v6429_v13, 0.0  ;;  %6528 = vmatmul.bf16.gmra.mxu1 %v12871_v47  ;;  %v6865_v5 = vmax.f32 %v6334_v15, 0.0 }
 0x852   : > { %v7203_v61 = vmul.f32 %v12632_v0, %v6850_v52  ;;  %6577 = vmatmul.bf16.gmra.mxu2 %v12871_v47  ;;  %v7217_v63 = vmul.f32 %v12644_v30, %v6864_v7 }
 0x853   : > { %v7204_v53 = vmul.f32 %v12632_v0, %v6851_v20  ;;  %6626 = vmatmul.bf16.gmra.mxu3 %v12871_v47  ;;  %v7218_v25 = vmul.f32 %v12644_v30, %v6865_v5 }
 0x854   : > { %v7463_v31 = vadd.f32 %v7462_v17, %v7203_v61  ;;  %v7422_v37 = vadd.f32 %v7421_v39, %v7217_v63 }
 0x855   : > { %v7484_v49 = vadd.f32 %v7483_v23, %v7204_v53  ;;  %v6382_v42 = vpop.f32.mrf.mxu2  ;;  %v7443_v34 = vadd.f32 %v7442_v6, %v7218_v25  ;;  %v6286_v57 = vpop.f32.mrf.mxu0 }
 0x856   : > { %v6383_v21 = vadd.f32 %v6382_v42, %v12430_v3  ;;  %v6431_v43 = vpop.f32.mrf.mxu3  ;;  %v6287_v56 = vadd.f32 %v6286_v57, %v12449_v51  ;;  %v6335_v9 = vpop.f32.mrf.mxu1 }
 0x857   : > { %v6432_v36 = vadd.f32 %v6431_v43, %v12430_v3  ;;  %v6336_v62 = vadd.f32 %v6335_v9, %v12449_v51 }
 0x858   : > { %v6866_v44 = vmax.f32 %v6383_v21, 0.0  ;;  %v6880_v17 = vmax.f32 %v6287_v56, 0.0 }
 0x859   : > { %v6867_v47 = vmax.f32 %v6432_v36, 0.0  ;;  %v6881_v23 = vmax.f32 %v6336_v62, 0.0 }
 0x85a   : > { %v7219_v32 = vmul.f32 %v12644_v30, %v6866_v44  ;;  %v7233_v6 = vmul.f32 %v12656_v16, %v6880_v17 }
 0x85b   : > { %v7220_v39 = vmul.f32 %v12644_v30, %v6867_v47  ;;  %v7234_v4 = vmul.f32 %v12656_v16, %v6881_v23 }
 0x85c   : > { %v7464_v13 = vadd.f32 %v7463_v31, %v7219_v32  ;;  %v7423_v52 = vadd.f32 %v7422_v37, %v7233_v6 }
 0x85d   : > { %v7485_v55 = vadd.f32 %v7484_v49, %v7220_v39  ;;  %v6384_v15 = vpop.f32.mrf.mxu2  ;;  %v7444_v20 = vadd.f32 %v7443_v34, %v7234_v4  ;;  %v6445_v5 = vpop.f32.mrf.mxu0 }
 0x85e   : > { %v6385_v7 = vadd.f32 %v6384_v15, %v12449_v51  ;;  %v6433_v61 = vpop.f32.mrf.mxu3  ;;  %v7424_v53 = vrot.slane %v7423_v52, 4  ;;  %v6494_v25 = vpop.f32.mrf.mxu1  ;;  %v6446_v37 = vadd.f32 %v6445_v5, %v12315_v28 }
 0x85f   : > { %v6434_v63 = vadd.f32 %v6433_v61, %v12449_v51  ;;  %v7445_v42 = vrot.slane %v7444_v20, 4  ;;  %v6495_v44 = vadd.f32 %v6494_v25, %v12315_v28 }
 0x860   : > { %v6882_v21 = vmax.f32 %v6385_v7, 0.0  ;;  %v7425_v43 = vadd.f32 %v7424_v53, %v7423_v52  ;;  %v6644_v15 = vmax.f32 %v6446_v37, 0.0 }
 0x861   : > { %v6883_v57 = vmax.f32 %v6434_v63, 0.0  ;;  %v7446_v36 = vadd.f32 %v7445_v42, %v7444_v20  ;;  %v6645_v5 = vmax.f32 %v6495_v44, 0.0 }
 0x862   : > { %v7235_v31 = vmul.f32 %v12656_v16, %v6882_v21  ;;  %v7426_v56 = vrot.slane %v7425_v43, 2 }
 0x863   : > { %v7236_v49 = vmul.f32 %v12656_v16, %v6883_v57  ;;  %v7447_v34 = vrot.slane %v7446_v36, 2 }
 0x864   : > { %v7465_v9 = vadd.f32 %v7464_v13, %v7235_v31  ;;  %v7427_v62 = vadd.f32 %v7426_v56, %v7425_v43  ;;  %v6997_v31 = vmul.f32 %v14000_v8, %v6644_v15 }
 0x865   : > { %v7486_v47 = vadd.f32 %v7485_v55, %v7236_v49  ;;  %v6543_v17 = vpop.f32.mrf.mxu2  ;;  %v7448_v32 = vadd.f32 %v7447_v34, %v7446_v36  ;;  %v6447_v6 = vpop.f32.mrf.mxu0 }
 0x866   : > { %v7466_v23 = vrot.slane %v7465_v9, 4  ;;  %v6592_v39 = vpop.f32.mrf.mxu3  ;;  %v7428_v4 = vrot.slane %v7427_v62, 1  ;;  %v6448_v20 = vadd.f32 %v6447_v6, %v13999_v26  ;;  %v6496_v7 = vpop.f32.mrf.mxu1  ;;  %v6544_v55 = vadd.f32 %v6543_v17, %v12315_v28 }
 0x867   : > { %v7487_v52 = vrot.slane %v7486_v47, 4  ;;  %v7449_v61 = vrot.slane %v7448_v32, 1  ;;  %v6497_v13 = vadd.f32 %v6496_v7, %v13999_v26  ;;  %v6593_v56 = vadd.f32 %v6592_v39, %v12315_v28 }
 0x868   : > { %v7467_v53 = vadd.f32 %v7466_v23, %v7465_v9  ;;  %v7429_v63 = vadd.f32 %v7428_v4, %v7427_v62  ;;  %v6660_v42 = vmax.f32 %v6448_v20, 0.0  ;;  %v6998_v9 = vmul.f32 %v14000_v8, %v6645_v5 }
 0x869   : > { %v7488_v25 = vadd.f32 %v7487_v52, %v7486_v47  ;;  %v7450_v21 = vadd.f32 %v7449_v61, %v7448_v32  ;;  %v6661_v57 = vmax.f32 %v6497_v13, 0.0  ;;  %v6646_v17 = vmax.f32 %v6544_v55, 0.0 }
 0x86a   : > { %v7468_v43 = vrot.slane %v7467_v53, 2  ;;  %v7013_v49 = vmul.f32 %v14002_v27, %v6660_v42  ;;  %v7591_v62 = vadd.f32 %v14001_v18, %v7429_v63  ;;  %v6647_v7 = vmax.f32 %v6593_v56, 0.0 }
 0x86b   : > { %v7489_v36 = vrot.slane %v7488_v25, 2  ;;  %v7592_v37 = vadd.f32 %v14001_v18, %v7450_v21  ;;  %v7014_v44 = vmul.f32 %v14002_v27, %v6661_v57 }
 0x86c   : > { %v7469_v34 = vadd.f32 %v7468_v43, %v7467_v53  ;;  %v7493_v32 = vadd.f32 %v7013_v49, %v6997_v31  ;;  %v7000_v49 = vmul.f32 %v14000_v8, %v6647_v7 }
 0x86d   : > { %v7490_v47 = vadd.f32 %v7489_v36, %v7488_v25  ;;  %v6545_v23 = vpop.f32.mrf.mxu2  ;;  %v7622_v6 = vrot.slane %v7592_v37, 7  ;;  %v7514_v52 = vadd.f32 %v7014_v44, %v6998_v9  ;;  %v6450_v15 = vpop.f32.mrf.mxu0  ;;  %v6999_v36 = vmul.f32 %v14000_v8, %v6646_v17 }
 0x86e   : > { %v7470_v4 = vrot.slane %v7469_v34, 1  ;;  %v6546_v28 = vadd.f32 %v6545_v23, %v13999_v26  ;;  %v6594_v39 = vpop.f32.mrf.mxu3  ;;  %v6451_v53 = vadd.f32 %v6450_v15, %v14003_v12  ;;  %v6499_v5 = vpop.f32.mrf.mxu1 }
 0x86f   : > { %v7491_v20 = vrot.slane %v7490_v47, 1  ;;  %v6595_v61 = vadd.f32 %v6594_v39, %v13999_v26  ;;  %v6500_v25 = vadd.f32 %v6499_v5, %v14003_v12  ;;  %v7643_v55 = vsel %vm7629_vm1, %v7591_v62, %v7622_v6 }
 0x870   : > { %v7471_v13 = vadd.f32 %v7470_v4, %v7469_v34  ;;  %v6662_v63 = vmax.f32 %v6546_v28, 0.0  ;;  %v6676_v43 = vmax.f32 %v6451_v53, 0.0 }
 0x871   : > { %v7492_v42 = vadd.f32 %v7491_v20, %v7490_v47  ;;  %v6663_v21 = vmax.f32 %v6595_v61, 0.0  ;;  %v6677_v56 = vmax.f32 %v6500_v25, 0.0 }
 0x872   : > { %v7593_v57 = vadd.f32 %v14001_v18, %v7471_v13  ;;  %v7015_v31 = vmul.f32 %v14002_v27, %v6662_v63  ;;  %v7029_v34 = vmul.f32 %v14005_v60, %v6676_v43 }
 0x873   : > { %v7594_v26 = vadd.f32 %v14001_v18, %v7492_v42  ;;  %v7016_v37 = vmul.f32 %v14002_v27, %v6663_v21  ;;  %v7030_v62 = vmul.f32 %v14005_v60, %v6677_v56 }
 0x874   : > { %v7623_v9 = vrot.slane %v7593_v57, 6  ;;  %v7535_v44 = vadd.f32 %v7015_v31, %v6999_v36  ;;  %v7494_v6 = vadd.f32 %v7493_v32, %v7029_v34 }
 0x875   : > { %v7624_v47 = vrot.slane %v7594_v26, 5  ;;  %v7556_v23 = vadd.f32 %v7016_v37, %v7000_v49  ;;  %v6548_v4 = vpop.f32.mrf.mxu2  ;;  %v7515_v17 = vadd.f32 %v7514_v52, %v7030_v62  ;;  %v6452_v15 = vpop.f32.mrf.mxu0 }
 0x876   : > { %v6549_v28 = vadd.f32 %v6548_v4, %v14003_v12  ;;  %v6597_v39 = vpop.f32.mrf.mxu3  ;;  %v6453_v8 = vadd.f32 %v6452_v15, %v14006_v10  ;;  %v6501_v27 = vpop.f32.mrf.mxu1 }
 0x877   : > { %v6598_v20 = vadd.f32 %v6597_v39, %v14003_v12  ;;  %v7644_v7 = vsel %vm7631_vm2, %v7623_v9, %v7624_v47  ;;  %v6502_v53 = vadd.f32 %v6501_v27, %v14006_v10 }
 0x878   : > { %v6678_v61 = vmax.f32 %v6549_v28, 0.0  ;;  %v13107_v5 = vsel %vm7633_vm3, %v7643_v55, %v7644_v7  ;;  %v6692_v13 = vmax.f32 %v6453_v8, 0.0 }
 0x879   : > { %14018 = vst [vmem:[#allocation23_spill] sm:$0xff] %v13107_v5  ;;  %v6679_v32 = vmax.f32 %v6598_v20, 0.0  ;;  %v6693_v63 = vmax.f32 %v6502_v53, 0.0 }
 0x87a   : > { %v7031_v52 = vmul.f32 %v14005_v60, %v6678_v61  ;;  %v7045_v12 = vmul.f32 %v14008_v38, %v6692_v13 }
 0x87b   : > { %v7032_v25 = vmul.f32 %v14005_v60, %v6679_v32  ;;  %v7046_v21 = vmul.f32 %v14008_v38, %v6693_v63 }
 0x87c   : > { %v7536_v42 = vadd.f32 %v7535_v44, %v7031_v52  ;;  %v7495_v57 = vadd.f32 %v7494_v6, %v7045_v12 }
 0x87d   : > { %v7557_v43 = vadd.f32 %v7556_v23, %v7032_v25  ;;  %v6550_v36 = vpop.f32.mrf.mxu2  ;;  %v7516_v31 = vadd.f32 %v7515_v17, %v7046_v21  ;;  %v6455_v26 = vpop.f32.mrf.mxu0 }
 0x87e   : > { %v6551_v56 = vadd.f32 %v6550_v36, %v14006_v10  ;;  %v6599_v55 = vpop.f32.mrf.mxu3  ;;  %v6456_v37 = vadd.f32 %v6455_v26, %v14009_v48  ;;  %v6504_v34 = vpop.f32.mrf.mxu1 }
 0x87f   : > { %v6600_v49 = vadd.f32 %v6599_v55, %v14006_v10  ;;  %v6505_v60 = vadd.f32 %v6504_v34, %v14009_v48 }
 0x880   : > { %v6694_v9 = vmax.f32 %v6551_v56, 0.0  ;;  %v6708_v44 = vmax.f32 %v6456_v37, 0.0 }
 0x881   : > { %v6695_v62 = vmax.f32 %v6600_v49, 0.0  ;;  %v6709_v23 = vmax.f32 %v6505_v60, 0.0 }
 0x882   : > { %v7047_v47 = vmul.f32 %v14008_v38, %v6694_v9  ;;  %v7061_v4 = vmul.f32 %v14011_v58, %v6708_v44 }
 0x883   : > { %v7048_v6 = vmul.f32 %v14008_v38, %v6695_v62  ;;  %v7062_v28 = vmul.f32 %v14011_v58, %v6709_v23 }
 0x884   : > { %v7537_v17 = vadd.f32 %v7536_v42, %v7047_v47  ;;  %v7496_v10 = vadd.f32 %v7495_v57, %v7061_v4 }
 0x885   : > { %v7558_v39 = vadd.f32 %v7557_v43, %v7048_v6  ;;  %v6553_v15 = vpop.f32.mrf.mxu2  ;;  %v13121_v20 = vadd.f32 %v7516_v31, %v7062_v28  ;;  %v6457_v7 = vpop.f32.mrf.mxu0 }
 0x886   : > { %v6554_v8 = vadd.f32 %v6553_v15, %v14009_v48  ;;  %v6602_v27 = vpop.f32.mrf.mxu3  ;;  %v6506_v53 = vpop.f32.mrf.mxu1  ;;  %v6458_v23 = vadd.f32 %v6457_v7, %v14012_v33 }
 0x887   : > { %v6603_v61 = vadd.f32 %v6602_v27, %v14009_v48  ;;  %v6507_v6 = vadd.f32 %v6506_v53, %v14012_v33 }
 0x888   : > { %v6710_v32 = vmax.f32 %v6554_v8, 0.0  ;;  %v6724_v28 = vmax.f32 %v6458_v23, 0.0 }
 0x889   : > { %v6711_v13 = vmax.f32 %v6603_v61, 0.0  ;;  %v6725_v15 = vmax.f32 %v6507_v6, 0.0 }
 0x88a   : > { %v7063_v38 = vmul.f32 %v14011_v58, %v6710_v32 }
 0x88b   : > { %v7064_v52 = vmul.f32 %v14011_v58, %v6711_v13 }
 0x88c   : > { %v7538_v63 = vadd.f32 %v7537_v17, %v7063_v38 }
 0x88d   : > { %v13127_v25 = vadd.f32 %v7558_v39, %v7064_v52  ;;  %v6555_v12 = vpop.f32.mrf.mxu2  ;;  %v6460_v21 = vpop.f32.mrf.mxu0 }
 0x88e   : > { %v6604_v42 = vpop.f32.mrf.mxu3  ;;  %v6509_v43 = vpop.f32.mrf.mxu1  ;;  %v6556_v4 = vadd.f32 %v6555_v12, %v14012_v33  ;;  %v6461_v39 = vadd.f32 %v6460_v21, %v14013_v22  ;;  %v7077_v12 = vmul.f32 %v12536_v54, %v6724_v28 }
 0x88f   : > { %v6605_v17 = vadd.f32 %v6604_v42, %v14012_v33  ;;  %v6510_v8 = vadd.f32 %v6509_v43, %v14013_v22  ;;  %v7078_v43 = vmul.f32 %v12536_v54, %v6725_v15 }
 0x890   : > { %v6726_v61 = vmax.f32 %v6556_v4, 0.0  ;;  %v6740_v42 = vmax.f32 %v6461_v39, 0.0 }
 0x891   : > { %v6727_v53 = vmax.f32 %v6605_v17, 0.0  ;;  %v6741_v23 = vmax.f32 %v6510_v8, 0.0 }
 0x892   : > { %v7093_v5 = vmul.f32 %v12548_v45, %v6740_v42 }
 0x893   : > { %v7080_v17 = vmul.f32 %v12536_v54, %v6727_v53  ;;  %v7094_v39 = vmul.f32 %v12548_v45, %v6741_v23 }
 0x895   : > { %v6558_v57 = vpop.f32.mrf.mxu2  ;;  %v6462_v31 = vpop.f32.mrf.mxu0 }
 0x896   : > { %v6607_v36 = vpop.f32.mrf.mxu3  ;;  %v6511_v56 = vpop.f32.mrf.mxu1  ;;  %v6559_v32 = vadd.f32 %v6558_v57, %v14013_v22  ;;  %v6463_v33 = vadd.f32 %v6462_v31, %v14015_v2  ;;  %v7079_v57 = vmul.f32 %v12536_v54, %v6726_v61  ;;  %v7497_v31 = vadd.f32 %v7496_v10, %v7077_v12 }
 0x897   : > { %v6608_v38 = vadd.f32 %v6607_v36, %v14013_v22  ;;  %v6512_v21 = vadd.f32 %v6511_v56, %v14015_v2  ;;  %v7518_v56 = vadd.f32 %v13121_v20, %v7078_v43 }
 0x898   : > { %v6742_v6 = vmax.f32 %v6559_v32, 0.0  ;;  %v6756_v36 = vmax.f32 %v6463_v33, 0.0  ;;  %v7498_v33 = vadd.f32 %v7497_v31, %v7093_v5 }
 0x899   : > { %v6743_v22 = vmax.f32 %v6608_v38, 0.0  ;;  %v6757_v18 = vmax.f32 %v6512_v21, 0.0  ;;  %v7519_v21 = vadd.f32 %v7518_v56, %v7094_v39 }
 0x89a   : > { %v7095_v54 = vmul.f32 %v12548_v45, %v6742_v6 }
 0x89b   : > { %v7096_v20 = vmul.f32 %v12548_v45, %v6743_v22 }
 0x89d   : > { %v6560_v55 = vpop.f32.mrf.mxu2  ;;  %v6465_v26 = vpop.f32.mrf.mxu0 }
 0x89e   : > { %v6609_v48 = vpop.f32.mrf.mxu3  ;;  %v6514_v49 = vpop.f32.mrf.mxu1  ;;  %v6561_v4 = vadd.f32 %v6560_v55, %v14015_v2  ;;  %v6466_v15 = vadd.f32 %v6465_v26, %v13982_v24  ;;  %v7539_v55 = vadd.f32 %v7538_v63, %v7079_v57  ;;  %v7110_v63 = vmul.f32 %v12560_v11, %v6757_v18 }
 0x89f   : > { %v6610_v28 = vadd.f32 %v6609_v48, %v14015_v2  ;;  %v6515_v8 = vadd.f32 %v6514_v49, %v13982_v24  ;;  %v7560_v2 = vadd.f32 %v13127_v25, %v7080_v17  ;;  %v7109_v48 = vmul.f32 %v12560_v11, %v6756_v36 }
 0x8a0   : > { %v6758_v32 = vmax.f32 %v6561_v4, 0.0  ;;  %v7540_v57 = vadd.f32 %v7539_v55, %v7095_v54  ;;  %v7520_v4 = vadd.f32 %v7519_v21, %v7110_v63 }
 0x8a1   : > { %v6759_v12 = vmax.f32 %v6610_v28, 0.0  ;;  %v6773_v43 = vmax.f32 %v6515_v8, 0.0 }
 0x8a2   : > { %v7111_v25 = vmul.f32 %v12560_v11, %v6758_v32 }
 0x8a3   : > { %v7126_v36 = vmul.f32 %v12572_v50, %v6773_v43 }
 0x8a4   : > { %v7541_v56 = vadd.f32 %v7540_v57, %v7111_v25 }
 0x8a5   : > { %v6563_v37 = vpop.f32.mrf.mxu2  ;;  %v6467_v9 = vpop.f32.mrf.mxu0 }
 0x8a6   : > { %v6612_v34 = vpop.f32.mrf.mxu3  ;;  %v6516_v60 = vpop.f32.mrf.mxu1  ;;  %v6564_v10 = vadd.f32 %v6563_v37, %v13982_v24  ;;  %v6468_v42 = vadd.f32 %v6467_v9, %v13984_v59  ;;  %v6772_v37 = vmax.f32 %v6466_v15, 0.0  ;;  %v7112_v9 = vmul.f32 %v12560_v11, %v6759_v12 }
 0x8a7   : > { %v6613_v26 = vadd.f32 %v6612_v34, %v13982_v24  ;;  %v6517_v23 = vadd.f32 %v6516_v60, %v13984_v59  ;;  %v7561_v24 = vadd.f32 %v7560_v2, %v7096_v20  ;;  %v7499_v34 = vadd.f32 %v7498_v33, %v7109_v48 }
 0x8a8   : > { %v6774_v45 = vmax.f32 %v6564_v10, 0.0  ;;  %v6788_v17 = vmax.f32 %v6468_v42, 0.0  ;;  %v7125_v22 = vmul.f32 %v12572_v50, %v6772_v37  ;;  %v7521_v48 = vadd.f32 %v7520_v4, %v7126_v36 }
 0x8a9   : > { %v6775_v5 = vmax.f32 %v6613_v26, 0.0  ;;  %v6789_v31 = vmax.f32 %v6517_v23, 0.0  ;;  %v7562_v32 = vadd.f32 %v7561_v24, %v7112_v9 }
 0x8aa   : > { %v7127_v39 = vmul.f32 %v12572_v50, %v6774_v45  ;;  %v7141_v10 = vmul.f32 %v12584_v1, %v6788_v17 }
 0x8ab   : > { %v7142_v26 = vmul.f32 %v12584_v1, %v6789_v31 }
 0x8ac   : > { %v7542_v33 = vadd.f32 %v7541_v56, %v7127_v39 }
 0x8ad   : > { %v13129_v58 = vpop.f32.mrf.mxu2  ;;  %v13133_v44 = vpop.f32.mrf.mxu0  ;;  %v7522_v57 = vadd.f32 %v7521_v48, %v7142_v26 }
 0x8ae   : > { %v13131_v62 = vpop.f32.mrf.mxu3  ;;  %v13135_v47 = vpop.f32.mrf.mxu1  ;;  %v6566_v6 = vadd.f32 %v13129_v58, %v13984_v59  ;;  %v6471_v60 = vadd.f32 %v13133_v44, %v13985_v29  ;;  %v7128_v44 = vmul.f32 %v12572_v50, %v6775_v5 }
 0x8af   : > { %v6615_v18 = vadd.f32 %v13131_v62, %v13984_v59  ;;  %v6520_v58 = vadd.f32 %v13135_v47, %v13985_v29 }
 0x8b0   : > { %v6790_v59 = vmax.f32 %v6566_v6, 0.0  ;;  %v6804_v2 = vmax.f32 %v6471_v60, 0.0 }
 0x8b1   : > { %v6791_v8 = vmax.f32 %v6615_v18, 0.0  ;;  %v6805_v50 = vmax.f32 %v6520_v58, 0.0 }
 0x8b2   : > { %v7143_v63 = vmul.f32 %v12584_v1, %v6790_v59  ;;  %v7157_v43 = vmul.f32 %v12596_v41, %v6804_v2 }
 0x8b3   : > { %v7144_v12 = vmul.f32 %v12584_v1, %v6791_v8  ;;  %v7158_v25 = vmul.f32 %v12596_v41, %v6805_v50 }
 0x8b4   : > { %v7543_v24 = vadd.f32 %v7542_v33, %v7143_v63 }
 0x8b5   : > { %v13143_v27 = vpop.f32.mrf.mxu2  ;;  %v13148_v7 = vpop.f32.mrf.mxu0  ;;  %v7523_v56 = vadd.f32 %v7522_v57, %v7158_v25 }
 0x8b6   : > { %v13146_v13 = vpop.f32.mrf.mxu3  ;;  %v13152_v52 = vpop.f32.mrf.mxu1  ;;  %v6569_v11 = vadd.f32 %v13143_v27, %v13985_v29  ;;  %v6473_v54 = vadd.f32 %v13148_v7, %v13987_v14  ;;  %v7500_v27 = vadd.f32 %v7499_v34, %v7125_v22  ;;  %v7563_v7 = vadd.f32 %v7562_v32, %v7128_v44 }
 0x8b7   : > { %v6618_v55 = vadd.f32 %v13146_v13, %v13985_v29  ;;  %v6522_v20 = vadd.f32 %v13152_v52, %v13987_v14 }
 0x8b8   : > { %v6806_v29 = vmax.f32 %v6569_v11, 0.0  ;;  %v6820_v21 = vmax.f32 %v6473_v54, 0.0  ;;  %v7501_v37 = vadd.f32 %v7500_v27, %v7141_v10  ;;  %v7564_v9 = vadd.f32 %v7563_v7, %v7144_v12 }
 0x8b9   : > { %v6807_v42 = vmax.f32 %v6618_v55, 0.0  ;;  %v6821_v52 = vmax.f32 %v6522_v20, 0.0 }
 0x8ba   : > { %v7159_v1 = vmul.f32 %v12596_v41, %v6806_v29  ;;  %v7173_v17 = vmul.f32 %v12608_v46, %v6820_v21 }
 0x8bb   : > { %v7174_v36 = vmul.f32 %v12608_v46, %v6821_v52 }
 0x8bd   : > { %v13166_v61 = vpop.f32.mrf.mxu2  ;;  %v6475_v38 = vpop.f32.mrf.mxu0  ;;  %v7524_v10 = vadd.f32 %v7523_v56, %v7174_v36 }
 0x8be   : > { %v13170_v53 = vpop.f32.mrf.mxu3  ;;  %v6524_v49 = vpop.f32.mrf.mxu1  ;;  %v6476_v13 = vadd.f32 %v6475_v38, %v13988_v19  ;;  %v6571_v45 = vadd.f32 %v13166_v61, %v13987_v14  ;;  %v7502_v61 = vadd.f32 %v7501_v37, %v7157_v43 }
 0x8bf   : > { %v6525_v23 = vadd.f32 %v6524_v49, %v13988_v19  ;;  %v7160_v49 = vmul.f32 %v12596_v41, %v6807_v42  ;;  %v6620_v59 = vadd.f32 %v13170_v53, %v13987_v14 }
 0x8c0   : > { %v6836_v34 = vmax.f32 %v6476_v13, 0.0  ;;  %v6822_v39 = vmax.f32 %v6571_v45, 0.0  ;;  %v7503_v54 = vadd.f32 %v7502_v61, %v7173_v17 }
 0x8c1   : > { %v6837_v31 = vmax.f32 %v6525_v23, 0.0  ;;  %v7565_v55 = vadd.f32 %v7564_v9, %v7160_v49  ;;  %v6823_v53 = vmax.f32 %v6620_v59, 0.0 }
 0x8c2   : > { %v7189_v41 = vmul.f32 %v12620_v40, %v6836_v34  ;;  %v7175_v14 = vmul.f32 %v12608_v46, %v6822_v39 }
 0x8c3   : > { %v7190_v2 = vmul.f32 %v12620_v40, %v6837_v31  ;;  %v7176_v23 = vmul.f32 %v12608_v46, %v6823_v53 }
 0x8c4   : > { %v7504_v50 = vadd.f32 %v7503_v54, %v7189_v41 }
 0x8c5   : > { %v6573_v28 = vpop.f32.mrf.mxu2  ;;  %v6477_v15 = vpop.f32.mrf.mxu0  ;;  %v7525_v37 = vadd.f32 %v7524_v10, %v7190_v2  ;;  %v7566_v17 = vadd.f32 %v7565_v55, %v7176_v23 }
 0x8c6   : > { %v6622_v62 = vpop.f32.mrf.mxu3  ;;  %v6526_v47 = vpop.f32.mrf.mxu1  ;;  %v6478_v6 = vadd.f32 %v6477_v15, %v13990_v35  ;;  %v7544_v15 = vadd.f32 %v7543_v24, %v7159_v1  ;;  %v6574_v44 = vadd.f32 %v6573_v28, %v13988_v19 }
 0x8c7   : > { %v6527_v5 = vadd.f32 %v6526_v47, %v13990_v35  ;;  %v6623_v47 = vadd.f32 %v6622_v62, %v13988_v19 }
 0x8c8   : > { %v6852_v11 = vmax.f32 %v6478_v6, 0.0  ;;  %v6838_v33 = vmax.f32 %v6574_v44, 0.0 }
 0x8c9   : > { %v6853_v8 = vmax.f32 %v6527_v5, 0.0  ;;  %v6839_v13 = vmax.f32 %v6623_v47, 0.0 }
 0x8ca   : > { %v7205_v48 = vmul.f32 %v12632_v0, %v6852_v11  ;;  %v7191_v6 = vmul.f32 %v12620_v40, %v6838_v33 }
 0x8cb   : > { %v7206_v63 = vmul.f32 %v12632_v0, %v6853_v8 }
 0x8cc   : > { %v7505_v57 = vadd.f32 %v7504_v50, %v7205_v48 }
 0x8cd   : > { %v6575_v38 = vpop.f32.mrf.mxu2  ;;  %v6480_v4 = vpop.f32.mrf.mxu0 }
 0x8ce   : > { %v6624_v18 = vpop.f32.mrf.mxu3  ;;  %v6481_v60 = vadd.f32 %v6480_v4, %v12430_v3  ;;  %v6529_v22 = vpop.f32.mrf.mxu1  ;;  %v6576_v20 = vadd.f32 %v6575_v38, %v13990_v35  ;;  %v7526_v38 = vadd.f32 %v7525_v37, %v7206_v63  ;;  %v7545_v4 = vadd.f32 %v7544_v15, %v7175_v14 }
 0x8cf   : > { %v6530_v58 = vadd.f32 %v6529_v22, %v12430_v3  ;;  %v6625_v26 = vadd.f32 %v6624_v18, %v13990_v35 }
 0x8d0   : > { %v6868_v32 = vmax.f32 %v6481_v60, 0.0  ;;  %v6854_v43 = vmax.f32 %v6576_v20, 0.0  ;;  %v7546_v36 = vadd.f32 %v7545_v4, %v7191_v6 }
 0x8d1   : > { %v6869_v27 = vmax.f32 %v6530_v58, 0.0  ;;  %v6855_v25 = vmax.f32 %v6625_v26, 0.0 }
 0x8d2   : > { %v7221_v7 = vmul.f32 %v12644_v30, %v6868_v32  ;;  %v7207_v9 = vmul.f32 %v12632_v0, %v6854_v43 }
 0x8d3   : > { %v7222_v35 = vmul.f32 %v12644_v30, %v6869_v27  ;;  %v7208_v60 = vmul.f32 %v12632_v0, %v6855_v25 }
 0x8d4   : > { %v7506_v34 = vadd.f32 %v7505_v57, %v7221_v7  ;;  %v7547_v41 = vadd.f32 %v7546_v36, %v7207_v9  ;;  %v14019_v7 = vld [vmem:[#allocation24_spill] sm:$0xff] }
 0x8d5   : > { %v6578_v28 = vpop.f32.mrf.mxu2  ;;  %v6482_v29 = vpop.f32.mrf.mxu0  ;;  %v7527_v49 = vadd.f32 %v7526_v38, %v7222_v35 }
 0x8d6   : > { %v6579_v19 = vadd.f32 %v6578_v28, %v12430_v3  ;;  %v6627_v62 = vpop.f32.mrf.mxu3  ;;  %v6483_v42 = vadd.f32 %v6482_v29, %v12449_v51  ;;  %v6531_v21 = vpop.f32.mrf.mxu1 }
 0x8d7   : > { %v6628_v12 = vadd.f32 %v6627_v62, %v12430_v3  ;;  %v6532_v52 = vadd.f32 %v6531_v21, %v12449_v51  ;;  %v7192_v3 = vmul.f32 %v12620_v40, %v6839_v13 }
 0x8d8   : > { %v6884_v45 = vmax.f32 %v6483_v42, 0.0  ;;  %v6870_v24 = vmax.f32 %v6579_v19, 0.0 }
 0x8d9   : > { %v6885_v1 = vmax.f32 %v6532_v52, 0.0  ;;  %v6871_v5 = vmax.f32 %v6628_v12, 0.0  ;;  %v7567_v39 = vadd.f32 %v7566_v17, %v7192_v3 }
 0x8da   : > { %v7237_v18 = vmul.f32 %v12656_v16, %v6884_v45  ;;  %v7223_v31 = vmul.f32 %v12644_v30, %v6870_v24 }
 0x8db   : > { %v7238_v46 = vmul.f32 %v12656_v16, %v6885_v1  ;;  %v7224_v59 = vmul.f32 %v12644_v30, %v6871_v5  ;;  %v7568_v55 = vadd.f32 %v7567_v39, %v7208_v60  ;;  %v14020_v5 = vld [vmem:[#allocation23_spill] sm:$0xff] }
 0x8dc   : > { %v7507_v22 = vadd.f32 %v7506_v34, %v7237_v18  ;;  %v7548_v47 = vadd.f32 %v7547_v41, %v7223_v31 }
 0x8dd   : > { %v6580_v61 = vpop.f32.mrf.mxu2  ;;  %v7528_v58 = vadd.f32 %v7527_v49, %v7238_v46  ;;  %v7569_v2 = vadd.f32 %v7568_v55, %v7224_v59 }
 0x8de   : > { %v6581_v40 = vadd.f32 %v6580_v61, %v12449_v51  ;;  %v6629_v56 = vpop.f32.mrf.mxu3  ;;  %v7508_v11 = vrot.slane %v7507_v22, 4 }
 0x8df   : > { %v6630_v15 = vadd.f32 %v6629_v56, %v12449_v51  ;;  %v7529_v44 = vrot.slane %v7528_v58, 4 }
 0x8e0   : > { %v6886_v8 = vmax.f32 %v6581_v40, 0.0  ;;  %v7509_v0 = vadd.f32 %v7508_v11, %v7507_v22 }
 0x8e1   : > { %v6887_v54 = vmax.f32 %v6630_v15, 0.0  ;;  %v7530_v32 = vadd.f32 %v7529_v44, %v7528_v58 }
 0x8e2   : > { %v7239_v10 = vmul.f32 %v12656_v16, %v6886_v8  ;;  %v7510_v20 = vrot.slane %v7509_v0, 2 }
 0x8e3   : > { %v7240_v27 = vmul.f32 %v12656_v16, %v6887_v54  ;;  %v7531_v14 = vrot.slane %v7530_v32, 2 }
 0x8e4   : > { %v7549_v53 = vadd.f32 %v7548_v47, %v7239_v10  ;;  %v7511_v30 = vadd.f32 %v7510_v20, %v7509_v0 }
 0x8e5   : > { %v7570_v48 = vadd.f32 %v7569_v2, %v7240_v27  ;;  %v7532_v26 = vadd.f32 %v7531_v14, %v7530_v32 }
 0x8e6   : > { %v7550_v51 = vrot.slane %v7549_v53, 4  ;;  %v7512_v28 = vrot.slane %v7511_v30, 1 }
 0x8e7   : > { %v7571_v50 = vrot.slane %v7570_v48, 4  ;;  %v7533_v33 = vrot.slane %v7532_v26, 1 }
 0x8e8   : > { %v7551_v63 = vadd.f32 %v7550_v51, %v7549_v53  ;;  %v7513_v19 = vadd.f32 %v7512_v28, %v7511_v30 }
 0x8e9   : > { %v7572_v62 = vadd.f32 %v7571_v50, %v7570_v48  ;;  %v7534_v29 = vadd.f32 %v7533_v33, %v7532_v26 }
 0x8ea   : > { %v7552_v13 = vrot.slane %v7551_v63, 2  ;;  %v7595_v12 = vadd.f32 %v14019_v7, %v7513_v19 }
 0x8eb   : > { %v7573_v42 = vrot.slane %v7572_v62, 2  ;;  %v7596_v16 = vadd.f32 %v14019_v7, %v7534_v29 }
 0x8ec   : > { %v7553_v21 = vadd.f32 %v7552_v13, %v7551_v63  ;;  %v7625_v37 = vrot.slane %v7595_v12, 4 }
 0x8ed   : > { %v7574_v43 = vadd.f32 %v7573_v42, %v7572_v62  ;;  %v7626_v35 = vrot.slane %v7596_v16, 3 }
 0x8ee   : > { %v7554_v52 = vrot.slane %v7553_v21, 1 }
 0x8ef   : > { %v7575_v23 = vrot.slane %v7574_v43, 1  ;;  %v7646_v25 = vsel %vm7635_vm4, %v7625_v37, %v7626_v35 }
 0x8f0   : > { %v7555_v57 = vadd.f32 %v7554_v52, %v7553_v21 }
 0x8f1   : > { %v7576_v45 = vadd.f32 %v7575_v23, %v7574_v43 }
 0x8f2   : > { %v7597_v6 = vadd.f32 %v14019_v7, %v7555_v57 }
 0x8f3   : > { %v7598_v38 = vadd.f32 %v14019_v7, %v7576_v45 }
 0x8f4   : > { %v7627_v24 = vrot.slane %v7597_v6, 2 }
 0x8f5   : > { %v7628_v1 = vrot.slane %v7598_v38, 1 }
 0x8f7   : > { %v7647_v3 = vsel %vm7637_vm5, %v7627_v24, %v7628_v1 }
 0x8f8   : > { %v7648_v34 = vsel %vm7639_vm6, %v7646_v25, %v7647_v3 }
 0x8f9   : > { %v7649_v18 = vsel %vm7641_vm7, %v14020_v5, %v7648_v34 }
 0x8fa   : > { %7653 = vst [vmem:[%s12945_s26 + $0x8] sm:$0xff] %v7649_v18 }
 0x8fb   : > { %8827 = shalt.err (!%p8824_p8)
}
 0x8fc   : > { %8686 = dma.vmem_to_hbm [thread:$0]  (%p8973_p5), %s7668_s15, 256, %s7670_s16, %s7655_s10  }
 0x8fd PF: > { %p8698_p9 = scmp.ge.s32.totalorder %s8866_s22, 2  ;;  %s7681_s23 = sand.u32 1, %s8854_s19  }
 0x8fe   : > { %s7682_s26 = scalar_lea.sflag [#allocation5], %s7681_s23 }
 0x8ff   : > { %p8693_p10 = pnand %p8698_p9, %p8977_p6 }
 0x901   : > { %p8694_p11 = pneg %p8693_p10 }
 0x903   : > { %8849 = dma.done.wait (%p8694_p11), %s7682_s26, 256  }
 0x904   : > { %8851 = vsyncadd (%p8694_p11), %s7682_s26, 4294967040  ;;  %p24_p12 = scmp.ge.s32.totalorder %s8960_s24, 10   ;;  %s14021_s19 = smov %s8858_s20 }
 0x905   : > { %s14022_s20 = smov %s8862_s21  ;;  %s14023_s21 = smov %s8971_s27 }
 0x906   : > { %s14024_s22 = smov %s8960_s24  ;;  %26 = sbr.rel (!%p24_p12) target bundleno = 7 (0x7), region = 104 }
 0x90b   :  { %7688 = vsyncpa [#allocation4], 1 }
 0x90c   :  { %7690 = vsyncpa [#allocation4 + $0x1], 1 }
 0x90d   :  { %7691 = vsyncpa [#allocation5], 1 }
 0x90e   :  { %7693 = vsyncpa [#allocation5 + $0x1], 1 }

</bundles_post_ra>
